<compile_context>
chip_gen: v7x
topology: tpu7x:2x2x1
jax: 0.10.0
libtpu: 0.0.40
codegen_flags: <defaults>
</compile_context>

<pallas_src>
import functools

import jax
import jax.numpy as jnp
from jax import lax
from jax.experimental import pallas as pl
from jax.experimental.pallas import tpu as pltpu


# ----------------------------------------------------------------------------
# Fused kernel: 3-layer LSTM recurrence (wavefront) + final Linear + ReLU
# ----------------------------------------------------------------------------
def _speaker_encoder_kernel(
    x_ref,                                   # (Tc, Bt, F) time-major input chunk
    wih0_ref, whh0_ref, b0_ref,              # layer 0: (F,4H), (H,4H), (1,4H)
    wih1_ref, whh1_ref, b1_ref,              # layer 1: (H,4H), (H,4H), (1,4H)
    wih2_ref, whh2_ref, b2_ref,              # layer 2: (H,4H), (H,4H), (1,4H)
    wlin_ref, blin_ref,                      # head:    (H,Ep), (1,Ep)
    out_ref,                                 # (Bt, Ep) written on last chunk only
    ih0_scr,                                 # (Tc, Bt, 4H) f32 hoisted layer-0 proj
    h0_scr, c0_scr, h1_scr, c1_scr, h2_scr, c2_scr,   # (Bt, H) f32 carries
    *, seq_len, unroll,
):
    chunk = pl.program_id(1)
    n_chunks = pl.num_programs(1)
    Tc, Bt, F = x_ref.shape
    H = h0_scr.shape[-1]
    wdt = whh0_ref.dtype                     # matmul operand dtype (f32 or bf16)

    # Fresh carries at the start of every batch tile's chunk sequence.
    @pl.when(chunk == 0)
    def _init():
        for s in (h0_scr, c0_scr, h1_scr, c1_scr, h2_scr, c2_scr):
            s[...] = jnp.zeros_like(s)

    # Resident weights: load once per grid step, reuse across the whole chunk.
    whh0 = whh0_ref[...]
    wih1 = wih1_ref[...]
    whh1 = whh1_ref[...]
    b1 = b1_ref[...]
    wih2 = wih2_ref[...]
    whh2 = whh2_ref[...]
    b2 = b2_ref[...]

    # Hoisted layer-0 input projection for the whole chunk: one MXU matmul,
    # bias folded in, result parked in VMEM scratch so the per-step read is a
    # leading-axis (Bt, 4H) tile (no mid-tensor slices on the critical path).
    x2d = x_ref[...].reshape(Tc * Bt, F)     # Bt % 8 == 0 -> layout-preserving
    ih0_scr[...] = (
        jnp.dot(x2d, wih0_ref[...], preferred_element_type=jnp.float32)
        + b0_ref[...]
    ).reshape(Tc, Bt, 4 * H)

    def mm(a, w):
        # MXU matmul: operands in the weight dtype, f32 accumulation.
        return jnp.dot(a.astype(wdt), w, preferred_element_type=jnp.float32)

    def cell(gates, c_prev):
        # Gate order [i, f, o, g]: one sigmoid over 3H contiguous lanes + one
        # tanh over the g slice; cell math stays f32.
        sig = jax.nn.sigmoid(gates[:, : 3 * H])
        i_g = sig[:, 0 * H:1 * H]
        f_g = sig[:, 1 * H:2 * H]
        o_g = sig[:, 2 * H:3 * H]
        g_g = jnp.tanh(gates[:, 3 * H:])
        c_new = f_g * c_prev + i_g * g_g
        return o_g * jnp.tanh(c_new), c_new

    def body(j, carry):
        h0, c0, h1, c1, h2, c2 = carry
        # Wavefront: all three layer updates read only the *incoming* carry
        # (layer0 @ t=k, layer1 @ t=k-1, layer2 @ t=k-2), so they are mutually
        # independent within the iteration and MXU/EUP latencies overlap.
        nh0, nc0 = cell(ih0_scr[j] + mm(h0, whh0), c0)
        nh1, nc1 = cell(mm(h0, wih1) + mm(h1, whh1) + b1, c1)
        nh2, nc2 = cell(mm(h1, wih2) + mm(h2, whh2) + b2, c2)
        # Warm-up masking: layer1 becomes live at global step k>=1, layer2 at
        # k>=2 (cheap scalar-pred vselects; only matter on the first chunk).
        k = chunk * Tc + j
        act1 = k >= 1
        act2 = k >= 2
        h1 = jnp.where(act1, nh1, h1)
        c1 = jnp.where(act1, nc1, c1)
        h2 = jnp.where(act2, nh2, h2)
        c2 = jnp.where(act2, nc2, c2)
        return (nh0, nc0, h1, c1, h2, c2)

    carry = (h0_scr[...], c0_scr[...], h1_scr[...],
             c1_scr[...], h2_scr[...], c2_scr[...])
    carry = lax.fori_loop(0, Tc, body, carry, unroll=unroll)
    h0, c0, h1, c1, h2, c2 = carry

    # Persist carries for the next chunk of this batch tile.
    h0_scr[...] = h0
    c0_scr[...] = c0
    h1_scr[...] = h1
    c1_scr[...] = c1
    h2_scr[...] = h2
    c2_scr[...] = c2

    # Last chunk: drain the two-step wavefront lag, then Linear + ReLU.
    @pl.when(chunk == n_chunks - 1)
    def _drain_and_head():
        # drain step k = T: layer1 -> h1[T-1], layer2 -> h2[T-2]
        nh1, nc1 = cell(mm(h0, wih1) + mm(h1, whh1) + b1, c1)
        if seq_len >= 2:
            nh2, nc2 = cell(mm(h1, wih2) + mm(h2, whh2) + b2, c2)
        else:
            nh2, nc2 = h2, c2
        # drain step k = T+1: layer2 -> h2[T-1]
        h2_last, _ = cell(mm(nh1, wih2) + mm(nh2, whh2) + b2, nc2)
        y = mm(h2_last, wlin_ref[...]) + blin_ref[...]
        out_ref[...] = jnp.maximum(y, 0.0).astype(out_ref.dtype)


# ----------------------------------------------------------------------------
# Wrapper helpers
# ----------------------------------------------------------------------------
def _round_up(x, m):
    return ((x + m - 1) // m) * m


def _pick_time_chunk(T, Bt, F, H, x_itemsize):
    """VMEM-budgeted default chunk: per chunk we hold the (Tc,Bt,4H) f32 ih0
    scratch plus the double-buffered (Tc,Bt,F) input block.  ~8 MiB budget is
    safe on v5e/v6e and on v7x's 64 MiB VMEM; for long sequences aim for >=4
    chunks so chunk c+1's input DMA hides behind chunk c's recurrence."""
    per_step = Bt * (4 * H * 4 + 2 * F * x_itemsize)
    max_tc = max(1, (8 << 20) // per_step)
    if T <= min(max_tc, 64):
        return T
    target = max(1, min(max_tc, (T + 3) // 4))
    best = 1
    for d in range(1, target + 1):
        if T % d == 0:
            best = d
    return best


def _vmem_limit_bytes(Tc, Bt, F, H, E_pad, w_itemsize, single_buffer_weights):
    wbuf = 1 if single_buffer_weights else 2
    weights = (F * 4 * H + 5 * H * 4 * H + H * E_pad) * w_itemsize
    biases = (3 * 4 * H + E_pad) * 4
    x_blocks = 2 * Tc * Bt * F * w_itemsize
    out_blocks = 2 * Bt * E_pad * 4
    scratch = Tc * Bt * 4 * H * 4 + 6 * Bt * H * 4
    total = wbuf * (weights + biases) + x_blocks + out_blocks + scratch
    return int(min(max(int(total * 1.5) + (2 << 20), 32 << 20), 64 << 20))


# ----------------------------------------------------------------------------
# Forward wrapper
# ----------------------------------------------------------------------------
@functools.partial(
    jax.jit,
    static_argnames=("embedding_size", "time_chunk", "batch_tile",
                     "single_buffer_weights"),
)
def speaker_encoder_forward(mel, kparams, *, embedding_size, time_chunk=None,
                            batch_tile=None, single_buffer_weights=True):
    """mel: (B, T, input_size) float32 (batch_first, like PyTorch).
    Returns (B, embedding_size) float32."""
    B, T, F = mel.shape
    layers = kparams["lstm"]
    if len(layers) != 3:
        raise ValueError("fused kernel is specialized for num_layers=3")
    l0, l1, l2 = layers
    H = l0["w_hh_t"].shape[0]
    E_pad = kparams["lin_w_t"].shape[1]
    wdt = l0["w_hh_t"].dtype
    w_itemsize = jnp.dtype(wdt).itemsize

    # --- batch padding / tiling --------------------------------------------
    B_pad = _round_up(max(B, 8), 8)
    if batch_tile is None:
        batch_tile = B_pad
        # Large batches: split into 2 tiles so the "parallel" grid axis can be
        # sharded across v7x's two TensorCores (harmless elsewhere).
        if B_pad >= 256 and (B_pad // 2) % 8 == 0:
            batch_tile = B_pad // 2
    if B_pad % batch_tile or batch_tile % 8:
        raise ValueError("batch_tile must be a multiple of 8 dividing padded B")
    n_btiles = B_pad // batch_tile

    # --- time chunking -------------------------------------------------------
    if time_chunk is None:
        Tc = _pick_time_chunk(T, batch_tile, F, H, w_itemsize)
    else:
        Tc = int(time_chunk)
    if T % Tc:
        raise ValueError("time_chunk must divide the sequence length")
    n_chunks = T // Tc

    # --- input prep: cast, pad batch, go time-major (one HBM transpose, off
    # the recurrence path; makes every per-step read a leading-axis tile). ----
    x = mel.astype(wdt)
    if B_pad != B:
        x = jnp.pad(x, ((0, B_pad - B), (0, 0), (0, 0)))
    x = jnp.transpose(x, (1, 0, 2))                      # (T, B_pad, F)

    def wspec(shape):
        # Constant-index resident weights: single-buffer them (halves resident
        # weight VMEM; most important on v7x's 64 MiB).
        if single_buffer_weights:
            return pl.BlockSpec(shape, lambda b, c: (0, 0),
                                pipeline_mode=pl.Buffered(1))
        return pl.BlockSpec(shape, lambda b, c: (0, 0))

    in_specs = [
        pl.BlockSpec((Tc, batch_tile, F), lambda b, c: (c, b, 0)),
        wspec((F, 4 * H)), wspec((H, 4 * H)), wspec((1, 4 * H)),
        wspec((H, 4 * H)), wspec((H, 4 * H)), wspec((1, 4 * H)),
        wspec((H, 4 * H)), wspec((H, 4 * H)), wspec((1, 4 * H)),
        wspec((H, E_pad)), wspec((1, E_pad)),
    ]
    out_spec = pl.BlockSpec((batch_tile, E_pad), lambda b, c: (b, 0))

    scratch_shapes = (
        [pltpu.VMEM((Tc, batch_tile, 4 * H), jnp.float32)]
        + [pltpu.VMEM((batch_tile, H), jnp.float32) for _ in range(6)]
    )

    kernel = functools.partial(
        _speaker_encoder_kernel, seq_len=T, unroll=int(min(Tc, 8)))

    out = pl.pallas_call(
        kernel,
        out_shape=jax.ShapeDtypeStruct((B_pad, E_pad), jnp.float32),
        grid_spec=pltpu.PrefetchScalarGridSpec(
            num_scalar_prefetch=0,
            grid=(n_btiles, n_chunks),          # chunk axis innermost
            in_specs=in_specs,
            out_specs=out_spec,
            scratch_shapes=scratch_shapes,
        ),
        compiler_params=pltpu.CompilerParams(
            dimension_semantics=("parallel", "arbitrary"),
            vmem_limit_bytes=_vmem_limit_bytes(
                Tc, batch_tile, F, H, E_pad, w_itemsize, single_buffer_weights),
        ),
    )(
        x,
        l0["w_ih_t"], l0["w_hh_t"], l0["bias"],
        l1["w_ih_t"], l1["w_hh_t"], l1["bias"],
        l2["w_ih_t"], l2["w_hh_t"], l2["bias"],
        kparams["lin_w_t"], kparams["lin_b"],
    )
    return out[:B, :embedding_size]


# ----------------------------------------------------------------------------
# Param prep: PyTorch-layout params -> kernel layout
# ----------------------------------------------------------------------------
def _regate(a, H):
    # PyTorch gate order [i, f, g, o] -> kernel order [i, f, o, g] along axis 0.
    i, f, g, o = (a[k * H:(k + 1) * H] for k in range(4))
    return jnp.concatenate([i, f, o, g], axis=0)


def prepare_params(params, *, weight_dtype=jnp.float32, lane_pad=128):
    """Transpose / permute / pad the PyTorch-style params for the kernel.
    weight_dtype=jnp.bfloat16 enables the bf16 MXU path on v6e/v7x (carries,
    biases and cell math stay f32 inside the kernel)."""
    H = params["lstm"][0]["w_hh"].shape[1]
    kp = {"lstm": []}
    for layer in params["lstm"]:
        kp["lstm"].append({
            "w_ih_t": _regate(layer["w_ih"], H).T.astype(weight_dtype),
            "w_hh_t": _regate(layer["w_hh"], H).T.astype(weight_dtype),
            "bias": _regate(layer["b_ih"] + layer["b_hh"], H)[None, :]
                    .astype(jnp.float32),
        })
    E = params["lin_w"].shape[0]
    E_pad = _round_up(E, lane_pad)           # lane-dense output store
    w_lin = jnp.pad(params["lin_w"].T, ((0, 0), (0, E_pad - E)))
    b_lin = jnp.pad(params["lin_b"], (0, E_pad - E))
    kp["lin_w_t"] = w_lin.astype(weight_dtype)
    kp["lin_b"] = b_lin[None, :].astype(jnp.float32)
    return kp


# ----------------------------------------------------------------------------
# Pure-JAX reference (PyTorch gate order, HIGHEST-precision matmuls)
# ----------------------------------------------------------------------------
def reference_forward(mel, params):
    hp = lax.Precision.HIGHEST
    x = jnp.transpose(mel, (1, 0, 2))                    # (T, B, F)
    for layer in params["lstm"]:
        w_ih, w_hh = layer["w_ih"], layer["w_hh"]
        bias = layer["b_ih"] + layer["b_hh"]
        H = w_hh.shape[1]
        B = x.shape[1]

        def step(carry, xt, w_ih=w_ih, w_hh=w_hh, bias=bias, H=H):
            h, c = carry
            gates = (jnp.dot(xt, w_ih.T, precision=hp)
                     + jnp.dot(h, w_hh.T, precision=hp) + bias)
            i = jax.nn.sigmoid(gates[:, 0 * H:1 * H])
            f = jax.nn.sigmoid(gates[:, 1 * H:2 * H])
            g = jnp.tanh(gates[:, 2 * H:3 * H])
            o = jax.nn.sigmoid(gates[:, 3 * H:4 * H])
            c = f * c + i * g
            h = o * jnp.tanh(c)
            return (h, c), h

        init = (jnp.zeros((B, H), jnp.float32), jnp.zeros((B, H), jnp.float32))
        _, x = lax.scan(step, init, x)
    h_last = x[-1]
    y = jnp.dot(h_last, params["lin_w"].T, precision=hp) + params["lin_b"]
    return jnp.maximum(y, 0.0)


# ----------------------------------------------------------------------------
# Synthetic PyTorch-style param init (mirrors nn.LSTM / nn.Linear shapes)
# ----------------------------------------------------------------------------
def init_params(key, input_size, hidden_size, embedding_size, num_layers):
    params = {"lstm": []}
    s = 1.0 / jnp.sqrt(jnp.float32(hidden_size))
    for l in range(num_layers):
        in_dim = input_size if l == 0 else hidden_size
        key, k1, k2, k3, k4 = jax.random.split(key, 5)
        params["lstm"].append({
            "w_ih": jax.random.uniform(k1, (4 * hidden_size, in_dim),
                                       jnp.float32, -s, s),
            "w_hh": jax.random.uniform(k2, (4 * hidden_size, hidden_size),
                                       jnp.float32, -s, s),
            "b_ih": jax.random.uniform(k3, (4 * hidden_size,), jnp.float32, -s, s),
            "b_hh": jax.random.uniform(k4, (4 * hidden_size,), jnp.float32, -s, s),
        })
    key, k1, k2 = jax.random.split(key, 3)
    params["lin_w"] = jax.random.uniform(k1, (embedding_size, hidden_size),
                                         jnp.float32, -s, s)
    params["lin_b"] = jax.random.uniform(k2, (embedding_size,), jnp.float32, -s, s)
    return params


if __name__ == "__main__":
    # Small demo shapes consistent with the module's forward (mel: B x T x F).
    B, T = 2, 8
    input_size, hidden_size, embedding_size, num_layers = 16, 32, 16, 3

    key = jax.random.PRNGKey(0)
    key, k_mel = jax.random.split(key)
    mel = jax.random.normal(k_mel, (B, T, input_size), jnp.float32)
    params = init_params(key, input_size, hidden_size, embedding_size, num_layers)

    # f32 weights for the parity check; pass weight_dtype=jnp.bfloat16 for the
    # bf16-native MXU path on v6e/v7x.
    kparams = prepare_params(params, weight_dtype=jnp.float32)

    try:
        out = jax.block_until_ready(
            speaker_encoder_forward(mel, kparams, embedding_size=embedding_size))
    except Exception:
        # Fallback if this JAX build rejects single-buffered (Buffered(1)) specs.
        out = jax.block_until_ready(
            speaker_encoder_forward(mel, kparams, embedding_size=embedding_size,
                                    single_buffer_weights=False))

    ref = reference_forward(mel, params)
    assert out.shape == (B, embedding_size)
    # Kernel matmuls run at the MXU's default precision while the reference
    # uses Precision.HIGHEST; tolerance covers that bf16-class rounding gap.
    assert jnp.allclose(out, ref, rtol=1e-2, atol=1e-3), \
        "Pallas output mismatch vs reference"
    print("KERNEL_OK")
</pallas_src>

<mosaic_0001>
module attributes {stable_mosaic.version = 11 : i64} {
  func.func @_speaker_encoder_kernel(%arg0: i32, %arg1: i32, %arg2: memref<8x8x16xf32, #tpu.memory_space<vmem>>, %arg3: memref<16x128xf32, #tpu.memory_space<vmem>>, %arg4: memref<32x128xf32, #tpu.memory_space<vmem>>, %arg5: memref<1x128xf32, #tpu.memory_space<vmem>>, %arg6: memref<32x128xf32, #tpu.memory_space<vmem>>, %arg7: memref<32x128xf32, #tpu.memory_space<vmem>>, %arg8: memref<1x128xf32, #tpu.memory_space<vmem>>, %arg9: memref<32x128xf32, #tpu.memory_space<vmem>>, %arg10: memref<32x128xf32, #tpu.memory_space<vmem>>, %arg11: memref<1x128xf32, #tpu.memory_space<vmem>>, %arg12: memref<32x128xf32, #tpu.memory_space<vmem>>, %arg13: memref<1x128xf32, #tpu.memory_space<vmem>>, %arg14: memref<8x128xf32, #tpu.memory_space<vmem>>, %arg15: memref<8x8x128xf32, #tpu.memory_space<vmem>>, %arg16: memref<8x32xf32, #tpu.memory_space<vmem>>, %arg17: memref<8x32xf32, #tpu.memory_space<vmem>>, %arg18: memref<8x32xf32, #tpu.memory_space<vmem>>, %arg19: memref<8x32xf32, #tpu.memory_space<vmem>>, %arg20: memref<8x32xf32, #tpu.memory_space<vmem>>, %arg21: memref<8x32xf32, #tpu.memory_space<vmem>>) attributes {dimension_semantics = [#tpu.dimension_semantics<parallel>, #tpu.dimension_semantics<arbitrary>], iteration_bounds = array<i64: 1, 1>, scalar_prefetch = 0 : i64, scratch_operands = 7 : i64, tpu.core_type = #tpu.core_type<tc>, window_params = [{transform_indices = @transform_0, window_bounds = array<i64: 8, 8, 16>}, {pipeline_mode = #tpu.pipeline_mode<synchronous>, transform_indices = @transform_1, window_bounds = array<i64: 16, 128>}, {pipeline_mode = #tpu.pipeline_mode<synchronous>, transform_indices = @transform_2, window_bounds = array<i64: 32, 128>}, {pipeline_mode = #tpu.pipeline_mode<synchronous>, transform_indices = @transform_3, window_bounds = array<i64: 1, 128>}, {pipeline_mode = #tpu.pipeline_mode<synchronous>, transform_indices = @transform_4, window_bounds = array<i64: 32, 128>}, {pipeline_mode = #tpu.pipeline_mode<synchronous>, transform_indices = @transform_5, window_bounds = array<i64: 32, 128>}, {pipeline_mode = #tpu.pipeline_mode<synchronous>, transform_indices = @transform_6, window_bounds = array<i64: 1, 128>}, {pipeline_mode = #tpu.pipeline_mode<synchronous>, transform_indices = @transform_7, window_bounds = array<i64: 32, 128>}, {pipeline_mode = #tpu.pipeline_mode<synchronous>, transform_indices = @transform_8, window_bounds = array<i64: 32, 128>}, {pipeline_mode = #tpu.pipeline_mode<synchronous>, transform_indices = @transform_9, window_bounds = array<i64: 1, 128>}, {pipeline_mode = #tpu.pipeline_mode<synchronous>, transform_indices = @transform_10, window_bounds = array<i64: 32, 128>}, {pipeline_mode = #tpu.pipeline_mode<synchronous>, transform_indices = @transform_11, window_bounds = array<i64: 1, 128>}, {transform_indices = @transform_12, window_bounds = array<i64: 8, 128>}]} {
    %c0_i32 = arith.constant 0 : i32
    %0 = arith.cmpi eq, %arg1, %c0_i32 : i32
    %1 = arith.extui %0 : i1 to i32
    %c0_i32_0 = arith.constant 0 : i32
    %2 = arith.cmpi ne, %1, %c0_i32_0 : i32
    scf.if %2 {
      %cst_155 = arith.constant 0.000000e+00 : f32
      %602 = vector.broadcast %cst_155 : f32 to vector<8x32xf32>
      %c0_156 = arith.constant 0 : index
      %c0_157 = arith.constant 0 : index
      %603 = vector.load %arg16[%c0_156, %c0_157] : memref<8x32xf32, #tpu.memory_space<vmem>>, vector<8x32xf32>
      tpu.vector_store %arg16[%c0_156, %c0_157], %602 {strides = array<i32>} : memref<8x32xf32, #tpu.memory_space<vmem>>, vector<8x32xf32>,
      %cst_158 = arith.constant 0.000000e+00 : f32
      %604 = vector.broadcast %cst_158 : f32 to vector<8x32xf32>
      %c0_159 = arith.constant 0 : index
      %c0_160 = arith.constant 0 : index
      %605 = vector.load %arg17[%c0_159, %c0_160] : memref<8x32xf32, #tpu.memory_space<vmem>>, vector<8x32xf32>
      tpu.vector_store %arg17[%c0_159, %c0_160], %604 {strides = array<i32>} : memref<8x32xf32, #tpu.memory_space<vmem>>, vector<8x32xf32>,
      %cst_161 = arith.constant 0.000000e+00 : f32
      %606 = vector.broadcast %cst_161 : f32 to vector<8x32xf32>
      %c0_162 = arith.constant 0 : index
      %c0_163 = arith.constant 0 : index
      %607 = vector.load %arg18[%c0_162, %c0_163] : memref<8x32xf32, #tpu.memory_space<vmem>>, vector<8x32xf32>
      tpu.vector_store %arg18[%c0_162, %c0_163], %606 {strides = array<i32>} : memref<8x32xf32, #tpu.memory_space<vmem>>, vector<8x32xf32>,
      %cst_164 = arith.constant 0.000000e+00 : f32
      %608 = vector.broadcast %cst_164 : f32 to vector<8x32xf32>
      %c0_165 = arith.constant 0 : index
      %c0_166 = arith.constant 0 : index
      %609 = vector.load %arg19[%c0_165, %c0_166] : memref<8x32xf32, #tpu.memory_space<vmem>>, vector<8x32xf32>
      tpu.vector_store %arg19[%c0_165, %c0_166], %608 {strides = array<i32>} : memref<8x32xf32, #tpu.memory_space<vmem>>, vector<8x32xf32>,
      %cst_167 = arith.constant 0.000000e+00 : f32
      %610 = vector.broadcast %cst_167 : f32 to vector<8x32xf32>
      %c0_168 = arith.constant 0 : index
      %c0_169 = arith.constant 0 : index
      %611 = vector.load %arg20[%c0_168, %c0_169] : memref<8x32xf32, #tpu.memory_space<vmem>>, vector<8x32xf32>
      tpu.vector_store %arg20[%c0_168, %c0_169], %610 {strides = array<i32>} : memref<8x32xf32, #tpu.memory_space<vmem>>, vector<8x32xf32>,
      %cst_170 = arith.constant 0.000000e+00 : f32
      %612 = vector.broadcast %cst_170 : f32 to vector<8x32xf32>
      %c0_171 = arith.constant 0 : index
      %c0_172 = arith.constant 0 : index
      %613 = vector.load %arg21[%c0_171, %c0_172] : memref<8x32xf32, #tpu.memory_space<vmem>>, vector<8x32xf32>
      tpu.vector_store %arg21[%c0_171, %c0_172], %612 {strides = array<i32>} : memref<8x32xf32, #tpu.memory_space<vmem>>, vector<8x32xf32>,
    } else {
    }
    %c0 = arith.constant 0 : index
    %c0_1 = arith.constant 0 : index
    %3 = vector.load %arg4[%c0, %c0_1] : memref<32x128xf32, #tpu.memory_space<vmem>>, vector<32x128xf32>
    %c0_2 = arith.constant 0 : index
    %c0_3 = arith.constant 0 : index
    %4 = vector.load %arg6[%c0_2, %c0_3] : memref<32x128xf32, #tpu.memory_space<vmem>>, vector<32x128xf32>
    %c0_4 = arith.constant 0 : index
    %c0_5 = arith.constant 0 : index
    %5 = vector.load %arg7[%c0_4, %c0_5] : memref<32x128xf32, #tpu.memory_space<vmem>>, vector<32x128xf32>
    %c0_6 = arith.constant 0 : index
    %c0_7 = arith.constant 0 : index
    %6 = vector.load %arg8[%c0_6, %c0_7] : memref<1x128xf32, #tpu.memory_space<vmem>>, vector<1x128xf32>
    %c0_8 = arith.constant 0 : index
    %c0_9 = arith.constant 0 : index
    %7 = vector.load %arg9[%c0_8, %c0_9] : memref<32x128xf32, #tpu.memory_space<vmem>>, vector<32x128xf32>
    %c0_10 = arith.constant 0 : index
    %c0_11 = arith.constant 0 : index
    %8 = vector.load %arg10[%c0_10, %c0_11] : memref<32x128xf32, #tpu.memory_space<vmem>>, vector<32x128xf32>
    %c0_12 = arith.constant 0 : index
    %c0_13 = arith.constant 0 : index
    %9 = vector.load %arg11[%c0_12, %c0_13] : memref<1x128xf32, #tpu.memory_space<vmem>>, vector<1x128xf32>
    %c0_14 = arith.constant 0 : index
    %c0_15 = arith.constant 0 : index
    %c0_16 = arith.constant 0 : index
    %10 = vector.load %arg2[%c0_14, %c0_15, %c0_16] : memref<8x8x16xf32, #tpu.memory_space<vmem>>, vector<8x8x16xf32>
    %11 = vector.shape_cast %10 : vector<8x8x16xf32> to vector<64x16xf32>
    %c0_17 = arith.constant 0 : index
    %c0_18 = arith.constant 0 : index
    %12 = vector.load %arg3[%c0_17, %c0_18] : memref<16x128xf32, #tpu.memory_space<vmem>>, vector<16x128xf32>
    %cst = arith.constant dense<0.000000e+00> : vector<64x128xf32>
    %13 = tpu.matmul %11, %12, %cst {dimension_numbers = #tpu.dot_dimension_numbers<[1], [0], [0], [1], [0, 0, 1, 1], [], []>} : vector<64x16xf32>, vector<16x128xf32>, vector<64x128xf32> -> vector<64x128xf32>
    %c0_19 = arith.constant 0 : index
    %c0_20 = arith.constant 0 : index
    %14 = vector.load %arg5[%c0_19, %c0_20] : memref<1x128xf32, #tpu.memory_space<vmem>>, vector<1x128xf32>
    %15 = vector.broadcast %14 : vector<1x128xf32> to vector<64x128xf32>
    %16 = arith.addf %13, %15 : vector<64x128xf32>
    %17 = vector.shape_cast %16 : vector<64x128xf32> to vector<8x8x128xf32>
    %c0_21 = arith.constant 0 : index
    %c0_22 = arith.constant 0 : index
    %c0_23 = arith.constant 0 : index
    %18 = vector.load %arg15[%c0_21, %c0_22, %c0_23] : memref<8x8x128xf32, #tpu.memory_space<vmem>>, vector<8x8x128xf32>
    tpu.vector_store %arg15[%c0_21, %c0_22, %c0_23], %17 {strides = array<i32>} : memref<8x8x128xf32, #tpu.memory_space<vmem>>, vector<8x8x128xf32>,
    %c0_24 = arith.constant 0 : index
    %c0_25 = arith.constant 0 : index
    %19 = vector.load %arg16[%c0_24, %c0_25] : memref<8x32xf32, #tpu.memory_space<vmem>>, vector<8x32xf32>
    %c0_26 = arith.constant 0 : index
    %c0_27 = arith.constant 0 : index
    %20 = vector.load %arg17[%c0_26, %c0_27] : memref<8x32xf32, #tpu.memory_space<vmem>>, vector<8x32xf32>
    %c0_28 = arith.constant 0 : index
    %c0_29 = arith.constant 0 : index
    %21 = vector.load %arg18[%c0_28, %c0_29] : memref<8x32xf32, #tpu.memory_space<vmem>>, vector<8x32xf32>
    %c0_30 = arith.constant 0 : index
    %c0_31 = arith.constant 0 : index
    %22 = vector.load %arg19[%c0_30, %c0_31] : memref<8x32xf32, #tpu.memory_space<vmem>>, vector<8x32xf32>
    %c0_32 = arith.constant 0 : index
    %c0_33 = arith.constant 0 : index
    %23 = vector.load %arg20[%c0_32, %c0_33] : memref<8x32xf32, #tpu.memory_space<vmem>>, vector<8x32xf32>
    %c0_34 = arith.constant 0 : index
    %c0_35 = arith.constant 0 : index
    %24 = vector.load %arg21[%c0_34, %c0_35] : memref<8x32xf32, #tpu.memory_space<vmem>>, vector<8x32xf32>
    %c0_i32_36 = arith.constant 0 : i32
    %25 = arith.index_cast %c0_i32_36 : i32 to index
    %c0_37 = arith.constant 0 : index
    %c0_38 = arith.constant 0 : index
    %26 = vector.load %arg15[%25, %c0_37, %c0_38] : memref<8x8x128xf32, #tpu.memory_space<vmem>>, vector<1x8x128xf32>
    %27 = vector.shape_cast %26 : vector<1x8x128xf32> to vector<8x128xf32>
    %cst_39 = arith.constant dense<0.000000e+00> : vector<8x128xf32>
    %28 = tpu.matmul %19, %3, %cst_39 {dimension_numbers = #tpu.dot_dimension_numbers<[1], [0], [0], [1], [0, 0, 1, 1], [], []>} : vector<8x32xf32>, vector<32x128xf32>, vector<8x128xf32> -> vector<8x128xf32>
    %29 = arith.addf %27, %28 : vector<8x128xf32>
    %30 = vector.extract_strided_slice %29 {offsets = [0, 0], sizes = [8, 96], strides = [1, 1]} : vector<8x128xf32> to vector<8x96xf32>
    %31 = arith.negf %30 : vector<8x96xf32>
    %32 = math.exp %31 : vector<8x96xf32>
    %cst_40 = arith.constant 1.000000e+00 : f32
    %33 = vector.broadcast %cst_40 : f32 to vector<8x96xf32>
    %34 = arith.addf %33, %32 : vector<8x96xf32>
    %35 = arith.divf %33, %34 : vector<8x96xf32>
    %36 = vector.extract_strided_slice %35 {offsets = [0, 0], sizes = [8, 32], strides = [1, 1]} : vector<8x96xf32> to vector<8x32xf32>
    %37 = vector.extract_strided_slice %35 {offsets = [0, 32], sizes = [8, 32], strides = [1, 1]} : vector<8x96xf32> to vector<8x32xf32>
    %38 = vector.extract_strided_slice %35 {offsets = [0, 64], sizes = [8, 32], strides = [1, 1]} : vector<8x96xf32> to vector<8x32xf32>
    %39 = vector.extract_strided_slice %29 {offsets = [0, 96], sizes = [8, 32], strides = [1, 1]} : vector<8x128xf32> to vector<8x32xf32>
    %40 = math.tanh %39 : vector<8x32xf32>
    %41 = arith.mulf %37, %20 : vector<8x32xf32>
    %42 = arith.mulf %36, %40 : vector<8x32xf32>
    %43 = arith.addf %41, %42 : vector<8x32xf32>
    %44 = math.tanh %43 : vector<8x32xf32>
    %45 = arith.mulf %38, %44 : vector<8x32xf32>
    %cst_41 = arith.constant dense<0.000000e+00> : vector<8x128xf32>
    %46 = tpu.matmul %19, %4, %cst_41 {dimension_numbers = #tpu.dot_dimension_numbers<[1], [0], [0], [1], [0, 0, 1, 1], [], []>} : vector<8x32xf32>, vector<32x128xf32>, vector<8x128xf32> -> vector<8x128xf32>
    %cst_42 = arith.constant dense<0.000000e+00> : vector<8x128xf32>
    %47 = tpu.matmul %21, %5, %cst_42 {dimension_numbers = #tpu.dot_dimension_numbers<[1], [0], [0], [1], [0, 0, 1, 1], [], []>} : vector<8x32xf32>, vector<32x128xf32>, vector<8x128xf32> -> vector<8x128xf32>
    %48 = arith.addf %46, %47 : vector<8x128xf32>
    %49 = vector.broadcast %6 : vector<1x128xf32> to vector<8x128xf32>
    %50 = arith.addf %48, %49 : vector<8x128xf32>
    %51 = vector.extract_strided_slice %50 {offsets = [0, 0], sizes = [8, 96], strides = [1, 1]} : vector<8x128xf32> to vector<8x96xf32>
    %52 = arith.negf %51 : vector<8x96xf32>
    %53 = math.exp %52 : vector<8x96xf32>
    %cst_43 = arith.constant 1.000000e+00 : f32
    %54 = vector.broadcast %cst_43 : f32 to vector<8x96xf32>
    %55 = arith.addf %54, %53 : vector<8x96xf32>
    %56 = arith.divf %54, %55 : vector<8x96xf32>
    %57 = vector.extract_strided_slice %56 {offsets = [0, 0], sizes = [8, 32], strides = [1, 1]} : vector<8x96xf32> to vector<8x32xf32>
    %58 = vector.extract_strided_slice %56 {offsets = [0, 32], sizes = [8, 32], strides = [1, 1]} : vector<8x96xf32> to vector<8x32xf32>
    %59 = vector.extract_strided_slice %56 {offsets = [0, 64], sizes = [8, 32], strides = [1, 1]} : vector<8x96xf32> to vector<8x32xf32>
    %60 = vector.extract_strided_slice %50 {offsets = [0, 96], sizes = [8, 32], strides = [1, 1]} : vector<8x128xf32> to vector<8x32xf32>
    %61 = math.tanh %60 : vector<8x32xf32>
    %62 = arith.mulf %58, %22 : vector<8x32xf32>
    %63 = arith.mulf %57, %61 : vector<8x32xf32>
    %64 = arith.addf %62, %63 : vector<8x32xf32>
    %65 = math.tanh %64 : vector<8x32xf32>
    %66 = arith.mulf %59, %65 : vector<8x32xf32>
    %cst_44 = arith.constant dense<0.000000e+00> : vector<8x128xf32>
    %67 = tpu.matmul %21, %7, %cst_44 {dimension_numbers = #tpu.dot_dimension_numbers<[1], [0], [0], [1], [0, 0, 1, 1], [], []>} : vector<8x32xf32>, vector<32x128xf32>, vector<8x128xf32> -> vector<8x128xf32>
    %cst_45 = arith.constant dense<0.000000e+00> : vector<8x128xf32>
    %68 = tpu.matmul %23, %8, %cst_45 {dimension_numbers = #tpu.dot_dimension_numbers<[1], [0], [0], [1], [0, 0, 1, 1], [], []>} : vector<8x32xf32>, vector<32x128xf32>, vector<8x128xf32> -> vector<8x128xf32>
    %69 = arith.addf %67, %68 : vector<8x128xf32>
    %70 = vector.broadcast %9 : vector<1x128xf32> to vector<8x128xf32>
    %71 = arith.addf %69, %70 : vector<8x128xf32>
    %72 = vector.extract_strided_slice %71 {offsets = [0, 0], sizes = [8, 96], strides = [1, 1]} : vector<8x128xf32> to vector<8x96xf32>
    %73 = arith.negf %72 : vector<8x96xf32>
    %74 = math.exp %73 : vector<8x96xf32>
    %cst_46 = arith.constant 1.000000e+00 : f32
    %75 = vector.broadcast %cst_46 : f32 to vector<8x96xf32>
    %76 = arith.addf %75, %74 : vector<8x96xf32>
    %77 = arith.divf %75, %76 : vector<8x96xf32>
    %78 = vector.extract_strided_slice %77 {offsets = [0, 0], sizes = [8, 32], strides = [1, 1]} : vector<8x96xf32> to vector<8x32xf32>
    %79 = vector.extract_strided_slice %77 {offsets = [0, 32], sizes = [8, 32], strides = [1, 1]} : vector<8x96xf32> to vector<8x32xf32>
    %80 = vector.extract_strided_slice %77 {offsets = [0, 64], sizes = [8, 32], strides = [1, 1]} : vector<8x96xf32> to vector<8x32xf32>
    %81 = vector.extract_strided_slice %71 {offsets = [0, 96], sizes = [8, 32], strides = [1, 1]} : vector<8x128xf32> to vector<8x32xf32>
    %82 = math.tanh %81 : vector<8x32xf32>
    %83 = arith.mulf %79, %24 : vector<8x32xf32>
    %84 = arith.mulf %78, %82 : vector<8x32xf32>
    %85 = arith.addf %83, %84 : vector<8x32xf32>
    %86 = math.tanh %85 : vector<8x32xf32>
    %87 = arith.mulf %80, %86 : vector<8x32xf32>
    %c8_i32 = arith.constant 8 : i32
    %88 = arith.muli %arg1, %c8_i32 : i32
    %89 = arith.addi %88, %c0_i32_36 : i32
    %c1_i32 = arith.constant 1 : i32
    %90 = arith.cmpi sge, %89, %c1_i32 : i32
    %c2_i32 = arith.constant 2 : i32
    %91 = arith.cmpi sge, %89, %c2_i32 : i32
    %92 = arith.select %90, %66, %21 : vector<8x32xf32>
    %93 = arith.select %90, %64, %22 : vector<8x32xf32>
    %94 = arith.select %91, %87, %23 : vector<8x32xf32>
    %95 = arith.select %91, %85, %24 : vector<8x32xf32>
    %c1_i32_47 = arith.constant 1 : i32
    %96 = arith.index_cast %c1_i32_47 : i32 to index
    %c0_48 = arith.constant 0 : index
    %c0_49 = arith.constant 0 : index
    %97 = vector.load %arg15[%96, %c0_48, %c0_49] : memref<8x8x128xf32, #tpu.memory_space<vmem>>, vector<1x8x128xf32>
    %98 = vector.shape_cast %97 : vector<1x8x128xf32> to vector<8x128xf32>
    %cst_50 = arith.constant dense<0.000000e+00> : vector<8x128xf32>
    %99 = tpu.matmul %45, %3, %cst_50 {dimension_numbers = #tpu.dot_dimension_numbers<[1], [0], [0], [1], [0, 0, 1, 1], [], []>} : vector<8x32xf32>, vector<32x128xf32>, vector<8x128xf32> -> vector<8x128xf32>
    %100 = arith.addf %98, %99 : vector<8x128xf32>
    %101 = vector.extract_strided_slice %100 {offsets = [0, 0], sizes = [8, 96], strides = [1, 1]} : vector<8x128xf32> to vector<8x96xf32>
    %102 = arith.negf %101 : vector<8x96xf32>
    %103 = math.exp %102 : vector<8x96xf32>
    %cst_51 = arith.constant 1.000000e+00 : f32
    %104 = vector.broadcast %cst_51 : f32 to vector<8x96xf32>
    %105 = arith.addf %104, %103 : vector<8x96xf32>
    %106 = arith.divf %104, %105 : vector<8x96xf32>
    %107 = vector.extract_strided_slice %106 {offsets = [0, 0], sizes = [8, 32], strides = [1, 1]} : vector<8x96xf32> to vector<8x32xf32>
    %108 = vector.extract_strided_slice %106 {offsets = [0, 32], sizes = [8, 32], strides = [1, 1]} : vector<8x96xf32> to vector<8x32xf32>
    %109 = vector.extract_strided_slice %106 {offsets = [0, 64], sizes = [8, 32], strides = [1, 1]} : vector<8x96xf32> to vector<8x32xf32>
    %110 = vector.extract_strided_slice %100 {offsets = [0, 96], sizes = [8, 32], strides = [1, 1]} : vector<8x128xf32> to vector<8x32xf32>
    %111 = math.tanh %110 : vector<8x32xf32>
    %112 = arith.mulf %108, %43 : vector<8x32xf32>
    %113 = arith.mulf %107, %111 : vector<8x32xf32>
    %114 = arith.addf %112, %113 : vector<8x32xf32>
    %115 = math.tanh %114 : vector<8x32xf32>
    %116 = arith.mulf %109, %115 : vector<8x32xf32>
    %cst_52 = arith.constant dense<0.000000e+00> : vector<8x128xf32>
    %117 = tpu.matmul %45, %4, %cst_52 {dimension_numbers = #tpu.dot_dimension_numbers<[1], [0], [0], [1], [0, 0, 1, 1], [], []>} : vector<8x32xf32>, vector<32x128xf32>, vector<8x128xf32> -> vector<8x128xf32>
    %cst_53 = arith.constant dense<0.000000e+00> : vector<8x128xf32>
    %118 = tpu.matmul %92, %5, %cst_53 {dimension_numbers = #tpu.dot_dimension_numbers<[1], [0], [0], [1], [0, 0, 1, 1], [], []>} : vector<8x32xf32>, vector<32x128xf32>, vector<8x128xf32> -> vector<8x128xf32>
    %119 = arith.addf %117, %118 : vector<8x128xf32>
    %120 = vector.broadcast %6 : vector<1x128xf32> to vector<8x128xf32>
    %121 = arith.addf %119, %120 : vector<8x128xf32>
    %122 = vector.extract_strided_slice %121 {offsets = [0, 0], sizes = [8, 96], strides = [1, 1]} : vector<8x128xf32> to vector<8x96xf32>
    %123 = arith.negf %122 : vector<8x96xf32>
    %124 = math.exp %123 : vector<8x96xf32>
    %cst_54 = arith.constant 1.000000e+00 : f32
    %125 = vector.broadcast %cst_54 : f32 to vector<8x96xf32>
    %126 = arith.addf %125, %124 : vector<8x96xf32>
    %127 = arith.divf %125, %126 : vector<8x96xf32>
    %128 = vector.extract_strided_slice %127 {offsets = [0, 0], sizes = [8, 32], strides = [1, 1]} : vector<8x96xf32> to vector<8x32xf32>
    %129 = vector.extract_strided_slice %127 {offsets = [0, 32], sizes = [8, 32], strides = [1, 1]} : vector<8x96xf32> to vector<8x32xf32>
    %130 = vector.extract_strided_slice %127 {offsets = [0, 64], sizes = [8, 32], strides = [1, 1]} : vector<8x96xf32> to vector<8x32xf32>
    %131 = vector.extract_strided_slice %121 {offsets = [0, 96], sizes = [8, 32], strides = [1, 1]} : vector<8x128xf32> to vector<8x32xf32>
    %132 = math.tanh %131 : vector<8x32xf32>
    %133 = arith.mulf %129, %93 : vector<8x32xf32>
    %134 = arith.mulf %128, %132 : vector<8x32xf32>
    %135 = arith.addf %133, %134 : vector<8x32xf32>
    %136 = math.tanh %135 : vector<8x32xf32>
    %137 = arith.mulf %130, %136 : vector<8x32xf32>
    %cst_55 = arith.constant dense<0.000000e+00> : vector<8x128xf32>
    %138 = tpu.matmul %92, %7, %cst_55 {dimension_numbers = #tpu.dot_dimension_numbers<[1], [0], [0], [1], [0, 0, 1, 1], [], []>} : vector<8x32xf32>, vector<32x128xf32>, vector<8x128xf32> -> vector<8x128xf32>
    %cst_56 = arith.constant dense<0.000000e+00> : vector<8x128xf32>
    %139 = tpu.matmul %94, %8, %cst_56 {dimension_numbers = #tpu.dot_dimension_numbers<[1], [0], [0], [1], [0, 0, 1, 1], [], []>} : vector<8x32xf32>, vector<32x128xf32>, vector<8x128xf32> -> vector<8x128xf32>
    %140 = arith.addf %138, %139 : vector<8x128xf32>
    %141 = vector.broadcast %9 : vector<1x128xf32> to vector<8x128xf32>
    %142 = arith.addf %140, %141 : vector<8x128xf32>
    %143 = vector.extract_strided_slice %142 {offsets = [0, 0], sizes = [8, 96], strides = [1, 1]} : vector<8x128xf32> to vector<8x96xf32>
    %144 = arith.negf %143 : vector<8x96xf32>
    %145 = math.exp %144 : vector<8x96xf32>
    %cst_57 = arith.constant 1.000000e+00 : f32
    %146 = vector.broadcast %cst_57 : f32 to vector<8x96xf32>
    %147 = arith.addf %146, %145 : vector<8x96xf32>
    %148 = arith.divf %146, %147 : vector<8x96xf32>
    %149 = vector.extract_strided_slice %148 {offsets = [0, 0], sizes = [8, 32], strides = [1, 1]} : vector<8x96xf32> to vector<8x32xf32>
    %150 = vector.extract_strided_slice %148 {offsets = [0, 32], sizes = [8, 32], strides = [1, 1]} : vector<8x96xf32> to vector<8x32xf32>
    %151 = vector.extract_strided_slice %148 {offsets = [0, 64], sizes = [8, 32], strides = [1, 1]} : vector<8x96xf32> to vector<8x32xf32>
    %152 = vector.extract_strided_slice %142 {offsets = [0, 96], sizes = [8, 32], strides = [1, 1]} : vector<8x128xf32> to vector<8x32xf32>
    %153 = math.tanh %152 : vector<8x32xf32>
    %154 = arith.mulf %150, %95 : vector<8x32xf32>
    %155 = arith.mulf %149, %153 : vector<8x32xf32>
    %156 = arith.addf %154, %155 : vector<8x32xf32>
    %157 = math.tanh %156 : vector<8x32xf32>
    %158 = arith.mulf %151, %157 : vector<8x32xf32>
    %c8_i32_58 = arith.constant 8 : i32
    %159 = arith.muli %arg1, %c8_i32_58 : i32
    %160 = arith.addi %159, %c1_i32_47 : i32
    %c1_i32_59 = arith.constant 1 : i32
    %161 = arith.cmpi sge, %160, %c1_i32_59 : i32
    %c2_i32_60 = arith.constant 2 : i32
    %162 = arith.cmpi sge, %160, %c2_i32_60 : i32
    %163 = arith.select %161, %137, %92 : vector<8x32xf32>
    %164 = arith.select %161, %135, %93 : vector<8x32xf32>
    %165 = arith.select %162, %158, %94 : vector<8x32xf32>
    %166 = arith.select %162, %156, %95 : vector<8x32xf32>
    %c2_i32_61 = arith.constant 2 : i32
    %167 = arith.index_cast %c2_i32_61 : i32 to index
    %c0_62 = arith.constant 0 : index
    %c0_63 = arith.constant 0 : index
    %168 = vector.load %arg15[%167, %c0_62, %c0_63] : memref<8x8x128xf32, #tpu.memory_space<vmem>>, vector<1x8x128xf32>
    %169 = vector.shape_cast %168 : vector<1x8x128xf32> to vector<8x128xf32>
    %cst_64 = arith.constant dense<0.000000e+00> : vector<8x128xf32>
    %170 = tpu.matmul %116, %3, %cst_64 {dimension_numbers = #tpu.dot_dimension_numbers<[1], [0], [0], [1], [0, 0, 1, 1], [], []>} : vector<8x32xf32>, vector<32x128xf32>, vector<8x128xf32> -> vector<8x128xf32>
    %171 = arith.addf %169, %170 : vector<8x128xf32>
    %172 = vector.extract_strided_slice %171 {offsets = [0, 0], sizes = [8, 96], strides = [1, 1]} : vector<8x128xf32> to vector<8x96xf32>
    %173 = arith.negf %172 : vector<8x96xf32>
    %174 = math.exp %173 : vector<8x96xf32>
    %cst_65 = arith.constant 1.000000e+00 : f32
    %175 = vector.broadcast %cst_65 : f32 to vector<8x96xf32>
    %176 = arith.addf %175, %174 : vector<8x96xf32>
    %177 = arith.divf %175, %176 : vector<8x96xf32>
    %178 = vector.extract_strided_slice %177 {offsets = [0, 0], sizes = [8, 32], strides = [1, 1]} : vector<8x96xf32> to vector<8x32xf32>
    %179 = vector.extract_strided_slice %177 {offsets = [0, 32], sizes = [8, 32], strides = [1, 1]} : vector<8x96xf32> to vector<8x32xf32>
    %180 = vector.extract_strided_slice %177 {offsets = [0, 64], sizes = [8, 32], strides = [1, 1]} : vector<8x96xf32> to vector<8x32xf32>
    %181 = vector.extract_strided_slice %171 {offsets = [0, 96], sizes = [8, 32], strides = [1, 1]} : vector<8x128xf32> to vector<8x32xf32>
    %182 = math.tanh %181 : vector<8x32xf32>
    %183 = arith.mulf %179, %114 : vector<8x32xf32>
    %184 = arith.mulf %178, %182 : vector<8x32xf32>
    %185 = arith.addf %183, %184 : vector<8x32xf32>
    %186 = math.tanh %185 : vector<8x32xf32>
    %187 = arith.mulf %180, %186 : vector<8x32xf32>
    %cst_66 = arith.constant dense<0.000000e+00> : vector<8x128xf32>
    %188 = tpu.matmul %116, %4, %cst_66 {dimension_numbers = #tpu.dot_dimension_numbers<[1], [0], [0], [1], [0, 0, 1, 1], [], []>} : vector<8x32xf32>, vector<32x128xf32>, vector<8x128xf32> -> vector<8x128xf32>
    %cst_67 = arith.constant dense<0.000000e+00> : vector<8x128xf32>
    %189 = tpu.matmul %163, %5, %cst_67 {dimension_numbers = #tpu.dot_dimension_numbers<[1], [0], [0], [1], [0, 0, 1, 1], [], []>} : vector<8x32xf32>, vector<32x128xf32>, vector<8x128xf32> -> vector<8x128xf32>
    %190 = arith.addf %188, %189 : vector<8x128xf32>
    %191 = vector.broadcast %6 : vector<1x128xf32> to vector<8x128xf32>
    %192 = arith.addf %190, %191 : vector<8x128xf32>
    %193 = vector.extract_strided_slice %192 {offsets = [0, 0], sizes = [8, 96], strides = [1, 1]} : vector<8x128xf32> to vector<8x96xf32>
    %194 = arith.negf %193 : vector<8x96xf32>
    %195 = math.exp %194 : vector<8x96xf32>
    %cst_68 = arith.constant 1.000000e+00 : f32
    %196 = vector.broadcast %cst_68 : f32 to vector<8x96xf32>
    %197 = arith.addf %196, %195 : vector<8x96xf32>
    %198 = arith.divf %196, %197 : vector<8x96xf32>
    %199 = vector.extract_strided_slice %198 {offsets = [0, 0], sizes = [8, 32], strides = [1, 1]} : vector<8x96xf32> to vector<8x32xf32>
    %200 = vector.extract_strided_slice %198 {offsets = [0, 32], sizes = [8, 32], strides = [1, 1]} : vector<8x96xf32> to vector<8x32xf32>
    %201 = vector.extract_strided_slice %198 {offsets = [0, 64], sizes = [8, 32], strides = [1, 1]} : vector<8x96xf32> to vector<8x32xf32>
    %202 = vector.extract_strided_slice %192 {offsets = [0, 96], sizes = [8, 32], strides = [1, 1]} : vector<8x128xf32> to vector<8x32xf32>
    %203 = math.tanh %202 : vector<8x32xf32>
    %204 = arith.mulf %200, %164 : vector<8x32xf32>
    %205 = arith.mulf %199, %203 : vector<8x32xf32>
    %206 = arith.addf %204, %205 : vector<8x32xf32>
    %207 = math.tanh %206 : vector<8x32xf32>
    %208 = arith.mulf %201, %207 : vector<8x32xf32>
    %cst_69 = arith.constant dense<0.000000e+00> : vector<8x128xf32>
    %209 = tpu.matmul %163, %7, %cst_69 {dimension_numbers = #tpu.dot_dimension_numbers<[1], [0], [0], [1], [0, 0, 1, 1], [], []>} : vector<8x32xf32>, vector<32x128xf32>, vector<8x128xf32> -> vector<8x128xf32>
    %cst_70 = arith.constant dense<0.000000e+00> : vector<8x128xf32>
    %210 = tpu.matmul %165, %8, %cst_70 {dimension_numbers = #tpu.dot_dimension_numbers<[1], [0], [0], [1], [0, 0, 1, 1], [], []>} : vector<8x32xf32>, vector<32x128xf32>, vector<8x128xf32> -> vector<8x128xf32>
    %211 = arith.addf %209, %210 : vector<8x128xf32>
    %212 = vector.broadcast %9 : vector<1x128xf32> to vector<8x128xf32>
    %213 = arith.addf %211, %212 : vector<8x128xf32>
    %214 = vector.extract_strided_slice %213 {offsets = [0, 0], sizes = [8, 96], strides = [1, 1]} : vector<8x128xf32> to vector<8x96xf32>
    %215 = arith.negf %214 : vector<8x96xf32>
    %216 = math.exp %215 : vector<8x96xf32>
    %cst_71 = arith.constant 1.000000e+00 : f32
    %217 = vector.broadcast %cst_71 : f32 to vector<8x96xf32>
    %218 = arith.addf %217, %216 : vector<8x96xf32>
    %219 = arith.divf %217, %218 : vector<8x96xf32>
    %220 = vector.extract_strided_slice %219 {offsets = [0, 0], sizes = [8, 32], strides = [1, 1]} : vector<8x96xf32> to vector<8x32xf32>
    %221 = vector.extract_strided_slice %219 {offsets = [0, 32], sizes = [8, 32], strides = [1, 1]} : vector<8x96xf32> to vector<8x32xf32>
    %222 = vector.extract_strided_slice %219 {offsets = [0, 64], sizes = [8, 32], strides = [1, 1]} : vector<8x96xf32> to vector<8x32xf32>
    %223 = vector.extract_strided_slice %213 {offsets = [0, 96], sizes = [8, 32], strides = [1, 1]} : vector<8x128xf32> to vector<8x32xf32>
    %224 = math.tanh %223 : vector<8x32xf32>
    %225 = arith.mulf %221, %166 : vector<8x32xf32>
    %226 = arith.mulf %220, %224 : vector<8x32xf32>
    %227 = arith.addf %225, %226 : vector<8x32xf32>
    %228 = math.tanh %227 : vector<8x32xf32>
    %229 = arith.mulf %222, %228 : vector<8x32xf32>
    %c8_i32_72 = arith.constant 8 : i32
    %230 = arith.muli %arg1, %c8_i32_72 : i32
    %231 = arith.addi %230, %c2_i32_61 : i32
    %c1_i32_73 = arith.constant 1 : i32
    %232 = arith.cmpi sge, %231, %c1_i32_73 : i32
    %c2_i32_74 = arith.constant 2 : i32
    %233 = arith.cmpi sge, %231, %c2_i32_74 : i32
    %234 = arith.select %232, %208, %163 : vector<8x32xf32>
    %235 = arith.select %232, %206, %164 : vector<8x32xf32>
    %236 = arith.select %233, %229, %165 : vector<8x32xf32>
    %237 = arith.select %233, %227, %166 : vector<8x32xf32>
    %c3_i32 = arith.constant 3 : i32
    %238 = arith.index_cast %c3_i32 : i32 to index
    %c0_75 = arith.constant 0 : index
    %c0_76 = arith.constant 0 : index
    %239 = vector.load %arg15[%238, %c0_75, %c0_76] : memref<8x8x128xf32, #tpu.memory_space<vmem>>, vector<1x8x128xf32>
    %240 = vector.shape_cast %239 : vector<1x8x128xf32> to vector<8x128xf32>
    %cst_77 = arith.constant dense<0.000000e+00> : vector<8x128xf32>
    %241 = tpu.matmul %187, %3, %cst_77 {dimension_numbers = #tpu.dot_dimension_numbers<[1], [0], [0], [1], [0, 0, 1, 1], [], []>} : vector<8x32xf32>, vector<32x128xf32>, vector<8x128xf32> -> vector<8x128xf32>
    %242 = arith.addf %240, %241 : vector<8x128xf32>
    %243 = vector.extract_strided_slice %242 {offsets = [0, 0], sizes = [8, 96], strides = [1, 1]} : vector<8x128xf32> to vector<8x96xf32>
    %244 = arith.negf %243 : vector<8x96xf32>
    %245 = math.exp %244 : vector<8x96xf32>
    %cst_78 = arith.constant 1.000000e+00 : f32
    %246 = vector.broadcast %cst_78 : f32 to vector<8x96xf32>
    %247 = arith.addf %246, %245 : vector<8x96xf32>
    %248 = arith.divf %246, %247 : vector<8x96xf32>
    %249 = vector.extract_strided_slice %248 {offsets = [0, 0], sizes = [8, 32], strides = [1, 1]} : vector<8x96xf32> to vector<8x32xf32>
    %250 = vector.extract_strided_slice %248 {offsets = [0, 32], sizes = [8, 32], strides = [1, 1]} : vector<8x96xf32> to vector<8x32xf32>
    %251 = vector.extract_strided_slice %248 {offsets = [0, 64], sizes = [8, 32], strides = [1, 1]} : vector<8x96xf32> to vector<8x32xf32>
    %252 = vector.extract_strided_slice %242 {offsets = [0, 96], sizes = [8, 32], strides = [1, 1]} : vector<8x128xf32> to vector<8x32xf32>
    %253 = math.tanh %252 : vector<8x32xf32>
    %254 = arith.mulf %250, %185 : vector<8x32xf32>
    %255 = arith.mulf %249, %253 : vector<8x32xf32>
    %256 = arith.addf %254, %255 : vector<8x32xf32>
    %257 = math.tanh %256 : vector<8x32xf32>
    %258 = arith.mulf %251, %257 : vector<8x32xf32>
    %cst_79 = arith.constant dense<0.000000e+00> : vector<8x128xf32>
    %259 = tpu.matmul %187, %4, %cst_79 {dimension_numbers = #tpu.dot_dimension_numbers<[1], [0], [0], [1], [0, 0, 1, 1], [], []>} : vector<8x32xf32>, vector<32x128xf32>, vector<8x128xf32> -> vector<8x128xf32>
    %cst_80 = arith.constant dense<0.000000e+00> : vector<8x128xf32>
    %260 = tpu.matmul %234, %5, %cst_80 {dimension_numbers = #tpu.dot_dimension_numbers<[1], [0], [0], [1], [0, 0, 1, 1], [], []>} : vector<8x32xf32>, vector<32x128xf32>, vector<8x128xf32> -> vector<8x128xf32>
    %261 = arith.addf %259, %260 : vector<8x128xf32>
    %262 = vector.broadcast %6 : vector<1x128xf32> to vector<8x128xf32>
    %263 = arith.addf %261, %262 : vector<8x128xf32>
    %264 = vector.extract_strided_slice %263 {offsets = [0, 0], sizes = [8, 96], strides = [1, 1]} : vector<8x128xf32> to vector<8x96xf32>
    %265 = arith.negf %264 : vector<8x96xf32>
    %266 = math.exp %265 : vector<8x96xf32>
    %cst_81 = arith.constant 1.000000e+00 : f32
    %267 = vector.broadcast %cst_81 : f32 to vector<8x96xf32>
    %268 = arith.addf %267, %266 : vector<8x96xf32>
    %269 = arith.divf %267, %268 : vector<8x96xf32>
    %270 = vector.extract_strided_slice %269 {offsets = [0, 0], sizes = [8, 32], strides = [1, 1]} : vector<8x96xf32> to vector<8x32xf32>
    %271 = vector.extract_strided_slice %269 {offsets = [0, 32], sizes = [8, 32], strides = [1, 1]} : vector<8x96xf32> to vector<8x32xf32>
    %272 = vector.extract_strided_slice %269 {offsets = [0, 64], sizes = [8, 32], strides = [1, 1]} : vector<8x96xf32> to vector<8x32xf32>
    %273 = vector.extract_strided_slice %263 {offsets = [0, 96], sizes = [8, 32], strides = [1, 1]} : vector<8x128xf32> to vector<8x32xf32>
    %274 = math.tanh %273 : vector<8x32xf32>
    %275 = arith.mulf %271, %235 : vector<8x32xf32>
    %276 = arith.mulf %270, %274 : vector<8x32xf32>
    %277 = arith.addf %275, %276 : vector<8x32xf32>
    %278 = math.tanh %277 : vector<8x32xf32>
    %279 = arith.mulf %272, %278 : vector<8x32xf32>
    %cst_82 = arith.constant dense<0.000000e+00> : vector<8x128xf32>
    %280 = tpu.matmul %234, %7, %cst_82 {dimension_numbers = #tpu.dot_dimension_numbers<[1], [0], [0], [1], [0, 0, 1, 1], [], []>} : vector<8x32xf32>, vector<32x128xf32>, vector<8x128xf32> -> vector<8x128xf32>
    %cst_83 = arith.constant dense<0.000000e+00> : vector<8x128xf32>
    %281 = tpu.matmul %236, %8, %cst_83 {dimension_numbers = #tpu.dot_dimension_numbers<[1], [0], [0], [1], [0, 0, 1, 1], [], []>} : vector<8x32xf32>, vector<32x128xf32>, vector<8x128xf32> -> vector<8x128xf32>
    %282 = arith.addf %280, %281 : vector<8x128xf32>
    %283 = vector.broadcast %9 : vector<1x128xf32> to vector<8x128xf32>
    %284 = arith.addf %282, %283 : vector<8x128xf32>
    %285 = vector.extract_strided_slice %284 {offsets = [0, 0], sizes = [8, 96], strides = [1, 1]} : vector<8x128xf32> to vector<8x96xf32>
    %286 = arith.negf %285 : vector<8x96xf32>
    %287 = math.exp %286 : vector<8x96xf32>
    %cst_84 = arith.constant 1.000000e+00 : f32
    %288 = vector.broadcast %cst_84 : f32 to vector<8x96xf32>
    %289 = arith.addf %288, %287 : vector<8x96xf32>
    %290 = arith.divf %288, %289 : vector<8x96xf32>
    %291 = vector.extract_strided_slice %290 {offsets = [0, 0], sizes = [8, 32], strides = [1, 1]} : vector<8x96xf32> to vector<8x32xf32>
    %292 = vector.extract_strided_slice %290 {offsets = [0, 32], sizes = [8, 32], strides = [1, 1]} : vector<8x96xf32> to vector<8x32xf32>
    %293 = vector.extract_strided_slice %290 {offsets = [0, 64], sizes = [8, 32], strides = [1, 1]} : vector<8x96xf32> to vector<8x32xf32>
    %294 = vector.extract_strided_slice %284 {offsets = [0, 96], sizes = [8, 32], strides = [1, 1]} : vector<8x128xf32> to vector<8x32xf32>
    %295 = math.tanh %294 : vector<8x32xf32>
    %296 = arith.mulf %292, %237 : vector<8x32xf32>
    %297 = arith.mulf %291, %295 : vector<8x32xf32>
    %298 = arith.addf %296, %297 : vector<8x32xf32>
    %299 = math.tanh %298 : vector<8x32xf32>
    %300 = arith.mulf %293, %299 : vector<8x32xf32>
    %c8_i32_85 = arith.constant 8 : i32
    %301 = arith.muli %arg1, %c8_i32_85 : i32
    %302 = arith.addi %301, %c3_i32 : i32
    %c1_i32_86 = arith.constant 1 : i32
    %303 = arith.cmpi sge, %302, %c1_i32_86 : i32
    %c2_i32_87 = arith.constant 2 : i32
    %304 = arith.cmpi sge, %302, %c2_i32_87 : i32
    %305 = arith.select %303, %279, %234 : vector<8x32xf32>
    %306 = arith.select %303, %277, %235 : vector<8x32xf32>
    %307 = arith.select %304, %300, %236 : vector<8x32xf32>
    %308 = arith.select %304, %298, %237 : vector<8x32xf32>
    %c4_i32 = arith.constant 4 : i32
    %309 = arith.index_cast %c4_i32 : i32 to index
    %c0_88 = arith.constant 0 : index
    %c0_89 = arith.constant 0 : index
    %310 = vector.load %arg15[%309, %c0_88, %c0_89] : memref<8x8x128xf32, #tpu.memory_space<vmem>>, vector<1x8x128xf32>
    %311 = vector.shape_cast %310 : vector<1x8x128xf32> to vector<8x128xf32>
    %cst_90 = arith.constant dense<0.000000e+00> : vector<8x128xf32>
    %312 = tpu.matmul %258, %3, %cst_90 {dimension_numbers = #tpu.dot_dimension_numbers<[1], [0], [0], [1], [0, 0, 1, 1], [], []>} : vector<8x32xf32>, vector<32x128xf32>, vector<8x128xf32> -> vector<8x128xf32>
    %313 = arith.addf %311, %312 : vector<8x128xf32>
    %314 = vector.extract_strided_slice %313 {offsets = [0, 0], sizes = [8, 96], strides = [1, 1]} : vector<8x128xf32> to vector<8x96xf32>
    %315 = arith.negf %314 : vector<8x96xf32>
    %316 = math.exp %315 : vector<8x96xf32>
    %cst_91 = arith.constant 1.000000e+00 : f32
    %317 = vector.broadcast %cst_91 : f32 to vector<8x96xf32>
    %318 = arith.addf %317, %316 : vector<8x96xf32>
    %319 = arith.divf %317, %318 : vector<8x96xf32>
    %320 = vector.extract_strided_slice %319 {offsets = [0, 0], sizes = [8, 32], strides = [1, 1]} : vector<8x96xf32> to vector<8x32xf32>
    %321 = vector.extract_strided_slice %319 {offsets = [0, 32], sizes = [8, 32], strides = [1, 1]} : vector<8x96xf32> to vector<8x32xf32>
    %322 = vector.extract_strided_slice %319 {offsets = [0, 64], sizes = [8, 32], strides = [1, 1]} : vector<8x96xf32> to vector<8x32xf32>
    %323 = vector.extract_strided_slice %313 {offsets = [0, 96], sizes = [8, 32], strides = [1, 1]} : vector<8x128xf32> to vector<8x32xf32>
    %324 = math.tanh %323 : vector<8x32xf32>
    %325 = arith.mulf %321, %256 : vector<8x32xf32>
    %326 = arith.mulf %320, %324 : vector<8x32xf32>
    %327 = arith.addf %325, %326 : vector<8x32xf32>
    %328 = math.tanh %327 : vector<8x32xf32>
    %329 = arith.mulf %322, %328 : vector<8x32xf32>
    %cst_92 = arith.constant dense<0.000000e+00> : vector<8x128xf32>
    %330 = tpu.matmul %258, %4, %cst_92 {dimension_numbers = #tpu.dot_dimension_numbers<[1], [0], [0], [1], [0, 0, 1, 1], [], []>} : vector<8x32xf32>, vector<32x128xf32>, vector<8x128xf32> -> vector<8x128xf32>
    %cst_93 = arith.constant dense<0.000000e+00> : vector<8x128xf32>
    %331 = tpu.matmul %305, %5, %cst_93 {dimension_numbers = #tpu.dot_dimension_numbers<[1], [0], [0], [1], [0, 0, 1, 1], [], []>} : vector<8x32xf32>, vector<32x128xf32>, vector<8x128xf32> -> vector<8x128xf32>
    %332 = arith.addf %330, %331 : vector<8x128xf32>
    %333 = vector.broadcast %6 : vector<1x128xf32> to vector<8x128xf32>
    %334 = arith.addf %332, %333 : vector<8x128xf32>
    %335 = vector.extract_strided_slice %334 {offsets = [0, 0], sizes = [8, 96], strides = [1, 1]} : vector<8x128xf32> to vector<8x96xf32>
    %336 = arith.negf %335 : vector<8x96xf32>
    %337 = math.exp %336 : vector<8x96xf32>
    %cst_94 = arith.constant 1.000000e+00 : f32
    %338 = vector.broadcast %cst_94 : f32 to vector<8x96xf32>
    %339 = arith.addf %338, %337 : vector<8x96xf32>
    %340 = arith.divf %338, %339 : vector<8x96xf32>
    %341 = vector.extract_strided_slice %340 {offsets = [0, 0], sizes = [8, 32], strides = [1, 1]} : vector<8x96xf32> to vector<8x32xf32>
    %342 = vector.extract_strided_slice %340 {offsets = [0, 32], sizes = [8, 32], strides = [1, 1]} : vector<8x96xf32> to vector<8x32xf32>
    %343 = vector.extract_strided_slice %340 {offsets = [0, 64], sizes = [8, 32], strides = [1, 1]} : vector<8x96xf32> to vector<8x32xf32>
    %344 = vector.extract_strided_slice %334 {offsets = [0, 96], sizes = [8, 32], strides = [1, 1]} : vector<8x128xf32> to vector<8x32xf32>
    %345 = math.tanh %344 : vector<8x32xf32>
    %346 = arith.mulf %342, %306 : vector<8x32xf32>
    %347 = arith.mulf %341, %345 : vector<8x32xf32>
    %348 = arith.addf %346, %347 : vector<8x32xf32>
    %349 = math.tanh %348 : vector<8x32xf32>
    %350 = arith.mulf %343, %349 : vector<8x32xf32>
    %cst_95 = arith.constant dense<0.000000e+00> : vector<8x128xf32>
    %351 = tpu.matmul %305, %7, %cst_95 {dimension_numbers = #tpu.dot_dimension_numbers<[1], [0], [0], [1], [0, 0, 1, 1], [], []>} : vector<8x32xf32>, vector<32x128xf32>, vector<8x128xf32> -> vector<8x128xf32>
    %cst_96 = arith.constant dense<0.000000e+00> : vector<8x128xf32>
    %352 = tpu.matmul %307, %8, %cst_96 {dimension_numbers = #tpu.dot_dimension_numbers<[1], [0], [0], [1], [0, 0, 1, 1], [], []>} : vector<8x32xf32>, vector<32x128xf32>, vector<8x128xf32> -> vector<8x128xf32>
    %353 = arith.addf %351, %352 : vector<8x128xf32>
    %354 = vector.broadcast %9 : vector<1x128xf32> to vector<8x128xf32>
    %355 = arith.addf %353, %354 : vector<8x128xf32>
    %356 = vector.extract_strided_slice %355 {offsets = [0, 0], sizes = [8, 96], strides = [1, 1]} : vector<8x128xf32> to vector<8x96xf32>
    %357 = arith.negf %356 : vector<8x96xf32>
    %358 = math.exp %357 : vector<8x96xf32>
    %cst_97 = arith.constant 1.000000e+00 : f32
    %359 = vector.broadcast %cst_97 : f32 to vector<8x96xf32>
    %360 = arith.addf %359, %358 : vector<8x96xf32>
    %361 = arith.divf %359, %360 : vector<8x96xf32>
    %362 = vector.extract_strided_slice %361 {offsets = [0, 0], sizes = [8, 32], strides = [1, 1]} : vector<8x96xf32> to vector<8x32xf32>
    %363 = vector.extract_strided_slice %361 {offsets = [0, 32], sizes = [8, 32], strides = [1, 1]} : vector<8x96xf32> to vector<8x32xf32>
    %364 = vector.extract_strided_slice %361 {offsets = [0, 64], sizes = [8, 32], strides = [1, 1]} : vector<8x96xf32> to vector<8x32xf32>
    %365 = vector.extract_strided_slice %355 {offsets = [0, 96], sizes = [8, 32], strides = [1, 1]} : vector<8x128xf32> to vector<8x32xf32>
    %366 = math.tanh %365 : vector<8x32xf32>
    %367 = arith.mulf %363, %308 : vector<8x32xf32>
    %368 = arith.mulf %362, %366 : vector<8x32xf32>
    %369 = arith.addf %367, %368 : vector<8x32xf32>
    %370 = math.tanh %369 : vector<8x32xf32>
    %371 = arith.mulf %364, %370 : vector<8x32xf32>
    %c8_i32_98 = arith.constant 8 : i32
    %372 = arith.muli %arg1, %c8_i32_98 : i32
    %373 = arith.addi %372, %c4_i32 : i32
    %c1_i32_99 = arith.constant 1 : i32
    %374 = arith.cmpi sge, %373, %c1_i32_99 : i32
    %c2_i32_100 = arith.constant 2 : i32
    %375 = arith.cmpi sge, %373, %c2_i32_100 : i32
    %376 = arith.select %374, %350, %305 : vector<8x32xf32>
    %377 = arith.select %374, %348, %306 : vector<8x32xf32>
    %378 = arith.select %375, %371, %307 : vector<8x32xf32>
    %379 = arith.select %375, %369, %308 : vector<8x32xf32>
    %c5_i32 = arith.constant 5 : i32
    %380 = arith.index_cast %c5_i32 : i32 to index
    %c0_101 = arith.constant 0 : index
    %c0_102 = arith.constant 0 : index
    %381 = vector.load %arg15[%380, %c0_101, %c0_102] : memref<8x8x128xf32, #tpu.memory_space<vmem>>, vector<1x8x128xf32>
    %382 = vector.shape_cast %381 : vector<1x8x128xf32> to vector<8x128xf32>
    %cst_103 = arith.constant dense<0.000000e+00> : vector<8x128xf32>
    %383 = tpu.matmul %329, %3, %cst_103 {dimension_numbers = #tpu.dot_dimension_numbers<[1], [0], [0], [1], [0, 0, 1, 1], [], []>} : vector<8x32xf32>, vector<32x128xf32>, vector<8x128xf32> -> vector<8x128xf32>
    %384 = arith.addf %382, %383 : vector<8x128xf32>
    %385 = vector.extract_strided_slice %384 {offsets = [0, 0], sizes = [8, 96], strides = [1, 1]} : vector<8x128xf32> to vector<8x96xf32>
    %386 = arith.negf %385 : vector<8x96xf32>
    %387 = math.exp %386 : vector<8x96xf32>
    %cst_104 = arith.constant 1.000000e+00 : f32
    %388 = vector.broadcast %cst_104 : f32 to vector<8x96xf32>
    %389 = arith.addf %388, %387 : vector<8x96xf32>
    %390 = arith.divf %388, %389 : vector<8x96xf32>
    %391 = vector.extract_strided_slice %390 {offsets = [0, 0], sizes = [8, 32], strides = [1, 1]} : vector<8x96xf32> to vector<8x32xf32>
    %392 = vector.extract_strided_slice %390 {offsets = [0, 32], sizes = [8, 32], strides = [1, 1]} : vector<8x96xf32> to vector<8x32xf32>
    %393 = vector.extract_strided_slice %390 {offsets = [0, 64], sizes = [8, 32], strides = [1, 1]} : vector<8x96xf32> to vector<8x32xf32>
    %394 = vector.extract_strided_slice %384 {offsets = [0, 96], sizes = [8, 32], strides = [1, 1]} : vector<8x128xf32> to vector<8x32xf32>
    %395 = math.tanh %394 : vector<8x32xf32>
    %396 = arith.mulf %392, %327 : vector<8x32xf32>
    %397 = arith.mulf %391, %395 : vector<8x32xf32>
    %398 = arith.addf %396, %397 : vector<8x32xf32>
    %399 = math.tanh %398 : vector<8x32xf32>
    %400 = arith.mulf %393, %399 : vector<8x32xf32>
    %cst_105 = arith.constant dense<0.000000e+00> : vector<8x128xf32>
    %401 = tpu.matmul %329, %4, %cst_105 {dimension_numbers = #tpu.dot_dimension_numbers<[1], [0], [0], [1], [0, 0, 1, 1], [], []>} : vector<8x32xf32>, vector<32x128xf32>, vector<8x128xf32> -> vector<8x128xf32>
    %cst_106 = arith.constant dense<0.000000e+00> : vector<8x128xf32>
    %402 = tpu.matmul %376, %5, %cst_106 {dimension_numbers = #tpu.dot_dimension_numbers<[1], [0], [0], [1], [0, 0, 1, 1], [], []>} : vector<8x32xf32>, vector<32x128xf32>, vector<8x128xf32> -> vector<8x128xf32>
    %403 = arith.addf %401, %402 : vector<8x128xf32>
    %404 = vector.broadcast %6 : vector<1x128xf32> to vector<8x128xf32>
    %405 = arith.addf %403, %404 : vector<8x128xf32>
    %406 = vector.extract_strided_slice %405 {offsets = [0, 0], sizes = [8, 96], strides = [1, 1]} : vector<8x128xf32> to vector<8x96xf32>
    %407 = arith.negf %406 : vector<8x96xf32>
    %408 = math.exp %407 : vector<8x96xf32>
    %cst_107 = arith.constant 1.000000e+00 : f32
    %409 = vector.broadcast %cst_107 : f32 to vector<8x96xf32>
    %410 = arith.addf %409, %408 : vector<8x96xf32>
    %411 = arith.divf %409, %410 : vector<8x96xf32>
    %412 = vector.extract_strided_slice %411 {offsets = [0, 0], sizes = [8, 32], strides = [1, 1]} : vector<8x96xf32> to vector<8x32xf32>
    %413 = vector.extract_strided_slice %411 {offsets = [0, 32], sizes = [8, 32], strides = [1, 1]} : vector<8x96xf32> to vector<8x32xf32>
    %414 = vector.extract_strided_slice %411 {offsets = [0, 64], sizes = [8, 32], strides = [1, 1]} : vector<8x96xf32> to vector<8x32xf32>
    %415 = vector.extract_strided_slice %405 {offsets = [0, 96], sizes = [8, 32], strides = [1, 1]} : vector<8x128xf32> to vector<8x32xf32>
    %416 = math.tanh %415 : vector<8x32xf32>
    %417 = arith.mulf %413, %377 : vector<8x32xf32>
    %418 = arith.mulf %412, %416 : vector<8x32xf32>
    %419 = arith.addf %417, %418 : vector<8x32xf32>
    %420 = math.tanh %419 : vector<8x32xf32>
    %421 = arith.mulf %414, %420 : vector<8x32xf32>
    %cst_108 = arith.constant dense<0.000000e+00> : vector<8x128xf32>
    %422 = tpu.matmul %376, %7, %cst_108 {dimension_numbers = #tpu.dot_dimension_numbers<[1], [0], [0], [1], [0, 0, 1, 1], [], []>} : vector<8x32xf32>, vector<32x128xf32>, vector<8x128xf32> -> vector<8x128xf32>
    %cst_109 = arith.constant dense<0.000000e+00> : vector<8x128xf32>
    %423 = tpu.matmul %378, %8, %cst_109 {dimension_numbers = #tpu.dot_dimension_numbers<[1], [0], [0], [1], [0, 0, 1, 1], [], []>} : vector<8x32xf32>, vector<32x128xf32>, vector<8x128xf32> -> vector<8x128xf32>
    %424 = arith.addf %422, %423 : vector<8x128xf32>
    %425 = vector.broadcast %9 : vector<1x128xf32> to vector<8x128xf32>
    %426 = arith.addf %424, %425 : vector<8x128xf32>
    %427 = vector.extract_strided_slice %426 {offsets = [0, 0], sizes = [8, 96], strides = [1, 1]} : vector<8x128xf32> to vector<8x96xf32>
    %428 = arith.negf %427 : vector<8x96xf32>
    %429 = math.exp %428 : vector<8x96xf32>
    %cst_110 = arith.constant 1.000000e+00 : f32
    %430 = vector.broadcast %cst_110 : f32 to vector<8x96xf32>
    %431 = arith.addf %430, %429 : vector<8x96xf32>
    %432 = arith.divf %430, %431 : vector<8x96xf32>
    %433 = vector.extract_strided_slice %432 {offsets = [0, 0], sizes = [8, 32], strides = [1, 1]} : vector<8x96xf32> to vector<8x32xf32>
    %434 = vector.extract_strided_slice %432 {offsets = [0, 32], sizes = [8, 32], strides = [1, 1]} : vector<8x96xf32> to vector<8x32xf32>
    %435 = vector.extract_strided_slice %432 {offsets = [0, 64], sizes = [8, 32], strides = [1, 1]} : vector<8x96xf32> to vector<8x32xf32>
    %436 = vector.extract_strided_slice %426 {offsets = [0, 96], sizes = [8, 32], strides = [1, 1]} : vector<8x128xf32> to vector<8x32xf32>
    %437 = math.tanh %436 : vector<8x32xf32>
    %438 = arith.mulf %434, %379 : vector<8x32xf32>
    %439 = arith.mulf %433, %437 : vector<8x32xf32>
    %440 = arith.addf %438, %439 : vector<8x32xf32>
    %441 = math.tanh %440 : vector<8x32xf32>
    %442 = arith.mulf %435, %441 : vector<8x32xf32>
    %c8_i32_111 = arith.constant 8 : i32
    %443 = arith.muli %arg1, %c8_i32_111 : i32
    %444 = arith.addi %443, %c5_i32 : i32
    %c1_i32_112 = arith.constant 1 : i32
    %445 = arith.cmpi sge, %444, %c1_i32_112 : i32
    %c2_i32_113 = arith.constant 2 : i32
    %446 = arith.cmpi sge, %444, %c2_i32_113 : i32
    %447 = arith.select %445, %421, %376 : vector<8x32xf32>
    %448 = arith.select %445, %419, %377 : vector<8x32xf32>
    %449 = arith.select %446, %442, %378 : vector<8x32xf32>
    %450 = arith.select %446, %440, %379 : vector<8x32xf32>
    %c6_i32 = arith.constant 6 : i32
    %451 = arith.index_cast %c6_i32 : i32 to index
    %c0_114 = arith.constant 0 : index
    %c0_115 = arith.constant 0 : index
    %452 = vector.load %arg15[%451, %c0_114, %c0_115] : memref<8x8x128xf32, #tpu.memory_space<vmem>>, vector<1x8x128xf32>
    %453 = vector.shape_cast %452 : vector<1x8x128xf32> to vector<8x128xf32>
    %cst_116 = arith.constant dense<0.000000e+00> : vector<8x128xf32>
    %454 = tpu.matmul %400, %3, %cst_116 {dimension_numbers = #tpu.dot_dimension_numbers<[1], [0], [0], [1], [0, 0, 1, 1], [], []>} : vector<8x32xf32>, vector<32x128xf32>, vector<8x128xf32> -> vector<8x128xf32>
    %455 = arith.addf %453, %454 : vector<8x128xf32>
    %456 = vector.extract_strided_slice %455 {offsets = [0, 0], sizes = [8, 96], strides = [1, 1]} : vector<8x128xf32> to vector<8x96xf32>
    %457 = arith.negf %456 : vector<8x96xf32>
    %458 = math.exp %457 : vector<8x96xf32>
    %cst_117 = arith.constant 1.000000e+00 : f32
    %459 = vector.broadcast %cst_117 : f32 to vector<8x96xf32>
    %460 = arith.addf %459, %458 : vector<8x96xf32>
    %461 = arith.divf %459, %460 : vector<8x96xf32>
    %462 = vector.extract_strided_slice %461 {offsets = [0, 0], sizes = [8, 32], strides = [1, 1]} : vector<8x96xf32> to vector<8x32xf32>
    %463 = vector.extract_strided_slice %461 {offsets = [0, 32], sizes = [8, 32], strides = [1, 1]} : vector<8x96xf32> to vector<8x32xf32>
    %464 = vector.extract_strided_slice %461 {offsets = [0, 64], sizes = [8, 32], strides = [1, 1]} : vector<8x96xf32> to vector<8x32xf32>
    %465 = vector.extract_strided_slice %455 {offsets = [0, 96], sizes = [8, 32], strides = [1, 1]} : vector<8x128xf32> to vector<8x32xf32>
    %466 = math.tanh %465 : vector<8x32xf32>
    %467 = arith.mulf %463, %398 : vector<8x32xf32>
    %468 = arith.mulf %462, %466 : vector<8x32xf32>
    %469 = arith.addf %467, %468 : vector<8x32xf32>
    %470 = math.tanh %469 : vector<8x32xf32>
    %471 = arith.mulf %464, %470 : vector<8x32xf32>
    %cst_118 = arith.constant dense<0.000000e+00> : vector<8x128xf32>
    %472 = tpu.matmul %400, %4, %cst_118 {dimension_numbers = #tpu.dot_dimension_numbers<[1], [0], [0], [1], [0, 0, 1, 1], [], []>} : vector<8x32xf32>, vector<32x128xf32>, vector<8x128xf32> -> vector<8x128xf32>
    %cst_119 = arith.constant dense<0.000000e+00> : vector<8x128xf32>
    %473 = tpu.matmul %447, %5, %cst_119 {dimension_numbers = #tpu.dot_dimension_numbers<[1], [0], [0], [1], [0, 0, 1, 1], [], []>} : vector<8x32xf32>, vector<32x128xf32>, vector<8x128xf32> -> vector<8x128xf32>
    %474 = arith.addf %472, %473 : vector<8x128xf32>
    %475 = vector.broadcast %6 : vector<1x128xf32> to vector<8x128xf32>
    %476 = arith.addf %474, %475 : vector<8x128xf32>
    %477 = vector.extract_strided_slice %476 {offsets = [0, 0], sizes = [8, 96], strides = [1, 1]} : vector<8x128xf32> to vector<8x96xf32>
    %478 = arith.negf %477 : vector<8x96xf32>
    %479 = math.exp %478 : vector<8x96xf32>
    %cst_120 = arith.constant 1.000000e+00 : f32
    %480 = vector.broadcast %cst_120 : f32 to vector<8x96xf32>
    %481 = arith.addf %480, %479 : vector<8x96xf32>
    %482 = arith.divf %480, %481 : vector<8x96xf32>
    %483 = vector.extract_strided_slice %482 {offsets = [0, 0], sizes = [8, 32], strides = [1, 1]} : vector<8x96xf32> to vector<8x32xf32>
    %484 = vector.extract_strided_slice %482 {offsets = [0, 32], sizes = [8, 32], strides = [1, 1]} : vector<8x96xf32> to vector<8x32xf32>
    %485 = vector.extract_strided_slice %482 {offsets = [0, 64], sizes = [8, 32], strides = [1, 1]} : vector<8x96xf32> to vector<8x32xf32>
    %486 = vector.extract_strided_slice %476 {offsets = [0, 96], sizes = [8, 32], strides = [1, 1]} : vector<8x128xf32> to vector<8x32xf32>
    %487 = math.tanh %486 : vector<8x32xf32>
    %488 = arith.mulf %484, %448 : vector<8x32xf32>
    %489 = arith.mulf %483, %487 : vector<8x32xf32>
    %490 = arith.addf %488, %489 : vector<8x32xf32>
    %491 = math.tanh %490 : vector<8x32xf32>
    %492 = arith.mulf %485, %491 : vector<8x32xf32>
    %cst_121 = arith.constant dense<0.000000e+00> : vector<8x128xf32>
    %493 = tpu.matmul %447, %7, %cst_121 {dimension_numbers = #tpu.dot_dimension_numbers<[1], [0], [0], [1], [0, 0, 1, 1], [], []>} : vector<8x32xf32>, vector<32x128xf32>, vector<8x128xf32> -> vector<8x128xf32>
    %cst_122 = arith.constant dense<0.000000e+00> : vector<8x128xf32>
    %494 = tpu.matmul %449, %8, %cst_122 {dimension_numbers = #tpu.dot_dimension_numbers<[1], [0], [0], [1], [0, 0, 1, 1], [], []>} : vector<8x32xf32>, vector<32x128xf32>, vector<8x128xf32> -> vector<8x128xf32>
    %495 = arith.addf %493, %494 : vector<8x128xf32>
    %496 = vector.broadcast %9 : vector<1x128xf32> to vector<8x128xf32>
    %497 = arith.addf %495, %496 : vector<8x128xf32>
    %498 = vector.extract_strided_slice %497 {offsets = [0, 0], sizes = [8, 96], strides = [1, 1]} : vector<8x128xf32> to vector<8x96xf32>
    %499 = arith.negf %498 : vector<8x96xf32>
    %500 = math.exp %499 : vector<8x96xf32>
    %cst_123 = arith.constant 1.000000e+00 : f32
    %501 = vector.broadcast %cst_123 : f32 to vector<8x96xf32>
    %502 = arith.addf %501, %500 : vector<8x96xf32>
    %503 = arith.divf %501, %502 : vector<8x96xf32>
    %504 = vector.extract_strided_slice %503 {offsets = [0, 0], sizes = [8, 32], strides = [1, 1]} : vector<8x96xf32> to vector<8x32xf32>
    %505 = vector.extract_strided_slice %503 {offsets = [0, 32], sizes = [8, 32], strides = [1, 1]} : vector<8x96xf32> to vector<8x32xf32>
    %506 = vector.extract_strided_slice %503 {offsets = [0, 64], sizes = [8, 32], strides = [1, 1]} : vector<8x96xf32> to vector<8x32xf32>
    %507 = vector.extract_strided_slice %497 {offsets = [0, 96], sizes = [8, 32], strides = [1, 1]} : vector<8x128xf32> to vector<8x32xf32>
    %508 = math.tanh %507 : vector<8x32xf32>
    %509 = arith.mulf %505, %450 : vector<8x32xf32>
    %510 = arith.mulf %504, %508 : vector<8x32xf32>
    %511 = arith.addf %509, %510 : vector<8x32xf32>
    %512 = math.tanh %511 : vector<8x32xf32>
    %513 = arith.mulf %506, %512 : vector<8x32xf32>
    %c8_i32_124 = arith.constant 8 : i32
    %514 = arith.muli %arg1, %c8_i32_124 : i32
    %515 = arith.addi %514, %c6_i32 : i32
    %c1_i32_125 = arith.constant 1 : i32
    %516 = arith.cmpi sge, %515, %c1_i32_125 : i32
    %c2_i32_126 = arith.constant 2 : i32
    %517 = arith.cmpi sge, %515, %c2_i32_126 : i32
    %518 = arith.select %516, %492, %447 : vector<8x32xf32>
    %519 = arith.select %516, %490, %448 : vector<8x32xf32>
    %520 = arith.select %517, %513, %449 : vector<8x32xf32>
    %521 = arith.select %517, %511, %450 : vector<8x32xf32>
    %c7_i32 = arith.constant 7 : i32
    %522 = arith.index_cast %c7_i32 : i32 to index
    %c0_127 = arith.constant 0 : index
    %c0_128 = arith.constant 0 : index
    %523 = vector.load %arg15[%522, %c0_127, %c0_128] : memref<8x8x128xf32, #tpu.memory_space<vmem>>, vector<1x8x128xf32>
    %524 = vector.shape_cast %523 : vector<1x8x128xf32> to vector<8x128xf32>
    %cst_129 = arith.constant dense<0.000000e+00> : vector<8x128xf32>
    %525 = tpu.matmul %471, %3, %cst_129 {dimension_numbers = #tpu.dot_dimension_numbers<[1], [0], [0], [1], [0, 0, 1, 1], [], []>} : vector<8x32xf32>, vector<32x128xf32>, vector<8x128xf32> -> vector<8x128xf32>
    %526 = arith.addf %524, %525 : vector<8x128xf32>
    %527 = vector.extract_strided_slice %526 {offsets = [0, 0], sizes = [8, 96], strides = [1, 1]} : vector<8x128xf32> to vector<8x96xf32>
    %528 = arith.negf %527 : vector<8x96xf32>
    %529 = math.exp %528 : vector<8x96xf32>
    %cst_130 = arith.constant 1.000000e+00 : f32
    %530 = vector.broadcast %cst_130 : f32 to vector<8x96xf32>
    %531 = arith.addf %530, %529 : vector<8x96xf32>
    %532 = arith.divf %530, %531 : vector<8x96xf32>
    %533 = vector.extract_strided_slice %532 {offsets = [0, 0], sizes = [8, 32], strides = [1, 1]} : vector<8x96xf32> to vector<8x32xf32>
    %534 = vector.extract_strided_slice %532 {offsets = [0, 32], sizes = [8, 32], strides = [1, 1]} : vector<8x96xf32> to vector<8x32xf32>
    %535 = vector.extract_strided_slice %532 {offsets = [0, 64], sizes = [8, 32], strides = [1, 1]} : vector<8x96xf32> to vector<8x32xf32>
    %536 = vector.extract_strided_slice %526 {offsets = [0, 96], sizes = [8, 32], strides = [1, 1]} : vector<8x128xf32> to vector<8x32xf32>
    %537 = math.tanh %536 : vector<8x32xf32>
    %538 = arith.mulf %534, %469 : vector<8x32xf32>
    %539 = arith.mulf %533, %537 : vector<8x32xf32>
    %540 = arith.addf %538, %539 : vector<8x32xf32>
    %541 = math.tanh %540 : vector<8x32xf32>
    %542 = arith.mulf %535, %541 : vector<8x32xf32>
    %cst_131 = arith.constant dense<0.000000e+00> : vector<8x128xf32>
    %543 = tpu.matmul %471, %4, %cst_131 {dimension_numbers = #tpu.dot_dimension_numbers<[1], [0], [0], [1], [0, 0, 1, 1], [], []>} : vector<8x32xf32>, vector<32x128xf32>, vector<8x128xf32> -> vector<8x128xf32>
    %cst_132 = arith.constant dense<0.000000e+00> : vector<8x128xf32>
    %544 = tpu.matmul %518, %5, %cst_132 {dimension_numbers = #tpu.dot_dimension_numbers<[1], [0], [0], [1], [0, 0, 1, 1], [], []>} : vector<8x32xf32>, vector<32x128xf32>, vector<8x128xf32> -> vector<8x128xf32>
    %545 = arith.addf %543, %544 : vector<8x128xf32>
    %546 = vector.broadcast %6 : vector<1x128xf32> to vector<8x128xf32>
    %547 = arith.addf %545, %546 : vector<8x128xf32>
    %548 = vector.extract_strided_slice %547 {offsets = [0, 0], sizes = [8, 96], strides = [1, 1]} : vector<8x128xf32> to vector<8x96xf32>
    %549 = arith.negf %548 : vector<8x96xf32>
    %550 = math.exp %549 : vector<8x96xf32>
    %cst_133 = arith.constant 1.000000e+00 : f32
    %551 = vector.broadcast %cst_133 : f32 to vector<8x96xf32>
    %552 = arith.addf %551, %550 : vector<8x96xf32>
    %553 = arith.divf %551, %552 : vector<8x96xf32>
    %554 = vector.extract_strided_slice %553 {offsets = [0, 0], sizes = [8, 32], strides = [1, 1]} : vector<8x96xf32> to vector<8x32xf32>
    %555 = vector.extract_strided_slice %553 {offsets = [0, 32], sizes = [8, 32], strides = [1, 1]} : vector<8x96xf32> to vector<8x32xf32>
    %556 = vector.extract_strided_slice %553 {offsets = [0, 64], sizes = [8, 32], strides = [1, 1]} : vector<8x96xf32> to vector<8x32xf32>
    %557 = vector.extract_strided_slice %547 {offsets = [0, 96], sizes = [8, 32], strides = [1, 1]} : vector<8x128xf32> to vector<8x32xf32>
    %558 = math.tanh %557 : vector<8x32xf32>
    %559 = arith.mulf %555, %519 : vector<8x32xf32>
    %560 = arith.mulf %554, %558 : vector<8x32xf32>
    %561 = arith.addf %559, %560 : vector<8x32xf32>
    %562 = math.tanh %561 : vector<8x32xf32>
    %563 = arith.mulf %556, %562 : vector<8x32xf32>
    %cst_134 = arith.constant dense<0.000000e+00> : vector<8x128xf32>
    %564 = tpu.matmul %518, %7, %cst_134 {dimension_numbers = #tpu.dot_dimension_numbers<[1], [0], [0], [1], [0, 0, 1, 1], [], []>} : vector<8x32xf32>, vector<32x128xf32>, vector<8x128xf32> -> vector<8x128xf32>
    %cst_135 = arith.constant dense<0.000000e+00> : vector<8x128xf32>
    %565 = tpu.matmul %520, %8, %cst_135 {dimension_numbers = #tpu.dot_dimension_numbers<[1], [0], [0], [1], [0, 0, 1, 1], [], []>} : vector<8x32xf32>, vector<32x128xf32>, vector<8x128xf32> -> vector<8x128xf32>
    %566 = arith.addf %564, %565 : vector<8x128xf32>
    %567 = vector.broadcast %9 : vector<1x128xf32> to vector<8x128xf32>
    %568 = arith.addf %566, %567 : vector<8x128xf32>
    %569 = vector.extract_strided_slice %568 {offsets = [0, 0], sizes = [8, 96], strides = [1, 1]} : vector<8x128xf32> to vector<8x96xf32>
    %570 = arith.negf %569 : vector<8x96xf32>
    %571 = math.exp %570 : vector<8x96xf32>
    %cst_136 = arith.constant 1.000000e+00 : f32
    %572 = vector.broadcast %cst_136 : f32 to vector<8x96xf32>
    %573 = arith.addf %572, %571 : vector<8x96xf32>
    %574 = arith.divf %572, %573 : vector<8x96xf32>
    %575 = vector.extract_strided_slice %574 {offsets = [0, 0], sizes = [8, 32], strides = [1, 1]} : vector<8x96xf32> to vector<8x32xf32>
    %576 = vector.extract_strided_slice %574 {offsets = [0, 32], sizes = [8, 32], strides = [1, 1]} : vector<8x96xf32> to vector<8x32xf32>
    %577 = vector.extract_strided_slice %574 {offsets = [0, 64], sizes = [8, 32], strides = [1, 1]} : vector<8x96xf32> to vector<8x32xf32>
    %578 = vector.extract_strided_slice %568 {offsets = [0, 96], sizes = [8, 32], strides = [1, 1]} : vector<8x128xf32> to vector<8x32xf32>
    %579 = math.tanh %578 : vector<8x32xf32>
    %580 = arith.mulf %576, %521 : vector<8x32xf32>
    %581 = arith.mulf %575, %579 : vector<8x32xf32>
    %582 = arith.addf %580, %581 : vector<8x32xf32>
    %583 = math.tanh %582 : vector<8x32xf32>
    %584 = arith.mulf %577, %583 : vector<8x32xf32>
    %c8_i32_137 = arith.constant 8 : i32
    %585 = arith.muli %arg1, %c8_i32_137 : i32
    %586 = arith.addi %585, %c7_i32 : i32
    %c1_i32_138 = arith.constant 1 : i32
    %587 = arith.cmpi sge, %586, %c1_i32_138 : i32
    %c2_i32_139 = arith.constant 2 : i32
    %588 = arith.cmpi sge, %586, %c2_i32_139 : i32
    %589 = arith.select %587, %563, %518 : vector<8x32xf32>
    %590 = arith.select %587, %561, %519 : vector<8x32xf32>
    %591 = arith.select %588, %584, %520 : vector<8x32xf32>
    %592 = arith.select %588, %582, %521 : vector<8x32xf32>
    %c8_i32_140 = arith.constant 8 : i32
    %c0_141 = arith.constant 0 : index
    %c0_142 = arith.constant 0 : index
    %593 = vector.load %arg16[%c0_141, %c0_142] : memref<8x32xf32, #tpu.memory_space<vmem>>, vector<8x32xf32>
    tpu.vector_store %arg16[%c0_141, %c0_142], %542 {strides = array<i32>} : memref<8x32xf32, #tpu.memory_space<vmem>>, vector<8x32xf32>,
    %c0_143 = arith.constant 0 : index
    %c0_144 = arith.constant 0 : index
    %594 = vector.load %arg17[%c0_143, %c0_144] : memref<8x32xf32, #tpu.memory_space<vmem>>, vector<8x32xf32>
    tpu.vector_store %arg17[%c0_143, %c0_144], %540 {strides = array<i32>} : memref<8x32xf32, #tpu.memory_space<vmem>>, vector<8x32xf32>,
    %c0_145 = arith.constant 0 : index
    %c0_146 = arith.constant 0 : index
    %595 = vector.load %arg18[%c0_145, %c0_146] : memref<8x32xf32, #tpu.memory_space<vmem>>, vector<8x32xf32>
    tpu.vector_store %arg18[%c0_145, %c0_146], %589 {strides = array<i32>} : memref<8x32xf32, #tpu.memory_space<vmem>>, vector<8x32xf32>,
    %c0_147 = arith.constant 0 : index
    %c0_148 = arith.constant 0 : index
    %596 = vector.load %arg19[%c0_147, %c0_148] : memref<8x32xf32, #tpu.memory_space<vmem>>, vector<8x32xf32>
    tpu.vector_store %arg19[%c0_147, %c0_148], %590 {strides = array<i32>} : memref<8x32xf32, #tpu.memory_space<vmem>>, vector<8x32xf32>,
    %c0_149 = arith.constant 0 : index
    %c0_150 = arith.constant 0 : index
    %597 = vector.load %arg20[%c0_149, %c0_150] : memref<8x32xf32, #tpu.memory_space<vmem>>, vector<8x32xf32>
    tpu.vector_store %arg20[%c0_149, %c0_150], %591 {strides = array<i32>} : memref<8x32xf32, #tpu.memory_space<vmem>>, vector<8x32xf32>,
    %c0_151 = arith.constant 0 : index
    %c0_152 = arith.constant 0 : index
    %598 = vector.load %arg21[%c0_151, %c0_152] : memref<8x32xf32, #tpu.memory_space<vmem>>, vector<8x32xf32>
    tpu.vector_store %arg21[%c0_151, %c0_152], %592 {strides = array<i32>} : memref<8x32xf32, #tpu.memory_space<vmem>>, vector<8x32xf32>,
    %c0_i32_153 = arith.constant 0 : i32
    %599 = arith.cmpi eq, %arg1, %c0_i32_153 : i32
    %600 = arith.extui %599 : i1 to i32
    %c0_i32_154 = arith.constant 0 : i32
    %601 = arith.cmpi ne, %600, %c0_i32_154 : i32
    scf.if %601 {
      %cst_155 = arith.constant dense<0.000000e+00> : vector<8x128xf32>
      %602 = tpu.matmul %542, %4, %cst_155 {dimension_numbers = #tpu.dot_dimension_numbers<[1], [0], [0], [1], [0, 0, 1, 1], [], []>} : vector<8x32xf32>, vector<32x128xf32>, vector<8x128xf32> -> vector<8x128xf32>
      %cst_156 = arith.constant dense<0.000000e+00> : vector<8x128xf32>
      %603 = tpu.matmul %589, %5, %cst_156 {dimension_numbers = #tpu.dot_dimension_numbers<[1], [0], [0], [1], [0, 0, 1, 1], [], []>} : vector<8x32xf32>, vector<32x128xf32>, vector<8x128xf32> -> vector<8x128xf32>
      %604 = arith.addf %602, %603 : vector<8x128xf32>
      %605 = vector.broadcast %6 : vector<1x128xf32> to vector<8x128xf32>
      %606 = arith.addf %604, %605 : vector<8x128xf32>
      %607 = vector.extract_strided_slice %606 {offsets = [0, 0], sizes = [8, 96], strides = [1, 1]} : vector<8x128xf32> to vector<8x96xf32>
      %608 = arith.negf %607 : vector<8x96xf32>
      %609 = math.exp %608 : vector<8x96xf32>
      %cst_157 = arith.constant 1.000000e+00 : f32
      %610 = vector.broadcast %cst_157 : f32 to vector<8x96xf32>
      %611 = arith.addf %610, %609 : vector<8x96xf32>
      %612 = arith.divf %610, %611 : vector<8x96xf32>
      %613 = vector.extract_strided_slice %612 {offsets = [0, 0], sizes = [8, 32], strides = [1, 1]} : vector<8x96xf32> to vector<8x32xf32>
      %614 = vector.extract_strided_slice %612 {offsets = [0, 32], sizes = [8, 32], strides = [1, 1]} : vector<8x96xf32> to vector<8x32xf32>
      %615 = vector.extract_strided_slice %612 {offsets = [0, 64], sizes = [8, 32], strides = [1, 1]} : vector<8x96xf32> to vector<8x32xf32>
      %616 = vector.extract_strided_slice %606 {offsets = [0, 96], sizes = [8, 32], strides = [1, 1]} : vector<8x128xf32> to vector<8x32xf32>
      %617 = math.tanh %616 : vector<8x32xf32>
      %618 = arith.mulf %614, %590 : vector<8x32xf32>
      %619 = arith.mulf %613, %617 : vector<8x32xf32>
      %620 = arith.addf %618, %619 : vector<8x32xf32>
      %621 = math.tanh %620 : vector<8x32xf32>
      %622 = arith.mulf %615, %621 : vector<8x32xf32>
      %cst_158 = arith.constant dense<0.000000e+00> : vector<8x128xf32>
      %623 = tpu.matmul %589, %7, %cst_158 {dimension_numbers = #tpu.dot_dimension_numbers<[1], [0], [0], [1], [0, 0, 1, 1], [], []>} : vector<8x32xf32>, vector<32x128xf32>, vector<8x128xf32> -> vector<8x128xf32>
      %cst_159 = arith.constant dense<0.000000e+00> : vector<8x128xf32>
      %624 = tpu.matmul %591, %8, %cst_159 {dimension_numbers = #tpu.dot_dimension_numbers<[1], [0], [0], [1], [0, 0, 1, 1], [], []>} : vector<8x32xf32>, vector<32x128xf32>, vector<8x128xf32> -> vector<8x128xf32>
      %625 = arith.addf %623, %624 : vector<8x128xf32>
      %626 = vector.broadcast %9 : vector<1x128xf32> to vector<8x128xf32>
      %627 = arith.addf %625, %626 : vector<8x128xf32>
      %628 = vector.extract_strided_slice %627 {offsets = [0, 0], sizes = [8, 96], strides = [1, 1]} : vector<8x128xf32> to vector<8x96xf32>
      %629 = arith.negf %628 : vector<8x96xf32>
      %630 = math.exp %629 : vector<8x96xf32>
      %cst_160 = arith.constant 1.000000e+00 : f32
      %631 = vector.broadcast %cst_160 : f32 to vector<8x96xf32>
      %632 = arith.addf %631, %630 : vector<8x96xf32>
      %633 = arith.divf %631, %632 : vector<8x96xf32>
      %634 = vector.extract_strided_slice %633 {offsets = [0, 0], sizes = [8, 32], strides = [1, 1]} : vector<8x96xf32> to vector<8x32xf32>
      %635 = vector.extract_strided_slice %633 {offsets = [0, 32], sizes = [8, 32], strides = [1, 1]} : vector<8x96xf32> to vector<8x32xf32>
      %636 = vector.extract_strided_slice %633 {offsets = [0, 64], sizes = [8, 32], strides = [1, 1]} : vector<8x96xf32> to vector<8x32xf32>
      %637 = vector.extract_strided_slice %627 {offsets = [0, 96], sizes = [8, 32], strides = [1, 1]} : vector<8x128xf32> to vector<8x32xf32>
      %638 = math.tanh %637 : vector<8x32xf32>
      %639 = arith.mulf %635, %592 : vector<8x32xf32>
      %640 = arith.mulf %634, %638 : vector<8x32xf32>
      %641 = arith.addf %639, %640 : vector<8x32xf32>
      %642 = math.tanh %641 : vector<8x32xf32>
      %643 = arith.mulf %636, %642 : vector<8x32xf32>
      %cst_161 = arith.constant dense<0.000000e+00> : vector<8x128xf32>
      %644 = tpu.matmul %622, %7, %cst_161 {dimension_numbers = #tpu.dot_dimension_numbers<[1], [0], [0], [1], [0, 0, 1, 1], [], []>} : vector<8x32xf32>, vector<32x128xf32>, vector<8x128xf32> -> vector<8x128xf32>
      %cst_162 = arith.constant dense<0.000000e+00> : vector<8x128xf32>
      %645 = tpu.matmul %643, %8, %cst_162 {dimension_numbers = #tpu.dot_dimension_numbers<[1], [0], [0], [1], [0, 0, 1, 1], [], []>} : vector<8x32xf32>, vector<32x128xf32>, vector<8x128xf32> -> vector<8x128xf32>
      %646 = arith.addf %644, %645 : vector<8x128xf32>
      %647 = vector.broadcast %9 : vector<1x128xf32> to vector<8x128xf32>
      %648 = arith.addf %646, %647 : vector<8x128xf32>
      %649 = vector.extract_strided_slice %648 {offsets = [0, 0], sizes = [8, 96], strides = [1, 1]} : vector<8x128xf32> to vector<8x96xf32>
      %650 = arith.negf %649 : vector<8x96xf32>
      %651 = math.exp %650 : vector<8x96xf32>
      %cst_163 = arith.constant 1.000000e+00 : f32
      %652 = vector.broadcast %cst_163 : f32 to vector<8x96xf32>
      %653 = arith.addf %652, %651 : vector<8x96xf32>
      %654 = arith.divf %652, %653 : vector<8x96xf32>
      %655 = vector.extract_strided_slice %654 {offsets = [0, 0], sizes = [8, 32], strides = [1, 1]} : vector<8x96xf32> to vector<8x32xf32>
      %656 = vector.extract_strided_slice %654 {offsets = [0, 32], sizes = [8, 32], strides = [1, 1]} : vector<8x96xf32> to vector<8x32xf32>
      %657 = vector.extract_strided_slice %654 {offsets = [0, 64], sizes = [8, 32], strides = [1, 1]} : vector<8x96xf32> to vector<8x32xf32>
      %658 = vector.extract_strided_slice %648 {offsets = [0, 96], sizes = [8, 32], strides = [1, 1]} : vector<8x128xf32> to vector<8x32xf32>
      %659 = math.tanh %658 : vector<8x32xf32>
      %660 = arith.mulf %656, %641 : vector<8x32xf32>
      %661 = arith.mulf %655, %659 : vector<8x32xf32>
      %662 = arith.addf %660, %661 : vector<8x32xf32>
      %663 = math.tanh %662 : vector<8x32xf32>
      %664 = arith.mulf %657, %663 : vector<8x32xf32>
      %c0_164 = arith.constant 0 : index
      %c0_165 = arith.constant 0 : index
      %665 = vector.load %arg12[%c0_164, %c0_165] : memref<32x128xf32, #tpu.memory_space<vmem>>, vector<32x128xf32>
      %cst_166 = arith.constant dense<0.000000e+00> : vector<8x128xf32>
      %666 = tpu.matmul %664, %665, %cst_166 {dimension_numbers = #tpu.dot_dimension_numbers<[1], [0], [0], [1], [0, 0, 1, 1], [], []>} : vector<8x32xf32>, vector<32x128xf32>, vector<8x128xf32> -> vector<8x128xf32>
      %c0_167 = arith.constant 0 : index
      %c0_168 = arith.constant 0 : index
      %667 = vector.load %arg13[%c0_167, %c0_168] : memref<1x128xf32, #tpu.memory_space<vmem>>, vector<1x128xf32>
      %668 = vector.broadcast %667 : vector<1x128xf32> to vector<8x128xf32>
      %669 = arith.addf %666, %668 : vector<8x128xf32>
      %cst_169 = arith.constant 0.000000e+00 : f32
      %670 = vector.broadcast %cst_169 : f32 to vector<8x128xf32>
      %671 = arith.maximumf %669, %670 : vector<8x128xf32>
      %c0_170 = arith.constant 0 : index
      %c0_171 = arith.constant 0 : index
      %672 = vector.load %arg14[%c0_170, %c0_171] : memref<8x128xf32, #tpu.memory_space<vmem>>, vector<8x128xf32>
      tpu.vector_store %arg14[%c0_170, %c0_171], %671 {strides = array<i32>} : memref<8x128xf32, #tpu.memory_space<vmem>>, vector<8x128xf32>,
    } else {
    }
    return
  }
  func.func @transform_0(%arg0: i32, %arg1: i32) -> (i32, i32, i32) {
    %c0_i32 = arith.constant 0 : i32
    %c0_i32_0 = arith.constant 0 : i32
    return %arg1, %arg0, %c0_i32 : i32, i32, i32
  }
  func.func @transform_1(%arg0: i32, %arg1: i32) -> (i32, i32) {
    %c0_i32 = arith.constant 0 : i32
    %c0_i32_0 = arith.constant 0 : i32
    %c0_i32_1 = arith.constant 0 : i32
    return %c0_i32, %c0_i32_0 : i32, i32
  }
  func.func @transform_2(%arg0: i32, %arg1: i32) -> (i32, i32) {
    %c0_i32 = arith.constant 0 : i32
    %c0_i32_0 = arith.constant 0 : i32
    %c0_i32_1 = arith.constant 0 : i32
    return %c0_i32, %c0_i32_0 : i32, i32
  }
  func.func @transform_3(%arg0: i32, %arg1: i32) -> (i32, i32) {
    %c0_i32 = arith.constant 0 : i32
    %c0_i32_0 = arith.constant 0 : i32
    %c0_i32_1 = arith.constant 0 : i32
    return %c0_i32, %c0_i32_0 : i32, i32
  }
  func.func @transform_4(%arg0: i32, %arg1: i32) -> (i32, i32) {
    %c0_i32 = arith.constant 0 : i32
    %c0_i32_0 = arith.constant 0 : i32
    %c0_i32_1 = arith.constant 0 : i32
    return %c0_i32, %c0_i32_0 : i32, i32
  }
  func.func @transform_5(%arg0: i32, %arg1: i32) -> (i32, i32) {
    %c0_i32 = arith.constant 0 : i32
    %c0_i32_0 = arith.constant 0 : i32
    %c0_i32_1 = arith.constant 0 : i32
    return %c0_i32, %c0_i32_0 : i32, i32
  }
  func.func @transform_6(%arg0: i32, %arg1: i32) -> (i32, i32) {
    %c0_i32 = arith.constant 0 : i32
    %c0_i32_0 = arith.constant 0 : i32
    %c0_i32_1 = arith.constant 0 : i32
    return %c0_i32, %c0_i32_0 : i32, i32
  }
  func.func @transform_7(%arg0: i32, %arg1: i32) -> (i32, i32) {
    %c0_i32 = arith.constant 0 : i32
    %c0_i32_0 = arith.constant 0 : i32
    %c0_i32_1 = arith.constant 0 : i32
    return %c0_i32, %c0_i32_0 : i32, i32
  }
  func.func @transform_8(%arg0: i32, %arg1: i32) -> (i32, i32) {
    %c0_i32 = arith.constant 0 : i32
    %c0_i32_0 = arith.constant 0 : i32
    %c0_i32_1 = arith.constant 0 : i32
    return %c0_i32, %c0_i32_0 : i32, i32
  }
  func.func @transform_9(%arg0: i32, %arg1: i32) -> (i32, i32) {
    %c0_i32 = arith.constant 0 : i32
    %c0_i32_0 = arith.constant 0 : i32
    %c0_i32_1 = arith.constant 0 : i32
    return %c0_i32, %c0_i32_0 : i32, i32
  }
  func.func @transform_10(%arg0: i32, %arg1: i32) -> (i32, i32) {
    %c0_i32 = arith.constant 0 : i32
    %c0_i32_0 = arith.constant 0 : i32
    %c0_i32_1 = arith.constant 0 : i32
    return %c0_i32, %c0_i32_0 : i32, i32
  }
  func.func @transform_11(%arg0: i32, %arg1: i32) -> (i32, i32) {
    %c0_i32 = arith.constant 0 : i32
    %c0_i32_0 = arith.constant 0 : i32
    %c0_i32_1 = arith.constant 0 : i32
    return %c0_i32, %c0_i32_0 : i32, i32
  }
  func.func @transform_12(%arg0: i32, %arg1: i32) -> (i32, i32) {
    %c0_i32 = arith.constant 0 : i32
    %c0_i32_0 = arith.constant 0 : i32
    return %arg0, %c0_i32 : i32, i32
  }
}

module attributes {stable_mosaic.version = 11 : i64} {
  func.func @_speaker_encoder_kernel(%arg0: i32, %arg1: i32, %arg2: memref<8x8x16xf32, #tpu.memory_space<vmem>>, %arg3: memref<16x128xf32, #tpu.memory_space<vmem>>, %arg4: memref<32x128xf32, #tpu.memory_space<vmem>>, %arg5: memref<1x128xf32, #tpu.memory_space<vmem>>, %arg6: memref<32x128xf32, #tpu.memory_space<vmem>>, %arg7: memref<32x128xf32, #tpu.memory_space<vmem>>, %arg8: memref<1x128xf32, #tpu.memory_space<vmem>>, %arg9: memref<32x128xf32, #tpu.memory_space<vmem>>, %arg10: memref<32x128xf32, #tpu.memory_space<vmem>>, %arg11: memref<1x128xf32, #tpu.memory_space<vmem>>, %arg12: memref<32x128xf32, #tpu.memory_space<vmem>>, %arg13: memref<1x128xf32, #tpu.memory_space<vmem>>, %arg14: memref<8x128xf32, #tpu.memory_space<vmem>>, %arg15: memref<8x8x128xf32, #tpu.memory_space<vmem>>, %arg16: memref<8x32xf32, #tpu.memory_space<vmem>>, %arg17: memref<8x32xf32, #tpu.memory_space<vmem>>, %arg18: memref<8x32xf32, #tpu.memory_space<vmem>>, %arg19: memref<8x32xf32, #tpu.memory_space<vmem>>, %arg20: memref<8x32xf32, #tpu.memory_space<vmem>>, %arg21: memref<8x32xf32, #tpu.memory_space<vmem>>) attributes {dimension_semantics = [#tpu.dimension_semantics<parallel>, #tpu.dimension_semantics<arbitrary>], iteration_bounds = array<i64: 1, 1>, scalar_prefetch = 0 : i64, scratch_operands = 7 : i64, tpu.core_type = #tpu.core_type<tc>, window_params = [{transform_indices = @transform_0, window_bounds = array<i64: 8, 8, 16>}, {pipeline_mode = #tpu.pipeline_mode<synchronous>, transform_indices = @transform_1, window_bounds = array<i64: 16, 128>}, {pipeline_mode = #tpu.pipeline_mode<synchronous>, transform_indices = @transform_2, window_bounds = array<i64: 32, 128>}, {pipeline_mode = #tpu.pipeline_mode<synchronous>, transform_indices = @transform_3, window_bounds = array<i64: 1, 128>}, {pipeline_mode = #tpu.pipeline_mode<synchronous>, transform_indices = @transform_4, window_bounds = array<i64: 32, 128>}, {pipeline_mode = #tpu.pipeline_mode<synchronous>, transform_indices = @transform_5, window_bounds = array<i64: 32, 128>}, {pipeline_mode = #tpu.pipeline_mode<synchronous>, transform_indices = @transform_6, window_bounds = array<i64: 1, 128>}, {pipeline_mode = #tpu.pipeline_mode<synchronous>, transform_indices = @transform_7, window_bounds = array<i64: 32, 128>}, {pipeline_mode = #tpu.pipeline_mode<synchronous>, transform_indices = @transform_8, window_bounds = array<i64: 32, 128>}, {pipeline_mode = #tpu.pipeline_mode<synchronous>, transform_indices = @transform_9, window_bounds = array<i64: 1, 128>}, {pipeline_mode = #tpu.pipeline_mode<synchronous>, transform_indices = @transform_10, window_bounds = array<i64: 32, 128>}, {pipeline_mode = #tpu.pipeline_mode<synchronous>, transform_indices = @transform_11, window_bounds = array<i64: 1, 128>}, {transform_indices = @transform_12, window_bounds = array<i64: 8, 128>}]} {
    %c0_i32 = arith.constant 0 : i32
    %0 = arith.cmpi eq, %arg1, %c0_i32 : i32
    %1 = arith.extui %0 : i1 to i32
    %c0_i32_0 = arith.constant 0 : i32
    %2 = arith.cmpi ne, %1, %c0_i32_0 : i32
    scf.if %2 {
      %cst_155 = arith.constant 0.000000e+00 : f32
      %602 = vector.broadcast %cst_155 : f32 to vector<8x32xf32>
      %c0_156 = arith.constant 0 : index
      %c0_157 = arith.constant 0 : index
      %603 = vector.load %arg16[%c0_156, %c0_157] : memref<8x32xf32, #tpu.memory_space<vmem>>, vector<8x32xf32>
      tpu.vector_store %arg16[%c0_156, %c0_157], %602 {strides = array<i32>} : memref<8x32xf32, #tpu.memory_space<vmem>>, vector<8x32xf32>,
      %cst_158 = arith.constant 0.000000e+00 : f32
      %604 = vector.broadcast %cst_158 : f32 to vector<8x32xf32>
      %c0_159 = arith.constant 0 : index
      %c0_160 = arith.constant 0 : index
      %605 = vector.load %arg17[%c0_159, %c0_160] : memref<8x32xf32, #tpu.memory_space<vmem>>, vector<8x32xf32>
      tpu.vector_store %arg17[%c0_159, %c0_160], %604 {strides = array<i32>} : memref<8x32xf32, #tpu.memory_space<vmem>>, vector<8x32xf32>,
      %cst_161 = arith.constant 0.000000e+00 : f32
      %606 = vector.broadcast %cst_161 : f32 to vector<8x32xf32>
      %c0_162 = arith.constant 0 : index
      %c0_163 = arith.constant 0 : index
      %607 = vector.load %arg18[%c0_162, %c0_163] : memref<8x32xf32, #tpu.memory_space<vmem>>, vector<8x32xf32>
      tpu.vector_store %arg18[%c0_162, %c0_163], %606 {strides = array<i32>} : memref<8x32xf32, #tpu.memory_space<vmem>>, vector<8x32xf32>,
      %cst_164 = arith.constant 0.000000e+00 : f32
      %608 = vector.broadcast %cst_164 : f32 to vector<8x32xf32>
      %c0_165 = arith.constant 0 : index
      %c0_166 = arith.constant 0 : index
      %609 = vector.load %arg19[%c0_165, %c0_166] : memref<8x32xf32, #tpu.memory_space<vmem>>, vector<8x32xf32>
      tpu.vector_store %arg19[%c0_165, %c0_166], %608 {strides = array<i32>} : memref<8x32xf32, #tpu.memory_space<vmem>>, vector<8x32xf32>,
      %cst_167 = arith.constant 0.000000e+00 : f32
      %610 = vector.broadcast %cst_167 : f32 to vector<8x32xf32>
      %c0_168 = arith.constant 0 : index
      %c0_169 = arith.constant 0 : index
      %611 = vector.load %arg20[%c0_168, %c0_169] : memref<8x32xf32, #tpu.memory_space<vmem>>, vector<8x32xf32>
      tpu.vector_store %arg20[%c0_168, %c0_169], %610 {strides = array<i32>} : memref<8x32xf32, #tpu.memory_space<vmem>>, vector<8x32xf32>,
      %cst_170 = arith.constant 0.000000e+00 : f32
      %612 = vector.broadcast %cst_170 : f32 to vector<8x32xf32>
      %c0_171 = arith.constant 0 : index
      %c0_172 = arith.constant 0 : index
      %613 = vector.load %arg21[%c0_171, %c0_172] : memref<8x32xf32, #tpu.memory_space<vmem>>, vector<8x32xf32>
      tpu.vector_store %arg21[%c0_171, %c0_172], %612 {strides = array<i32>} : memref<8x32xf32, #tpu.memory_space<vmem>>, vector<8x32xf32>,
    } else {
    }
    %c0 = arith.constant 0 : index
    %c0_1 = arith.constant 0 : index
    %3 = vector.load %arg4[%c0, %c0_1] : memref<32x128xf32, #tpu.memory_space<vmem>>, vector<32x128xf32>
    %c0_2 = arith.constant 0 : index
    %c0_3 = arith.constant 0 : index
    %4 = vector.load %arg6[%c0_2, %c0_3] : memref<32x128xf32, #tpu.memory_space<vmem>>, vector<32x128xf32>
    %c0_4 = arith.constant 0 : index
    %c0_5 = arith.constant 0 : index
    %5 = vector.load %arg7[%c0_4, %c0_5] : memref<32x128xf32, #tpu.memory_space<vmem>>, vector<32x128xf32>
    %c0_6 = arith.constant 0 : index
    %c0_7 = arith.constant 0 : index
    %6 = vector.load %arg8[%c0_6, %c0_7] : memref<1x128xf32, #tpu.memory_space<vmem>>, vector<1x128xf32>
    %c0_8 = arith.constant 0 : index
    %c0_9 = arith.constant 0 : index
    %7 = vector.load %arg9[%c0_8, %c0_9] : memref<32x128xf32, #tpu.memory_space<vmem>>, vector<32x128xf32>
    %c0_10 = arith.constant 0 : index
    %c0_11 = arith.constant 0 : index
    %8 = vector.load %arg10[%c0_10, %c0_11] : memref<32x128xf32, #tpu.memory_space<vmem>>, vector<32x128xf32>
    %c0_12 = arith.constant 0 : index
    %c0_13 = arith.constant 0 : index
    %9 = vector.load %arg11[%c0_12, %c0_13] : memref<1x128xf32, #tpu.memory_space<vmem>>, vector<1x128xf32>
    %c0_14 = arith.constant 0 : index
    %c0_15 = arith.constant 0 : index
    %c0_16 = arith.constant 0 : index
    %10 = vector.load %arg2[%c0_14, %c0_15, %c0_16] : memref<8x8x16xf32, #tpu.memory_space<vmem>>, vector<8x8x16xf32>
    %11 = vector.shape_cast %10 : vector<8x8x16xf32> to vector<64x16xf32>
    %c0_17 = arith.constant 0 : index
    %c0_18 = arith.constant 0 : index
    %12 = vector.load %arg3[%c0_17, %c0_18] : memref<16x128xf32, #tpu.memory_space<vmem>>, vector<16x128xf32>
    %cst = arith.constant dense<0.000000e+00> : vector<64x128xf32>
    %13 = tpu.matmul %11, %12, %cst {dimension_numbers = #tpu.dot_dimension_numbers<[1], [0], [0], [1], [0, 0, 1, 1], [], []>} : vector<64x16xf32>, vector<16x128xf32>, vector<64x128xf32> -> vector<64x128xf32>
    %c0_19 = arith.constant 0 : index
    %c0_20 = arith.constant 0 : index
    %14 = vector.load %arg5[%c0_19, %c0_20] : memref<1x128xf32, #tpu.memory_space<vmem>>, vector<1x128xf32>
    %15 = vector.broadcast %14 : vector<1x128xf32> to vector<64x128xf32>
    %16 = arith.addf %13, %15 : vector<64x128xf32>
    %17 = vector.shape_cast %16 : vector<64x128xf32> to vector<8x8x128xf32>
    %c0_21 = arith.constant 0 : index
    %c0_22 = arith.constant 0 : index
    %c0_23 = arith.constant 0 : index
    %18 = vector.load %arg15[%c0_21, %c0_22, %c0_23] : memref<8x8x128xf32, #tpu.memory_space<vmem>>, vector<8x8x128xf32>
    tpu.vector_store %arg15[%c0_21, %c0_22, %c0_23], %17 {strides = array<i32>} : memref<8x8x128xf32, #tpu.memory_space<vmem>>, vector<8x8x128xf32>,
    %c0_24 = arith.constant 0 : index
    %c0_25 = arith.constant 0 : index
    %19 = vector.load %arg16[%c0_24, %c0_25] : memref<8x32xf32, #tpu.memory_space<vmem>>, vector<8x32xf32>
    %c0_26 = arith.constant 0 : index
    %c0_27 = arith.constant 0 : index
    %20 = vector.load %arg17[%c0_26, %c0_27] : memref<8x32xf32, #tpu.memory_space<vmem>>, vector<8x32xf32>
    %c0_28 = arith.constant 0 : index
    %c0_29 = arith.constant 0 : index
    %21 = vector.load %arg18[%c0_28, %c0_29] : memref<8x32xf32, #tpu.memory_space<vmem>>, vector<8x32xf32>
    %c0_30 = arith.constant 0 : index
    %c0_31 = arith.constant 0 : index
    %22 = vector.load %arg19[%c0_30, %c0_31] : memref<8x32xf32, #tpu.memory_space<vmem>>, vector<8x32xf32>
    %c0_32 = arith.constant 0 : index
    %c0_33 = arith.constant 0 : index
    %23 = vector.load %arg20[%c0_32, %c0_33] : memref<8x32xf32, #tpu.memory_space<vmem>>, vector<8x32xf32>
    %c0_34 = arith.constant 0 : index
    %c0_35 = arith.constant 0 : index
    %24 = vector.load %arg21[%c0_34, %c0_35] : memref<8x32xf32, #tpu.memory_space<vmem>>, vector<8x32xf32>
    %c0_i32_36 = arith.constant 0 : i32
    %25 = arith.index_cast %c0_i32_36 : i32 to index
    %c0_37 = arith.constant 0 : index
    %c0_38 = arith.constant 0 : index
    %26 = vector.load %arg15[%25, %c0_37, %c0_38] : memref<8x8x128xf32, #tpu.memory_space<vmem>>, vector<1x8x128xf32>
    %27 = vector.shape_cast %26 : vector<1x8x128xf32> to vector<8x128xf32>
    %cst_39 = arith.constant dense<0.000000e+00> : vector<8x128xf32>
    %28 = tpu.matmul %19, %3, %cst_39 {dimension_numbers = #tpu.dot_dimension_numbers<[1], [0], [0], [1], [0, 0, 1, 1], [], []>} : vector<8x32xf32>, vector<32x128xf32>, vector<8x128xf32> -> vector<8x128xf32>
    %29 = arith.addf %27, %28 : vector<8x128xf32>
    %30 = vector.extract_strided_slice %29 {offsets = [0, 0], sizes = [8, 96], strides = [1, 1]} : vector<8x128xf32> to vector<8x96xf32>
    %31 = arith.negf %30 : vector<8x96xf32>
    %32 = math.exp %31 : vector<8x96xf32>
    %cst_40 = arith.constant 1.000000e+00 : f32
    %33 = vector.broadcast %cst_40 : f32 to vector<8x96xf32>
    %34 = arith.addf %33, %32 : vector<8x96xf32>
    %35 = arith.divf %33, %34 : vector<8x96xf32>
    %36 = vector.extract_strided_slice %35 {offsets = [0, 0], sizes = [8, 32], strides = [1, 1]} : vector<8x96xf32> to vector<8x32xf32>
    %37 = vector.extract_strided_slice %35 {offsets = [0, 32], sizes = [8, 32], strides = [1, 1]} : vector<8x96xf32> to vector<8x32xf32>
    %38 = vector.extract_strided_slice %35 {offsets = [0, 64], sizes = [8, 32], strides = [1, 1]} : vector<8x96xf32> to vector<8x32xf32>
    %39 = vector.extract_strided_slice %29 {offsets = [0, 96], sizes = [8, 32], strides = [1, 1]} : vector<8x128xf32> to vector<8x32xf32>
    %40 = math.tanh %39 : vector<8x32xf32>
    %41 = arith.mulf %37, %20 : vector<8x32xf32>
    %42 = arith.mulf %36, %40 : vector<8x32xf32>
    %43 = arith.addf %41, %42 : vector<8x32xf32>
    %44 = math.tanh %43 : vector<8x32xf32>
    %45 = arith.mulf %38, %44 : vector<8x32xf32>
    %cst_41 = arith.constant dense<0.000000e+00> : vector<8x128xf32>
    %46 = tpu.matmul %19, %4, %cst_41 {dimension_numbers = #tpu.dot_dimension_numbers<[1], [0], [0], [1], [0, 0, 1, 1], [], []>} : vector<8x32xf32>, vector<32x128xf32>, vector<8x128xf32> -> vector<8x128xf32>
    %cst_42 = arith.constant dense<0.000000e+00> : vector<8x128xf32>
    %47 = tpu.matmul %21, %5, %cst_42 {dimension_numbers = #tpu.dot_dimension_numbers<[1], [0], [0], [1], [0, 0, 1, 1], [], []>} : vector<8x32xf32>, vector<32x128xf32>, vector<8x128xf32> -> vector<8x128xf32>
    %48 = arith.addf %46, %47 : vector<8x128xf32>
    %49 = vector.broadcast %6 : vector<1x128xf32> to vector<8x128xf32>
    %50 = arith.addf %48, %49 : vector<8x128xf32>
    %51 = vector.extract_strided_slice %50 {offsets = [0, 0], sizes = [8, 96], strides = [1, 1]} : vector<8x128xf32> to vector<8x96xf32>
    %52 = arith.negf %51 : vector<8x96xf32>
    %53 = math.exp %52 : vector<8x96xf32>
    %cst_43 = arith.constant 1.000000e+00 : f32
    %54 = vector.broadcast %cst_43 : f32 to vector<8x96xf32>
    %55 = arith.addf %54, %53 : vector<8x96xf32>
    %56 = arith.divf %54, %55 : vector<8x96xf32>
    %57 = vector.extract_strided_slice %56 {offsets = [0, 0], sizes = [8, 32], strides = [1, 1]} : vector<8x96xf32> to vector<8x32xf32>
    %58 = vector.extract_strided_slice %56 {offsets = [0, 32], sizes = [8, 32], strides = [1, 1]} : vector<8x96xf32> to vector<8x32xf32>
    %59 = vector.extract_strided_slice %56 {offsets = [0, 64], sizes = [8, 32], strides = [1, 1]} : vector<8x96xf32> to vector<8x32xf32>
    %60 = vector.extract_strided_slice %50 {offsets = [0, 96], sizes = [8, 32], strides = [1, 1]} : vector<8x128xf32> to vector<8x32xf32>
    %61 = math.tanh %60 : vector<8x32xf32>
    %62 = arith.mulf %58, %22 : vector<8x32xf32>
    %63 = arith.mulf %57, %61 : vector<8x32xf32>
    %64 = arith.addf %62, %63 : vector<8x32xf32>
    %65 = math.tanh %64 : vector<8x32xf32>
    %66 = arith.mulf %59, %65 : vector<8x32xf32>
    %cst_44 = arith.constant dense<0.000000e+00> : vector<8x128xf32>
    %67 = tpu.matmul %21, %7, %cst_44 {dimension_numbers = #tpu.dot_dimension_numbers<[1], [0], [0], [1], [0, 0, 1, 1], [], []>} : vector<8x32xf32>, vector<32x128xf32>, vector<8x128xf32> -> vector<8x128xf32>
    %cst_45 = arith.constant dense<0.000000e+00> : vector<8x128xf32>
    %68 = tpu.matmul %23, %8, %cst_45 {dimension_numbers = #tpu.dot_dimension_numbers<[1], [0], [0], [1], [0, 0, 1, 1], [], []>} : vector<8x32xf32>, vector<32x128xf32>, vector<8x128xf32> -> vector<8x128xf32>
    %69 = arith.addf %67, %68 : vector<8x128xf32>
    %70 = vector.broadcast %9 : vector<1x128xf32> to vector<8x128xf32>
    %71 = arith.addf %69, %70 : vector<8x128xf32>
    %72 = vector.extract_strided_slice %71 {offsets = [0, 0], sizes = [8, 96], strides = [1, 1]} : vector<8x128xf32> to vector<8x96xf32>
    %73 = arith.negf %72 : vector<8x96xf32>
    %74 = math.exp %73 : vector<8x96xf32>
    %cst_46 = arith.constant 1.000000e+00 : f32
    %75 = vector.broadcast %cst_46 : f32 to vector<8x96xf32>
    %76 = arith.addf %75, %74 : vector<8x96xf32>
    %77 = arith.divf %75, %76 : vector<8x96xf32>
    %78 = vector.extract_strided_slice %77 {offsets = [0, 0], sizes = [8, 32], strides = [1, 1]} : vector<8x96xf32> to vector<8x32xf32>
    %79 = vector.extract_strided_slice %77 {offsets = [0, 32], sizes = [8, 32], strides = [1, 1]} : vector<8x96xf32> to vector<8x32xf32>
    %80 = vector.extract_strided_slice %77 {offsets = [0, 64], sizes = [8, 32], strides = [1, 1]} : vector<8x96xf32> to vector<8x32xf32>
    %81 = vector.extract_strided_slice %71 {offsets = [0, 96], sizes = [8, 32], strides = [1, 1]} : vector<8x128xf32> to vector<8x32xf32>
    %82 = math.tanh %81 : vector<8x32xf32>
    %83 = arith.mulf %79, %24 : vector<8x32xf32>
    %84 = arith.mulf %78, %82 : vector<8x32xf32>
    %85 = arith.addf %83, %84 : vector<8x32xf32>
    %86 = math.tanh %85 : vector<8x32xf32>
    %87 = arith.mulf %80, %86 : vector<8x32xf32>
    %c8_i32 = arith.constant 8 : i32
    %88 = arith.muli %arg1, %c8_i32 : i32
    %89 = arith.addi %88, %c0_i32_36 : i32
    %c1_i32 = arith.constant 1 : i32
    %90 = arith.cmpi sge, %89, %c1_i32 : i32
    %c2_i32 = arith.constant 2 : i32
    %91 = arith.cmpi sge, %89, %c2_i32 : i32
    %92 = arith.select %90, %66, %21 : vector<8x32xf32>
    %93 = arith.select %90, %64, %22 : vector<8x32xf32>
    %94 = arith.select %91, %87, %23 : vector<8x32xf32>
    %95 = arith.select %91, %85, %24 : vector<8x32xf32>
    %c1_i32_47 = arith.constant 1 : i32
    %96 = arith.index_cast %c1_i32_47 : i32 to index
    %c0_48 = arith.constant 0 : index
    %c0_49 = arith.constant 0 : index
    %97 = vector.load %arg15[%96, %c0_48, %c0_49] : memref<8x8x128xf32, #tpu.memory_space<vmem>>, vector<1x8x128xf32>
    %98 = vector.shape_cast %97 : vector<1x8x128xf32> to vector<8x128xf32>
    %cst_50 = arith.constant dense<0.000000e+00> : vector<8x128xf32>
    %99 = tpu.matmul %45, %3, %cst_50 {dimension_numbers = #tpu.dot_dimension_numbers<[1], [0], [0], [1], [0, 0, 1, 1], [], []>} : vector<8x32xf32>, vector<32x128xf32>, vector<8x128xf32> -> vector<8x128xf32>
    %100 = arith.addf %98, %99 : vector<8x128xf32>
    %101 = vector.extract_strided_slice %100 {offsets = [0, 0], sizes = [8, 96], strides = [1, 1]} : vector<8x128xf32> to vector<8x96xf32>
    %102 = arith.negf %101 : vector<8x96xf32>
    %103 = math.exp %102 : vector<8x96xf32>
    %cst_51 = arith.constant 1.000000e+00 : f32
    %104 = vector.broadcast %cst_51 : f32 to vector<8x96xf32>
    %105 = arith.addf %104, %103 : vector<8x96xf32>
    %106 = arith.divf %104, %105 : vector<8x96xf32>
    %107 = vector.extract_strided_slice %106 {offsets = [0, 0], sizes = [8, 32], strides = [1, 1]} : vector<8x96xf32> to vector<8x32xf32>
    %108 = vector.extract_strided_slice %106 {offsets = [0, 32], sizes = [8, 32], strides = [1, 1]} : vector<8x96xf32> to vector<8x32xf32>
    %109 = vector.extract_strided_slice %106 {offsets = [0, 64], sizes = [8, 32], strides = [1, 1]} : vector<8x96xf32> to vector<8x32xf32>
    %110 = vector.extract_strided_slice %100 {offsets = [0, 96], sizes = [8, 32], strides = [1, 1]} : vector<8x128xf32> to vector<8x32xf32>
    %111 = math.tanh %110 : vector<8x32xf32>
    %112 = arith.mulf %108, %43 : vector<8x32xf32>
    %113 = arith.mulf %107, %111 : vector<8x32xf32>
    %114 = arith.addf %112, %113 : vector<8x32xf32>
    %115 = math.tanh %114 : vector<8x32xf32>
    %116 = arith.mulf %109, %115 : vector<8x32xf32>
    %cst_52 = arith.constant dense<0.000000e+00> : vector<8x128xf32>
    %117 = tpu.matmul %45, %4, %cst_52 {dimension_numbers = #tpu.dot_dimension_numbers<[1], [0], [0], [1], [0, 0, 1, 1], [], []>} : vector<8x32xf32>, vector<32x128xf32>, vector<8x128xf32> -> vector<8x128xf32>
    %cst_53 = arith.constant dense<0.000000e+00> : vector<8x128xf32>
    %118 = tpu.matmul %92, %5, %cst_53 {dimension_numbers = #tpu.dot_dimension_numbers<[1], [0], [0], [1], [0, 0, 1, 1], [], []>} : vector<8x32xf32>, vector<32x128xf32>, vector<8x128xf32> -> vector<8x128xf32>
    %119 = arith.addf %117, %118 : vector<8x128xf32>
    %120 = vector.broadcast %6 : vector<1x128xf32> to vector<8x128xf32>
    %121 = arith.addf %119, %120 : vector<8x128xf32>
    %122 = vector.extract_strided_slice %121 {offsets = [0, 0], sizes = [8, 96], strides = [1, 1]} : vector<8x128xf32> to vector<8x96xf32>
    %123 = arith.negf %122 : vector<8x96xf32>
    %124 = math.exp %123 : vector<8x96xf32>
    %cst_54 = arith.constant 1.000000e+00 : f32
    %125 = vector.broadcast %cst_54 : f32 to vector<8x96xf32>
    %126 = arith.addf %125, %124 : vector<8x96xf32>
    %127 = arith.divf %125, %126 : vector<8x96xf32>
    %128 = vector.extract_strided_slice %127 {offsets = [0, 0], sizes = [8, 32], strides = [1, 1]} : vector<8x96xf32> to vector<8x32xf32>
    %129 = vector.extract_strided_slice %127 {offsets = [0, 32], sizes = [8, 32], strides = [1, 1]} : vector<8x96xf32> to vector<8x32xf32>
    %130 = vector.extract_strided_slice %127 {offsets = [0, 64], sizes = [8, 32], strides = [1, 1]} : vector<8x96xf32> to vector<8x32xf32>
    %131 = vector.extract_strided_slice %121 {offsets = [0, 96], sizes = [8, 32], strides = [1, 1]} : vector<8x128xf32> to vector<8x32xf32>
    %132 = math.tanh %131 : vector<8x32xf32>
    %133 = arith.mulf %129, %93 : vector<8x32xf32>
    %134 = arith.mulf %128, %132 : vector<8x32xf32>
    %135 = arith.addf %133, %134 : vector<8x32xf32>
    %136 = math.tanh %135 : vector<8x32xf32>
    %137 = arith.mulf %130, %136 : vector<8x32xf32>
    %cst_55 = arith.constant dense<0.000000e+00> : vector<8x128xf32>
    %138 = tpu.matmul %92, %7, %cst_55 {dimension_numbers = #tpu.dot_dimension_numbers<[1], [0], [0], [1], [0, 0, 1, 1], [], []>} : vector<8x32xf32>, vector<32x128xf32>, vector<8x128xf32> -> vector<8x128xf32>
    %cst_56 = arith.constant dense<0.000000e+00> : vector<8x128xf32>
    %139 = tpu.matmul %94, %8, %cst_56 {dimension_numbers = #tpu.dot_dimension_numbers<[1], [0], [0], [1], [0, 0, 1, 1], [], []>} : vector<8x32xf32>, vector<32x128xf32>, vector<8x128xf32> -> vector<8x128xf32>
    %140 = arith.addf %138, %139 : vector<8x128xf32>
    %141 = vector.broadcast %9 : vector<1x128xf32> to vector<8x128xf32>
    %142 = arith.addf %140, %141 : vector<8x128xf32>
    %143 = vector.extract_strided_slice %142 {offsets = [0, 0], sizes = [8, 96], strides = [1, 1]} : vector<8x128xf32> to vector<8x96xf32>
    %144 = arith.negf %143 : vector<8x96xf32>
    %145 = math.exp %144 : vector<8x96xf32>
    %cst_57 = arith.constant 1.000000e+00 : f32
    %146 = vector.broadcast %cst_57 : f32 to vector<8x96xf32>
    %147 = arith.addf %146, %145 : vector<8x96xf32>
    %148 = arith.divf %146, %147 : vector<8x96xf32>
    %149 = vector.extract_strided_slice %148 {offsets = [0, 0], sizes = [8, 32], strides = [1, 1]} : vector<8x96xf32> to vector<8x32xf32>
    %150 = vector.extract_strided_slice %148 {offsets = [0, 32], sizes = [8, 32], strides = [1, 1]} : vector<8x96xf32> to vector<8x32xf32>
    %151 = vector.extract_strided_slice %148 {offsets = [0, 64], sizes = [8, 32], strides = [1, 1]} : vector<8x96xf32> to vector<8x32xf32>
    %152 = vector.extract_strided_slice %142 {offsets = [0, 96], sizes = [8, 32], strides = [1, 1]} : vector<8x128xf32> to vector<8x32xf32>
    %153 = math.tanh %152 : vector<8x32xf32>
    %154 = arith.mulf %150, %95 : vector<8x32xf32>
    %155 = arith.mulf %149, %153 : vector<8x32xf32>
    %156 = arith.addf %154, %155 : vector<8x32xf32>
    %157 = math.tanh %156 : vector<8x32xf32>
    %158 = arith.mulf %151, %157 : vector<8x32xf32>
    %c8_i32_58 = arith.constant 8 : i32
    %159 = arith.muli %arg1, %c8_i32_58 : i32
    %160 = arith.addi %159, %c1_i32_47 : i32
    %c1_i32_59 = arith.constant 1 : i32
    %161 = arith.cmpi sge, %160, %c1_i32_59 : i32
    %c2_i32_60 = arith.constant 2 : i32
    %162 = arith.cmpi sge, %160, %c2_i32_60 : i32
    %163 = arith.select %161, %137, %92 : vector<8x32xf32>
    %164 = arith.select %161, %135, %93 : vector<8x32xf32>
    %165 = arith.select %162, %158, %94 : vector<8x32xf32>
    %166 = arith.select %162, %156, %95 : vector<8x32xf32>
    %c2_i32_61 = arith.constant 2 : i32
    %167 = arith.index_cast %c2_i32_61 : i32 to index
    %c0_62 = arith.constant 0 : index
    %c0_63 = arith.constant 0 : index
    %168 = vector.load %arg15[%167, %c0_62, %c0_63] : memref<8x8x128xf32, #tpu.memory_space<vmem>>, vector<1x8x128xf32>
    %169 = vector.shape_cast %168 : vector<1x8x128xf32> to vector<8x128xf32>
    %cst_64 = arith.constant dense<0.000000e+00> : vector<8x128xf32>
    %170 = tpu.matmul %116, %3, %cst_64 {dimension_numbers = #tpu.dot_dimension_numbers<[1], [0], [0], [1], [0, 0, 1, 1], [], []>} : vector<8x32xf32>, vector<32x128xf32>, vector<8x128xf32> -> vector<8x128xf32>
    %171 = arith.addf %169, %170 : vector<8x128xf32>
    %172 = vector.extract_strided_slice %171 {offsets = [0, 0], sizes = [8, 96], strides = [1, 1]} : vector<8x128xf32> to vector<8x96xf32>
    %173 = arith.negf %172 : vector<8x96xf32>
    %174 = math.exp %173 : vector<8x96xf32>
    %cst_65 = arith.constant 1.000000e+00 : f32
    %175 = vector.broadcast %cst_65 : f32 to vector<8x96xf32>
    %176 = arith.addf %175, %174 : vector<8x96xf32>
    %177 = arith.divf %175, %176 : vector<8x96xf32>
    %178 = vector.extract_strided_slice %177 {offsets = [0, 0], sizes = [8, 32], strides = [1, 1]} : vector<8x96xf32> to vector<8x32xf32>
    %179 = vector.extract_strided_slice %177 {offsets = [0, 32], sizes = [8, 32], strides = [1, 1]} : vector<8x96xf32> to vector<8x32xf32>
    %180 = vector.extract_strided_slice %177 {offsets = [0, 64], sizes = [8, 32], strides = [1, 1]} : vector<8x96xf32> to vector<8x32xf32>
    %181 = vector.extract_strided_slice %171 {offsets = [0, 96], sizes = [8, 32], strides = [1, 1]} : vector<8x128xf32> to vector<8x32xf32>
    %182 = math.tanh %181 : vector<8x32xf32>
    %183 = arith.mulf %179, %114 : vector<8x32xf32>
    %184 = arith.mulf %178, %182 : vector<8x32xf32>
    %185 = arith.addf %183, %184 : vector<8x32xf32>
    %186 = math.tanh %185 : vector<8x32xf32>
    %187 = arith.mulf %180, %186 : vector<8x32xf32>
    %cst_66 = arith.constant dense<0.000000e+00> : vector<8x128xf32>
    %188 = tpu.matmul %116, %4, %cst_66 {dimension_numbers = #tpu.dot_dimension_numbers<[1], [0], [0], [1], [0, 0, 1, 1], [], []>} : vector<8x32xf32>, vector<32x128xf32>, vector<8x128xf32> -> vector<8x128xf32>
    %cst_67 = arith.constant dense<0.000000e+00> : vector<8x128xf32>
    %189 = tpu.matmul %163, %5, %cst_67 {dimension_numbers = #tpu.dot_dimension_numbers<[1], [0], [0], [1], [0, 0, 1, 1], [], []>} : vector<8x32xf32>, vector<32x128xf32>, vector<8x128xf32> -> vector<8x128xf32>
    %190 = arith.addf %188, %189 : vector<8x128xf32>
    %191 = vector.broadcast %6 : vector<1x128xf32> to vector<8x128xf32>
    %192 = arith.addf %190, %191 : vector<8x128xf32>
    %193 = vector.extract_strided_slice %192 {offsets = [0, 0], sizes = [8, 96], strides = [1, 1]} : vector<8x128xf32> to vector<8x96xf32>
    %194 = arith.negf %193 : vector<8x96xf32>
    %195 = math.exp %194 : vector<8x96xf32>
    %cst_68 = arith.constant 1.000000e+00 : f32
    %196 = vector.broadcast %cst_68 : f32 to vector<8x96xf32>
    %197 = arith.addf %196, %195 : vector<8x96xf32>
    %198 = arith.divf %196, %197 : vector<8x96xf32>
    %199 = vector.extract_strided_slice %198 {offsets = [0, 0], sizes = [8, 32], strides = [1, 1]} : vector<8x96xf32> to vector<8x32xf32>
    %200 = vector.extract_strided_slice %198 {offsets = [0, 32], sizes = [8, 32], strides = [1, 1]} : vector<8x96xf32> to vector<8x32xf32>
    %201 = vector.extract_strided_slice %198 {offsets = [0, 64], sizes = [8, 32], strides = [1, 1]} : vector<8x96xf32> to vector<8x32xf32>
    %202 = vector.extract_strided_slice %192 {offsets = [0, 96], sizes = [8, 32], strides = [1, 1]} : vector<8x128xf32> to vector<8x32xf32>
    %203 = math.tanh %202 : vector<8x32xf32>
    %204 = arith.mulf %200, %164 : vector<8x32xf32>
    %205 = arith.mulf %199, %203 : vector<8x32xf32>
    %206 = arith.addf %204, %205 : vector<8x32xf32>
    %207 = math.tanh %206 : vector<8x32xf32>
    %208 = arith.mulf %201, %207 : vector<8x32xf32>
    %cst_69 = arith.constant dense<0.000000e+00> : vector<8x128xf32>
    %209 = tpu.matmul %163, %7, %cst_69 {dimension_numbers = #tpu.dot_dimension_numbers<[1], [0], [0], [1], [0, 0, 1, 1], [], []>} : vector<8x32xf32>, vector<32x128xf32>, vector<8x128xf32> -> vector<8x128xf32>
    %cst_70 = arith.constant dense<0.000000e+00> : vector<8x128xf32>
    %210 = tpu.matmul %165, %8, %cst_70 {dimension_numbers = #tpu.dot_dimension_numbers<[1], [0], [0], [1], [0, 0, 1, 1], [], []>} : vector<8x32xf32>, vector<32x128xf32>, vector<8x128xf32> -> vector<8x128xf32>
    %211 = arith.addf %209, %210 : vector<8x128xf32>
    %212 = vector.broadcast %9 : vector<1x128xf32> to vector<8x128xf32>
    %213 = arith.addf %211, %212 : vector<8x128xf32>
    %214 = vector.extract_strided_slice %213 {offsets = [0, 0], sizes = [8, 96], strides = [1, 1]} : vector<8x128xf32> to vector<8x96xf32>
    %215 = arith.negf %214 : vector<8x96xf32>
    %216 = math.exp %215 : vector<8x96xf32>
    %cst_71 = arith.constant 1.000000e+00 : f32
    %217 = vector.broadcast %cst_71 : f32 to vector<8x96xf32>
    %218 = arith.addf %217, %216 : vector<8x96xf32>
    %219 = arith.divf %217, %218 : vector<8x96xf32>
    %220 = vector.extract_strided_slice %219 {offsets = [0, 0], sizes = [8, 32], strides = [1, 1]} : vector<8x96xf32> to vector<8x32xf32>
    %221 = vector.extract_strided_slice %219 {offsets = [0, 32], sizes = [8, 32], strides = [1, 1]} : vector<8x96xf32> to vector<8x32xf32>
    %222 = vector.extract_strided_slice %219 {offsets = [0, 64], sizes = [8, 32], strides = [1, 1]} : vector<8x96xf32> to vector<8x32xf32>
    %223 = vector.extract_strided_slice %213 {offsets = [0, 96], sizes = [8, 32], strides = [1, 1]} : vector<8x128xf32> to vector<8x32xf32>
    %224 = math.tanh %223 : vector<8x32xf32>
    %225 = arith.mulf %221, %166 : vector<8x32xf32>
    %226 = arith.mulf %220, %224 : vector<8x32xf32>
    %227 = arith.addf %225, %226 : vector<8x32xf32>
    %228 = math.tanh %227 : vector<8x32xf32>
    %229 = arith.mulf %222, %228 : vector<8x32xf32>
    %c8_i32_72 = arith.constant 8 : i32
    %230 = arith.muli %arg1, %c8_i32_72 : i32
    %231 = arith.addi %230, %c2_i32_61 : i32
    %c1_i32_73 = arith.constant 1 : i32
    %232 = arith.cmpi sge, %231, %c1_i32_73 : i32
    %c2_i32_74 = arith.constant 2 : i32
    %233 = arith.cmpi sge, %231, %c2_i32_74 : i32
    %234 = arith.select %232, %208, %163 : vector<8x32xf32>
    %235 = arith.select %232, %206, %164 : vector<8x32xf32>
    %236 = arith.select %233, %229, %165 : vector<8x32xf32>
    %237 = arith.select %233, %227, %166 : vector<8x32xf32>
    %c3_i32 = arith.constant 3 : i32
    %238 = arith.index_cast %c3_i32 : i32 to index
    %c0_75 = arith.constant 0 : index
    %c0_76 = arith.constant 0 : index
    %239 = vector.load %arg15[%238, %c0_75, %c0_76] : memref<8x8x128xf32, #tpu.memory_space<vmem>>, vector<1x8x128xf32>
    %240 = vector.shape_cast %239 : vector<1x8x128xf32> to vector<8x128xf32>
    %cst_77 = arith.constant dense<0.000000e+00> : vector<8x128xf32>
    %241 = tpu.matmul %187, %3, %cst_77 {dimension_numbers = #tpu.dot_dimension_numbers<[1], [0], [0], [1], [0, 0, 1, 1], [], []>} : vector<8x32xf32>, vector<32x128xf32>, vector<8x128xf32> -> vector<8x128xf32>
    %242 = arith.addf %240, %241 : vector<8x128xf32>
    %243 = vector.extract_strided_slice %242 {offsets = [0, 0], sizes = [8, 96], strides = [1, 1]} : vector<8x128xf32> to vector<8x96xf32>
    %244 = arith.negf %243 : vector<8x96xf32>
    %245 = math.exp %244 : vector<8x96xf32>
    %cst_78 = arith.constant 1.000000e+00 : f32
    %246 = vector.broadcast %cst_78 : f32 to vector<8x96xf32>
    %247 = arith.addf %246, %245 : vector<8x96xf32>
    %248 = arith.divf %246, %247 : vector<8x96xf32>
    %249 = vector.extract_strided_slice %248 {offsets = [0, 0], sizes = [8, 32], strides = [1, 1]} : vector<8x96xf32> to vector<8x32xf32>
    %250 = vector.extract_strided_slice %248 {offsets = [0, 32], sizes = [8, 32], strides = [1, 1]} : vector<8x96xf32> to vector<8x32xf32>
    %251 = vector.extract_strided_slice %248 {offsets = [0, 64], sizes = [8, 32], strides = [1, 1]} : vector<8x96xf32> to vector<8x32xf32>
    %252 = vector.extract_strided_slice %242 {offsets = [0, 96], sizes = [8, 32], strides = [1, 1]} : vector<8x128xf32> to vector<8x32xf32>
    %253 = math.tanh %252 : vector<8x32xf32>
    %254 = arith.mulf %250, %185 : vector<8x32xf32>
    %255 = arith.mulf %249, %253 : vector<8x32xf32>
    %256 = arith.addf %254, %255 : vector<8x32xf32>
    %257 = math.tanh %256 : vector<8x32xf32>
    %258 = arith.mulf %251, %257 : vector<8x32xf32>
    %cst_79 = arith.constant dense<0.000000e+00> : vector<8x128xf32>
    %259 = tpu.matmul %187, %4, %cst_79 {dimension_numbers = #tpu.dot_dimension_numbers<[1], [0], [0], [1], [0, 0, 1, 1], [], []>} : vector<8x32xf32>, vector<32x128xf32>, vector<8x128xf32> -> vector<8x128xf32>
    %cst_80 = arith.constant dense<0.000000e+00> : vector<8x128xf32>
    %260 = tpu.matmul %234, %5, %cst_80 {dimension_numbers = #tpu.dot_dimension_numbers<[1], [0], [0], [1], [0, 0, 1, 1], [], []>} : vector<8x32xf32>, vector<32x128xf32>, vector<8x128xf32> -> vector<8x128xf32>
    %261 = arith.addf %259, %260 : vector<8x128xf32>
    %262 = vector.broadcast %6 : vector<1x128xf32> to vector<8x128xf32>
    %263 = arith.addf %261, %262 : vector<8x128xf32>
    %264 = vector.extract_strided_slice %263 {offsets = [0, 0], sizes = [8, 96], strides = [1, 1]} : vector<8x128xf32> to vector<8x96xf32>
    %265 = arith.negf %264 : vector<8x96xf32>
    %266 = math.exp %265 : vector<8x96xf32>
    %cst_81 = arith.constant 1.000000e+00 : f32
    %267 = vector.broadcast %cst_81 : f32 to vector<8x96xf32>
    %268 = arith.addf %267, %266 : vector<8x96xf32>
    %269 = arith.divf %267, %268 : vector<8x96xf32>
    %270 = vector.extract_strided_slice %269 {offsets = [0, 0], sizes = [8, 32], strides = [1, 1]} : vector<8x96xf32> to vector<8x32xf32>
    %271 = vector.extract_strided_slice %269 {offsets = [0, 32], sizes = [8, 32], strides = [1, 1]} : vector<8x96xf32> to vector<8x32xf32>
    %272 = vector.extract_strided_slice %269 {offsets = [0, 64], sizes = [8, 32], strides = [1, 1]} : vector<8x96xf32> to vector<8x32xf32>
    %273 = vector.extract_strided_slice %263 {offsets = [0, 96], sizes = [8, 32], strides = [1, 1]} : vector<8x128xf32> to vector<8x32xf32>
    %274 = math.tanh %273 : vector<8x32xf32>
    %275 = arith.mulf %271, %235 : vector<8x32xf32>
    %276 = arith.mulf %270, %274 : vector<8x32xf32>
    %277 = arith.addf %275, %276 : vector<8x32xf32>
    %278 = math.tanh %277 : vector<8x32xf32>
    %279 = arith.mulf %272, %278 : vector<8x32xf32>
    %cst_82 = arith.constant dense<0.000000e+00> : vector<8x128xf32>
    %280 = tpu.matmul %234, %7, %cst_82 {dimension_numbers = #tpu.dot_dimension_numbers<[1], [0], [0], [1], [0, 0, 1, 1], [], []>} : vector<8x32xf32>, vector<32x128xf32>, vector<8x128xf32> -> vector<8x128xf32>
    %cst_83 = arith.constant dense<0.000000e+00> : vector<8x128xf32>
    %281 = tpu.matmul %236, %8, %cst_83 {dimension_numbers = #tpu.dot_dimension_numbers<[1], [0], [0], [1], [0, 0, 1, 1], [], []>} : vector<8x32xf32>, vector<32x128xf32>, vector<8x128xf32> -> vector<8x128xf32>
    %282 = arith.addf %280, %281 : vector<8x128xf32>
    %283 = vector.broadcast %9 : vector<1x128xf32> to vector<8x128xf32>
    %284 = arith.addf %282, %283 : vector<8x128xf32>
    %285 = vector.extract_strided_slice %284 {offsets = [0, 0], sizes = [8, 96], strides = [1, 1]} : vector<8x128xf32> to vector<8x96xf32>
    %286 = arith.negf %285 : vector<8x96xf32>
    %287 = math.exp %286 : vector<8x96xf32>
    %cst_84 = arith.constant 1.000000e+00 : f32
    %288 = vector.broadcast %cst_84 : f32 to vector<8x96xf32>
    %289 = arith.addf %288, %287 : vector<8x96xf32>
    %290 = arith.divf %288, %289 : vector<8x96xf32>
    %291 = vector.extract_strided_slice %290 {offsets = [0, 0], sizes = [8, 32], strides = [1, 1]} : vector<8x96xf32> to vector<8x32xf32>
    %292 = vector.extract_strided_slice %290 {offsets = [0, 32], sizes = [8, 32], strides = [1, 1]} : vector<8x96xf32> to vector<8x32xf32>
    %293 = vector.extract_strided_slice %290 {offsets = [0, 64], sizes = [8, 32], strides = [1, 1]} : vector<8x96xf32> to vector<8x32xf32>
    %294 = vector.extract_strided_slice %284 {offsets = [0, 96], sizes = [8, 32], strides = [1, 1]} : vector<8x128xf32> to vector<8x32xf32>
    %295 = math.tanh %294 : vector<8x32xf32>
    %296 = arith.mulf %292, %237 : vector<8x32xf32>
    %297 = arith.mulf %291, %295 : vector<8x32xf32>
    %298 = arith.addf %296, %297 : vector<8x32xf32>
    %299 = math.tanh %298 : vector<8x32xf32>
    %300 = arith.mulf %293, %299 : vector<8x32xf32>
    %c8_i32_85 = arith.constant 8 : i32
    %301 = arith.muli %arg1, %c8_i32_85 : i32
    %302 = arith.addi %301, %c3_i32 : i32
    %c1_i32_86 = arith.constant 1 : i32
    %303 = arith.cmpi sge, %302, %c1_i32_86 : i32
    %c2_i32_87 = arith.constant 2 : i32
    %304 = arith.cmpi sge, %302, %c2_i32_87 : i32
    %305 = arith.select %303, %279, %234 : vector<8x32xf32>
    %306 = arith.select %303, %277, %235 : vector<8x32xf32>
    %307 = arith.select %304, %300, %236 : vector<8x32xf32>
    %308 = arith.select %304, %298, %237 : vector<8x32xf32>
    %c4_i32 = arith.constant 4 : i32
    %309 = arith.index_cast %c4_i32 : i32 to index
    %c0_88 = arith.constant 0 : index
    %c0_89 = arith.constant 0 : index
    %310 = vector.load %arg15[%309, %c0_88, %c0_89] : memref<8x8x128xf32, #tpu.memory_space<vmem>>, vector<1x8x128xf32>
    %311 = vector.shape_cast %310 : vector<1x8x128xf32> to vector<8x128xf32>
    %cst_90 = arith.constant dense<0.000000e+00> : vector<8x128xf32>
    %312 = tpu.matmul %258, %3, %cst_90 {dimension_numbers = #tpu.dot_dimension_numbers<[1], [0], [0], [1], [0, 0, 1, 1], [], []>} : vector<8x32xf32>, vector<32x128xf32>, vector<8x128xf32> -> vector<8x128xf32>
    %313 = arith.addf %311, %312 : vector<8x128xf32>
    %314 = vector.extract_strided_slice %313 {offsets = [0, 0], sizes = [8, 96], strides = [1, 1]} : vector<8x128xf32> to vector<8x96xf32>
    %315 = arith.negf %314 : vector<8x96xf32>
    %316 = math.exp %315 : vector<8x96xf32>
    %cst_91 = arith.constant 1.000000e+00 : f32
    %317 = vector.broadcast %cst_91 : f32 to vector<8x96xf32>
    %318 = arith.addf %317, %316 : vector<8x96xf32>
    %319 = arith.divf %317, %318 : vector<8x96xf32>
    %320 = vector.extract_strided_slice %319 {offsets = [0, 0], sizes = [8, 32], strides = [1, 1]} : vector<8x96xf32> to vector<8x32xf32>
    %321 = vector.extract_strided_slice %319 {offsets = [0, 32], sizes = [8, 32], strides = [1, 1]} : vector<8x96xf32> to vector<8x32xf32>
    %322 = vector.extract_strided_slice %319 {offsets = [0, 64], sizes = [8, 32], strides = [1, 1]} : vector<8x96xf32> to vector<8x32xf32>
    %323 = vector.extract_strided_slice %313 {offsets = [0, 96], sizes = [8, 32], strides = [1, 1]} : vector<8x128xf32> to vector<8x32xf32>
    %324 = math.tanh %323 : vector<8x32xf32>
    %325 = arith.mulf %321, %256 : vector<8x32xf32>
    %326 = arith.mulf %320, %324 : vector<8x32xf32>
    %327 = arith.addf %325, %326 : vector<8x32xf32>
    %328 = math.tanh %327 : vector<8x32xf32>
    %329 = arith.mulf %322, %328 : vector<8x32xf32>
    %cst_92 = arith.constant dense<0.000000e+00> : vector<8x128xf32>
    %330 = tpu.matmul %258, %4, %cst_92 {dimension_numbers = #tpu.dot_dimension_numbers<[1], [0], [0], [1], [0, 0, 1, 1], [], []>} : vector<8x32xf32>, vector<32x128xf32>, vector<8x128xf32> -> vector<8x128xf32>
    %cst_93 = arith.constant dense<0.000000e+00> : vector<8x128xf32>
    %331 = tpu.matmul %305, %5, %cst_93 {dimension_numbers = #tpu.dot_dimension_numbers<[1], [0], [0], [1], [0, 0, 1, 1], [], []>} : vector<8x32xf32>, vector<32x128xf32>, vector<8x128xf32> -> vector<8x128xf32>
    %332 = arith.addf %330, %331 : vector<8x128xf32>
    %333 = vector.broadcast %6 : vector<1x128xf32> to vector<8x128xf32>
    %334 = arith.addf %332, %333 : vector<8x128xf32>
    %335 = vector.extract_strided_slice %334 {offsets = [0, 0], sizes = [8, 96], strides = [1, 1]} : vector<8x128xf32> to vector<8x96xf32>
    %336 = arith.negf %335 : vector<8x96xf32>
    %337 = math.exp %336 : vector<8x96xf32>
    %cst_94 = arith.constant 1.000000e+00 : f32
    %338 = vector.broadcast %cst_94 : f32 to vector<8x96xf32>
    %339 = arith.addf %338, %337 : vector<8x96xf32>
    %340 = arith.divf %338, %339 : vector<8x96xf32>
    %341 = vector.extract_strided_slice %340 {offsets = [0, 0], sizes = [8, 32], strides = [1, 1]} : vector<8x96xf32> to vector<8x32xf32>
    %342 = vector.extract_strided_slice %340 {offsets = [0, 32], sizes = [8, 32], strides = [1, 1]} : vector<8x96xf32> to vector<8x32xf32>
    %343 = vector.extract_strided_slice %340 {offsets = [0, 64], sizes = [8, 32], strides = [1, 1]} : vector<8x96xf32> to vector<8x32xf32>
    %344 = vector.extract_strided_slice %334 {offsets = [0, 96], sizes = [8, 32], strides = [1, 1]} : vector<8x128xf32> to vector<8x32xf32>
    %345 = math.tanh %344 : vector<8x32xf32>
    %346 = arith.mulf %342, %306 : vector<8x32xf32>
    %347 = arith.mulf %341, %345 : vector<8x32xf32>
    %348 = arith.addf %346, %347 : vector<8x32xf32>
    %349 = math.tanh %348 : vector<8x32xf32>
    %350 = arith.mulf %343, %349 : vector<8x32xf32>
    %cst_95 = arith.constant dense<0.000000e+00> : vector<8x128xf32>
    %351 = tpu.matmul %305, %7, %cst_95 {dimension_numbers = #tpu.dot_dimension_numbers<[1], [0], [0], [1], [0, 0, 1, 1], [], []>} : vector<8x32xf32>, vector<32x128xf32>, vector<8x128xf32> -> vector<8x128xf32>
    %cst_96 = arith.constant dense<0.000000e+00> : vector<8x128xf32>
    %352 = tpu.matmul %307, %8, %cst_96 {dimension_numbers = #tpu.dot_dimension_numbers<[1], [0], [0], [1], [0, 0, 1, 1], [], []>} : vector<8x32xf32>, vector<32x128xf32>, vector<8x128xf32> -> vector<8x128xf32>
    %353 = arith.addf %351, %352 : vector<8x128xf32>
    %354 = vector.broadcast %9 : vector<1x128xf32> to vector<8x128xf32>
    %355 = arith.addf %353, %354 : vector<8x128xf32>
    %356 = vector.extract_strided_slice %355 {offsets = [0, 0], sizes = [8, 96], strides = [1, 1]} : vector<8x128xf32> to vector<8x96xf32>
    %357 = arith.negf %356 : vector<8x96xf32>
    %358 = math.exp %357 : vector<8x96xf32>
    %cst_97 = arith.constant 1.000000e+00 : f32
    %359 = vector.broadcast %cst_97 : f32 to vector<8x96xf32>
    %360 = arith.addf %359, %358 : vector<8x96xf32>
    %361 = arith.divf %359, %360 : vector<8x96xf32>
    %362 = vector.extract_strided_slice %361 {offsets = [0, 0], sizes = [8, 32], strides = [1, 1]} : vector<8x96xf32> to vector<8x32xf32>
    %363 = vector.extract_strided_slice %361 {offsets = [0, 32], sizes = [8, 32], strides = [1, 1]} : vector<8x96xf32> to vector<8x32xf32>
    %364 = vector.extract_strided_slice %361 {offsets = [0, 64], sizes = [8, 32], strides = [1, 1]} : vector<8x96xf32> to vector<8x32xf32>
    %365 = vector.extract_strided_slice %355 {offsets = [0, 96], sizes = [8, 32], strides = [1, 1]} : vector<8x128xf32> to vector<8x32xf32>
    %366 = math.tanh %365 : vector<8x32xf32>
    %367 = arith.mulf %363, %308 : vector<8x32xf32>
    %368 = arith.mulf %362, %366 : vector<8x32xf32>
    %369 = arith.addf %367, %368 : vector<8x32xf32>
    %370 = math.tanh %369 : vector<8x32xf32>
    %371 = arith.mulf %364, %370 : vector<8x32xf32>
    %c8_i32_98 = arith.constant 8 : i32
    %372 = arith.muli %arg1, %c8_i32_98 : i32
    %373 = arith.addi %372, %c4_i32 : i32
    %c1_i32_99 = arith.constant 1 : i32
    %374 = arith.cmpi sge, %373, %c1_i32_99 : i32
    %c2_i32_100 = arith.constant 2 : i32
    %375 = arith.cmpi sge, %373, %c2_i32_100 : i32
    %376 = arith.select %374, %350, %305 : vector<8x32xf32>
    %377 = arith.select %374, %348, %306 : vector<8x32xf32>
    %378 = arith.select %375, %371, %307 : vector<8x32xf32>
    %379 = arith.select %375, %369, %308 : vector<8x32xf32>
    %c5_i32 = arith.constant 5 : i32
    %380 = arith.index_cast %c5_i32 : i32 to index
    %c0_101 = arith.constant 0 : index
    %c0_102 = arith.constant 0 : index
    %381 = vector.load %arg15[%380, %c0_101, %c0_102] : memref<8x8x128xf32, #tpu.memory_space<vmem>>, vector<1x8x128xf32>
    %382 = vector.shape_cast %381 : vector<1x8x128xf32> to vector<8x128xf32>
    %cst_103 = arith.constant dense<0.000000e+00> : vector<8x128xf32>
    %383 = tpu.matmul %329, %3, %cst_103 {dimension_numbers = #tpu.dot_dimension_numbers<[1], [0], [0], [1], [0, 0, 1, 1], [], []>} : vector<8x32xf32>, vector<32x128xf32>, vector<8x128xf32> -> vector<8x128xf32>
    %384 = arith.addf %382, %383 : vector<8x128xf32>
    %385 = vector.extract_strided_slice %384 {offsets = [0, 0], sizes = [8, 96], strides = [1, 1]} : vector<8x128xf32> to vector<8x96xf32>
    %386 = arith.negf %385 : vector<8x96xf32>
    %387 = math.exp %386 : vector<8x96xf32>
    %cst_104 = arith.constant 1.000000e+00 : f32
    %388 = vector.broadcast %cst_104 : f32 to vector<8x96xf32>
    %389 = arith.addf %388, %387 : vector<8x96xf32>
    %390 = arith.divf %388, %389 : vector<8x96xf32>
    %391 = vector.extract_strided_slice %390 {offsets = [0, 0], sizes = [8, 32], strides = [1, 1]} : vector<8x96xf32> to vector<8x32xf32>
    %392 = vector.extract_strided_slice %390 {offsets = [0, 32], sizes = [8, 32], strides = [1, 1]} : vector<8x96xf32> to vector<8x32xf32>
    %393 = vector.extract_strided_slice %390 {offsets = [0, 64], sizes = [8, 32], strides = [1, 1]} : vector<8x96xf32> to vector<8x32xf32>
    %394 = vector.extract_strided_slice %384 {offsets = [0, 96], sizes = [8, 32], strides = [1, 1]} : vector<8x128xf32> to vector<8x32xf32>
    %395 = math.tanh %394 : vector<8x32xf32>
    %396 = arith.mulf %392, %327 : vector<8x32xf32>
    %397 = arith.mulf %391, %395 : vector<8x32xf32>
    %398 = arith.addf %396, %397 : vector<8x32xf32>
    %399 = math.tanh %398 : vector<8x32xf32>
    %400 = arith.mulf %393, %399 : vector<8x32xf32>
    %cst_105 = arith.constant dense<0.000000e+00> : vector<8x128xf32>
    %401 = tpu.matmul %329, %4, %cst_105 {dimension_numbers = #tpu.dot_dimension_numbers<[1], [0], [0], [1], [0, 0, 1, 1], [], []>} : vector<8x32xf32>, vector<32x128xf32>, vector<8x128xf32> -> vector<8x128xf32>
    %cst_106 = arith.constant dense<0.000000e+00> : vector<8x128xf32>
    %402 = tpu.matmul %376, %5, %cst_106 {dimension_numbers = #tpu.dot_dimension_numbers<[1], [0], [0], [1], [0, 0, 1, 1], [], []>} : vector<8x32xf32>, vector<32x128xf32>, vector<8x128xf32> -> vector<8x128xf32>
    %403 = arith.addf %401, %402 : vector<8x128xf32>
    %404 = vector.broadcast %6 : vector<1x128xf32> to vector<8x128xf32>
    %405 = arith.addf %403, %404 : vector<8x128xf32>
    %406 = vector.extract_strided_slice %405 {offsets = [0, 0], sizes = [8, 96], strides = [1, 1]} : vector<8x128xf32> to vector<8x96xf32>
    %407 = arith.negf %406 : vector<8x96xf32>
    %408 = math.exp %407 : vector<8x96xf32>
    %cst_107 = arith.constant 1.000000e+00 : f32
    %409 = vector.broadcast %cst_107 : f32 to vector<8x96xf32>
    %410 = arith.addf %409, %408 : vector<8x96xf32>
    %411 = arith.divf %409, %410 : vector<8x96xf32>
    %412 = vector.extract_strided_slice %411 {offsets = [0, 0], sizes = [8, 32], strides = [1, 1]} : vector<8x96xf32> to vector<8x32xf32>
    %413 = vector.extract_strided_slice %411 {offsets = [0, 32], sizes = [8, 32], strides = [1, 1]} : vector<8x96xf32> to vector<8x32xf32>
    %414 = vector.extract_strided_slice %411 {offsets = [0, 64], sizes = [8, 32], strides = [1, 1]} : vector<8x96xf32> to vector<8x32xf32>
    %415 = vector.extract_strided_slice %405 {offsets = [0, 96], sizes = [8, 32], strides = [1, 1]} : vector<8x128xf32> to vector<8x32xf32>
    %416 = math.tanh %415 : vector<8x32xf32>
    %417 = arith.mulf %413, %377 : vector<8x32xf32>
    %418 = arith.mulf %412, %416 : vector<8x32xf32>
    %419 = arith.addf %417, %418 : vector<8x32xf32>
    %420 = math.tanh %419 : vector<8x32xf32>
    %421 = arith.mulf %414, %420 : vector<8x32xf32>
    %cst_108 = arith.constant dense<0.000000e+00> : vector<8x128xf32>
    %422 = tpu.matmul %376, %7, %cst_108 {dimension_numbers = #tpu.dot_dimension_numbers<[1], [0], [0], [1], [0, 0, 1, 1], [], []>} : vector<8x32xf32>, vector<32x128xf32>, vector<8x128xf32> -> vector<8x128xf32>
    %cst_109 = arith.constant dense<0.000000e+00> : vector<8x128xf32>
    %423 = tpu.matmul %378, %8, %cst_109 {dimension_numbers = #tpu.dot_dimension_numbers<[1], [0], [0], [1], [0, 0, 1, 1], [], []>} : vector<8x32xf32>, vector<32x128xf32>, vector<8x128xf32> -> vector<8x128xf32>
    %424 = arith.addf %422, %423 : vector<8x128xf32>
    %425 = vector.broadcast %9 : vector<1x128xf32> to vector<8x128xf32>
    %426 = arith.addf %424, %425 : vector<8x128xf32>
    %427 = vector.extract_strided_slice %426 {offsets = [0, 0], sizes = [8, 96], strides = [1, 1]} : vector<8x128xf32> to vector<8x96xf32>
    %428 = arith.negf %427 : vector<8x96xf32>
    %429 = math.exp %428 : vector<8x96xf32>
    %cst_110 = arith.constant 1.000000e+00 : f32
    %430 = vector.broadcast %cst_110 : f32 to vector<8x96xf32>
    %431 = arith.addf %430, %429 : vector<8x96xf32>
    %432 = arith.divf %430, %431 : vector<8x96xf32>
    %433 = vector.extract_strided_slice %432 {offsets = [0, 0], sizes = [8, 32], strides = [1, 1]} : vector<8x96xf32> to vector<8x32xf32>
    %434 = vector.extract_strided_slice %432 {offsets = [0, 32], sizes = [8, 32], strides = [1, 1]} : vector<8x96xf32> to vector<8x32xf32>
    %435 = vector.extract_strided_slice %432 {offsets = [0, 64], sizes = [8, 32], strides = [1, 1]} : vector<8x96xf32> to vector<8x32xf32>
    %436 = vector.extract_strided_slice %426 {offsets = [0, 96], sizes = [8, 32], strides = [1, 1]} : vector<8x128xf32> to vector<8x32xf32>
    %437 = math.tanh %436 : vector<8x32xf32>
    %438 = arith.mulf %434, %379 : vector<8x32xf32>
    %439 = arith.mulf %433, %437 : vector<8x32xf32>
    %440 = arith.addf %438, %439 : vector<8x32xf32>
    %441 = math.tanh %440 : vector<8x32xf32>
    %442 = arith.mulf %435, %441 : vector<8x32xf32>
    %c8_i32_111 = arith.constant 8 : i32
    %443 = arith.muli %arg1, %c8_i32_111 : i32
    %444 = arith.addi %443, %c5_i32 : i32
    %c1_i32_112 = arith.constant 1 : i32
    %445 = arith.cmpi sge, %444, %c1_i32_112 : i32
    %c2_i32_113 = arith.constant 2 : i32
    %446 = arith.cmpi sge, %444, %c2_i32_113 : i32
    %447 = arith.select %445, %421, %376 : vector<8x32xf32>
    %448 = arith.select %445, %419, %377 : vector<8x32xf32>
    %449 = arith.select %446, %442, %378 : vector<8x32xf32>
    %450 = arith.select %446, %440, %379 : vector<8x32xf32>
    %c6_i32 = arith.constant 6 : i32
    %451 = arith.index_cast %c6_i32 : i32 to index
    %c0_114 = arith.constant 0 : index
    %c0_115 = arith.constant 0 : index
    %452 = vector.load %arg15[%451, %c0_114, %c0_115] : memref<8x8x128xf32, #tpu.memory_space<vmem>>, vector<1x8x128xf32>
    %453 = vector.shape_cast %452 : vector<1x8x128xf32> to vector<8x128xf32>
    %cst_116 = arith.constant dense<0.000000e+00> : vector<8x128xf32>
    %454 = tpu.matmul %400, %3, %cst_116 {dimension_numbers = #tpu.dot_dimension_numbers<[1], [0], [0], [1], [0, 0, 1, 1], [], []>} : vector<8x32xf32>, vector<32x128xf32>, vector<8x128xf32> -> vector<8x128xf32>
    %455 = arith.addf %453, %454 : vector<8x128xf32>
    %456 = vector.extract_strided_slice %455 {offsets = [0, 0], sizes = [8, 96], strides = [1, 1]} : vector<8x128xf32> to vector<8x96xf32>
    %457 = arith.negf %456 : vector<8x96xf32>
    %458 = math.exp %457 : vector<8x96xf32>
    %cst_117 = arith.constant 1.000000e+00 : f32
    %459 = vector.broadcast %cst_117 : f32 to vector<8x96xf32>
    %460 = arith.addf %459, %458 : vector<8x96xf32>
    %461 = arith.divf %459, %460 : vector<8x96xf32>
    %462 = vector.extract_strided_slice %461 {offsets = [0, 0], sizes = [8, 32], strides = [1, 1]} : vector<8x96xf32> to vector<8x32xf32>
    %463 = vector.extract_strided_slice %461 {offsets = [0, 32], sizes = [8, 32], strides = [1, 1]} : vector<8x96xf32> to vector<8x32xf32>
    %464 = vector.extract_strided_slice %461 {offsets = [0, 64], sizes = [8, 32], strides = [1, 1]} : vector<8x96xf32> to vector<8x32xf32>
    %465 = vector.extract_strided_slice %455 {offsets = [0, 96], sizes = [8, 32], strides = [1, 1]} : vector<8x128xf32> to vector<8x32xf32>
    %466 = math.tanh %465 : vector<8x32xf32>
    %467 = arith.mulf %463, %398 : vector<8x32xf32>
    %468 = arith.mulf %462, %466 : vector<8x32xf32>
    %469 = arith.addf %467, %468 : vector<8x32xf32>
    %470 = math.tanh %469 : vector<8x32xf32>
    %471 = arith.mulf %464, %470 : vector<8x32xf32>
    %cst_118 = arith.constant dense<0.000000e+00> : vector<8x128xf32>
    %472 = tpu.matmul %400, %4, %cst_118 {dimension_numbers = #tpu.dot_dimension_numbers<[1], [0], [0], [1], [0, 0, 1, 1], [], []>} : vector<8x32xf32>, vector<32x128xf32>, vector<8x128xf32> -> vector<8x128xf32>
    %cst_119 = arith.constant dense<0.000000e+00> : vector<8x128xf32>
    %473 = tpu.matmul %447, %5, %cst_119 {dimension_numbers = #tpu.dot_dimension_numbers<[1], [0], [0], [1], [0, 0, 1, 1], [], []>} : vector<8x32xf32>, vector<32x128xf32>, vector<8x128xf32> -> vector<8x128xf32>
    %474 = arith.addf %472, %473 : vector<8x128xf32>
    %475 = vector.broadcast %6 : vector<1x128xf32> to vector<8x128xf32>
    %476 = arith.addf %474, %475 : vector<8x128xf32>
    %477 = vector.extract_strided_slice %476 {offsets = [0, 0], sizes = [8, 96], strides = [1, 1]} : vector<8x128xf32> to vector<8x96xf32>
    %478 = arith.negf %477 : vector<8x96xf32>
    %479 = math.exp %478 : vector<8x96xf32>
    %cst_120 = arith.constant 1.000000e+00 : f32
    %480 = vector.broadcast %cst_120 : f32 to vector<8x96xf32>
    %481 = arith.addf %480, %479 : vector<8x96xf32>
    %482 = arith.divf %480, %481 : vector<8x96xf32>
    %483 = vector.extract_strided_slice %482 {offsets = [0, 0], sizes = [8, 32], strides = [1, 1]} : vector<8x96xf32> to vector<8x32xf32>
    %484 = vector.extract_strided_slice %482 {offsets = [0, 32], sizes = [8, 32], strides = [1, 1]} : vector<8x96xf32> to vector<8x32xf32>
    %485 = vector.extract_strided_slice %482 {offsets = [0, 64], sizes = [8, 32], strides = [1, 1]} : vector<8x96xf32> to vector<8x32xf32>
    %486 = vector.extract_strided_slice %476 {offsets = [0, 96], sizes = [8, 32], strides = [1, 1]} : vector<8x128xf32> to vector<8x32xf32>
    %487 = math.tanh %486 : vector<8x32xf32>
    %488 = arith.mulf %484, %448 : vector<8x32xf32>
    %489 = arith.mulf %483, %487 : vector<8x32xf32>
    %490 = arith.addf %488, %489 : vector<8x32xf32>
    %491 = math.tanh %490 : vector<8x32xf32>
    %492 = arith.mulf %485, %491 : vector<8x32xf32>
    %cst_121 = arith.constant dense<0.000000e+00> : vector<8x128xf32>
    %493 = tpu.matmul %447, %7, %cst_121 {dimension_numbers = #tpu.dot_dimension_numbers<[1], [0], [0], [1], [0, 0, 1, 1], [], []>} : vector<8x32xf32>, vector<32x128xf32>, vector<8x128xf32> -> vector<8x128xf32>
    %cst_122 = arith.constant dense<0.000000e+00> : vector<8x128xf32>
    %494 = tpu.matmul %449, %8, %cst_122 {dimension_numbers = #tpu.dot_dimension_numbers<[1], [0], [0], [1], [0, 0, 1, 1], [], []>} : vector<8x32xf32>, vector<32x128xf32>, vector<8x128xf32> -> vector<8x128xf32>
    %495 = arith.addf %493, %494 : vector<8x128xf32>
    %496 = vector.broadcast %9 : vector<1x128xf32> to vector<8x128xf32>
    %497 = arith.addf %495, %496 : vector<8x128xf32>
    %498 = vector.extract_strided_slice %497 {offsets = [0, 0], sizes = [8, 96], strides = [1, 1]} : vector<8x128xf32> to vector<8x96xf32>
    %499 = arith.negf %498 : vector<8x96xf32>
    %500 = math.exp %499 : vector<8x96xf32>
    %cst_123 = arith.constant 1.000000e+00 : f32
    %501 = vector.broadcast %cst_123 : f32 to vector<8x96xf32>
    %502 = arith.addf %501, %500 : vector<8x96xf32>
    %503 = arith.divf %501, %502 : vector<8x96xf32>
    %504 = vector.extract_strided_slice %503 {offsets = [0, 0], sizes = [8, 32], strides = [1, 1]} : vector<8x96xf32> to vector<8x32xf32>
    %505 = vector.extract_strided_slice %503 {offsets = [0, 32], sizes = [8, 32], strides = [1, 1]} : vector<8x96xf32> to vector<8x32xf32>
    %506 = vector.extract_strided_slice %503 {offsets = [0, 64], sizes = [8, 32], strides = [1, 1]} : vector<8x96xf32> to vector<8x32xf32>
    %507 = vector.extract_strided_slice %497 {offsets = [0, 96], sizes = [8, 32], strides = [1, 1]} : vector<8x128xf32> to vector<8x32xf32>
    %508 = math.tanh %507 : vector<8x32xf32>
    %509 = arith.mulf %505, %450 : vector<8x32xf32>
    %510 = arith.mulf %504, %508 : vector<8x32xf32>
    %511 = arith.addf %509, %510 : vector<8x32xf32>
    %512 = math.tanh %511 : vector<8x32xf32>
    %513 = arith.mulf %506, %512 : vector<8x32xf32>
    %c8_i32_124 = arith.constant 8 : i32
    %514 = arith.muli %arg1, %c8_i32_124 : i32
    %515 = arith.addi %514, %c6_i32 : i32
    %c1_i32_125 = arith.constant 1 : i32
    %516 = arith.cmpi sge, %515, %c1_i32_125 : i32
    %c2_i32_126 = arith.constant 2 : i32
    %517 = arith.cmpi sge, %515, %c2_i32_126 : i32
    %518 = arith.select %516, %492, %447 : vector<8x32xf32>
    %519 = arith.select %516, %490, %448 : vector<8x32xf32>
    %520 = arith.select %517, %513, %449 : vector<8x32xf32>
    %521 = arith.select %517, %511, %450 : vector<8x32xf32>
    %c7_i32 = arith.constant 7 : i32
    %522 = arith.index_cast %c7_i32 : i32 to index
    %c0_127 = arith.constant 0 : index
    %c0_128 = arith.constant 0 : index
    %523 = vector.load %arg15[%522, %c0_127, %c0_128] : memref<8x8x128xf32, #tpu.memory_space<vmem>>, vector<1x8x128xf32>
    %524 = vector.shape_cast %523 : vector<1x8x128xf32> to vector<8x128xf32>
    %cst_129 = arith.constant dense<0.000000e+00> : vector<8x128xf32>
    %525 = tpu.matmul %471, %3, %cst_129 {dimension_numbers = #tpu.dot_dimension_numbers<[1], [0], [0], [1], [0, 0, 1, 1], [], []>} : vector<8x32xf32>, vector<32x128xf32>, vector<8x128xf32> -> vector<8x128xf32>
    %526 = arith.addf %524, %525 : vector<8x128xf32>
    %527 = vector.extract_strided_slice %526 {offsets = [0, 0], sizes = [8, 96], strides = [1, 1]} : vector<8x128xf32> to vector<8x96xf32>
    %528 = arith.negf %527 : vector<8x96xf32>
    %529 = math.exp %528 : vector<8x96xf32>
    %cst_130 = arith.constant 1.000000e+00 : f32
    %530 = vector.broadcast %cst_130 : f32 to vector<8x96xf32>
    %531 = arith.addf %530, %529 : vector<8x96xf32>
    %532 = arith.divf %530, %531 : vector<8x96xf32>
    %533 = vector.extract_strided_slice %532 {offsets = [0, 0], sizes = [8, 32], strides = [1, 1]} : vector<8x96xf32> to vector<8x32xf32>
    %534 = vector.extract_strided_slice %532 {offsets = [0, 32], sizes = [8, 32], strides = [1, 1]} : vector<8x96xf32> to vector<8x32xf32>
    %535 = vector.extract_strided_slice %532 {offsets = [0, 64], sizes = [8, 32], strides = [1, 1]} : vector<8x96xf32> to vector<8x32xf32>
    %536 = vector.extract_strided_slice %526 {offsets = [0, 96], sizes = [8, 32], strides = [1, 1]} : vector<8x128xf32> to vector<8x32xf32>
    %537 = math.tanh %536 : vector<8x32xf32>
    %538 = arith.mulf %534, %469 : vector<8x32xf32>
    %539 = arith.mulf %533, %537 : vector<8x32xf32>
    %540 = arith.addf %538, %539 : vector<8x32xf32>
    %541 = math.tanh %540 : vector<8x32xf32>
    %542 = arith.mulf %535, %541 : vector<8x32xf32>
    %cst_131 = arith.constant dense<0.000000e+00> : vector<8x128xf32>
    %543 = tpu.matmul %471, %4, %cst_131 {dimension_numbers = #tpu.dot_dimension_numbers<[1], [0], [0], [1], [0, 0, 1, 1], [], []>} : vector<8x32xf32>, vector<32x128xf32>, vector<8x128xf32> -> vector<8x128xf32>
    %cst_132 = arith.constant dense<0.000000e+00> : vector<8x128xf32>
    %544 = tpu.matmul %518, %5, %cst_132 {dimension_numbers = #tpu.dot_dimension_numbers<[1], [0], [0], [1], [0, 0, 1, 1], [], []>} : vector<8x32xf32>, vector<32x128xf32>, vector<8x128xf32> -> vector<8x128xf32>
    %545 = arith.addf %543, %544 : vector<8x128xf32>
    %546 = vector.broadcast %6 : vector<1x128xf32> to vector<8x128xf32>
    %547 = arith.addf %545, %546 : vector<8x128xf32>
    %548 = vector.extract_strided_slice %547 {offsets = [0, 0], sizes = [8, 96], strides = [1, 1]} : vector<8x128xf32> to vector<8x96xf32>
    %549 = arith.negf %548 : vector<8x96xf32>
    %550 = math.exp %549 : vector<8x96xf32>
    %cst_133 = arith.constant 1.000000e+00 : f32
    %551 = vector.broadcast %cst_133 : f32 to vector<8x96xf32>
    %552 = arith.addf %551, %550 : vector<8x96xf32>
    %553 = arith.divf %551, %552 : vector<8x96xf32>
    %554 = vector.extract_strided_slice %553 {offsets = [0, 0], sizes = [8, 32], strides = [1, 1]} : vector<8x96xf32> to vector<8x32xf32>
    %555 = vector.extract_strided_slice %553 {offsets = [0, 32], sizes = [8, 32], strides = [1, 1]} : vector<8x96xf32> to vector<8x32xf32>
    %556 = vector.extract_strided_slice %553 {offsets = [0, 64], sizes = [8, 32], strides = [1, 1]} : vector<8x96xf32> to vector<8x32xf32>
    %557 = vector.extract_strided_slice %547 {offsets = [0, 96], sizes = [8, 32], strides = [1, 1]} : vector<8x128xf32> to vector<8x32xf32>
    %558 = math.tanh %557 : vector<8x32xf32>
    %559 = arith.mulf %555, %519 : vector<8x32xf32>
    %560 = arith.mulf %554, %558 : vector<8x32xf32>
    %561 = arith.addf %559, %560 : vector<8x32xf32>
    %562 = math.tanh %561 : vector<8x32xf32>
    %563 = arith.mulf %556, %562 : vector<8x32xf32>
    %cst_134 = arith.constant dense<0.000000e+00> : vector<8x128xf32>
    %564 = tpu.matmul %518, %7, %cst_134 {dimension_numbers = #tpu.dot_dimension_numbers<[1], [0], [0], [1], [0, 0, 1, 1], [], []>} : vector<8x32xf32>, vector<32x128xf32>, vector<8x128xf32> -> vector<8x128xf32>
    %cst_135 = arith.constant dense<0.000000e+00> : vector<8x128xf32>
    %565 = tpu.matmul %520, %8, %cst_135 {dimension_numbers = #tpu.dot_dimension_numbers<[1], [0], [0], [1], [0, 0, 1, 1], [], []>} : vector<8x32xf32>, vector<32x128xf32>, vector<8x128xf32> -> vector<8x128xf32>
    %566 = arith.addf %564, %565 : vector<8x128xf32>
    %567 = vector.broadcast %9 : vector<1x128xf32> to vector<8x128xf32>
    %568 = arith.addf %566, %567 : vector<8x128xf32>
    %569 = vector.extract_strided_slice %568 {offsets = [0, 0], sizes = [8, 96], strides = [1, 1]} : vector<8x128xf32> to vector<8x96xf32>
    %570 = arith.negf %569 : vector<8x96xf32>
    %571 = math.exp %570 : vector<8x96xf32>
    %cst_136 = arith.constant 1.000000e+00 : f32
    %572 = vector.broadcast %cst_136 : f32 to vector<8x96xf32>
    %573 = arith.addf %572, %571 : vector<8x96xf32>
    %574 = arith.divf %572, %573 : vector<8x96xf32>
    %575 = vector.extract_strided_slice %574 {offsets = [0, 0], sizes = [8, 32], strides = [1, 1]} : vector<8x96xf32> to vector<8x32xf32>
    %576 = vector.extract_strided_slice %574 {offsets = [0, 32], sizes = [8, 32], strides = [1, 1]} : vector<8x96xf32> to vector<8x32xf32>
    %577 = vector.extract_strided_slice %574 {offsets = [0, 64], sizes = [8, 32], strides = [1, 1]} : vector<8x96xf32> to vector<8x32xf32>
    %578 = vector.extract_strided_slice %568 {offsets = [0, 96], sizes = [8, 32], strides = [1, 1]} : vector<8x128xf32> to vector<8x32xf32>
    %579 = math.tanh %578 : vector<8x32xf32>
    %580 = arith.mulf %576, %521 : vector<8x32xf32>
    %581 = arith.mulf %575, %579 : vector<8x32xf32>
    %582 = arith.addf %580, %581 : vector<8x32xf32>
    %583 = math.tanh %582 : vector<8x32xf32>
    %584 = arith.mulf %577, %583 : vector<8x32xf32>
    %c8_i32_137 = arith.constant 8 : i32
    %585 = arith.muli %arg1, %c8_i32_137 : i32
    %586 = arith.addi %585, %c7_i32 : i32
    %c1_i32_138 = arith.constant 1 : i32
    %587 = arith.cmpi sge, %586, %c1_i32_138 : i32
    %c2_i32_139 = arith.constant 2 : i32
    %588 = arith.cmpi sge, %586, %c2_i32_139 : i32
    %589 = arith.select %587, %563, %518 : vector<8x32xf32>
    %590 = arith.select %587, %561, %519 : vector<8x32xf32>
    %591 = arith.select %588, %584, %520 : vector<8x32xf32>
    %592 = arith.select %588, %582, %521 : vector<8x32xf32>
    %c8_i32_140 = arith.constant 8 : i32
    %c0_141 = arith.constant 0 : index
    %c0_142 = arith.constant 0 : index
    %593 = vector.load %arg16[%c0_141, %c0_142] : memref<8x32xf32, #tpu.memory_space<vmem>>, vector<8x32xf32>
    tpu.vector_store %arg16[%c0_141, %c0_142], %542 {strides = array<i32>} : memref<8x32xf32, #tpu.memory_space<vmem>>, vector<8x32xf32>,
    %c0_143 = arith.constant 0 : index
    %c0_144 = arith.constant 0 : index
    %594 = vector.load %arg17[%c0_143, %c0_144] : memref<8x32xf32, #tpu.memory_space<vmem>>, vector<8x32xf32>
    tpu.vector_store %arg17[%c0_143, %c0_144], %540 {strides = array<i32>} : memref<8x32xf32, #tpu.memory_space<vmem>>, vector<8x32xf32>,
    %c0_145 = arith.constant 0 : index
    %c0_146 = arith.constant 0 : index
    %595 = vector.load %arg18[%c0_145, %c0_146] : memref<8x32xf32, #tpu.memory_space<vmem>>, vector<8x32xf32>
    tpu.vector_store %arg18[%c0_145, %c0_146], %589 {strides = array<i32>} : memref<8x32xf32, #tpu.memory_space<vmem>>, vector<8x32xf32>,
    %c0_147 = arith.constant 0 : index
    %c0_148 = arith.constant 0 : index
    %596 = vector.load %arg19[%c0_147, %c0_148] : memref<8x32xf32, #tpu.memory_space<vmem>>, vector<8x32xf32>
    tpu.vector_store %arg19[%c0_147, %c0_148], %590 {strides = array<i32>} : memref<8x32xf32, #tpu.memory_space<vmem>>, vector<8x32xf32>,
    %c0_149 = arith.constant 0 : index
    %c0_150 = arith.constant 0 : index
    %597 = vector.load %arg20[%c0_149, %c0_150] : memref<8x32xf32, #tpu.memory_space<vmem>>, vector<8x32xf32>
    tpu.vector_store %arg20[%c0_149, %c0_150], %591 {strides = array<i32>} : memref<8x32xf32, #tpu.memory_space<vmem>>, vector<8x32xf32>,
    %c0_151 = arith.constant 0 : index
    %c0_152 = arith.constant 0 : index
    %598 = vector.load %arg21[%c0_151, %c0_152] : memref<8x32xf32, #tpu.memory_space<vmem>>, vector<8x32xf32>
    tpu.vector_store %arg21[%c0_151, %c0_152], %592 {strides = array<i32>} : memref<8x32xf32, #tpu.memory_space<vmem>>, vector<8x32xf32>,
    %c0_i32_153 = arith.constant 0 : i32
    %599 = arith.cmpi eq, %arg1, %c0_i32_153 : i32
    %600 = arith.extui %599 : i1 to i32
    %c0_i32_154 = arith.constant 0 : i32
    %601 = arith.cmpi ne, %600, %c0_i32_154 : i32
    scf.if %601 {
      %cst_155 = arith.constant dense<0.000000e+00> : vector<8x128xf32>
      %602 = tpu.matmul %542, %4, %cst_155 {dimension_numbers = #tpu.dot_dimension_numbers<[1], [0], [0], [1], [0, 0, 1, 1], [], []>} : vector<8x32xf32>, vector<32x128xf32>, vector<8x128xf32> -> vector<8x128xf32>
      %cst_156 = arith.constant dense<0.000000e+00> : vector<8x128xf32>
      %603 = tpu.matmul %589, %5, %cst_156 {dimension_numbers = #tpu.dot_dimension_numbers<[1], [0], [0], [1], [0, 0, 1, 1], [], []>} : vector<8x32xf32>, vector<32x128xf32>, vector<8x128xf32> -> vector<8x128xf32>
      %604 = arith.addf %602, %603 : vector<8x128xf32>
      %605 = vector.broadcast %6 : vector<1x128xf32> to vector<8x128xf32>
      %606 = arith.addf %604, %605 : vector<8x128xf32>
      %607 = vector.extract_strided_slice %606 {offsets = [0, 0], sizes = [8, 96], strides = [1, 1]} : vector<8x128xf32> to vector<8x96xf32>
      %608 = arith.negf %607 : vector<8x96xf32>
      %609 = math.exp %608 : vector<8x96xf32>
      %cst_157 = arith.constant 1.000000e+00 : f32
      %610 = vector.broadcast %cst_157 : f32 to vector<8x96xf32>
      %611 = arith.addf %610, %609 : vector<8x96xf32>
      %612 = arith.divf %610, %611 : vector<8x96xf32>
      %613 = vector.extract_strided_slice %612 {offsets = [0, 0], sizes = [8, 32], strides = [1, 1]} : vector<8x96xf32> to vector<8x32xf32>
      %614 = vector.extract_strided_slice %612 {offsets = [0, 32], sizes = [8, 32], strides = [1, 1]} : vector<8x96xf32> to vector<8x32xf32>
      %615 = vector.extract_strided_slice %612 {offsets = [0, 64], sizes = [8, 32], strides = [1, 1]} : vector<8x96xf32> to vector<8x32xf32>
      %616 = vector.extract_strided_slice %606 {offsets = [0, 96], sizes = [8, 32], strides = [1, 1]} : vector<8x128xf32> to vector<8x32xf32>
      %617 = math.tanh %616 : vector<8x32xf32>
      %618 = arith.mulf %614, %590 : vector<8x32xf32>
      %619 = arith.mulf %613, %617 : vector<8x32xf32>
      %620 = arith.addf %618, %619 : vector<8x32xf32>
      %621 = math.tanh %620 : vector<8x32xf32>
      %622 = arith.mulf %615, %621 : vector<8x32xf32>
      %cst_158 = arith.constant dense<0.000000e+00> : vector<8x128xf32>
      %623 = tpu.matmul %589, %7, %cst_158 {dimension_numbers = #tpu.dot_dimension_numbers<[1], [0], [0], [1], [0, 0, 1, 1], [], []>} : vector<8x32xf32>, vector<32x128xf32>, vector<8x128xf32> -> vector<8x128xf32>
      %cst_159 = arith.constant dense<0.000000e+00> : vector<8x128xf32>
      %624 = tpu.matmul %591, %8, %cst_159 {dimension_numbers = #tpu.dot_dimension_numbers<[1], [0], [0], [1], [0, 0, 1, 1], [], []>} : vector<8x32xf32>, vector<32x128xf32>, vector<8x128xf32> -> vector<8x128xf32>
      %625 = arith.addf %623, %624 : vector<8x128xf32>
      %626 = vector.broadcast %9 : vector<1x128xf32> to vector<8x128xf32>
      %627 = arith.addf %625, %626 : vector<8x128xf32>
      %628 = vector.extract_strided_slice %627 {offsets = [0, 0], sizes = [8, 96], strides = [1, 1]} : vector<8x128xf32> to vector<8x96xf32>
      %629 = arith.negf %628 : vector<8x96xf32>
      %630 = math.exp %629 : vector<8x96xf32>
      %cst_160 = arith.constant 1.000000e+00 : f32
      %631 = vector.broadcast %cst_160 : f32 to vector<8x96xf32>
      %632 = arith.addf %631, %630 : vector<8x96xf32>
      %633 = arith.divf %631, %632 : vector<8x96xf32>
      %634 = vector.extract_strided_slice %633 {offsets = [0, 0], sizes = [8, 32], strides = [1, 1]} : vector<8x96xf32> to vector<8x32xf32>
      %635 = vector.extract_strided_slice %633 {offsets = [0, 32], sizes = [8, 32], strides = [1, 1]} : vector<8x96xf32> to vector<8x32xf32>
      %636 = vector.extract_strided_slice %633 {offsets = [0, 64], sizes = [8, 32], strides = [1, 1]} : vector<8x96xf32> to vector<8x32xf32>
      %637 = vector.extract_strided_slice %627 {offsets = [0, 96], sizes = [8, 32], strides = [1, 1]} : vector<8x128xf32> to vector<8x32xf32>
      %638 = math.tanh %637 : vector<8x32xf32>
      %639 = arith.mulf %635, %592 : vector<8x32xf32>
      %640 = arith.mulf %634, %638 : vector<8x32xf32>
      %641 = arith.addf %639, %640 : vector<8x32xf32>
      %642 = math.tanh %641 : vector<8x32xf32>
      %643 = arith.mulf %636, %642 : vector<8x32xf32>
      %cst_161 = arith.constant dense<0.000000e+00> : vector<8x128xf32>
      %644 = tpu.matmul %622, %7, %cst_161 {dimension_numbers = #tpu.dot_dimension_numbers<[1], [0], [0], [1], [0, 0, 1, 1], [], []>} : vector<8x32xf32>, vector<32x128xf32>, vector<8x128xf32> -> vector<8x128xf32>
      %cst_162 = arith.constant dense<0.000000e+00> : vector<8x128xf32>
      %645 = tpu.matmul %643, %8, %cst_162 {dimension_numbers = #tpu.dot_dimension_numbers<[1], [0], [0], [1], [0, 0, 1, 1], [], []>} : vector<8x32xf32>, vector<32x128xf32>, vector<8x128xf32> -> vector<8x128xf32>
      %646 = arith.addf %644, %645 : vector<8x128xf32>
      %647 = vector.broadcast %9 : vector<1x128xf32> to vector<8x128xf32>
      %648 = arith.addf %646, %647 : vector<8x128xf32>
      %649 = vector.extract_strided_slice %648 {offsets = [0, 0], sizes = [8, 96], strides = [1, 1]} : vector<8x128xf32> to vector<8x96xf32>
      %650 = arith.negf %649 : vector<8x96xf32>
      %651 = math.exp %650 : vector<8x96xf32>
      %cst_163 = arith.constant 1.000000e+00 : f32
      %652 = vector.broadcast %cst_163 : f32 to vector<8x96xf32>
      %653 = arith.addf %652, %651 : vector<8x96xf32>
      %654 = arith.divf %652, %653 : vector<8x96xf32>
      %655 = vector.extract_strided_slice %654 {offsets = [0, 0], sizes = [8, 32], strides = [1, 1]} : vector<8x96xf32> to vector<8x32xf32>
      %656 = vector.extract_strided_slice %654 {offsets = [0, 32], sizes = [8, 32], strides = [1, 1]} : vector<8x96xf32> to vector<8x32xf32>
      %657 = vector.extract_strided_slice %654 {offsets = [0, 64], sizes = [8, 32], strides = [1, 1]} : vector<8x96xf32> to vector<8x32xf32>
      %658 = vector.extract_strided_slice %648 {offsets = [0, 96], sizes = [8, 32], strides = [1, 1]} : vector<8x128xf32> to vector<8x32xf32>
      %659 = math.tanh %658 : vector<8x32xf32>
      %660 = arith.mulf %656, %641 : vector<8x32xf32>
      %661 = arith.mulf %655, %659 : vector<8x32xf32>
      %662 = arith.addf %660, %661 : vector<8x32xf32>
      %663 = math.tanh %662 : vector<8x32xf32>
      %664 = arith.mulf %657, %663 : vector<8x32xf32>
      %c0_164 = arith.constant 0 : index
      %c0_165 = arith.constant 0 : index
      %665 = vector.load %arg12[%c0_164, %c0_165] : memref<32x128xf32, #tpu.memory_space<vmem>>, vector<32x128xf32>
      %cst_166 = arith.constant dense<0.000000e+00> : vector<8x128xf32>
      %666 = tpu.matmul %664, %665, %cst_166 {dimension_numbers = #tpu.dot_dimension_numbers<[1], [0], [0], [1], [0, 0, 1, 1], [], []>} : vector<8x32xf32>, vector<32x128xf32>, vector<8x128xf32> -> vector<8x128xf32>
      %c0_167 = arith.constant 0 : index
      %c0_168 = arith.constant 0 : index
      %667 = vector.load %arg13[%c0_167, %c0_168] : memref<1x128xf32, #tpu.memory_space<vmem>>, vector<1x128xf32>
      %668 = vector.broadcast %667 : vector<1x128xf32> to vector<8x128xf32>
      %669 = arith.addf %666, %668 : vector<8x128xf32>
      %cst_169 = arith.constant 0.000000e+00 : f32
      %670 = vector.broadcast %cst_169 : f32 to vector<8x128xf32>
      %671 = arith.maximumf %669, %670 : vector<8x128xf32>
      %c0_170 = arith.constant 0 : index
      %c0_171 = arith.constant 0 : index
      %672 = vector.load %arg14[%c0_170, %c0_171] : memref<8x128xf32, #tpu.memory_space<vmem>>, vector<8x128xf32>
      tpu.vector_store %arg14[%c0_170, %c0_171], %671 {strides = array<i32>} : memref<8x128xf32, #tpu.memory_space<vmem>>, vector<8x128xf32>,
    } else {
    }
    return
  }
  func.func @transform_0(%arg0: i32, %arg1: i32) -> (i32, i32, i32) {
    %c0_i32 = arith.constant 0 : i32
    %c0_i32_0 = arith.constant 0 : i32
    return %arg1, %arg0, %c0_i32 : i32, i32, i32
  }
  func.func @transform_1(%arg0: i32, %arg1: i32) -> (i32, i32) {
    %c0_i32 = arith.constant 0 : i32
    %c0_i32_0 = arith.constant 0 : i32
    %c0_i32_1 = arith.constant 0 : i32
    return %c0_i32, %c0_i32_0 : i32, i32
  }
  func.func @transform_2(%arg0: i32, %arg1: i32) -> (i32, i32) {
    %c0_i32 = arith.constant 0 : i32
    %c0_i32_0 = arith.constant 0 : i32
    %c0_i32_1 = arith.constant 0 : i32
    return %c0_i32, %c0_i32_0 : i32, i32
  }
  func.func @transform_3(%arg0: i32, %arg1: i32) -> (i32, i32) {
    %c0_i32 = arith.constant 0 : i32
    %c0_i32_0 = arith.constant 0 : i32
    %c0_i32_1 = arith.constant 0 : i32
    return %c0_i32, %c0_i32_0 : i32, i32
  }
  func.func @transform_4(%arg0: i32, %arg1: i32) -> (i32, i32) {
    %c0_i32 = arith.constant 0 : i32
    %c0_i32_0 = arith.constant 0 : i32
    %c0_i32_1 = arith.constant 0 : i32
    return %c0_i32, %c0_i32_0 : i32, i32
  }
  func.func @transform_5(%arg0: i32, %arg1: i32) -> (i32, i32) {
    %c0_i32 = arith.constant 0 : i32
    %c0_i32_0 = arith.constant 0 : i32
    %c0_i32_1 = arith.constant 0 : i32
    return %c0_i32, %c0_i32_0 : i32, i32
  }
  func.func @transform_6(%arg0: i32, %arg1: i32) -> (i32, i32) {
    %c0_i32 = arith.constant 0 : i32
    %c0_i32_0 = arith.constant 0 : i32
    %c0_i32_1 = arith.constant 0 : i32
    return %c0_i32, %c0_i32_0 : i32, i32
  }
  func.func @transform_7(%arg0: i32, %arg1: i32) -> (i32, i32) {
    %c0_i32 = arith.constant 0 : i32
    %c0_i32_0 = arith.constant 0 : i32
    %c0_i32_1 = arith.constant 0 : i32
    return %c0_i32, %c0_i32_0 : i32, i32
  }
  func.func @transform_8(%arg0: i32, %arg1: i32) -> (i32, i32) {
    %c0_i32 = arith.constant 0 : i32
    %c0_i32_0 = arith.constant 0 : i32
    %c0_i32_1 = arith.constant 0 : i32
    return %c0_i32, %c0_i32_0 : i32, i32
  }
  func.func @transform_9(%arg0: i32, %arg1: i32) -> (i32, i32) {
    %c0_i32 = arith.constant 0 : i32
    %c0_i32_0 = arith.constant 0 : i32
    %c0_i32_1 = arith.constant 0 : i32
    return %c0_i32, %c0_i32_0 : i32, i32
  }
  func.func @transform_10(%arg0: i32, %arg1: i32) -> (i32, i32) {
    %c0_i32 = arith.constant 0 : i32
    %c0_i32_0 = arith.constant 0 : i32
    %c0_i32_1 = arith.constant 0 : i32
    return %c0_i32, %c0_i32_0 : i32, i32
  }
  func.func @transform_11(%arg0: i32, %arg1: i32) -> (i32, i32) {
    %c0_i32 = arith.constant 0 : i32
    %c0_i32_0 = arith.constant 0 : i32
    %c0_i32_1 = arith.constant 0 : i32
    return %c0_i32, %c0_i32_0 : i32, i32
  }
  func.func @transform_12(%arg0: i32, %arg1: i32) -> (i32, i32) {
    %c0_i32 = arith.constant 0 : i32
    %c0_i32_0 = arith.constant 0 : i32
    return %arg0, %c0_i32 : i32, i32
  }
}

</mosaic_0001>

<bundles_post_ra>
// kernel: speaker_encoder_forward.1
= control target key start
LH: loop header
LB: loop body
LE: loop exit
PB: predicated region body
PF: predicated region fallthrough
CT: control target
= control target key end

     0   :  { %17 = vsyncpa [#allocation10], 0  ;;  %s6914_s0 = inlined_call_operand.vmem [shape: f32[8,8,16], index: 0, kind: input, shape index: {}]   ;;  %s6915_s1 = inlined_call_operand.hbm [shape: f32[16,128], index: 1, kind: input, shape index: {}]   ;;  %s6916_s2 = inlined_call_operand.vmem [shape: f32[32,128], index: 2, kind: input, shape index: {}]   ;;  %s6917_s3 = inlined_call_operand.vmem [shape: f32[1,128], index: 3, kind: input, shape index: {}]   ;;  %s6918_s4 = inlined_call_operand.vmem [shape: f32[32,128], index: 4, kind: input, shape index: {}]   ;;  %s6919_s5 = inlined_call_operand.vmem [shape: f32[32,128], index: 5, kind: input, shape index: {}]   ;;  %s6920_s6 = inlined_call_operand.vmem [shape: f32[1,128], index: 6, kind: input, shape index: {}]   ;;  %s6921_s7 = inlined_call_operand.vmem [shape: f32[32,128], index: 7, kind: input, shape index: {}]   ;;  %s6922_s8 = inlined_call_operand.hbm [shape: f32[32,128], index: 8, kind: input, shape index: {}]   ;;  %s6923_s9 = inlined_call_operand.vmem [shape: f32[1,128], index: 9, kind: input, shape index: {}]   ;;  %s6924_s10 = inlined_call_operand.hbm [shape: f32[32,128], index: 10, kind: input, shape index: {}]   ;;  %s6925_s11 = inlined_call_operand.hbm [shape: f32[1,128], index: 11, kind: input, shape index: {}]   ;;  %s6926_s12 = inlined_call_operand.vmem [shape: f32[8,128], index: 12, kind: output, shape index: {}]  }
   0x1   :  { %18 = vsyncpa [#allocation12], 0 }
   0x2   :  { %19 = vsyncpa [#allocation15], 0  ;;  %s6042_s21 = smov [#allocation11]   ;;  %s6043_s23 = smov [#allocation9]  }
   0x3   :  { %s51_s22 = sshll.u32 %s6042_s21, 4  ;;  %s27_s24 = sshll.u32 %s6043_s23, 4  ;;  %s52_s22 = int_to_ptr.vmem [resolvable:$true] %s51_s22  ;;  %s6119_s24 = int_to_ptr.vmem [resolvable:$true] %s27_s24 }
   0x4   :  { %s5948_s27 = scalar_lea.hbm %s6922_s8, 512 }
   0x5   :  { %p5949_p0 = scmp.ne.s32.totalorder %s6922_s8, %s5948_s27  ;;  %p5952_p1 = scmp.lt.u32.totalorder %s5948_s27, %s6922_s8 }
   0x7   :  { %p5954_p2 = pnand %p5952_p1, %p5949_p0 }
   0x9   :  { %5957 = shalt.err (!%p5954_p2)
}
   0xa   :  { %s5958_s14 = scalar_lea.vmem %s52_s22, 512  ;;  %p5963_p4 = scmp.lt.s32.totalorder %s52_s22, %s52_s22 }
   0xb   :  { %p5959_p3 = scmp.ne.s32.totalorder %s52_s22, %s5958_s14  ;;  %p5964_p5 = scmp.lt.s32.totalorder %s5958_s14, %s5958_s14 }
   0xd   :  { %p5965_p6 = por %p5964_p5, %p5963_p4 }
   0xf   :  { %p5966_p7 = pnand %p5965_p6, %p5959_p3 }
  0x11   :  { %5969 = shalt.err (!%p5966_p7)
}
  0x12   :  { %s6044_s15 = smov 128   ;;  %s6045_s16 = smov 8  }
  0x13   :  { %57 = dma.hbm_to_vmem [thread:$0]  %s6922_s8, 512, %s52_s22, [#allocation12], %s6044_s15, %s6044_s15, %s6045_s16  }
  0x14   :  { %s5970_s21 = scalar_lea.hbm %s6915_s1, 256 }
  0x15   :  { %p5971_p8 = scmp.ne.s32.totalorder %s6915_s1, %s5970_s21  ;;  %p5974_p9 = scmp.lt.u32.totalorder %s5970_s21, %s6915_s1 }
  0x17   :  { %p5976_p10 = pnand %p5974_p9, %p5971_p8 }
  0x19   :  { %5979 = shalt.err (!%p5976_p10)
}
  0x1a   :  { %s5980_s28 = scalar_lea.vmem %s6119_s24, 256  ;;  %p5985_p12 = scmp.lt.s32.totalorder %s6119_s24, %s6119_s24 }
  0x1b   :  { %p5981_p11 = scmp.ne.s32.totalorder %s6119_s24, %s5980_s28  ;;  %p5986_p13 = scmp.lt.s32.totalorder %s5980_s28, %s5980_s28 }
  0x1d   :  { %p5987_p0 = por %p5986_p13, %p5985_p12 }
  0x1f   :  { %p5988_p1 = pnand %p5987_p0, %p5981_p11 }
  0x21   :  { %5991 = shalt.err (!%p5988_p1)
}
  0x22   :  { %33 = dma.hbm_to_vmem [thread:$0]  %s6915_s1, 256, %s6119_s24, [#allocation10], %s6044_s15, %s6044_s15, %s6045_s16  }
  0x23   :  { %s6046_s29 = smov [#allocation13]   ;;  %s6047_s13 = smov [#allocation14]  }
  0x24   :  { %s65_s30 = sshll.u32 %s6046_s29, 4  ;;  %s78_s14 = sshll.u32 %s6047_s13, 4  ;;  %s66_s30 = int_to_ptr.vmem [resolvable:$true] %s65_s30  ;;  %s79_s14 = int_to_ptr.vmem [resolvable:$true] %s78_s14 }
  0x25   :  { %s5992_s19 = scalar_lea.hbm %s6924_s10, 512 }
  0x26   :  { %p5993_p2 = scmp.ne.s32.totalorder %s6924_s10, %s5992_s19  ;;  %p5996_p3 = scmp.lt.u32.totalorder %s5992_s19, %s6924_s10 }
  0x28   :  { %p5998_p4 = pnand %p5996_p3, %p5993_p2 }
  0x2a   :  { %6001 = shalt.err (!%p5998_p4)
}
  0x2b   :  { %s6002_s1 = scalar_lea.vmem %s66_s30, 512  ;;  %p6007_p6 = scmp.lt.s32.totalorder %s66_s30, %s66_s30 }
  0x2c   :  { %p6003_p5 = scmp.ne.s32.totalorder %s66_s30, %s6002_s1  ;;  %p6008_p7 = scmp.lt.s32.totalorder %s6002_s1, %s6002_s1 }
  0x2e   :  { %p6009_p8 = por %p6008_p7, %p6007_p6 }
  0x30   :  { %p6010_p9 = pnand %p6009_p8, %p6003_p5 }
  0x32   :  { %6013 = shalt.err (!%p6010_p9)
}
  0x33   :  { %71 = dma.hbm_to_vmem [thread:$0]  %s6924_s10, 512, %s66_s30, [#allocation12], %s6044_s15, %s6044_s15, %s6045_s16  }
  0x34   :  { %s6014_s8 = scalar_lea.hbm %s6925_s11, 16 }
  0x35   :  { %p6015_p10 = scmp.ne.s32.totalorder %s6925_s11, %s6014_s8  ;;  %p6018_p11 = scmp.lt.u32.totalorder %s6014_s8, %s6925_s11 }
  0x37   :  { %p6020_p12 = pnand %p6018_p11, %p6015_p10 }
  0x39   :  { %6023 = shalt.err (!%p6020_p12)
}
  0x3a   :  { %s6024_s18 = scalar_lea.vmem %s79_s14, 16  ;;  %s6028_s19 = scalar_lea.vmem %s79_s14, 32 }
  0x3b   :  { %p6025_p13 = scmp.ne.s32.totalorder %s79_s14, %s6024_s18  ;;  %p6029_p0 = scmp.lt.s32.totalorder %s79_s14, %s79_s14 }
  0x3c   :  { %p6030_p1 = scmp.lt.s32.totalorder %s6028_s19, %s6024_s18 }
  0x3e   :  { %p6031_p2 = por %p6030_p1, %p6029_p0 }
  0x40   :  { %p6032_p3 = pnand %p6031_p2, %p6025_p13 }
  0x42   :  { %6035 = shalt.err (!%p6032_p3)
}
  0x43   :  { %81 = dma.hbm_to_vmem [thread:$0]  %s6925_s11, 16, %s79_s14, [#allocation15]  }
  0x44   :  { %6036 = dma.done.wait [#allocation10], 256  }
  0x45   :  { %6037 = vsyncadd [#allocation10], 4294967040 }
  0x46   :  { %6038 = dma.done.wait [#allocation12], 1024  }
  0x47   :  { %6039 = vsyncadd [#allocation12], 4294966272 }
  0x48   :  { %6040 = dma.done.wait [#allocation15], 16  }
  0x49   :  { %6041 = vsyncadd [#allocation15], 4294967280  ;;  %v6048_v0 = vmov 0.0|0.0   ;;  %vm6049_vm0 = vmmov 0   ;;  %v6050_v1 = vmov 0.0   ;;  %vm98_vm1 = vcmask 261120  }
  0x4a   :  { %5459 = vmatprep.subr.bf16.mxu1 %v6048_v0  ;;  %4946 = vmatprep.mubr.msk.f32.mxu1 %vm6049_vm0, %v6050_v1  ;;  %99 = vst.msk [vmem:[#allocation3] sm:$0xff] %vm98_vm1, %v6050_v1  ;;  %100 = vst.msk [vmem:[#allocation4] sm:$0xff] %vm98_vm1, %v6050_v1  ;;  %vm144_vm2 = vcmask 130048   ;;  %v135_v2 = vld [vmem:[#allocation9] sm:$0xff]  ;;  %v136_v3 = vld [vmem:[#allocation9 + $0x8] sm:$0xff]  ;;  %s6051_s8 = smov 32  }
  0x4b   :  { %101 = vst.msk [vmem:[#allocation5] sm:$0xff] %vm98_vm1, %v6050_v1  ;;  %102 = vst.msk [vmem:[#allocation6] sm:$0xff] %vm98_vm1, %v6050_v1  ;;  %v105_v4 = vld [vmem:[%s6916_s2] sm:$0xff]  ;;  %v5455_v5 = vpack.c.bf16 %v136_v3, %v135_v2  ;;  %v106_v6 = vld [vmem:[%s6916_s2 + $0x8] sm:$0xff]  ;;  %s6052_s22 = smov 64  }
  0x4c   :  { %103 = vst.msk [vmem:[#allocation7] sm:$0xff] %vm98_vm1, %v6050_v1  ;;  %104 = vst.msk [vmem:[#allocation8] sm:$0xff] %vm98_vm1, %v6050_v1  ;;  %v127_v7 = vld [vmem:[%s6914_s0] sm:$0xff]  ;;  %v6207_v8 = vpack.c.bf16 %v106_v6, %v105_v4  ;;  %v107_v9 = vld [vmem:[%s6916_s2 + $0x10] sm:$0xff] }
  0x4d   :  { %4926 = vmatprep.mubr.msk.f32.mxu0 %vm144_vm2, %v127_v7  ;;  %v108_v10 = vld [vmem:[%s6916_s2 + $0x18] sm:$0xff]  ;;  %5456 = vmatprep.subr.bf16.mxu0 %v5455_v5  ;;  %v128_v11 = vld [vmem:[%s6914_s0 + $0x8] sm:$0xff]  ;;  %v6236_v14 = vld [vmem:[%s6917_s3] ss:$0 sm:$0xff] }
  0x4e   :  { %5461 = vmatpush3.bf16.msra.mxu1 %v6207_v8  ;;  %5458 = vmatpush3.bf16.msra.mxu0 %v5455_v5  ;;  %v6220_v12 = vpack.c.bf16 %v108_v10, %v107_v9  ;;  %v113_v35 = vld [vmem:[%s6919_s5] sm:$0xff]  ;;  %v114_v36 = vld [vmem:[%s6919_s5 + $0x8] sm:$0xff]  ;;  %v129_v40 = vld [vmem:[%s6914_s0 + $0x10] sm:$0xff] }
  0x4f   :  { %5462 = vmatprep.subr.bf16.mxu1 %v6048_v0  ;;  %5471 = vmatprep.subr.bf16.mxu0 %v6048_v0  ;;  %v109_v37 = vld [vmem:[%s6918_s4] sm:$0xff]  ;;  %v6265_v38 = vpack.c.bf16 %v114_v36, %v113_v35  ;;  %v110_v39 = vld [vmem:[%s6918_s4 + $0x8] sm:$0xff]  ;;  %v130_v41 = vld [vmem:[%s6914_s0 + $0x18] sm:$0xff] }
  0x50   :  { %v6276_v42 = vpack.c.bf16 %v110_v39, %v109_v37  ;;  %v115_v43 = vld [vmem:[%s6919_s5 + $0x10] sm:$0xff]  ;;  %v116_v44 = vld [vmem:[%s6919_s5 + $0x18] sm:$0xff]  ;;  %v131_v45 = vld [vmem:[%s6914_s0 + $0x20] sm:$0xff] }
  0x51   :  { %4927 = vmatmul.mubr.msk.f32.vlgmr.msra.gmra.mrb[0].mxu0 %vm144_vm2, %v128_v11  ;;  %v6226_v13 = vld [vmem:[#allocation3] sm:$0xff]  ;;  %v283_v22 = vld [vmem:[#allocation4] sm:$0xff]  ;;  %v6290_v46 = vpack.c.bf16 %v116_v44, %v115_v43  ;;  %v111_v47 = vld [vmem:[%s6918_s4 + $0x10] sm:$0xff] }
  0x52   :  { %5464 = vmatpush3.bf16.msra.mxu1 %v6220_v12  ;;  %v6247_v29 = vld [vmem:[#allocation5] sm:$0xff]  ;;  %4929 = vmatprep.mubr.msk.f32.mxu0 %vm144_vm2, %v129_v40  ;;  %v112_v48 = vld [vmem:[%s6918_s4 + $0x18] sm:$0xff]  ;;  %v132_v49 = vld [vmem:[%s6914_s0 + $0x28] sm:$0xff] }
  0x53   :  { %5465 = vmatprep.subr.bf16.mxu1 %v6048_v0  ;;  %5473 = vmatpush3.bf16.msra.mxu0 %v6276_v42  ;;  %v6303_v50 = vpack.c.bf16 %v112_v48, %v111_v47  ;;  %v122_v51 = vld [vmem:[#allocation11] sm:$0xff]  ;;  %v123_v52 = vld [vmem:[#allocation11 + $0x8] sm:$0xff]  ;;  %v133_v53 = vld [vmem:[%s6914_s0 + $0x30] sm:$0xff] }
  0x54   :  { %5474 = vmatprep.subr.bf16.mxu0 %v6048_v0  ;;  %v6312_v54 = vpack.c.bf16 %v123_v52, %v122_v51  ;;  %v124_v55 = vld [vmem:[#allocation11 + $0x10] sm:$0xff]  ;;  %v125_v56 = vld [vmem:[#allocation11 + $0x18] sm:$0xff]  ;;  %v118_v59 = vld [vmem:[%s6921_s7] sm:$0xff] }
  0x55   :  { %4947 = vmatmul.mubr.msk.f32.vlgmr.msra.gmra.mrb[0].mxu1 %vm98_vm1, %v6226_v13  ;;  %4930 = vmatmul.mubr.msk.f32.gmra.mrb[2].mxu0 %vm144_vm2, %v130_v41  ;;  %v134_v57 = vld [vmem:[%s6914_s0 + $0x38] sm:$0xff]  ;;  %v119_v60 = vld [vmem:[%s6921_s7 + $0x8] sm:$0xff]  ;;  %v6331_v61 = vpack.c.bf16 %v125_v56, %v124_v55  ;;  %v120_v63 = vld [vmem:[%s6921_s7 + $0x10] sm:$0xff] }
  0x56   :  { %4957 = vmatprep.mubr.msk.f32.mxu1 %vm6049_vm0, %v6050_v1  ;;  %5467 = vmatpush3.bf16.msra.mxu1 %v6265_v38  ;;  %v6339_v62 = vpack.c.bf16 %v119_v60, %v118_v59  ;;  %v121_v2 = vld [vmem:[%s6921_s7 + $0x18] sm:$0xff]  ;;  %v6348_v3 = vld [vmem:[#allocation7] sm:$0xff] }
  0x57   :  { %5468 = vmatprep.subr.bf16.mxu1 %v6048_v0  ;;  %4932 = vmatprep.mubr.msk.f32.mxu0 %vm144_vm2, %v131_v45  ;;  %v6354_v4 = vpack.c.bf16 %v121_v2, %v120_v63  ;;  %v285_v44 = vld [vmem:[#allocation6] sm:$0xff] }
  0x58   :  { %5476 = vmatpush3.bf16.msra.mxu0 %v6303_v50 }
  0x59   :  { %4933 = vmatmul.mubr.msk.f32.gmra.mrb[4].mxu0 %vm144_vm2, %v132_v49  ;;  %5483 = vmatprep.subr.bf16.mxu0 %v6048_v0 }
  0x5a   :  { %5470 = vmatpush3.bf16.msra.mxu1 %v6290_v46  ;;  %4935 = vmatprep.mubr.msk.f32.mxu0 %vm144_vm2, %v133_v53 }
  0x5b   :  { %5477 = vmatprep.subr.bf16.mxu1 %v6048_v0 }
  0x5d   :  { %4958 = vmatmul.mubr.msk.f32.vlgmr.msra.gmra.mrb[2].mxu1 %vm98_vm1, %v6247_v29  ;;  %4936 = vmatmul.mubr.msk.f32.gmra.mrb[6].mxu0 %vm144_vm2, %v134_v57 }
  0x5e   :  { %5479 = vmatpush3.bf16.msra.mxu1 %v6312_v54  ;;  %4968 = vmatprep.mubr.msk.f32.mxu0 %vm6049_vm0, %v6050_v1 }
  0x5f   :  { %5480 = vmatprep.subr.bf16.mxu1 %v6048_v0  ;;  %4979 = vmatprep.mubr.msk.f32.mxu1 %vm6049_vm0, %v6050_v1 }
  0x61   :  { %4969 = vmatmul.mubr.msk.f32.vlgmr.msra.gmra.mrb[8].mxu0 %vm98_vm1, %v6226_v13 }
  0x62   :  { %5482 = vmatpush3.bf16.msra.mxu1 %v6331_v61  ;;  %5485 = vmatpush3.bf16.msra.mxu0 %v6339_v62 }
  0x63   :  { %5489 = vmatprep.subr.bf16.mxu1 %v6048_v0  ;;  %4990 = vmatprep.mubr.msk.f32.mxu0 %vm6049_vm0, %v6050_v1 }
  0x64   :  { %5486 = vmatprep.subr.bf16.mxu0 %v6048_v0 }
  0x65   :  { %4980 = vmatmul.mubr.msk.f32.vlgmr.msra.gmra.mrb[4].mxu1 %vm98_vm1, %v6348_v3 }
  0x66   :  { %5491 = vmatpush3.bf16.msra.mxu1 %v6207_v8  ;;  %5001 = vmatprep.mubr.msk.f32.mxu1 %vm6049_vm0, %v6050_v1 }
  0x67   :  { %5492 = vmatprep.subr.bf16.mxu1 %v6048_v0  ;;  %5488 = vmatpush3.bf16.msra.mxu0 %v6354_v4 }
  0x68   :  { %5495 = vmatprep.subr.bf16.mxu0 %v6048_v0 }
  0x6a   :  { %5494 = vmatpush3.bf16.msra.mxu1 %v6220_v12  ;;  %4991 = vmatmul.mubr.msk.f32.vlgmr.msra.gmra.mrb[10].mxu0 %vm98_vm1, %v6247_v29 }
  0x6b   :  { %5501 = vmatprep.subr.bf16.mxu1 %v6048_v0  ;;  %5497 = vmatpush3.bf16.msra.mxu0 %v6265_v38 }
  0x6c   :  { %5012 = vmatprep.mubr.msk.f32.mxu0 %vm6049_vm0, %v6050_v1  ;;  %5498 = vmatprep.subr.bf16.mxu0 %v6048_v0 }
  0x6f   :  { %5500 = vmatpush3.bf16.msra.mxu0 %v6290_v46 }
  0x70   :  { %5507 = vmatprep.subr.bf16.mxu0 %v6048_v0 }
 0x124   :  { %v6238_v15 = vpop.f32.mrb[0].mxu0 }
 0x125   :  { %v235_v16 = vpop.f32.mrb[1].mxu0 }
 0x126   :  { %v236_v17 = vadd.f32 %v6236_v14, %v235_v16 }
 0x128   :  { %v359_v18 = vpop.f32.mrb[0].mxu1  ;;  %v6386_v9 = vpop.f32.mrb[2].mxu0 }
 0x129   :  { %v363_v19 = vadd.f32 %v359_v18, %v236_v17  ;;  %v4948_v20 = vpop.f32.mrb[1].mxu1  ;;  %v6388_v10 = vpop.f32.mrb[3].mxu0 }
 0x12b   :  { %5753 = vtanh.f32 %v363_v19  ;;  %v4601_v23 = vmul.f32 -1.442695, %v363_v19 }
 0x12c   :  { %v6390_v11 = vpop.f32.mrb[4].mxu0 }
 0x12d   :  { %5755 = vpow2.f32 %v4601_v23  ;;  %v6392_v13 = vpop.f32.mrb[5].mxu0 }
 0x130   :  { %v461_v16 = vpop.f32.mrb[2].mxu1  ;;  %v6394_v18 = vpop.f32.mrb[6].mxu0 }
 0x131   :  { %v4959_v17 = vpop.f32.mrb[3].mxu1  ;;  %v6396_v19 = vpop.f32.mrb[7].mxu0 }
 0x134   :  { %v531_v20 = vpop.f32.mrb[8].mxu0 }
 0x135   :  { %v5754_v21 = vpop.eup %5753 }
 0x136   :  { %377 = vrot.lane.b32.xlu0 %v5754_v21, %s6051_s8  ;;  %v4970_v21 = vpop.f32.mrb[9].mxu0 }
 0x137   :  { %v5756_v24 = vpop.eup %5755 }
 0x138   :  { %v367_v25 = vadd.f32 1.0, %v5756_v24 }
 0x13a   :  { %372 = vrot.lane.b32.xlu0 %v283_v22, %s6051_s8  ;;  %5757 = vrcp.f32 %v367_v25  ;;  %v639_v22 = vpop.f32.mrb[4].mxu1 }
 0x13b   :  { %v4981_v23 = vpop.f32.mrb[5].mxu1 }
 0x13d   :  { %v709_v24 = vpop.f32.mrb[10].mxu0 }
 0x13e   :  { %754 = vrot.lane.b32.xlu0 %v6247_v29, %s6052_s22  ;;  %v4992_v25 = vpop.f32.mrb[11].mxu0  ;;  %v241_v29 = vadd.f32 %v6238_v15, %v6236_v14 }
 0x144   :  { %v6243_v26 = vpop.eup %5757 }
 0x1a8   :  { %v378_v27 = vpop.permute.xlu0 %377 }
 0x1a9   :  { %v380_v28 = vmul.f32 %v6243_v26, %v378_v27 }
 0x1ab   :  { %382 = vrot.lane.b32.xlu1 %v380_v28, %s6051_s8 }
 0x1ac   :  { %v373_v30 = vpop.permute.xlu0 %372 }
 0x1ad   :  { %v375_v31 = vmul.f32 %v6243_v26, %v373_v30 }
 0x1b0   :  { %v755_v34 = vpop.permute.xlu0 %754 }
 0x1b1   :  { %870 = vrot.lane.b32.xlu0 %v755_v34, %s6052_s22  ;;  %v6424_v34 = vld [vmem:[%s6920_s6] ss:$0 sm:$0xff] }
 0x21d   :  { %v383_v32 = vpop.permute.xlu1 %382 }
 0x21e   :  { %v6252_v33 = vadd.f32 %v383_v32, %v375_v31 }
 0x220   :  { %5759 = vtanh.f32 %v6252_v33 }
 0x223   :  { %v871_v5 = vpop.permute.xlu0 %870 }
 0x224   :  { %5013 = vmatmul.mubr.msk.f32.vlgmr.msra.gmra.mrb[12].mxu0 %vm98_vm1, %v871_v5 }
 0x225   :  { %5509 = vmatpush3.bf16.msra.mxu0 %v6312_v54  ;;  %5034 = vmatprep.mubr.msk.f32.mxu0 %vm6049_vm0, %v6050_v1 }
 0x226   :  { %5510 = vmatprep.subr.bf16.mxu0 %v6048_v0 }
 0x229   :  { %5512 = vmatpush3.bf16.msra.mxu0 %v6331_v61 }
 0x22a   :  { %v5760_v58 = vpop.eup %5759  ;;  %5519 = vmatprep.subr.bf16.mxu0 %v6048_v0 }
 0x22b   :  { %388 = vrot.lane.b32.xlu1 %v5760_v58, %s6051_s8 }
 0x29d   :  { %v389_v6 = vpop.permute.xlu1 %388 }
 0x29e   :  { %v391_v7 = vmul.f32 %v6243_v26, %v389_v6 }
 0x2a0   :  { %770 = vrot.lane.b32.xlu1 %v391_v7, %s6052_s22 }
 0x2f7   :  { %v940_v27 = vpop.f32.mrb[12].mxu0 }
 0x2f8   :  { %v5014_v28 = vpop.f32.mrb[13].mxu0 }
 0x312   :  { %v771_v26 = vpop.permute.xlu1 %770 }
 0x313   :  { %5002 = vmatmul.mubr.msk.f32.vlgmr.msra.gmra.mrb[6].mxu1 %vm98_vm1, %v771_v26 }
 0x314   :  { %5503 = vmatpush3.bf16.msra.mxu1 %v6276_v42  ;;  %5023 = vmatprep.mubr.msk.f32.mxu1 %vm6049_vm0, %v6050_v1 }
 0x315   :  { %5504 = vmatprep.subr.bf16.mxu1 %v6048_v0 }
 0x318   :  { %5506 = vmatpush3.bf16.msra.mxu1 %v6303_v50 }
 0x319   :  { %5513 = vmatprep.subr.bf16.mxu1 %v6048_v0 }
 0x31b   :  { %5024 = vmatmul.mubr.msk.f32.vlgmr.msra.gmra.mrb[8].mxu1 %vm98_vm1, %v771_v26 }
 0x31c   :  { %5515 = vmatpush3.bf16.msra.mxu1 %v6339_v62  ;;  %5045 = vmatprep.mubr.msk.f32.mxu1 %vm6049_vm0, %v6050_v1 }
 0x31d   :  { %5516 = vmatprep.subr.bf16.mxu1 %v6048_v0 }
 0x320   :  { %5518 = vmatpush3.bf16.msra.mxu1 %v6354_v4 }
 0x321   :  { %5525 = vmatprep.subr.bf16.mxu1 %v6048_v0 }
 0x323   :  { %5046 = vmatmul.mubr.msk.f32.vlgmr.msra.gmra.mrb[10].mxu1 %vm98_vm1, %v871_v5 }
 0x324   :  { %5527 = vmatpush3.bf16.msra.mxu1 %v6265_v38  ;;  %5067 = vmatprep.mubr.msk.f32.mxu1 %vm6049_vm0, %v6050_v1 }
 0x325   :  { %5528 = vmatprep.subr.bf16.mxu1 %v6048_v0 }
 0x328   :  { %5530 = vmatpush3.bf16.msra.mxu1 %v6290_v46 }
 0x329   :  { %5537 = vmatprep.subr.bf16.mxu1 %v6048_v0 }
 0x3e6   :  { %v840_v30 = vpop.f32.mrb[6].mxu1 }
 0x3e7   :  { %v844_v31 = vadd.f32 %v840_v30, %v241_v29  ;;  %v5003_v32 = vpop.f32.mrb[7].mxu1  ;;  %v246_v30 = vadd.f32 %v6236_v14, %v6388_v10  ;;  %v6496_v10 = vld [vmem:[%s6923_s9] ss:$0 sm:$0xff] }
 0x3e9   :  { %5761 = vtanh.f32 %v844_v31  ;;  %v4611_v45 = vmul.f32 -1.442695, %v844_v31 }
 0x3ee   :  { %v1010_v35 = vpop.f32.mrb[8].mxu1 }
 0x3ef   :  { %v1011_v36 = vadd.f32 %v1010_v35, %v940_v27  ;;  %v5025_v37 = vpop.f32.mrb[9].mxu1 }
 0x3f1   :  { %v1014_v39 = vadd.f32 %v6424_v34, %v1011_v36 }
 0x3f3   :  { %v5762_v40 = vpop.eup %5761  ;;  %5763 = vtanh.f32 %v1014_v39  ;;  %v4614_v47 = vmul.f32 -1.442695, %v1014_v39 }
 0x3f4   :  { %854 = vrot.lane.b32.xlu1 %v5762_v40, %s6051_s8  ;;  %5765 = vpow2.f32 %v4611_v45 }
 0x3f5   :  { %5767 = vpow2.f32 %v4614_v47 }
 0x3f6   :  { %v1180_v41 = vpop.f32.mrb[10].mxu1 }
 0x3f7   :  { %v5047_v15 = vpop.f32.mrb[11].mxu1 }
 0x3fd   :  { %v5764_v43 = vpop.eup %5763 }
 0x3fe   :  { %1024 = vrot.lane.b32.xlu0 %v5764_v43, %s6051_s8  ;;  %v5766_v48 = vpop.eup %5765 }
 0x3ff   :  { %v848_v49 = vadd.f32 1.0, %v5766_v48  ;;  %v5768_v51 = vpop.eup %5767 }
 0x400   :  { %v1018_v52 = vadd.f32 1.0, %v5768_v51 }
 0x401   :  { %5769 = vrcp.f32 %v848_v49 }
 0x402   :  { %550 = vrot.lane.b32.xlu0 %v285_v44, %s6051_s8  ;;  %5771 = vrcp.f32 %v1018_v52 }
 0x406   :  { %762 = vrot.lane.b32.xlu0 %v6348_v3, %s6052_s22 }
 0x40b   :  { %v5770_v53 = vpop.eup %5769 }
 0x40c   :  { %v5772_v57 = vpop.eup %5771  ;;  %v852_v60 = vmul.f32 %v5770_v53, %v6252_v33 }
 0x466   :  { %v855_v55 = vpop.permute.xlu1 %854 }
 0x467   :  { %v857_v56 = vmul.f32 %v5770_v53, %v855_v55 }
 0x469   :  { %859 = vrot.lane.b32.xlu1 %v857_v56, %s6051_s8 }
 0x470   :  { %v1025_v58 = vpop.permute.xlu0 %1024 }
 0x471   :  { %v1027_v59 = vmul.f32 %v5772_v57, %v1025_v58 }
 0x473   :  { %1029 = vrot.lane.b32.xlu1 %v1027_v59, %s6051_s8 }
 0x474   :  { %v551_v3 = vpop.permute.xlu0 %550 }
 0x475   :  { %v1022_v5 = vmul.f32 %v5772_v57, %v551_v3 }
 0x478   :  { %v763_v17 = vpop.permute.xlu0 %762 }
 0x4db   :  { %v860_v63 = vpop.permute.xlu1 %859 }
 0x4dc   :  { %v6435_v2 = vadd.f32 %v860_v63, %v852_v60 }
 0x4de   :  { %5773 = vtanh.f32 %v6435_v2 }
 0x4e5   :  { %v1030_v6 = vpop.permute.xlu1 %1029 }
 0x4e6   :  { %v6438_v7 = vadd.f32 %v1030_v6, %v1022_v5 }
 0x4e8   :  { %v5774_v16 = vpop.eup %5773  ;;  %5775 = vtanh.f32 %v6438_v7 }
 0x4e9   :  { %865 = vrot.lane.b32.xlu1 %v5774_v16, %s6051_s8 }
 0x4ed   :  { %1040 = vrot.lane.b32.xlu1 %v763_v17, %s6052_s22 }
 0x4f2   :  { %v5776_v20 = vpop.eup %5775 }
 0x4f3   :  { %1035 = vrot.lane.b32.xlu0 %v5776_v20, %s6051_s8 }
 0x55b   :  { %v866_v33 = vpop.permute.xlu1 %865 }
 0x55c   :  { %v868_v21 = vmul.f32 %v5770_v53, %v866_v33 }
 0x55e   :  { %1225 = vrot.lane.b32.xlu0 %v868_v21, %s6052_s22 }
 0x55f   :  { %v1041_v22 = vpop.permute.xlu1 %1040 }
 0x560   :  { %5035 = vmatmul.mubr.msk.f32.vlgmr.msra.gmra.mrb[14].mxu0 %vm98_vm1, %v1041_v22 }
 0x561   :  { %5521 = vmatpush3.bf16.msra.mxu0 %v6207_v8  ;;  %5056 = vmatprep.mubr.msk.f32.mxu0 %vm6049_vm0, %v6050_v1 }
 0x562   :  { %1495 = vrot.lane.b32.xlu0 %v763_v17, %s6052_s22  ;;  %5522 = vmatprep.subr.bf16.mxu0 %v6048_v0  ;;  %v287_v17 = vld [vmem:[#allocation8] sm:$0xff] }
 0x565   :  { %v1036_v23 = vpop.permute.xlu0 %1035  ;;  %5524 = vmatpush3.bf16.msra.mxu0 %v6220_v12 }
 0x566   :  { %v1038_v24 = vmul.f32 %v5772_v57, %v1036_v23  ;;  %5531 = vmatprep.subr.bf16.mxu0 %v6048_v0 }
 0x568   :  { %1325 = vrot.lane.b32.xlu1 %v1038_v24, %s6052_s22 }
 0x5d0   :  { %v1226_v25 = vpop.permute.xlu0 %1225 }
 0x5d1   :  { %5057 = vmatmul.mubr.msk.f32.vlgmr.msra.gmra.mrb[16].mxu0 %vm98_vm1, %v1226_v25 }
 0x5d2   :  { %5533 = vmatpush3.bf16.msra.mxu0 %v6276_v42  ;;  %5078 = vmatprep.mubr.msk.f32.mxu0 %vm6049_vm0, %v6050_v1 }
 0x5d3   :  { %5534 = vmatprep.subr.bf16.mxu0 %v6048_v0 }
 0x5d4   :  { %v1496_v27 = vpop.permute.xlu0 %1495 }
 0x5d6   :  { %5536 = vmatpush3.bf16.msra.mxu0 %v6303_v50 }
 0x5d7   :  { %5543 = vmatprep.subr.bf16.mxu0 %v6048_v0 }
 0x5d9   :  { %5079 = vmatmul.mubr.msk.f32.vlgmr.msra.gmra.mrb[18].mxu0 %vm98_vm1, %v1226_v25 }
 0x5da   :  { %v1326_v26 = vpop.permute.xlu1 %1325  ;;  %5545 = vmatpush3.bf16.msra.mxu0 %v6339_v62  ;;  %5100 = vmatprep.mubr.msk.f32.mxu0 %vm6049_vm0, %v6050_v1 }
 0x5db   :  { %5068 = vmatmul.mubr.msk.f32.vlgmr.msra.gmra.mrb[12].mxu1 %vm98_vm1, %v1326_v26  ;;  %5546 = vmatprep.subr.bf16.mxu0 %v6048_v0 }
 0x5dc   :  { %5539 = vmatpush3.bf16.msra.mxu1 %v6312_v54  ;;  %5089 = vmatprep.mubr.msk.f32.mxu1 %vm6049_vm0, %v6050_v1 }
 0x5dd   :  { %5540 = vmatprep.subr.bf16.mxu1 %v6048_v0 }
 0x5de   :  { %5548 = vmatpush3.bf16.msra.mxu0 %v6354_v4 }
 0x5df   :  { %5555 = vmatprep.subr.bf16.mxu0 %v6048_v0 }
 0x5e0   :  { %5542 = vmatpush3.bf16.msra.mxu1 %v6331_v61 }
 0x5e1   :  { %5101 = vmatmul.mubr.msk.f32.vlgmr.msra.gmra.mrb[20].mxu0 %vm98_vm1, %v1326_v26  ;;  %5549 = vmatprep.subr.bf16.mxu1 %v6048_v0 }
 0x5e2   :  { %5557 = vmatpush3.bf16.msra.mxu0 %v6265_v38  ;;  %5122 = vmatprep.mubr.msk.f32.mxu0 %vm6049_vm0, %v6050_v1 }
 0x5e3   :  { %5090 = vmatmul.mubr.msk.f32.vlgmr.msra.gmra.mrb[14].mxu1 %vm98_vm1, %v1496_v27  ;;  %5558 = vmatprep.subr.bf16.mxu0 %v6048_v0 }
 0x5e4   :  { %5551 = vmatpush3.bf16.msra.mxu1 %v6207_v8  ;;  %5111 = vmatprep.mubr.msk.f32.mxu1 %vm6049_vm0, %v6050_v1 }
 0x5e5   :  { %5552 = vmatprep.subr.bf16.mxu1 %v6048_v0 }
 0x5e6   :  { %5560 = vmatpush3.bf16.msra.mxu0 %v6290_v46 }
 0x5e7   :  { %5567 = vmatprep.subr.bf16.mxu0 %v6048_v0 }
 0x5e8   :  { %5554 = vmatpush3.bf16.msra.mxu1 %v6220_v12 }
 0x5e9   :  { %5561 = vmatprep.subr.bf16.mxu1 %v6048_v0 }
 0x633   :  { %v1110_v28 = vpop.f32.mrb[14].mxu0 }
 0x634   :  { %v5036_v29 = vpop.f32.mrb[15].mxu0 }
 0x6a4   :  { %v1295_v31 = vpop.f32.mrb[16].mxu0 }
 0x6a5   :  { %v1299_v32 = vadd.f32 %v1295_v31, %v246_v30  ;;  %v5058_v35 = vpop.f32.mrb[17].mxu0 }
 0x6a7   :  { %5777 = vtanh.f32 %v1299_v32  ;;  %v4619_v55 = vmul.f32 -1.442695, %v1299_v32 }
 0x6ac   :  { %v1465_v36 = vpop.f32.mrb[18].mxu0 }
 0x6ad   :  { %v5080_v37 = vpop.f32.mrb[19].mxu0 }
 0x6ae   :  { %v1395_v39 = vpop.f32.mrb[12].mxu1 }
 0x6af   :  { %v1466_v40 = vadd.f32 %v1465_v36, %v1395_v39  ;;  %v5069_v41 = vpop.f32.mrb[13].mxu1 }
 0x6b1   :  { %v5778_v15 = vpop.eup %5777  ;;  %v1469_v43 = vadd.f32 %v6424_v34, %v1466_v40 }
 0x6b2   :  { %1309 = vrot.lane.b32.xlu1 %v5778_v15, %s6051_s8 }
 0x6b3   :  { %5779 = vtanh.f32 %v1469_v43  ;;  %v4622_v56 = vmul.f32 -1.442695, %v1469_v43 }
 0x6b4   :  { %v1635_v44 = vpop.f32.mrb[20].mxu0 }
 0x6b5   :  { %v5102_v45 = vpop.f32.mrb[21].mxu0 }
 0x6b6   :  { %v1565_v47 = vpop.f32.mrb[14].mxu1 }
 0x6b7   :  { %v1636_v48 = vadd.f32 %v1635_v44, %v1565_v47  ;;  %v5091_v49 = vpop.f32.mrb[15].mxu1 }
 0x6b9   :  { %v1639_v51 = vadd.f32 %v6496_v10, %v1636_v48 }
 0x6bb   :  { %5781 = vtanh.f32 %v1639_v51  ;;  %v4625_v59 = vmul.f32 -1.442695, %v1639_v51  ;;  %v251_v51 = vadd.f32 %v6386_v9, %v6236_v14 }
 0x6bc   :  { %5783 = vpow2.f32 %v4619_v55 }
 0x6bd   :  { %v5780_v52 = vpop.eup %5779  ;;  %5785 = vpow2.f32 %v4622_v56 }
 0x6be   :  { %1479 = vrot.lane.b32.xlu0 %v5780_v52, %s6051_s8 }
 0x6c5   :  { %v5782_v53 = vpop.eup %5781 }
 0x6c6   :  { %1649 = vrot.lane.b32.xlu1 %v5782_v53, %s6051_s8  ;;  %v5784_v57 = vpop.eup %5783 }
 0x6c7   :  { %v1303_v58 = vadd.f32 1.0, %v5784_v57  ;;  %v5786_v60 = vpop.eup %5785 }
 0x6c8   :  { %v1473_v63 = vadd.f32 1.0, %v5786_v60 }
 0x6c9   :  { %5787 = vrcp.f32 %v1303_v58 }
 0x6ca   :  { %5789 = vpow2.f32 %v4625_v59 }
 0x6cb   :  { %5791 = vrcp.f32 %v1473_v63 }
 0x6d3   :  { %v5788_v3 = vpop.eup %5787 }
 0x6d4   :  { %v5790_v16 = vpop.eup %5789  ;;  %v1307_v26 = vmul.f32 %v5788_v3, %v6435_v2 }
 0x6d5   :  { %v1643_v20 = vadd.f32 1.0, %v5790_v16  ;;  %v5792_v33 = vpop.eup %5791 }
 0x6d6   :  { %v1477_v29 = vmul.f32 %v5792_v33, %v6438_v7 }
 0x6d7   :  { %5793 = vrcp.f32 %v1643_v20 }
 0x6e1   :  { %v5794_v23 = vpop.eup %5793 }
 0x724   :  { %v1310_v5 = vpop.permute.xlu1 %1309 }
 0x725   :  { %v1312_v6 = vmul.f32 %v5788_v3, %v1310_v5 }
 0x727   :  { %1314 = vrot.lane.b32.xlu0 %v1312_v6, %s6051_s8 }
 0x72b   :  { %728 = vrot.lane.b32.xlu0 %v287_v17, %s6051_s8 }
 0x730   :  { %v1480_v21 = vpop.permute.xlu0 %1479 }
 0x731   :  { %v1482_v22 = vmul.f32 %v5792_v33, %v1480_v21 }
 0x733   :  { %1484 = vrot.lane.b32.xlu1 %v1482_v22, %s6051_s8 }
 0x738   :  { %v1650_v24 = vpop.permute.xlu1 %1649 }
 0x739   :  { %v1652_v25 = vmul.f32 %v5794_v23, %v1650_v24 }
 0x73b   :  { %1654 = vrot.lane.b32.xlu1 %v1652_v25, %s6051_s8 }
 0x799   :  { %v1315_v27 = vpop.permute.xlu0 %1314 }
 0x79a   :  { %v6506_v28 = vadd.f32 %v1315_v27, %v1307_v26 }
 0x79c   :  { %5795 = vtanh.f32 %v6506_v28 }
 0x79d   :  { %v729_v35 = vpop.permute.xlu0 %728 }
 0x79e   :  { %v1647_v36 = vmul.f32 %v5794_v23, %v729_v35 }
 0x7a5   :  { %v1485_v30 = vpop.permute.xlu1 %1484 }
 0x7a6   :  { %v5796_v31 = vpop.eup %5795  ;;  %v6510_v32 = vadd.f32 %v1485_v30, %v1477_v29 }
 0x7a7   :  { %1320 = vrot.lane.b32.xlu0 %v5796_v31, %s6051_s8 }
 0x7a8   :  { %5797 = vtanh.f32 %v6510_v32 }
 0x7ad   :  { %v1655_v37 = vpop.permute.xlu1 %1654 }
 0x7ae   :  { %v6514_v39 = vadd.f32 %v1655_v37, %v1647_v36 }
 0x7b0   :  { %5799 = vtanh.f32 %v6514_v39 }
 0x7b2   :  { %v5798_v2 = vpop.eup %5797 }
 0x7b3   :  { %1490 = vrot.lane.b32.xlu1 %v5798_v2, %s6051_s8 }
 0x7ba   :  { %v5800_v40 = vpop.eup %5799 }
 0x7bb   :  { %1660 = vrot.lane.b32.xlu0 %v5800_v40, %s6051_s8 }
 0x819   :  { %v1321_v7 = vpop.permute.xlu0 %1320 }
 0x81a   :  { %v1323_v41 = vmul.f32 %v5788_v3, %v1321_v7 }
 0x81c   :  { %1680 = vrot.lane.b32.xlu1 %v1323_v41, %s6052_s22 }
 0x825   :  { %v1491_v15 = vpop.permute.xlu1 %1490 }
 0x826   :  { %v1493_v43 = vmul.f32 %v5792_v33, %v1491_v15 }
 0x828   :  { %1780 = vrot.lane.b32.xlu0 %v1493_v43, %s6052_s22 }
 0x82d   :  { %v1661_v44 = vpop.permute.xlu0 %1660 }
 0x82e   :  { %v1663_v45 = vmul.f32 %v5794_v23, %v1661_v44 }
 0x830   :  { %1950 = vrot.lane.b32.xlu1 %v1663_v45, %s6052_s22 }
 0x88e   :  { %v1681_v47 = vpop.permute.xlu1 %1680 }
 0x88f   :  { %5112 = vmatmul.mubr.msk.f32.vlgmr.msra.gmra.mrb[16].mxu1 %vm98_vm1, %v1681_v47 }
 0x890   :  { %5563 = vmatpush3.bf16.msra.mxu1 %v6276_v42  ;;  %5133 = vmatprep.mubr.msk.f32.mxu1 %vm6049_vm0, %v6050_v1 }
 0x891   :  { %5564 = vmatprep.subr.bf16.mxu1 %v6048_v0 }
 0x894   :  { %5566 = vmatpush3.bf16.msra.mxu1 %v6303_v50 }
 0x895   :  { %5573 = vmatprep.subr.bf16.mxu1 %v6048_v0 }
 0x897   :  { %5134 = vmatmul.mubr.msk.f32.vlgmr.msra.gmra.mrb[18].mxu1 %vm98_vm1, %v1681_v47 }
 0x898   :  { %5575 = vmatpush3.bf16.msra.mxu1 %v6339_v62  ;;  %5155 = vmatprep.mubr.msk.f32.mxu1 %vm6049_vm0, %v6050_v1 }
 0x899   :  { %5576 = vmatprep.subr.bf16.mxu1 %v6048_v0 }
 0x89a   :  { %v1781_v48 = vpop.permute.xlu0 %1780 }
 0x89b   :  { %5123 = vmatmul.mubr.msk.f32.vlgmr.msra.gmra.mrb[22].mxu0 %vm98_vm1, %v1781_v48 }
 0x89c   :  { %5569 = vmatpush3.bf16.msra.mxu0 %v6312_v54  ;;  %5578 = vmatpush3.bf16.msra.mxu1 %v6354_v4 }
 0x89d   :  { %5570 = vmatprep.subr.bf16.mxu0 %v6048_v0  ;;  %5144 = vmatprep.mubr.msk.f32.mxu0 %vm6049_vm0, %v6050_v1 }
 0x89e   :  { %5585 = vmatprep.subr.bf16.mxu1 %v6048_v0 }
 0x89f   :  { %5156 = vmatmul.mubr.msk.f32.vlgmr.msra.gmra.mrb[20].mxu1 %vm98_vm1, %v1781_v48 }
 0x8a0   :  { %5572 = vmatpush3.bf16.msra.mxu0 %v6331_v61  ;;  %5587 = vmatpush3.bf16.msra.mxu1 %v6265_v38 }
 0x8a1   :  { %5579 = vmatprep.subr.bf16.mxu0 %v6048_v0  ;;  %5588 = vmatprep.subr.bf16.mxu1 %v6048_v0 }
 0x8a2   :  { %v1951_v49 = vpop.permute.xlu1 %1950  ;;  %5177 = vmatprep.mubr.msk.f32.mxu1 %vm6049_vm0, %v6050_v1 }
 0x8a3   :  { %5145 = vmatmul.mubr.msk.f32.vlgmr.msra.gmra.mrb[24].mxu0 %vm98_vm1, %v1951_v49 }
 0x8a4   :  { %5581 = vmatpush3.bf16.msra.mxu0 %v6207_v8  ;;  %5166 = vmatprep.mubr.msk.f32.mxu0 %vm6049_vm0, %v6050_v1 }
 0x8a5   :  { %5582 = vmatprep.subr.bf16.mxu0 %v6048_v0  ;;  %5590 = vmatpush3.bf16.msra.mxu1 %v6290_v46 }
 0x8a6   :  { %5597 = vmatprep.subr.bf16.mxu1 %v6048_v0 }
 0x8a8   :  { %5584 = vmatpush3.bf16.msra.mxu0 %v6220_v12 }
 0x8a9   :  { %5591 = vmatprep.subr.bf16.mxu0 %v6048_v0 }
 0x962   :  { %v1750_v52 = vpop.f32.mrb[16].mxu1 }
 0x963   :  { %v1754_v53 = vadd.f32 %v1750_v52, %v251_v51  ;;  %v5113_v55 = vpop.f32.mrb[17].mxu1 }
 0x965   :  { %5801 = vtanh.f32 %v1754_v53  ;;  %v4627_v22 = vmul.f32 -1.442695, %v1754_v53 }
 0x96a   :  { %v1920_v56 = vpop.f32.mrb[18].mxu1 }
 0x96b   :  { %v5135_v57 = vpop.f32.mrb[19].mxu1 }
 0x96e   :  { %v1850_v58 = vpop.f32.mrb[22].mxu0 }
 0x96f   :  { %v5802_v59 = vpop.eup %5801  ;;  %v1921_v60 = vadd.f32 %v1920_v56, %v1850_v58  ;;  %v5124_v63 = vpop.f32.mrb[23].mxu0 }
 0x970   :  { %1764 = vrot.lane.b32.xlu0 %v5802_v59, %s6051_s8 }
 0x971   :  { %v1924_v3 = vadd.f32 %v6424_v34, %v1921_v60 }
 0x972   :  { %v2090_v5 = vpop.f32.mrb[20].mxu1 }
 0x973   :  { %5803 = vtanh.f32 %v1924_v3  ;;  %v5157_v6 = vpop.f32.mrb[21].mxu1  ;;  %v4630_v24 = vmul.f32 -1.442695, %v1924_v3 }
 0x976   :  { %v2020_v16 = vpop.f32.mrb[24].mxu0 }
 0x977   :  { %v2091_v17 = vadd.f32 %v2090_v5, %v2020_v16  ;;  %v5146_v9 = vpop.f32.mrb[25].mxu0  ;;  %v256_v16 = vadd.f32 %v6236_v14, %v6392_v13 }
 0x979   :  { %v2094_v20 = vadd.f32 %v6496_v10, %v2091_v17 }
 0x97b   :  { %5805 = vtanh.f32 %v2094_v20  ;;  %v4633_v26 = vmul.f32 -1.442695, %v2094_v20 }
 0x97c   :  { %5807 = vpow2.f32 %v4627_v22 }
 0x97d   :  { %v5804_v33 = vpop.eup %5803  ;;  %5809 = vpow2.f32 %v4630_v24 }
 0x97e   :  { %1934 = vrot.lane.b32.xlu1 %v5804_v33, %s6051_s8 }
 0x985   :  { %v5806_v21 = vpop.eup %5805 }
 0x986   :  { %2104 = vrot.lane.b32.xlu0 %v5806_v21, %s6051_s8  ;;  %v5808_v23 = vpop.eup %5807 }
 0x987   :  { %v1758_v25 = vadd.f32 1.0, %v5808_v23  ;;  %v5810_v27 = vpop.eup %5809 }
 0x988   :  { %v1928_v30 = vadd.f32 1.0, %v5810_v27 }
 0x989   :  { %5811 = vrcp.f32 %v1758_v25 }
 0x98a   :  { %5813 = vpow2.f32 %v4633_v26 }
 0x98b   :  { %5815 = vrcp.f32 %v1928_v30 }
 0x993   :  { %v5812_v29 = vpop.eup %5811 }
 0x994   :  { %v5814_v36 = vpop.eup %5813  ;;  %v1762_v44 = vmul.f32 %v5812_v29, %v6506_v28 }
 0x995   :  { %v2098_v37 = vadd.f32 1.0, %v5814_v36  ;;  %v5816_v2 = vpop.eup %5815 }
 0x996   :  { %v1932_v49 = vmul.f32 %v5816_v2, %v6510_v32 }
 0x997   :  { %5817 = vrcp.f32 %v2098_v37 }
 0x9a1   :  { %v5818_v41 = vpop.eup %5817 }
 0x9a2   :  { %v2102_v53 = vmul.f32 %v5818_v41, %v6514_v39 }
 0x9e2   :  { %v1765_v31 = vpop.permute.xlu0 %1764 }
 0x9e3   :  { %v1767_v35 = vmul.f32 %v5812_v29, %v1765_v31 }
 0x9e5   :  { %1769 = vrot.lane.b32.xlu1 %v1767_v35, %s6051_s8 }
 0x9f0   :  { %v1935_v40 = vpop.permute.xlu1 %1934 }
 0x9f1   :  { %v1937_v7 = vmul.f32 %v5816_v2, %v1935_v40 }
 0x9f3   :  { %1939 = vrot.lane.b32.xlu0 %v1937_v7, %s6051_s8 }
 0x9f8   :  { %v2105_v15 = vpop.permute.xlu0 %2104 }
 0x9f9   :  { %v2107_v43 = vmul.f32 %v5818_v41, %v2105_v15 }
 0x9fb   :  { %2109 = vrot.lane.b32.xlu1 %v2107_v43, %s6051_s8 }
 0xa57   :  { %v1770_v45 = vpop.permute.xlu1 %1769 }
 0xa58   :  { %v6568_v47 = vadd.f32 %v1770_v45, %v1762_v44 }
 0xa5a   :  { %5819 = vtanh.f32 %v6568_v47 }
 0xa64   :  { %v5820_v48 = vpop.eup %5819 }
 0xa65   :  { %v1940_v51 = vpop.permute.xlu0 %1939  ;;  %1775 = vrot.lane.b32.xlu0 %v5820_v48, %s6051_s8 }
 0xa66   :  { %v6573_v52 = vadd.f32 %v1940_v51, %v1932_v49 }
 0xa68   :  { %5821 = vtanh.f32 %v6573_v52 }
 0xa6d   :  { %v2110_v55 = vpop.permute.xlu1 %2109 }
 0xa6e   :  { %v6577_v56 = vadd.f32 %v2110_v55, %v2102_v53 }
 0xa70   :  { %5823 = vtanh.f32 %v6577_v56 }
 0xa72   :  { %v5822_v28 = vpop.eup %5821 }
 0xa73   :  { %1945 = vrot.lane.b32.xlu1 %v5822_v28, %s6051_s8 }
 0xa7a   :  { %v5824_v57 = vpop.eup %5823 }
 0xa7b   :  { %2115 = vrot.lane.b32.xlu0 %v5824_v57, %s6051_s8 }
 0xad7   :  { %v1776_v32 = vpop.permute.xlu0 %1775 }
 0xad8   :  { %v1778_v58 = vmul.f32 %v5812_v29, %v1776_v32 }
 0xada   :  { %2135 = vrot.lane.b32.xlu1 %v1778_v58, %s6052_s22 }
 0xae5   :  { %v1946_v59 = vpop.permute.xlu1 %1945 }
 0xae6   :  { %v1948_v60 = vmul.f32 %v5816_v2, %v1946_v59 }
 0xae8   :  { %2235 = vrot.lane.b32.xlu0 %v1948_v60, %s6052_s22 }
 0xaed   :  { %v2116_v39 = vpop.permute.xlu0 %2115 }
 0xaee   :  { %v2118_v63 = vmul.f32 %v5818_v41, %v2116_v39 }
 0xaf0   :  { %2405 = vrot.lane.b32.xlu1 %v2118_v63, %s6052_s22 }
 0xb4c   :  { %v2136_v3 = vpop.permute.xlu1 %2135 }
 0xb4d   :  { %5167 = vmatmul.mubr.msk.f32.vlgmr.msra.gmra.mrb[26].mxu0 %vm98_vm1, %v2136_v3 }
 0xb4e   :  { %5593 = vmatpush3.bf16.msra.mxu0 %v6276_v42  ;;  %5188 = vmatprep.mubr.msk.f32.mxu0 %vm6049_vm0, %v6050_v1 }
 0xb4f   :  { %5594 = vmatprep.subr.bf16.mxu0 %v6048_v0 }
 0xb52   :  { %5596 = vmatpush3.bf16.msra.mxu0 %v6303_v50 }
 0xb53   :  { %5603 = vmatprep.subr.bf16.mxu0 %v6048_v0 }
 0xb55   :  { %5189 = vmatmul.mubr.msk.f32.vlgmr.msra.gmra.mrb[28].mxu0 %vm98_vm1, %v2136_v3 }
 0xb56   :  { %5605 = vmatpush3.bf16.msra.mxu0 %v6339_v62  ;;  %5210 = vmatprep.mubr.msk.f32.mxu0 %vm6049_vm0, %v6050_v1 }
 0xb57   :  { %5606 = vmatprep.subr.bf16.mxu0 %v6048_v0 }
 0xb5a   :  { %5608 = vmatpush3.bf16.msra.mxu0 %v6354_v4  ;;  %v2236_v5 = vpop.permute.xlu0 %2235 }
 0xb5b   :  { %5178 = vmatmul.mubr.msk.f32.vlgmr.msra.gmra.mrb[22].mxu1 %vm98_vm1, %v2236_v5  ;;  %5615 = vmatprep.subr.bf16.mxu0 %v6048_v0 }
 0xb5c   :  { %5599 = vmatpush3.bf16.msra.mxu1 %v6312_v54  ;;  %5199 = vmatprep.mubr.msk.f32.mxu1 %vm6049_vm0, %v6050_v1 }
 0xb5d   :  { %5211 = vmatmul.mubr.msk.f32.vlgmr.msra.gmra.mrb[30].mxu0 %vm98_vm1, %v2236_v5  ;;  %5600 = vmatprep.subr.bf16.mxu1 %v6048_v0 }
 0xb5e   :  { %5617 = vmatpush3.bf16.msra.mxu0 %v6265_v38  ;;  %5232 = vmatprep.mubr.msk.f32.mxu0 %vm6049_vm0, %v6050_v1 }
 0xb5f   :  { %5618 = vmatprep.subr.bf16.mxu0 %v6048_v0 }
 0xb60   :  { %5602 = vmatpush3.bf16.msra.mxu1 %v6331_v61 }
 0xb61   :  { %5609 = vmatprep.subr.bf16.mxu1 %v6048_v0 }
 0xb62   :  { %v2406_v6 = vpop.permute.xlu1 %2405  ;;  %5620 = vmatpush3.bf16.msra.mxu0 %v6290_v46 }
 0xb63   :  { %5200 = vmatmul.mubr.msk.f32.vlgmr.msra.gmra.mrb[24].mxu1 %vm98_vm1, %v2406_v6  ;;  %5627 = vmatprep.subr.bf16.mxu0 %v6048_v0 }
 0xb64   :  { %5611 = vmatpush3.bf16.msra.mxu1 %v6207_v8  ;;  %5221 = vmatprep.mubr.msk.f32.mxu1 %vm6049_vm0, %v6050_v1 }
 0xb65   :  { %5612 = vmatprep.subr.bf16.mxu1 %v6048_v0 }
 0xb68   :  { %5614 = vmatpush3.bf16.msra.mxu1 %v6220_v12 }
 0xb69   :  { %5621 = vmatprep.subr.bf16.mxu1 %v6048_v0 }
 0xc20   :  { %v2205_v17 = vpop.f32.mrb[26].mxu0 }
 0xc21   :  { %v2209_v9 = vadd.f32 %v2205_v17, %v256_v16  ;;  %v5168_v20 = vpop.f32.mrb[27].mxu0 }
 0xc23   :  { %5825 = vtanh.f32 %v2209_v9  ;;  %v4635_v37 = vmul.f32 -1.442695, %v2209_v9 }
 0xc28   :  { %v2375_v33 = vpop.f32.mrb[28].mxu0 }
 0xc29   :  { %v5190_v21 = vpop.f32.mrb[29].mxu0 }
 0xc2d   :  { %v5826_v22 = vpop.eup %5825 }
 0xc2e   :  { %v2305_v23 = vpop.f32.mrb[22].mxu1  ;;  %2219 = vrot.lane.b32.xlu0 %v5826_v22, %s6051_s8 }
 0xc2f   :  { %v2376_v24 = vadd.f32 %v2375_v33, %v2305_v23  ;;  %v5179_v25 = vpop.f32.mrb[23].mxu1 }
 0xc30   :  { %v2545_v26 = vpop.f32.mrb[30].mxu0 }
 0xc31   :  { %v2379_v27 = vadd.f32 %v6424_v34, %v2376_v24  ;;  %v5212_v29 = vpop.f32.mrb[31].mxu0 }
 0xc33   :  { %5827 = vtanh.f32 %v2379_v27  ;;  %v4638_v40 = vmul.f32 -1.442695, %v2379_v27  ;;  %v6686_v27 = vld [vmem:[%s6917_s3] ss:$0 sm:$0xff] }
 0xc34   :  { %v261_v29 = vadd.f32 %v6686_v27, %v6390_v11 }
 0xc36   :  { %v2475_v30 = vpop.f32.mrb[24].mxu1 }
 0xc37   :  { %v2546_v31 = vadd.f32 %v2545_v26, %v2475_v30  ;;  %v5201_v14 = vpop.f32.mrb[25].mxu1 }
 0xc39   :  { %v2549_v13 = vadd.f32 %v6496_v10, %v2546_v31 }
 0xc3b   :  { %5829 = vtanh.f32 %v2549_v13  ;;  %v4641_v41 = vmul.f32 -1.442695, %v2549_v13 }
 0xc3c   :  { %5831 = vpow2.f32 %v4635_v37 }
 0xc3d   :  { %v5828_v35 = vpop.eup %5827  ;;  %5833 = vpow2.f32 %v4638_v40 }
 0xc3e   :  { %2389 = vrot.lane.b32.xlu1 %v5828_v35, %s6051_s8 }
 0xc45   :  { %v5830_v36 = vpop.eup %5829 }
 0xc46   :  { %2559 = vrot.lane.b32.xlu0 %v5830_v36, %s6051_s8  ;;  %v5832_v2 = vpop.eup %5831 }
 0xc47   :  { %v2213_v7 = vadd.f32 1.0, %v5832_v2  ;;  %v5834_v15 = vpop.eup %5833 }
 0xc48   :  { %v2383_v48 = vadd.f32 1.0, %v5834_v15 }
 0xc49   :  { %5835 = vrcp.f32 %v2213_v7 }
 0xc4a   :  { %5837 = vpow2.f32 %v4641_v41 }
 0xc4b   :  { %5839 = vrcp.f32 %v2383_v48 }
 0xc53   :  { %v5836_v43 = vpop.eup %5835 }
 0xc54   :  { %v5838_v49 = vpop.eup %5837  ;;  %v2217_v59 = vmul.f32 %v5836_v43, %v6568_v47 }
 0xc55   :  { %v2553_v51 = vadd.f32 1.0, %v5838_v49  ;;  %v5840_v53 = vpop.eup %5839 }
 0xc56   :  { %v2387_v3 = vmul.f32 %v5840_v53, %v6573_v52 }
 0xc57   :  { %5841 = vrcp.f32 %v2553_v51 }
 0xc61   :  { %v5842_v57 = vpop.eup %5841 }
 0xc62   :  { %v2557_v16 = vmul.f32 %v5842_v57, %v6577_v56 }
 0xca0   :  { %v2220_v44 = vpop.permute.xlu0 %2219 }
 0xca1   :  { %v2222_v45 = vmul.f32 %v5836_v43, %v2220_v44 }
 0xca3   :  { %2224 = vrot.lane.b32.xlu1 %v2222_v45, %s6051_s8 }
 0xcb0   :  { %v2390_v55 = vpop.permute.xlu1 %2389 }
 0xcb1   :  { %v2392_v28 = vmul.f32 %v5840_v53, %v2390_v55 }
 0xcb3   :  { %2394 = vrot.lane.b32.xlu0 %v2392_v28, %s6051_s8 }
 0xcb8   :  { %v2560_v32 = vpop.permute.xlu0 %2559 }
 0xcb9   :  { %v2562_v58 = vmul.f32 %v5842_v57, %v2560_v32 }
 0xcbb   :  { %2564 = vrot.lane.b32.xlu1 %v2562_v58, %s6051_s8 }
 0xd15   :  { %v2225_v60 = vpop.permute.xlu1 %2224 }
 0xd16   :  { %v6631_v39 = vadd.f32 %v2225_v60, %v2217_v59 }
 0xd18   :  { %5843 = vtanh.f32 %v6631_v39 }
 0xd22   :  { %v5844_v63 = vpop.eup %5843 }
 0xd23   :  { %2230 = vrot.lane.b32.xlu0 %v5844_v63, %s6051_s8 }
 0xd25   :  { %v2395_v5 = vpop.permute.xlu0 %2394 }
 0xd26   :  { %v6636_v6 = vadd.f32 %v2395_v5, %v2387_v3 }
 0xd28   :  { %5845 = vtanh.f32 %v6636_v6 }
 0xd2d   :  { %v2565_v17 = vpop.permute.xlu1 %2564 }
 0xd2e   :  { %v6640_v9 = vadd.f32 %v2565_v17, %v2557_v16 }
 0xd30   :  { %5847 = vtanh.f32 %v6640_v9 }
 0xd32   :  { %v5846_v47 = vpop.eup %5845 }
 0xd33   :  { %2400 = vrot.lane.b32.xlu1 %v5846_v47, %s6051_s8 }
 0xd3a   :  { %v5848_v20 = vpop.eup %5847 }
 0xd3b   :  { %2570 = vrot.lane.b32.xlu0 %v5848_v20, %s6051_s8 }
 0xd95   :  { %v2231_v33 = vpop.permute.xlu0 %2230 }
 0xd96   :  { %v2233_v52 = vmul.f32 %v5836_v43, %v2231_v33 }
 0xd98   :  { %2590 = vrot.lane.b32.xlu1 %v2233_v52, %s6052_s22 }
 0xda5   :  { %v2401_v21 = vpop.permute.xlu1 %2400 }
 0xda6   :  { %v2403_v22 = vmul.f32 %v5840_v53, %v2401_v21 }
 0xda8   :  { %2690 = vrot.lane.b32.xlu0 %v2403_v22, %s6052_s22 }
 0xdad   :  { %v2571_v56 = vpop.permute.xlu0 %2570 }
 0xdae   :  { %v2573_v23 = vmul.f32 %v5842_v57, %v2571_v56 }
 0xdb0   :  { %2860 = vrot.lane.b32.xlu1 %v2573_v23, %s6052_s22 }
 0xe0a   :  { %v2591_v24 = vpop.permute.xlu1 %2590 }
 0xe0b   :  { %5222 = vmatmul.mubr.msk.f32.vlgmr.msra.gmra.mrb[26].mxu1 %vm98_vm1, %v2591_v24 }
 0xe0c   :  { %5623 = vmatpush3.bf16.msra.mxu1 %v6276_v42  ;;  %5243 = vmatprep.mubr.msk.f32.mxu1 %vm6049_vm0, %v6050_v1 }
 0xe0d   :  { %5624 = vmatprep.subr.bf16.mxu1 %v6048_v0 }
 0xe10   :  { %5626 = vmatpush3.bf16.msra.mxu1 %v6303_v50 }
 0xe11   :  { %5633 = vmatprep.subr.bf16.mxu1 %v6048_v0 }
 0xe13   :  { %5244 = vmatmul.mubr.msk.f32.vlgmr.msra.gmra.mrb[28].mxu1 %vm98_vm1, %v2591_v24 }
 0xe14   :  { %5635 = vmatpush3.bf16.msra.mxu1 %v6339_v62  ;;  %5265 = vmatprep.mubr.msk.f32.mxu1 %vm6049_vm0, %v6050_v1 }
 0xe15   :  { %5636 = vmatprep.subr.bf16.mxu1 %v6048_v0 }
 0xe18   :  { %5638 = vmatpush3.bf16.msra.mxu1 %v6354_v4 }
 0xe19   :  { %5645 = vmatprep.subr.bf16.mxu1 %v6048_v0 }
 0xe1a   :  { %v2691_v25 = vpop.permute.xlu0 %2690 }
 0xe1b   :  { %5233 = vmatmul.mubr.msk.f32.vlgmr.msra.gmra.mrb[32].mxu0 %vm98_vm1, %v2691_v25  ;;  %5266 = vmatmul.mubr.msk.f32.vlgmr.msra.gmra.mrb[30].mxu1 %vm98_vm1, %v2691_v25 }
 0xe1c   :  { %5629 = vmatpush3.bf16.msra.mxu0 %v6312_v54  ;;  %5254 = vmatprep.mubr.msk.f32.mxu0 %vm6049_vm0, %v6050_v1 }
 0xe1d   :  { %5630 = vmatprep.subr.bf16.mxu0 %v6048_v0  ;;  %5647 = vmatpush3.bf16.msra.mxu1 %v6265_v38 }
 0xe1e   :  { %5648 = vmatprep.subr.bf16.mxu1 %v6048_v0  ;;  %5287 = vmatprep.mubr.msk.f32.mxu1 %vm6049_vm0, %v6050_v1 }
 0xe20   :  { %5632 = vmatpush3.bf16.msra.mxu0 %v6331_v61 }
 0xe21   :  { %5639 = vmatprep.subr.bf16.mxu0 %v6048_v0  ;;  %5650 = vmatpush3.bf16.msra.mxu1 %v6290_v46 }
 0xe22   :  { %v2861_v26 = vpop.permute.xlu1 %2860  ;;  %5657 = vmatprep.subr.bf16.mxu1 %v6048_v0 }
 0xe23   :  { %5255 = vmatmul.mubr.msk.f32.vlgmr.msra.gmra.mrb[34].mxu0 %vm98_vm1, %v2861_v26 }
 0xe24   :  { %5641 = vmatpush3.bf16.msra.mxu0 %v6207_v8  ;;  %5276 = vmatprep.mubr.msk.f32.mxu0 %vm6049_vm0, %v6050_v1 }
 0xe25   :  { %5642 = vmatprep.subr.bf16.mxu0 %v6048_v0 }
 0xe28   :  { %5644 = vmatpush3.bf16.msra.mxu0 %v6220_v12 }
 0xe29   :  { %5651 = vmatprep.subr.bf16.mxu0 %v6048_v0 }
 0xede   :  { %v2660_v30 = vpop.f32.mrb[26].mxu1 }
 0xedf   :  { %v2664_v31 = vadd.f32 %v2660_v30, %v261_v29  ;;  %v5223_v14 = vpop.f32.mrb[27].mxu1 }
 0xee1   :  { %5849 = vtanh.f32 %v2664_v31  ;;  %v4643_v51 = vmul.f32 -1.442695, %v2664_v31 }
 0xee6   :  { %v2830_v13 = vpop.f32.mrb[28].mxu1 }
 0xee7   :  { %v5245_v35 = vpop.f32.mrb[29].mxu1 }
 0xeeb   :  { %v5850_v36 = vpop.eup %5849 }
 0xeec   :  { %2674 = vrot.lane.b32.xlu0 %v5850_v36, %s6051_s8 }
 0xeee   :  { %v2760_v37 = vpop.f32.mrb[32].mxu0  ;;  %v3000_v2 = vpop.f32.mrb[30].mxu1 }
 0xeef   :  { %v2831_v40 = vadd.f32 %v2830_v13, %v2760_v37  ;;  %v5234_v7 = vpop.f32.mrb[33].mxu0  ;;  %v5267_v41 = vpop.f32.mrb[31].mxu1 }
 0xef0   :  { %v266_v7 = vadd.f32 %v6686_v27, %v6396_v19 }
 0xef1   :  { %v2834_v15 = vadd.f32 %v6424_v34, %v2831_v40 }
 0xef3   :  { %5851 = vtanh.f32 %v2834_v15  ;;  %v4646_v28 = vmul.f32 -1.442695, %v2834_v15 }
 0xef6   :  { %v2930_v43 = vpop.f32.mrb[34].mxu0 }
 0xef7   :  { %v3001_v44 = vadd.f32 %v3000_v2, %v2930_v43  ;;  %v5256_v11 = vpop.f32.mrb[35].mxu0 }
 0xef9   :  { %v3004_v45 = vadd.f32 %v6496_v10, %v3001_v44 }
 0xefb   :  { %5853 = vtanh.f32 %v3004_v45  ;;  %v4649_v34 = vmul.f32 -1.442695, %v3004_v45 }
 0xefc   :  { %5855 = vpow2.f32 %v4643_v51 }
 0xefd   :  { %v5852_v48 = vpop.eup %5851 }
 0xefe   :  { %2844 = vrot.lane.b32.xlu1 %v5852_v48, %s6051_s8 }
 0xf05   :  { %v5854_v49 = vpop.eup %5853 }
 0xf06   :  { %3014 = vrot.lane.b32.xlu0 %v5854_v49, %s6051_s8  ;;  %v5856_v53 = vpop.eup %5855 }
 0xf07   :  { %v2668_v55 = vadd.f32 1.0, %v5856_v53 }
 0xf09   :  { %5857 = vrcp.f32 %v2668_v55 }
 0xf0a   :  { %5859 = vpow2.f32 %v4646_v28 }
 0xf0b   :  { %5861 = vpow2.f32 %v4649_v34 }
 0xf13   :  { %v5858_v57 = vpop.eup %5857 }
 0xf14   :  { %v5860_v58 = vpop.eup %5859  ;;  %v2672_v52 = vmul.f32 %v5858_v57, %v6631_v39 }
 0xf15   :  { %v2838_v60 = vadd.f32 1.0, %v5860_v58  ;;  %v5862_v63 = vpop.eup %5861 }
 0xf16   :  { %v3008_v3 = vadd.f32 1.0, %v5862_v63 }
 0xf17   :  { %5863 = vrcp.f32 %v2838_v60 }
 0xf18   :  { %5865 = vrcp.f32 %v3008_v3 }
 0xf21   :  { %v5864_v5 = vpop.eup %5863 }
 0xf22   :  { %v5866_v47 = vpop.eup %5865  ;;  %v2842_v23 = vmul.f32 %v5864_v5, %v6636_v6 }
 0xf23   :  { %v3012_v26 = vmul.f32 %v5866_v47, %v6640_v9 }
 0xf5e   :  { %v2675_v32 = vpop.permute.xlu0 %2674 }
 0xf5f   :  { %v2677_v59 = vmul.f32 %v5858_v57, %v2675_v32 }
 0xf61   :  { %2679 = vrot.lane.b32.xlu1 %v2677_v59, %s6051_s8 }
 0xf70   :  { %v2845_v16 = vpop.permute.xlu1 %2844 }
 0xf71   :  { %v2847_v17 = vmul.f32 %v5864_v5, %v2845_v16 }
 0xf73   :  { %2849 = vrot.lane.b32.xlu0 %v2847_v17, %s6051_s8 }
 0xf78   :  { %v3015_v20 = vpop.permute.xlu0 %3014 }
 0xf79   :  { %v3017_v33 = vmul.f32 %v5866_v47, %v3015_v20 }
 0xf7b   :  { %3019 = vrot.lane.b32.xlu1 %v3017_v33, %s6051_s8 }
 0xfd3   :  { %v2680_v21 = vpop.permute.xlu1 %2679 }
 0xfd4   :  { %v6699_v22 = vadd.f32 %v2680_v21, %v2672_v52 }
 0xfd6   :  { %5867 = vtanh.f32 %v6699_v22 }
 0xfe0   :  { %v5868_v56 = vpop.eup %5867 }
 0xfe1   :  { %2685 = vrot.lane.b32.xlu0 %v5868_v56, %s6051_s8 }
 0xfe5   :  { %v2850_v24 = vpop.permute.xlu0 %2849 }
 0xfe6   :  { %v6704_v25 = vadd.f32 %v2850_v24, %v2842_v23 }
 0xfe8   :  { %5869 = vtanh.f32 %v6704_v25 }
 0xfed   :  { %v3020_v29 = vpop.permute.xlu1 %3019 }
 0xfee   :  { %v6708_v30 = vadd.f32 %v3020_v29, %v3012_v26 }
 0xff0   :  { %5871 = vtanh.f32 %v6708_v30 }
 0xff2   :  { %v5870_v39 = vpop.eup %5869 }
 0xff3   :  { %2855 = vrot.lane.b32.xlu1 %v5870_v39, %s6051_s8 }
 0xffa   :  { %v5872_v31 = vpop.eup %5871 }
 0xffb   :  { %3025 = vrot.lane.b32.xlu0 %v5872_v31, %s6051_s8 }
0x1053   :  { %v2686_v14 = vpop.permute.xlu0 %2685 }
0x1054   :  { %v2688_v6 = vmul.f32 %v5858_v57, %v2686_v14 }
0x1056   :  { %3045 = vrot.lane.b32.xlu1 %v2688_v6, %s6052_s22 }
0x1065   :  { %v2856_v13 = vpop.permute.xlu1 %2855 }
0x1066   :  { %v2858_v35 = vmul.f32 %v5864_v5, %v2856_v13 }
0x1068   :  { %3145 = vrot.lane.b32.xlu0 %v2858_v35, %s6052_s22 }
0x106d   :  { %v3026_v9 = vpop.permute.xlu0 %3025 }
0x106e   :  { %v3028_v36 = vmul.f32 %v5866_v47, %v3026_v9 }
0x1070   :  { %3315 = vrot.lane.b32.xlu1 %v3028_v36, %s6052_s22 }
0x10c8   :  { %v3046_v37 = vpop.permute.xlu1 %3045 }
0x10c9   :  { %5277 = vmatmul.mubr.msk.f32.vlgmr.msra.gmra.mrb[36].mxu0 %vm98_vm1, %v3046_v37 }
0x10ca   :  { %5653 = vmatpush3.bf16.msra.mxu0 %v6276_v42  ;;  %5298 = vmatprep.mubr.msk.f32.mxu0 %vm6049_vm0, %v6050_v1 }
0x10cb   :  { %5654 = vmatprep.subr.bf16.mxu0 %v6048_v0 }
0x10ce   :  { %5656 = vmatpush3.bf16.msra.mxu0 %v6303_v50 }
0x10cf   :  { %5663 = vmatprep.subr.bf16.mxu0 %v6048_v0 }
0x10d1   :  { %5299 = vmatmul.mubr.msk.f32.vlgmr.msra.gmra.mrb[38].mxu0 %vm98_vm1, %v3046_v37 }
0x10d2   :  { %5665 = vmatpush3.bf16.msra.mxu0 %v6339_v62  ;;  %5320 = vmatprep.mubr.msk.f32.mxu0 %vm6049_vm0, %v6050_v1 }
0x10d3   :  { %5666 = vmatprep.subr.bf16.mxu0 %v6048_v0 }
0x10d6   :  { %5668 = vmatpush3.bf16.msra.mxu0 %v6354_v4 }
0x10d7   :  { %5675 = vmatprep.subr.bf16.mxu0 %v6048_v0 }
0x10da   :  { %v3146_v2 = vpop.permute.xlu0 %3145 }
0x10db   :  { %5288 = vmatmul.mubr.msk.f32.vlgmr.msra.gmra.mrb[32].mxu1 %vm98_vm1, %v3146_v2  ;;  %5321 = vmatmul.mubr.msk.f32.vlgmr.msra.gmra.mrb[40].mxu0 %vm98_vm1, %v3146_v2 }
0x10dc   :  { %5659 = vmatpush3.bf16.msra.mxu1 %v6312_v54  ;;  %5309 = vmatprep.mubr.msk.f32.mxu1 %vm6049_vm0, %v6050_v1 }
0x10dd   :  { %5660 = vmatprep.subr.bf16.mxu1 %v6048_v0  ;;  %5677 = vmatpush3.bf16.msra.mxu0 %v6265_v38 }
0x10de   :  { %5678 = vmatprep.subr.bf16.mxu0 %v6048_v0  ;;  %5342 = vmatprep.mubr.msk.f32.mxu0 %vm6049_vm0, %v6050_v1 }
0x10e0   :  { %5662 = vmatpush3.bf16.msra.mxu1 %v6331_v61 }
0x10e1   :  { %5669 = vmatprep.subr.bf16.mxu1 %v6048_v0  ;;  %5680 = vmatpush3.bf16.msra.mxu0 %v6290_v46 }
0x10e2   :  { %v3316_v40 = vpop.permute.xlu1 %3315  ;;  %5687 = vmatprep.subr.bf16.mxu0 %v6048_v0 }
0x10e3   :  { %5310 = vmatmul.mubr.msk.f32.vlgmr.msra.gmra.mrb[34].mxu1 %vm98_vm1, %v3316_v40 }
0x10e4   :  { %5671 = vmatpush3.bf16.msra.mxu1 %v6207_v8  ;;  %5331 = vmatprep.mubr.msk.f32.mxu1 %vm6049_vm0, %v6050_v1 }
0x10e5   :  { %5672 = vmatprep.subr.bf16.mxu1 %v6048_v0 }
0x10e8   :  { %5674 = vmatpush3.bf16.msra.mxu1 %v6220_v12  ;;  %v6757_v12 = vld [vmem:[%s6920_s6] ss:$0 sm:$0xff] }
0x10e9   :  { %5681 = vmatprep.subr.bf16.mxu1 %v6048_v0 }
0x119c   :  { %v3115_v41 = vpop.f32.mrb[36].mxu0 }
0x119d   :  { %v3119_v15 = vadd.f32 %v3115_v41, %v266_v7  ;;  %v5278_v43 = vpop.f32.mrb[37].mxu0 }
0x119f   :  { %5873 = vtanh.f32 %v3119_v15  ;;  %v4651_v59 = vmul.f32 -1.442695, %v3119_v15 }
0x11a4   :  { %v3285_v44 = vpop.f32.mrb[38].mxu0 }
0x11a5   :  { %v5300_v11 = vpop.f32.mrb[39].mxu0 }
0x11a9   :  { %v5874_v45 = vpop.eup %5873 }
0x11aa   :  { %3129 = vrot.lane.b32.xlu0 %v5874_v45, %s6051_s8 }
0x11ae   :  { %v3215_v8 = vpop.f32.mrb[32].mxu1  ;;  %v3455_v48 = vpop.f32.mrb[40].mxu0 }
0x11af   :  { %v3286_v49 = vadd.f32 %v3285_v44, %v3215_v8  ;;  %v5289_v51 = vpop.f32.mrb[33].mxu1  ;;  %v5322_v53 = vpop.f32.mrb[41].mxu0 }
0x11b1   :  { %v3289_v19 = vadd.f32 %v6757_v12, %v3286_v49 }
0x11b3   :  { %5875 = vtanh.f32 %v3289_v19  ;;  %v4654_v3 = vmul.f32 -1.442695, %v3289_v19 }
0x11b6   :  { %v3385_v55 = vpop.f32.mrb[34].mxu1 }
0x11b7   :  { %v3456_v28 = vadd.f32 %v3455_v48, %v3385_v55  ;;  %v5311_v34 = vpop.f32.mrb[35].mxu1 }
0x11b9   :  { %v3459_v57 = vadd.f32 %v6496_v10, %v3456_v28 }
0x11bb   :  { %5877 = vtanh.f32 %v3459_v57  ;;  %v4657_v5 = vmul.f32 -1.442695, %v3459_v57 }
0x11bc   :  { %5879 = vpow2.f32 %v4651_v59 }
0x11bd   :  { %v5876_v32 = vpop.eup %5875 }
0x11be   :  { %3299 = vrot.lane.b32.xlu1 %v5876_v32, %s6051_s8 }
0x11c5   :  { %v5878_v58 = vpop.eup %5877 }
0x11c6   :  { %3469 = vrot.lane.b32.xlu0 %v5878_v58, %s6051_s8  ;;  %v5880_v60 = vpop.eup %5879 }
0x11c7   :  { %v3123_v63 = vadd.f32 1.0, %v5880_v60 }
0x11c9   :  { %5881 = vrcp.f32 %v3123_v63 }
0x11ca   :  { %5883 = vpow2.f32 %v4654_v3 }
0x11cb   :  { %5885 = vpow2.f32 %v4657_v5 }
0x11d3   :  { %v5882_v16 = vpop.eup %5881 }
0x11d4   :  { %v5884_v10 = vpop.eup %5883  ;;  %v3127_v39 = vmul.f32 %v5882_v16, %v6699_v22 }
0x11d5   :  { %v3293_v20 = vadd.f32 1.0, %v5884_v10  ;;  %v5886_v33 = vpop.eup %5885 }
0x11d6   :  { %v3463_v52 = vadd.f32 1.0, %v5886_v33 }
0x11d7   :  { %5887 = vrcp.f32 %v3293_v20 }
0x11d8   :  { %5889 = vrcp.f32 %v3463_v52 }
0x11e1   :  { %v5888_v21 = vpop.eup %5887 }
0x11e2   :  { %v5890_v24 = vpop.eup %5889  ;;  %v3297_v13 = vmul.f32 %v5888_v21, %v6704_v25 }
0x11e3   :  { %v3467_v36 = vmul.f32 %v5890_v24, %v6708_v30 }
0x121c   :  { %v3130_v17 = vpop.permute.xlu0 %3129 }
0x121d   :  { %v3132_v47 = vmul.f32 %v5882_v16, %v3130_v17 }
0x121f   :  { %3134 = vrot.lane.b32.xlu1 %v3132_v47, %s6051_s8 }
0x1230   :  { %v3300_v56 = vpop.permute.xlu1 %3299 }
0x1231   :  { %v3302_v23 = vmul.f32 %v5888_v21, %v3300_v56 }
0x1233   :  { %3304 = vrot.lane.b32.xlu0 %v3302_v23, %s6051_s8 }
0x1238   :  { %v3470_v26 = vpop.permute.xlu0 %3469 }
0x1239   :  { %v3472_v29 = vmul.f32 %v5890_v24, %v3470_v26 }
0x123b   :  { %3474 = vrot.lane.b32.xlu1 %v3472_v29, %s6051_s8 }
0x1291   :  { %v3135_v31 = vpop.permute.xlu1 %3134 }
0x1292   :  { %v6767_v14 = vadd.f32 %v3135_v31, %v3127_v39 }
0x1294   :  { %5891 = vtanh.f32 %v6767_v14 }
0x129e   :  { %v5892_v6 = vpop.eup %5891 }
0x129f   :  { %3140 = vrot.lane.b32.xlu0 %v5892_v6, %s6051_s8 }
0x12a5   :  { %v3305_v35 = vpop.permute.xlu0 %3304 }
0x12a6   :  { %v6772_v9 = vadd.f32 %v3305_v35, %v3297_v13 }
0x12a8   :  { %5893 = vtanh.f32 %v6772_v9 }
0x12ad   :  { %v3475_v37 = vpop.permute.xlu1 %3474 }
0x12ae   :  { %v6776_v2 = vadd.f32 %v3475_v37, %v3467_v36 }
0x12b0   :  { %5895 = vtanh.f32 %v6776_v2 }
0x12b2   :  { %v5894_v22 = vpop.eup %5893 }
0x12b3   :  { %3310 = vrot.lane.b32.xlu1 %v5894_v22, %s6051_s8 }
0x12ba   :  { %v5896_v40 = vpop.eup %5895 }
0x12bb   :  { %3480 = vrot.lane.b32.xlu0 %v5896_v40, %s6051_s8 }
0x1311   :  { %v3141_v7 = vpop.permute.xlu0 %3140 }
0x1312   :  { %v3143_v25 = vmul.f32 %v5882_v16, %v3141_v7 }
0x1314   :  { %3500 = vrot.lane.b32.xlu1 %v3143_v25, %s6052_s22 }
0x1325   :  { %v3311_v41 = vpop.permute.xlu1 %3310 }
0x1326   :  { %v3313_v15 = vmul.f32 %v5888_v21, %v3311_v41 }
0x1328   :  { %3600 = vrot.lane.b32.xlu0 %v3313_v15, %s6052_s22 }
0x132d   :  { %v3481_v30 = vpop.permute.xlu0 %3480 }
0x132e   :  { %v3483_v43 = vmul.f32 %v5890_v24, %v3481_v30 }
0x1330   :  { %3770 = vrot.lane.b32.xlu1 %v3483_v43, %s6052_s22 }
0x1386   :  { %v3501_v44 = vpop.permute.xlu1 %3500 }
0x1387   :  { %5332 = vmatmul.mubr.msk.f32.vlgmr.msra.gmra.mrb[36].mxu1 %vm98_vm1, %v3501_v44 }
0x1388   :  { %5683 = vmatpush3.bf16.msra.mxu1 %v6276_v42  ;;  %5353 = vmatprep.mubr.msk.f32.mxu1 %vm6049_vm0, %v6050_v1 }
0x1389   :  { %5684 = vmatprep.subr.bf16.mxu1 %v6048_v0 }
0x138c   :  { %5686 = vmatpush3.bf16.msra.mxu1 %v6303_v50 }
0x138d   :  { %5693 = vmatprep.subr.bf16.mxu1 %v6048_v0 }
0x138f   :  { %5354 = vmatmul.mubr.msk.f32.vlgmr.msra.gmra.mrb[38].mxu1 %vm98_vm1, %v3501_v44 }
0x1390   :  { %5695 = vmatpush3.bf16.msra.mxu1 %v6339_v62  ;;  %5375 = vmatprep.mubr.msk.f32.mxu1 %vm6049_vm0, %v6050_v1 }
0x1391   :  { %5696 = vmatprep.subr.bf16.mxu1 %v6048_v0 }
0x1394   :  { %5698 = vmatpush3.bf16.msra.mxu1 %v6354_v4 }
0x1395   :  { %5705 = vmatprep.subr.bf16.mxu1 %v6048_v0 }
0x139a   :  { %v3601_v11 = vpop.permute.xlu0 %3600 }
0x139b   :  { %5343 = vmatmul.mubr.msk.f32.vlgmr.msra.gmra.mrb[42].mxu0 %vm98_vm1, %v3601_v11  ;;  %5376 = vmatmul.mubr.msk.f32.vlgmr.msra.gmra.mrb[40].mxu1 %vm98_vm1, %v3601_v11 }
0x139c   :  { %5689 = vmatpush3.bf16.msra.mxu0 %v6312_v54  ;;  %5364 = vmatprep.mubr.msk.f32.mxu0 %vm6049_vm0, %v6050_v1 }
0x139d   :  { %5690 = vmatprep.subr.bf16.mxu0 %v6048_v0  ;;  %5707 = vmatpush3.bf16.msra.mxu1 %v6276_v42  ;;  %v271_v42 = vadd.f32 %v6686_v27, %v6394_v18  ;;  %v6826_v27 = vld [vmem:[%s6923_s9] ss:$0 sm:$0xff]  ;;  %s6053_s9 = smov 96  }
0x139e   :  { %5708 = vmatprep.subr.bf16.mxu1 %v6048_v0  ;;  %5397 = vmatprep.mubr.msk.f32.mxu1 %vm6049_vm0, %v6050_v1 }
0x13a0   :  { %5692 = vmatpush3.bf16.msra.mxu0 %v6331_v61 }
0x13a1   :  { %5710 = vmatpush3.bf16.msra.mxu1 %v6303_v50  ;;  %5699 = vmatprep.subr.bf16.mxu0 %v6048_v0 }
0x13a2   :  { %v3771_v45 = vpop.permute.xlu1 %3770  ;;  %5717 = vmatprep.subr.bf16.mxu1 %v6048_v0 }
0x13a3   :  { %5365 = vmatmul.mubr.msk.f32.vlgmr.msra.gmra.mrb[44].mxu0 %vm98_vm1, %v3771_v45 }
0x13a4   :  { %5701 = vmatpush3.bf16.msra.mxu0 %v6265_v38  ;;  %5386 = vmatprep.mubr.msk.f32.mxu0 %vm6049_vm0, %v6050_v1 }
0x13a5   :  { %5702 = vmatprep.subr.bf16.mxu0 %v6048_v0 }
0x13a8   :  { %5704 = vmatpush3.bf16.msra.mxu0 %v6290_v46 }
0x13a9   :  { %5711 = vmatprep.subr.bf16.mxu0 %v6048_v0 }
0x145a   :  { %v3570_v50 = vpop.f32.mrb[36].mxu1 }
0x145b   :  { %v3574_v8 = vadd.f32 %v3570_v50, %v271_v42  ;;  %v5333_v48 = vpop.f32.mrb[37].mxu1 }
0x145d   :  { %5897 = vtanh.f32 %v3574_v8  ;;  %v4659_v63 = vmul.f32 -1.442695, %v3574_v8 }
0x1462   :  { %v3740_v49 = vpop.f32.mrb[38].mxu1 }
0x1463   :  { %v5355_v51 = vpop.f32.mrb[39].mxu1 }
0x1467   :  { %v5898_v53 = vpop.eup %5897 }
0x1468   :  { %3584 = vrot.lane.b32.xlu0 %v5898_v53, %s6051_s8 }
0x146e   :  { %v3670_v38 = vpop.f32.mrb[42].mxu0  ;;  %v3910_v19 = vpop.f32.mrb[40].mxu1 }
0x146f   :  { %v3741_v55 = vadd.f32 %v3740_v49, %v3670_v38  ;;  %v5344_v28 = vpop.f32.mrb[43].mxu0  ;;  %v5377_v34 = vpop.f32.mrb[41].mxu1 }
0x1471   :  { %v3744_v46 = vadd.f32 %v6757_v12, %v3741_v55 }
0x1473   :  { %5899 = vtanh.f32 %v3744_v46  ;;  %v4662_v16 = vmul.f32 -1.442695, %v3744_v46 }
0x1476   :  { %v3840_v57 = vpop.f32.mrb[44].mxu0 }
0x1477   :  { %v3911_v32 = vadd.f32 %v3910_v19, %v3840_v57  ;;  %v5366_v18 = vpop.f32.mrb[45].mxu0 }
0x1479   :  { %v3914_v58 = vadd.f32 %v6826_v27, %v3911_v32 }
0x147b   :  { %5901 = vtanh.f32 %v3914_v58  ;;  %v4665_v17 = vmul.f32 -1.442695, %v3914_v58 }
0x147c   :  { %5903 = vpow2.f32 %v4659_v63 }
0x147d   :  { %v5900_v59 = vpop.eup %5899 }
0x147e   :  { %3754 = vrot.lane.b32.xlu1 %v5900_v59, %s6051_s8 }
0x1485   :  { %v5902_v60 = vpop.eup %5901 }
0x1486   :  { %3924 = vrot.lane.b32.xlu0 %v5902_v60, %s6051_s8  ;;  %v5904_v3 = vpop.eup %5903 }
0x1487   :  { %v3578_v5 = vadd.f32 1.0, %v5904_v3 }
0x1489   :  { %5905 = vrcp.f32 %v3578_v5 }
0x148a   :  { %5907 = vpow2.f32 %v4662_v16 }
0x148b   :  { %5909 = vpow2.f32 %v4665_v17 }
0x1493   :  { %v5906_v47 = vpop.eup %5905 }
0x1494   :  { %v5908_v33 = vpop.eup %5907  ;;  %v3582_v6 = vmul.f32 %v5906_v47, %v6767_v14 }
0x1495   :  { %v3748_v52 = vadd.f32 1.0, %v5908_v33  ;;  %v5910_v21 = vpop.eup %5909 }
0x1496   :  { %v3918_v56 = vadd.f32 1.0, %v5910_v21 }
0x1497   :  { %5911 = vrcp.f32 %v3748_v52 }
0x1498   :  { %5913 = vrcp.f32 %v3918_v56 }
0x14a1   :  { %v5912_v23 = vpop.eup %5911 }
0x14a2   :  { %v5914_v29 = vpop.eup %5913  ;;  %v3752_v37 = vmul.f32 %v5912_v23, %v6772_v9 }
0x14a3   :  { %v3922_v7 = vmul.f32 %v5914_v29, %v6776_v2 }
0x14da   :  { %v3585_v10 = vpop.permute.xlu0 %3584 }
0x14db   :  { %v3587_v20 = vmul.f32 %v5906_v47, %v3585_v10 }
0x14dd   :  { %3589 = vrot.lane.b32.xlu1 %v3587_v20, %s6051_s8 }
0x14f0   :  { %v3755_v24 = vpop.permute.xlu1 %3754 }
0x14f1   :  { %v3757_v26 = vmul.f32 %v5912_v23, %v3755_v24 }
0x14f3   :  { %3759 = vrot.lane.b32.xlu0 %v3757_v26, %s6051_s8 }
0x14f8   :  { %v3925_v39 = vpop.permute.xlu0 %3924 }
0x14f9   :  { %v3927_v31 = vmul.f32 %v5914_v29, %v3925_v39 }
0x14fb   :  { %3929 = vrot.lane.b32.xlu1 %v3927_v31, %s6051_s8 }
0x154f   :  { %v3590_v13 = vpop.permute.xlu1 %3589 }
0x1550   :  { %v6835_v35 = vadd.f32 %v3590_v13, %v3582_v6 }
0x1552   :  { %5915 = vtanh.f32 %v6835_v35 }
0x155c   :  { %v5916_v36 = vpop.eup %5915 }
0x155d   :  { %3595 = vrot.lane.b32.xlu0 %v5916_v36, %s6051_s8 }
0x1565   :  { %v3760_v22 = vpop.permute.xlu0 %3759 }
0x1566   :  { %v6840_v40 = vadd.f32 %v3760_v22, %v3752_v37 }
0x1568   :  { %5917 = vtanh.f32 %v6840_v40 }
0x156d   :  { %v3930_v25 = vpop.permute.xlu1 %3929 }
0x156e   :  { %v6844_v41 = vadd.f32 %v3930_v25, %v3922_v7 }
0x1570   :  { %5919 = vtanh.f32 %v6844_v41 }
0x1572   :  { %v5918_v14 = vpop.eup %5917 }
0x1573   :  { %3765 = vrot.lane.b32.xlu1 %v5918_v14, %s6051_s8 }
0x157a   :  { %v5920_v15 = vpop.eup %5919 }
0x157b   :  { %3935 = vrot.lane.b32.xlu0 %v5920_v15, %s6051_s8 }
0x15cf   :  { %v3596_v30 = vpop.permute.xlu0 %3595 }
0x15d0   :  { %v3598_v9 = vmul.f32 %v5906_v47, %v3596_v30 }
0x15d2   :  { %3953 = vrot.lane.b32.xlu1 %v3598_v9, %s6052_s22 }
0x15e5   :  { %v3766_v43 = vpop.permute.xlu1 %3765 }
0x15e6   :  { %v3768_v44 = vmul.f32 %v5912_v23, %v3766_v43 }
0x15e8   :  { %3963 = vrot.lane.b32.xlu0 %v3768_v44, %s6052_s22 }
0x15ed   :  { %v3936_v2 = vpop.permute.xlu0 %3935 }
0x15ee   :  { %v3938_v11 = vmul.f32 %v5914_v29, %v3936_v2 }
0x15f0   :  { %3973 = vrot.lane.b32.xlu1 %v3938_v11, %s6052_s22 }
0x1644   :  { %v3954_v45 = vpop.permute.xlu1 %3953 }
0x1645   :  { %3956 = vst.msk [vmem:[#allocation3] sm:$0xff] %vm98_vm1, %v3954_v45  ;;  %5398 = vmatmul.mubr.msk.f32.vlgmr.msra.gmra.mrb[42].mxu1 %vm98_vm1, %v3954_v45  ;;  %v4496_v45 = vld [vmem:[#allocation13] sm:$0xff] }
0x1646   :  { %5719 = vmatpush3.bf16.msra.mxu1 %v6339_v62  ;;  %5419 = vmatprep.mubr.msk.f32.mxu1 %vm6049_vm0, %v6050_v1 }
0x1647   :  { %5720 = vmatprep.subr.bf16.mxu1 %v6048_v0 }
0x164a   :  { %5722 = vmatpush3.bf16.msra.mxu1 %v6354_v4 }
0x164b   :  { %5729 = vmatprep.subr.bf16.mxu1 %v6048_v0 }
0x165a   :  { %v3964_v42 = vpop.permute.xlu0 %3963 }
0x165b   :  { %3966 = vst.msk [vmem:[#allocation5] sm:$0xff] %vm98_vm1, %v3964_v42  ;;  %5387 = vmatmul.mubr.msk.f32.vlgmr.msra.gmra.mrb[46].mxu0 %vm98_vm1, %v3964_v42  ;;  %5420 = vmatmul.mubr.msk.f32.vlgmr.msra.gmra.mrb[44].mxu1 %vm98_vm1, %v3964_v42  ;;  %v4498_v42 = vld [vmem:[#allocation13 + $0x10] sm:$0xff] }
0x165c   :  { %5713 = vmatpush3.bf16.msra.mxu0 %v6312_v54  ;;  %5408 = vmatprep.mubr.msk.f32.mxu0 %vm6049_vm0, %v6050_v1 }
0x165d   :  { %5714 = vmatprep.subr.bf16.mxu0 %v6048_v0  ;;  %5731 = vmatpush3.bf16.msra.mxu1 %v6339_v62 }
0x165e   :  { %5732 = vmatprep.subr.bf16.mxu1 %v6048_v0  ;;  %5441 = vmatprep.mubr.msk.f32.mxu1 %vm6049_vm0, %v6050_v1 }
0x1660   :  { %5716 = vmatpush3.bf16.msra.mxu0 %v6331_v61 }
0x1661   :  { %5734 = vmatpush3.bf16.msra.mxu1 %v6354_v4  ;;  %5723 = vmatprep.subr.bf16.mxu0 %v6048_v0 }
0x1662   :  { %v3974_v50 = vpop.permute.xlu1 %3973 }
0x1663   :  { %3976 = vst.msk [vmem:[#allocation7] sm:$0xff] %vm98_vm1, %v3974_v50  ;;  %5409 = vmatmul.mubr.msk.f32.vlgmr.msra.gmra.mrb[48].mxu0 %vm98_vm1, %v3974_v50 }
0x1664   :  { %5725 = vmatpush3.bf16.msra.mxu0 %v6312_v54  ;;  %5430 = vmatprep.mubr.msk.f32.mxu0 %vm6049_vm0, %v6050_v1 }
0x1665   :  { %5726 = vmatprep.subr.bf16.mxu0 %v6048_v0 }
0x1668   :  { %5728 = vmatpush3.bf16.msra.mxu0 %v6331_v61 }
0x1669   :  { %5735 = vmatprep.subr.bf16.mxu0 %v6048_v0 }
0x1718   :  { %v4125_v62 = vpop.f32.mrb[42].mxu1 }
0x1719   :  { %v5399_v4 = vpop.f32.mrb[43].mxu1 }
0x172e   :  { %v4053_v8 = vpop.f32.mrb[46].mxu0  ;;  %v4292_v48 = vpop.f32.mrb[44].mxu1 }
0x172f   :  { %v4126_v49 = vadd.f32 %v4125_v62, %v4053_v8  ;;  %v5388_v51 = vpop.f32.mrb[47].mxu0  ;;  %v5421_v53 = vpop.f32.mrb[45].mxu1  ;;  %v4499_v62 = vld [vmem:[#allocation13 + $0x18] sm:$0xff] }
0x1730   :  { %v5739_v4 = vpack.c.bf16 %v4499_v62, %v4498_v42 }
0x1731   :  { %v4129_v38 = vadd.f32 %v6757_v12, %v4126_v49 }
0x1733   :  { %5921 = vtanh.f32 %v4129_v38  ;;  %v4668_v46 = vmul.f32 -1.442695, %v4129_v38 }
0x1736   :  { %v4222_v54 = vpop.f32.mrb[48].mxu0 }
0x1737   :  { %v4293_v19 = vadd.f32 %v4292_v48, %v4222_v54  ;;  %v5410_v55 = vpop.f32.mrb[49].mxu0 }
0x1739   :  { %v4296_v28 = vadd.f32 %v6826_v27, %v4293_v19 }
0x173b   :  { %5923 = vtanh.f32 %v4296_v28  ;;  %v4671_v57 = vmul.f32 -1.442695, %v4296_v28 }
0x173c   :  { %5925 = vpow2.f32 %v4668_v46 }
0x173d   :  { %v5922_v34 = vpop.eup %5921  ;;  %5927 = vpow2.f32 %v4671_v57 }
0x173e   :  { %4139 = vrot.lane.b32.xlu0 %v5922_v34, %s6051_s8 }
0x1745   :  { %v5924_v61 = vpop.eup %5923 }
0x1746   :  { %4306 = vrot.lane.b32.xlu1 %v5924_v61, %s6051_s8  ;;  %v5926_v32 = vpop.eup %5925 }
0x1747   :  { %v4133_v18 = vadd.f32 1.0, %v5926_v32  ;;  %v5928_v12 = vpop.eup %5927 }
0x1748   :  { %v4300_v58 = vadd.f32 1.0, %v5928_v12 }
0x1749   :  { %5929 = vrcp.f32 %v4133_v18 }
0x174a   :  { %5931 = vrcp.f32 %v4300_v58 }
0x1753   :  { %v5930_v59 = vpop.eup %5929 }
0x1754   :  { %v5932_v3 = vpop.eup %5931  ;;  %v4137_v17 = vmul.f32 %v5930_v59, %v6840_v40 }
0x1755   :  { %v4304_v20 = vmul.f32 %v5932_v3, %v6844_v41 }
0x17b0   :  { %v4140_v60 = vpop.permute.xlu0 %4139 }
0x17b1   :  { %v4142_v63 = vmul.f32 %v5930_v59, %v4140_v60 }
0x17b3   :  { %4144 = vrot.lane.b32.xlu0 %v4142_v63, %s6051_s8 }
0x17b8   :  { %v4307_v5 = vpop.permute.xlu1 %4306 }
0x17b9   :  { %v4309_v16 = vmul.f32 %v5932_v3, %v4307_v5 }
0x17bb   :  { %4311 = vrot.lane.b32.xlu1 %v4309_v16, %s6051_s8 }
0x1825   :  { %v4145_v47 = vpop.permute.xlu0 %4144 }
0x1826   :  { %v4147_v10 = vadd.f32 %v4145_v47, %v4137_v17 }
0x1828   :  { %5933 = vtanh.f32 %v4147_v10 }
0x182d   :  { %v4312_v33 = vpop.permute.xlu1 %4311 }
0x182e   :  { %v4314_v52 = vadd.f32 %v4312_v33, %v4304_v20 }
0x1830   :  { %5935 = vtanh.f32 %v4314_v52 }
0x1832   :  { %v5934_v21 = vpop.eup %5933 }
0x1833   :  { %4150 = vrot.lane.b32.xlu0 %v5934_v21, %s6051_s8 }
0x183a   :  { %v5936_v56 = vpop.eup %5935 }
0x183b   :  { %4317 = vrot.lane.b32.xlu1 %v5936_v56, %s6051_s8 }
0x18a5   :  { %v4151_v23 = vpop.permute.xlu0 %4150 }
0x18a6   :  { %v4153_v24 = vmul.f32 %v5930_v59, %v4151_v23 }
0x18a8   :  { %4397 = vrot.lane.b32.xlu1 %v4153_v24, %s6052_s22 }
0x18ad   :  { %v4318_v26 = vpop.permute.xlu1 %4317 }
0x18ae   :  { %v4320_v29 = vmul.f32 %v5932_v3, %v4318_v26 }
0x18b0   :  { %4322 = vrot.lane.b32.xlu0 %v4320_v29, %s6052_s22 }
0x191a   :  { %v4398_v39 = vpop.permute.xlu1 %4397 }
0x191b   :  { %5442 = vmatmul.mubr.msk.f32.vlgmr.msra.gmra.mrb[46].mxu1 %vm98_vm1, %v4398_v39 }
0x1922   :  { %v4323_v31 = vpop.permute.xlu0 %4322 }
0x1923   :  { %5431 = vmatmul.mubr.msk.f32.vlgmr.msra.gmra.mrb[50].mxu0 %vm98_vm1, %v4323_v31 }
0x1924   :  { %5452 = vmatprep.mubr.msk.f32.mxu0 %vm6049_vm0, %v6050_v1 }
0x19ee   :  { %v4467_v6 = vpop.f32.mrb[46].mxu1 }
0x19ef   :  { %v5443_v13 = vpop.f32.mrb[47].mxu1 }
0x19f6   :  { %v4392_v36 = vpop.f32.mrb[50].mxu0 }
0x19f7   :  { %v4468_v37 = vadd.f32 %v4467_v6, %v4392_v36  ;;  %v5432_v22 = vpop.f32.mrb[51].mxu0 }
0x19f9   :  { %v4471_v7 = vadd.f32 %v6826_v27, %v4468_v37  ;;  %v4497_v27 = vld [vmem:[#allocation13 + $0x8] sm:$0xff] }
0x19fa   :  { %v5736_v50 = vpack.c.bf16 %v4497_v27, %v4496_v45 }
0x19fb   :  { %5937 = vtanh.f32 %v4471_v7  ;;  %v4674_v14 = vmul.f32 -1.442695, %v4471_v7 }
0x19fc   :  { %5737 = vmatpush3.bf16.msra.mxu0 %v5736_v50 }
0x19fd   :  { %5939 = vpow2.f32 %v4674_v14  ;;  %5738 = vmatprep.subr.bf16.mxu0 %v6048_v0 }
0x1a00   :  { %5740 = vmatpush3.bf16.msra.mxu0 %v5739_v4 }
0x1a05   :  { %v5938_v25 = vpop.eup %5937 }
0x1a06   :  { %4481 = vrot.lane.b32.xlu0 %v5938_v25, %s6051_s8 }
0x1a07   :  { %v5940_v15 = vpop.eup %5939 }
0x1a08   :  { %v4475_v30 = vadd.f32 1.0, %v5940_v15 }
0x1a0a   :  { %5941 = vrcp.f32 %v4475_v30 }
0x1a14   :  { %v5942_v9 = vpop.eup %5941 }
0x1a15   :  { %v4479_v1 = vmul.f32 %v5942_v9, %v4314_v52 }
0x1a78   :  { %v4482_v43 = vpop.permute.xlu0 %4481 }
0x1a79   :  { %v4484_v44 = vmul.f32 %v5942_v9, %v4482_v43 }
0x1a7b   :  { %4486 = vrot.lane.b32.xlu1 %v4484_v44, %s6051_s8 }
0x1aed   :  { %v4487_v2 = vpop.permute.xlu1 %4486 }
0x1aee   :  { %v4489_v11 = vadd.f32 %v4487_v2, %v4479_v1 }
0x1af0   :  { %5943 = vtanh.f32 %v4489_v11 }
0x1afa   :  { %v5944_v8 = vpop.eup %5943 }
0x1afb   :  { %4492 = vrot.lane.b32.xlu0 %v5944_v8, %s6051_s8 }
0x1aff   :  { %3958 = vrot.lane.b32.xlu0 %v6835_v35, %s6053_s9  ;;  %v4675_v35 = vld [vmem:[#allocation14] ss:$0 sm:$0xff] }
0x1b03   :  { %3978 = vrot.lane.b32.xlu0 %v6844_v41, %s6053_s9 }
0x1b6d   :  { %v4493_v48 = vpop.permute.xlu0 %4492 }
0x1b6e   :  { %v4495_v49 = vmul.f32 %v5942_v9, %v4493_v48 }
0x1b70   :  { %4508 = vrot.lane.b32.xlu1 %v4495_v49, %s6052_s22 }
0x1b71   :  { %v3959_v51 = vpop.permute.xlu0 %3958 }
0x1b72   :  { %3961 = vst.msk [vmem:[#allocation4] sm:$0xff] %vm98_vm1, %v3959_v51 }
0x1b74   :  { %3968 = vrot.lane.b32.xlu1 %v6840_v40, %s6053_s9 }
0x1b75   :  { %v3979_v53 = vpop.permute.xlu0 %3978 }
0x1b76   :  { %3981 = vst.msk [vmem:[#allocation8] sm:$0xff] %vm98_vm1, %v3979_v53 }
0x1be2   :  { %v4509_v0 = vpop.permute.xlu1 %4508 }
0x1be3   :  { %5453 = vmatmul.mubr.msk.f32.vlgmr.msra.gmra.mrb[52].mxu0 %vm98_vm1, %v4509_v0 }
0x1be6   :  { %v3969_v38 = vpop.permute.xlu1 %3968 }
0x1be7   :  { %3971 = vst.msk [vmem:[#allocation6] sm:$0xff] %vm98_vm1, %v3969_v38 }
0x1cb6   :  { %v4578_v41 = vpop.f32.mrb[52].mxu0 }
0x1cb7   :  { %v4579_v54 = vadd.f32 %v4675_v35, %v4578_v41  ;;  %v5454_v19 = vpop.f32.mrb[53].mxu0 }
0x1cb9   :  { %v4582_v55 = vmax.f32 %v4579_v54, 0.0 }
0x1cbb   :  { %4583 = vst [vmem:[%s6926_s12] sm:$0xff] %v4582_v55 }
0x1cbc   :  { %4588 = vsyncpa [#allocation10], 1 }
0x1cbd   :  { %4589 = vsyncpa [#allocation12], 1 }
0x1cbe   :  { %4590 = vsyncpa [#allocation15], 1 }

// kernel: speaker_encoder_forward.1
= control target key start
LH: loop header
LB: loop body
LE: loop exit
PB: predicated region body
PF: predicated region fallthrough
CT: control target
= control target key end

     0   :  { %17 = vsyncpa [#allocation10], 0  ;;  %s6914_s0 = inlined_call_operand.vmem [shape: f32[8,8,16], index: 0, kind: input, shape index: {}]   ;;  %s6915_s1 = inlined_call_operand.hbm [shape: f32[16,128], index: 1, kind: input, shape index: {}]   ;;  %s6916_s2 = inlined_call_operand.vmem [shape: f32[32,128], index: 2, kind: input, shape index: {}]   ;;  %s6917_s3 = inlined_call_operand.vmem [shape: f32[1,128], index: 3, kind: input, shape index: {}]   ;;  %s6918_s4 = inlined_call_operand.vmem [shape: f32[32,128], index: 4, kind: input, shape index: {}]   ;;  %s6919_s5 = inlined_call_operand.vmem [shape: f32[32,128], index: 5, kind: input, shape index: {}]   ;;  %s6920_s6 = inlined_call_operand.vmem [shape: f32[1,128], index: 6, kind: input, shape index: {}]   ;;  %s6921_s7 = inlined_call_operand.vmem [shape: f32[32,128], index: 7, kind: input, shape index: {}]   ;;  %s6922_s8 = inlined_call_operand.hbm [shape: f32[32,128], index: 8, kind: input, shape index: {}]   ;;  %s6923_s9 = inlined_call_operand.vmem [shape: f32[1,128], index: 9, kind: input, shape index: {}]   ;;  %s6924_s10 = inlined_call_operand.hbm [shape: f32[32,128], index: 10, kind: input, shape index: {}]   ;;  %s6925_s11 = inlined_call_operand.hbm [shape: f32[1,128], index: 11, kind: input, shape index: {}]   ;;  %s6926_s12 = inlined_call_operand.vmem [shape: f32[8,128], index: 12, kind: output, shape index: {}]  }
   0x1   :  { %18 = vsyncpa [#allocation12], 0 }
   0x2   :  { %19 = vsyncpa [#allocation15], 0  ;;  %s6042_s21 = smov [#allocation11]   ;;  %s6043_s23 = smov [#allocation9]  }
   0x3   :  { %s51_s22 = sshll.u32 %s6042_s21, 4  ;;  %s27_s24 = sshll.u32 %s6043_s23, 4  ;;  %s52_s22 = int_to_ptr.vmem [resolvable:$true] %s51_s22  ;;  %s6119_s24 = int_to_ptr.vmem [resolvable:$true] %s27_s24 }
   0x4   :  { %s5948_s27 = scalar_lea.hbm %s6922_s8, 512 }
   0x5   :  { %p5949_p0 = scmp.ne.s32.totalorder %s6922_s8, %s5948_s27  ;;  %p5952_p1 = scmp.lt.u32.totalorder %s5948_s27, %s6922_s8 }
   0x7   :  { %p5954_p2 = pnand %p5952_p1, %p5949_p0 }
   0x9   :  { %5957 = shalt.err (!%p5954_p2)
}
   0xa   :  { %s5958_s14 = scalar_lea.vmem %s52_s22, 512  ;;  %p5963_p4 = scmp.lt.s32.totalorder %s52_s22, %s52_s22 }
   0xb   :  { %p5959_p3 = scmp.ne.s32.totalorder %s52_s22, %s5958_s14  ;;  %p5964_p5 = scmp.lt.s32.totalorder %s5958_s14, %s5958_s14 }
   0xd   :  { %p5965_p6 = por %p5964_p5, %p5963_p4 }
   0xf   :  { %p5966_p7 = pnand %p5965_p6, %p5959_p3 }
  0x11   :  { %5969 = shalt.err (!%p5966_p7)
}
  0x12   :  { %s6044_s15 = smov 128   ;;  %s6045_s16 = smov 8  }
  0x13   :  { %57 = dma.hbm_to_vmem [thread:$0]  %s6922_s8, 512, %s52_s22, [#allocation12], %s6044_s15, %s6044_s15, %s6045_s16  }
  0x14   :  { %s5970_s21 = scalar_lea.hbm %s6915_s1, 256 }
  0x15   :  { %p5971_p8 = scmp.ne.s32.totalorder %s6915_s1, %s5970_s21  ;;  %p5974_p9 = scmp.lt.u32.totalorder %s5970_s21, %s6915_s1 }
  0x17   :  { %p5976_p10 = pnand %p5974_p9, %p5971_p8 }
  0x19   :  { %5979 = shalt.err (!%p5976_p10)
}
  0x1a   :  { %s5980_s28 = scalar_lea.vmem %s6119_s24, 256  ;;  %p5985_p12 = scmp.lt.s32.totalorder %s6119_s24, %s6119_s24 }
  0x1b   :  { %p5981_p11 = scmp.ne.s32.totalorder %s6119_s24, %s5980_s28  ;;  %p5986_p13 = scmp.lt.s32.totalorder %s5980_s28, %s5980_s28 }
  0x1d   :  { %p5987_p0 = por %p5986_p13, %p5985_p12 }
  0x1f   :  { %p5988_p1 = pnand %p5987_p0, %p5981_p11 }
  0x21   :  { %5991 = shalt.err (!%p5988_p1)
}
  0x22   :  { %33 = dma.hbm_to_vmem [thread:$0]  %s6915_s1, 256, %s6119_s24, [#allocation10], %s6044_s15, %s6044_s15, %s6045_s16  }
  0x23   :  { %s6046_s29 = smov [#allocation13]   ;;  %s6047_s13 = smov [#allocation14]  }
  0x24   :  { %s65_s30 = sshll.u32 %s6046_s29, 4  ;;  %s78_s14 = sshll.u32 %s6047_s13, 4  ;;  %s66_s30 = int_to_ptr.vmem [resolvable:$true] %s65_s30  ;;  %s79_s14 = int_to_ptr.vmem [resolvable:$true] %s78_s14 }
  0x25   :  { %s5992_s19 = scalar_lea.hbm %s6924_s10, 512 }
  0x26   :  { %p5993_p2 = scmp.ne.s32.totalorder %s6924_s10, %s5992_s19  ;;  %p5996_p3 = scmp.lt.u32.totalorder %s5992_s19, %s6924_s10 }
  0x28   :  { %p5998_p4 = pnand %p5996_p3, %p5993_p2 }
  0x2a   :  { %6001 = shalt.err (!%p5998_p4)
}
  0x2b   :  { %s6002_s1 = scalar_lea.vmem %s66_s30, 512  ;;  %p6007_p6 = scmp.lt.s32.totalorder %s66_s30, %s66_s30 }
  0x2c   :  { %p6003_p5 = scmp.ne.s32.totalorder %s66_s30, %s6002_s1  ;;  %p6008_p7 = scmp.lt.s32.totalorder %s6002_s1, %s6002_s1 }
  0x2e   :  { %p6009_p8 = por %p6008_p7, %p6007_p6 }
  0x30   :  { %p6010_p9 = pnand %p6009_p8, %p6003_p5 }
  0x32   :  { %6013 = shalt.err (!%p6010_p9)
}
  0x33   :  { %71 = dma.hbm_to_vmem [thread:$0]  %s6924_s10, 512, %s66_s30, [#allocation12], %s6044_s15, %s6044_s15, %s6045_s16  }
  0x34   :  { %s6014_s8 = scalar_lea.hbm %s6925_s11, 16 }
  0x35   :  { %p6015_p10 = scmp.ne.s32.totalorder %s6925_s11, %s6014_s8  ;;  %p6018_p11 = scmp.lt.u32.totalorder %s6014_s8, %s6925_s11 }
  0x37   :  { %p6020_p12 = pnand %p6018_p11, %p6015_p10 }
  0x39   :  { %6023 = shalt.err (!%p6020_p12)
}
  0x3a   :  { %s6024_s18 = scalar_lea.vmem %s79_s14, 16  ;;  %s6028_s19 = scalar_lea.vmem %s79_s14, 32 }
  0x3b   :  { %p6025_p13 = scmp.ne.s32.totalorder %s79_s14, %s6024_s18  ;;  %p6029_p0 = scmp.lt.s32.totalorder %s79_s14, %s79_s14 }
  0x3c   :  { %p6030_p1 = scmp.lt.s32.totalorder %s6028_s19, %s6024_s18 }
  0x3e   :  { %p6031_p2 = por %p6030_p1, %p6029_p0 }
  0x40   :  { %p6032_p3 = pnand %p6031_p2, %p6025_p13 }
  0x42   :  { %6035 = shalt.err (!%p6032_p3)
}
  0x43   :  { %81 = dma.hbm_to_vmem [thread:$0]  %s6925_s11, 16, %s79_s14, [#allocation15]  }
  0x44   :  { %6036 = dma.done.wait [#allocation10], 256  }
  0x45   :  { %6037 = vsyncadd [#allocation10], 4294967040 }
  0x46   :  { %6038 = dma.done.wait [#allocation12], 1024  }
  0x47   :  { %6039 = vsyncadd [#allocation12], 4294966272 }
  0x48   :  { %6040 = dma.done.wait [#allocation15], 16  }
  0x49   :  { %6041 = vsyncadd [#allocation15], 4294967280  ;;  %v6048_v0 = vmov 0.0|0.0   ;;  %vm6049_vm0 = vmmov 0   ;;  %v6050_v1 = vmov 0.0   ;;  %vm98_vm1 = vcmask 261120  }
  0x4a   :  { %5459 = vmatprep.subr.bf16.mxu1 %v6048_v0  ;;  %4946 = vmatprep.mubr.msk.f32.mxu1 %vm6049_vm0, %v6050_v1  ;;  %99 = vst.msk [vmem:[#allocation3] sm:$0xff] %vm98_vm1, %v6050_v1  ;;  %100 = vst.msk [vmem:[#allocation4] sm:$0xff] %vm98_vm1, %v6050_v1  ;;  %vm144_vm2 = vcmask 130048   ;;  %v135_v2 = vld [vmem:[#allocation9] sm:$0xff]  ;;  %v136_v3 = vld [vmem:[#allocation9 + $0x8] sm:$0xff]  ;;  %s6051_s8 = smov 32  }
  0x4b   :  { %101 = vst.msk [vmem:[#allocation5] sm:$0xff] %vm98_vm1, %v6050_v1  ;;  %102 = vst.msk [vmem:[#allocation6] sm:$0xff] %vm98_vm1, %v6050_v1  ;;  %v105_v4 = vld [vmem:[%s6916_s2] sm:$0xff]  ;;  %v5455_v5 = vpack.c.bf16 %v136_v3, %v135_v2  ;;  %v106_v6 = vld [vmem:[%s6916_s2 + $0x8] sm:$0xff]  ;;  %s6052_s22 = smov 64  }
  0x4c   :  { %103 = vst.msk [vmem:[#allocation7] sm:$0xff] %vm98_vm1, %v6050_v1  ;;  %104 = vst.msk [vmem:[#allocation8] sm:$0xff] %vm98_vm1, %v6050_v1  ;;  %v127_v7 = vld [vmem:[%s6914_s0] sm:$0xff]  ;;  %v6207_v8 = vpack.c.bf16 %v106_v6, %v105_v4  ;;  %v107_v9 = vld [vmem:[%s6916_s2 + $0x10] sm:$0xff] }
  0x4d   :  { %4926 = vmatprep.mubr.msk.f32.mxu0 %vm144_vm2, %v127_v7  ;;  %v108_v10 = vld [vmem:[%s6916_s2 + $0x18] sm:$0xff]  ;;  %5456 = vmatprep.subr.bf16.mxu0 %v5455_v5  ;;  %v128_v11 = vld [vmem:[%s6914_s0 + $0x8] sm:$0xff]  ;;  %v6236_v14 = vld [vmem:[%s6917_s3] ss:$0 sm:$0xff] }
  0x4e   :  { %5461 = vmatpush3.bf16.msra.mxu1 %v6207_v8  ;;  %5458 = vmatpush3.bf16.msra.mxu0 %v5455_v5  ;;  %v6220_v12 = vpack.c.bf16 %v108_v10, %v107_v9  ;;  %v113_v35 = vld [vmem:[%s6919_s5] sm:$0xff]  ;;  %v114_v36 = vld [vmem:[%s6919_s5 + $0x8] sm:$0xff]  ;;  %v129_v40 = vld [vmem:[%s6914_s0 + $0x10] sm:$0xff] }
  0x4f   :  { %5462 = vmatprep.subr.bf16.mxu1 %v6048_v0  ;;  %5471 = vmatprep.subr.bf16.mxu0 %v6048_v0  ;;  %v109_v37 = vld [vmem:[%s6918_s4] sm:$0xff]  ;;  %v6265_v38 = vpack.c.bf16 %v114_v36, %v113_v35  ;;  %v110_v39 = vld [vmem:[%s6918_s4 + $0x8] sm:$0xff]  ;;  %v130_v41 = vld [vmem:[%s6914_s0 + $0x18] sm:$0xff] }
  0x50   :  { %v6276_v42 = vpack.c.bf16 %v110_v39, %v109_v37  ;;  %v115_v43 = vld [vmem:[%s6919_s5 + $0x10] sm:$0xff]  ;;  %v116_v44 = vld [vmem:[%s6919_s5 + $0x18] sm:$0xff]  ;;  %v131_v45 = vld [vmem:[%s6914_s0 + $0x20] sm:$0xff] }
  0x51   :  { %4927 = vmatmul.mubr.msk.f32.vlgmr.msra.gmra.mrb[0].mxu0 %vm144_vm2, %v128_v11  ;;  %v6226_v13 = vld [vmem:[#allocation3] sm:$0xff]  ;;  %v283_v22 = vld [vmem:[#allocation4] sm:$0xff]  ;;  %v6290_v46 = vpack.c.bf16 %v116_v44, %v115_v43  ;;  %v111_v47 = vld [vmem:[%s6918_s4 + $0x10] sm:$0xff] }
  0x52   :  { %5464 = vmatpush3.bf16.msra.mxu1 %v6220_v12  ;;  %v6247_v29 = vld [vmem:[#allocation5] sm:$0xff]  ;;  %4929 = vmatprep.mubr.msk.f32.mxu0 %vm144_vm2, %v129_v40  ;;  %v112_v48 = vld [vmem:[%s6918_s4 + $0x18] sm:$0xff]  ;;  %v132_v49 = vld [vmem:[%s6914_s0 + $0x28] sm:$0xff] }
  0x53   :  { %5465 = vmatprep.subr.bf16.mxu1 %v6048_v0  ;;  %5473 = vmatpush3.bf16.msra.mxu0 %v6276_v42  ;;  %v6303_v50 = vpack.c.bf16 %v112_v48, %v111_v47  ;;  %v122_v51 = vld [vmem:[#allocation11] sm:$0xff]  ;;  %v123_v52 = vld [vmem:[#allocation11 + $0x8] sm:$0xff]  ;;  %v133_v53 = vld [vmem:[%s6914_s0 + $0x30] sm:$0xff] }
  0x54   :  { %5474 = vmatprep.subr.bf16.mxu0 %v6048_v0  ;;  %v6312_v54 = vpack.c.bf16 %v123_v52, %v122_v51  ;;  %v124_v55 = vld [vmem:[#allocation11 + $0x10] sm:$0xff]  ;;  %v125_v56 = vld [vmem:[#allocation11 + $0x18] sm:$0xff]  ;;  %v118_v59 = vld [vmem:[%s6921_s7] sm:$0xff] }
  0x55   :  { %4947 = vmatmul.mubr.msk.f32.vlgmr.msra.gmra.mrb[0].mxu1 %vm98_vm1, %v6226_v13  ;;  %4930 = vmatmul.mubr.msk.f32.gmra.mrb[2].mxu0 %vm144_vm2, %v130_v41  ;;  %v134_v57 = vld [vmem:[%s6914_s0 + $0x38] sm:$0xff]  ;;  %v119_v60 = vld [vmem:[%s6921_s7 + $0x8] sm:$0xff]  ;;  %v6331_v61 = vpack.c.bf16 %v125_v56, %v124_v55  ;;  %v120_v63 = vld [vmem:[%s6921_s7 + $0x10] sm:$0xff] }
  0x56   :  { %4957 = vmatprep.mubr.msk.f32.mxu1 %vm6049_vm0, %v6050_v1  ;;  %5467 = vmatpush3.bf16.msra.mxu1 %v6265_v38  ;;  %v6339_v62 = vpack.c.bf16 %v119_v60, %v118_v59  ;;  %v121_v2 = vld [vmem:[%s6921_s7 + $0x18] sm:$0xff]  ;;  %v6348_v3 = vld [vmem:[#allocation7] sm:$0xff] }
  0x57   :  { %5468 = vmatprep.subr.bf16.mxu1 %v6048_v0  ;;  %4932 = vmatprep.mubr.msk.f32.mxu0 %vm144_vm2, %v131_v45  ;;  %v6354_v4 = vpack.c.bf16 %v121_v2, %v120_v63  ;;  %v285_v44 = vld [vmem:[#allocation6] sm:$0xff] }
  0x58   :  { %5476 = vmatpush3.bf16.msra.mxu0 %v6303_v50 }
  0x59   :  { %4933 = vmatmul.mubr.msk.f32.gmra.mrb[4].mxu0 %vm144_vm2, %v132_v49  ;;  %5483 = vmatprep.subr.bf16.mxu0 %v6048_v0 }
  0x5a   :  { %5470 = vmatpush3.bf16.msra.mxu1 %v6290_v46  ;;  %4935 = vmatprep.mubr.msk.f32.mxu0 %vm144_vm2, %v133_v53 }
  0x5b   :  { %5477 = vmatprep.subr.bf16.mxu1 %v6048_v0 }
  0x5d   :  { %4958 = vmatmul.mubr.msk.f32.vlgmr.msra.gmra.mrb[2].mxu1 %vm98_vm1, %v6247_v29  ;;  %4936 = vmatmul.mubr.msk.f32.gmra.mrb[6].mxu0 %vm144_vm2, %v134_v57 }
  0x5e   :  { %5479 = vmatpush3.bf16.msra.mxu1 %v6312_v54  ;;  %4968 = vmatprep.mubr.msk.f32.mxu0 %vm6049_vm0, %v6050_v1 }
  0x5f   :  { %5480 = vmatprep.subr.bf16.mxu1 %v6048_v0  ;;  %4979 = vmatprep.mubr.msk.f32.mxu1 %vm6049_vm0, %v6050_v1 }
  0x61   :  { %4969 = vmatmul.mubr.msk.f32.vlgmr.msra.gmra.mrb[8].mxu0 %vm98_vm1, %v6226_v13 }
  0x62   :  { %5482 = vmatpush3.bf16.msra.mxu1 %v6331_v61  ;;  %5485 = vmatpush3.bf16.msra.mxu0 %v6339_v62 }
  0x63   :  { %5489 = vmatprep.subr.bf16.mxu1 %v6048_v0  ;;  %4990 = vmatprep.mubr.msk.f32.mxu0 %vm6049_vm0, %v6050_v1 }
  0x64   :  { %5486 = vmatprep.subr.bf16.mxu0 %v6048_v0 }
  0x65   :  { %4980 = vmatmul.mubr.msk.f32.vlgmr.msra.gmra.mrb[4].mxu1 %vm98_vm1, %v6348_v3 }
  0x66   :  { %5491 = vmatpush3.bf16.msra.mxu1 %v6207_v8  ;;  %5001 = vmatprep.mubr.msk.f32.mxu1 %vm6049_vm0, %v6050_v1 }
  0x67   :  { %5492 = vmatprep.subr.bf16.mxu1 %v6048_v0  ;;  %5488 = vmatpush3.bf16.msra.mxu0 %v6354_v4 }
  0x68   :  { %5495 = vmatprep.subr.bf16.mxu0 %v6048_v0 }
  0x6a   :  { %5494 = vmatpush3.bf16.msra.mxu1 %v6220_v12  ;;  %4991 = vmatmul.mubr.msk.f32.vlgmr.msra.gmra.mrb[10].mxu0 %vm98_vm1, %v6247_v29 }
  0x6b   :  { %5501 = vmatprep.subr.bf16.mxu1 %v6048_v0  ;;  %5497 = vmatpush3.bf16.msra.mxu0 %v6265_v38 }
  0x6c   :  { %5012 = vmatprep.mubr.msk.f32.mxu0 %vm6049_vm0, %v6050_v1  ;;  %5498 = vmatprep.subr.bf16.mxu0 %v6048_v0 }
  0x6f   :  { %5500 = vmatpush3.bf16.msra.mxu0 %v6290_v46 }
  0x70   :  { %5507 = vmatprep.subr.bf16.mxu0 %v6048_v0 }
 0x124   :  { %v6238_v15 = vpop.f32.mrb[0].mxu0 }
 0x125   :  { %v235_v16 = vpop.f32.mrb[1].mxu0 }
 0x126   :  { %v236_v17 = vadd.f32 %v6236_v14, %v235_v16 }
 0x128   :  { %v359_v18 = vpop.f32.mrb[0].mxu1  ;;  %v6386_v9 = vpop.f32.mrb[2].mxu0 }
 0x129   :  { %v363_v19 = vadd.f32 %v359_v18, %v236_v17  ;;  %v4948_v20 = vpop.f32.mrb[1].mxu1  ;;  %v6388_v10 = vpop.f32.mrb[3].mxu0 }
 0x12b   :  { %5753 = vtanh.f32 %v363_v19  ;;  %v4601_v23 = vmul.f32 -1.442695, %v363_v19 }
 0x12c   :  { %v6390_v11 = vpop.f32.mrb[4].mxu0 }
 0x12d   :  { %5755 = vpow2.f32 %v4601_v23  ;;  %v6392_v13 = vpop.f32.mrb[5].mxu0 }
 0x130   :  { %v461_v16 = vpop.f32.mrb[2].mxu1  ;;  %v6394_v18 = vpop.f32.mrb[6].mxu0 }
 0x131   :  { %v4959_v17 = vpop.f32.mrb[3].mxu1  ;;  %v6396_v19 = vpop.f32.mrb[7].mxu0 }
 0x134   :  { %v531_v20 = vpop.f32.mrb[8].mxu0 }
 0x135   :  { %v5754_v21 = vpop.eup %5753 }
 0x136   :  { %377 = vrot.lane.b32.xlu0 %v5754_v21, %s6051_s8  ;;  %v4970_v21 = vpop.f32.mrb[9].mxu0 }
 0x137   :  { %v5756_v24 = vpop.eup %5755 }
 0x138   :  { %v367_v25 = vadd.f32 1.0, %v5756_v24 }
 0x13a   :  { %372 = vrot.lane.b32.xlu0 %v283_v22, %s6051_s8  ;;  %5757 = vrcp.f32 %v367_v25  ;;  %v639_v22 = vpop.f32.mrb[4].mxu1 }
 0x13b   :  { %v4981_v23 = vpop.f32.mrb[5].mxu1 }
 0x13d   :  { %v709_v24 = vpop.f32.mrb[10].mxu0 }
 0x13e   :  { %754 = vrot.lane.b32.xlu0 %v6247_v29, %s6052_s22  ;;  %v4992_v25 = vpop.f32.mrb[11].mxu0  ;;  %v241_v29 = vadd.f32 %v6238_v15, %v6236_v14 }
 0x144   :  { %v6243_v26 = vpop.eup %5757 }
 0x1a8   :  { %v378_v27 = vpop.permute.xlu0 %377 }
 0x1a9   :  { %v380_v28 = vmul.f32 %v6243_v26, %v378_v27 }
 0x1ab   :  { %382 = vrot.lane.b32.xlu1 %v380_v28, %s6051_s8 }
 0x1ac   :  { %v373_v30 = vpop.permute.xlu0 %372 }
 0x1ad   :  { %v375_v31 = vmul.f32 %v6243_v26, %v373_v30 }
 0x1b0   :  { %v755_v34 = vpop.permute.xlu0 %754 }
 0x1b1   :  { %870 = vrot.lane.b32.xlu0 %v755_v34, %s6052_s22  ;;  %v6424_v34 = vld [vmem:[%s6920_s6] ss:$0 sm:$0xff] }
 0x21d   :  { %v383_v32 = vpop.permute.xlu1 %382 }
 0x21e   :  { %v6252_v33 = vadd.f32 %v383_v32, %v375_v31 }
 0x220   :  { %5759 = vtanh.f32 %v6252_v33 }
 0x223   :  { %v871_v5 = vpop.permute.xlu0 %870 }
 0x224   :  { %5013 = vmatmul.mubr.msk.f32.vlgmr.msra.gmra.mrb[12].mxu0 %vm98_vm1, %v871_v5 }
 0x225   :  { %5509 = vmatpush3.bf16.msra.mxu0 %v6312_v54  ;;  %5034 = vmatprep.mubr.msk.f32.mxu0 %vm6049_vm0, %v6050_v1 }
 0x226   :  { %5510 = vmatprep.subr.bf16.mxu0 %v6048_v0 }
 0x229   :  { %5512 = vmatpush3.bf16.msra.mxu0 %v6331_v61 }
 0x22a   :  { %v5760_v58 = vpop.eup %5759  ;;  %5519 = vmatprep.subr.bf16.mxu0 %v6048_v0 }
 0x22b   :  { %388 = vrot.lane.b32.xlu1 %v5760_v58, %s6051_s8 }
 0x29d   :  { %v389_v6 = vpop.permute.xlu1 %388 }
 0x29e   :  { %v391_v7 = vmul.f32 %v6243_v26, %v389_v6 }
 0x2a0   :  { %770 = vrot.lane.b32.xlu1 %v391_v7, %s6052_s22 }
 0x2f7   :  { %v940_v27 = vpop.f32.mrb[12].mxu0 }
 0x2f8   :  { %v5014_v28 = vpop.f32.mrb[13].mxu0 }
 0x312   :  { %v771_v26 = vpop.permute.xlu1 %770 }
 0x313   :  { %5002 = vmatmul.mubr.msk.f32.vlgmr.msra.gmra.mrb[6].mxu1 %vm98_vm1, %v771_v26 }
 0x314   :  { %5503 = vmatpush3.bf16.msra.mxu1 %v6276_v42  ;;  %5023 = vmatprep.mubr.msk.f32.mxu1 %vm6049_vm0, %v6050_v1 }
 0x315   :  { %5504 = vmatprep.subr.bf16.mxu1 %v6048_v0 }
 0x318   :  { %5506 = vmatpush3.bf16.msra.mxu1 %v6303_v50 }
 0x319   :  { %5513 = vmatprep.subr.bf16.mxu1 %v6048_v0 }
 0x31b   :  { %5024 = vmatmul.mubr.msk.f32.vlgmr.msra.gmra.mrb[8].mxu1 %vm98_vm1, %v771_v26 }
 0x31c   :  { %5515 = vmatpush3.bf16.msra.mxu1 %v6339_v62  ;;  %5045 = vmatprep.mubr.msk.f32.mxu1 %vm6049_vm0, %v6050_v1 }
 0x31d   :  { %5516 = vmatprep.subr.bf16.mxu1 %v6048_v0 }
 0x320   :  { %5518 = vmatpush3.bf16.msra.mxu1 %v6354_v4 }
 0x321   :  { %5525 = vmatprep.subr.bf16.mxu1 %v6048_v0 }
 0x323   :  { %5046 = vmatmul.mubr.msk.f32.vlgmr.msra.gmra.mrb[10].mxu1 %vm98_vm1, %v871_v5 }
 0x324   :  { %5527 = vmatpush3.bf16.msra.mxu1 %v6265_v38  ;;  %5067 = vmatprep.mubr.msk.f32.mxu1 %vm6049_vm0, %v6050_v1 }
 0x325   :  { %5528 = vmatprep.subr.bf16.mxu1 %v6048_v0 }
 0x328   :  { %5530 = vmatpush3.bf16.msra.mxu1 %v6290_v46 }
 0x329   :  { %5537 = vmatprep.subr.bf16.mxu1 %v6048_v0 }
 0x3e6   :  { %v840_v30 = vpop.f32.mrb[6].mxu1 }
 0x3e7   :  { %v844_v31 = vadd.f32 %v840_v30, %v241_v29  ;;  %v5003_v32 = vpop.f32.mrb[7].mxu1  ;;  %v246_v30 = vadd.f32 %v6236_v14, %v6388_v10  ;;  %v6496_v10 = vld [vmem:[%s6923_s9] ss:$0 sm:$0xff] }
 0x3e9   :  { %5761 = vtanh.f32 %v844_v31  ;;  %v4611_v45 = vmul.f32 -1.442695, %v844_v31 }
 0x3ee   :  { %v1010_v35 = vpop.f32.mrb[8].mxu1 }
 0x3ef   :  { %v1011_v36 = vadd.f32 %v1010_v35, %v940_v27  ;;  %v5025_v37 = vpop.f32.mrb[9].mxu1 }
 0x3f1   :  { %v1014_v39 = vadd.f32 %v6424_v34, %v1011_v36 }
 0x3f3   :  { %v5762_v40 = vpop.eup %5761  ;;  %5763 = vtanh.f32 %v1014_v39  ;;  %v4614_v47 = vmul.f32 -1.442695, %v1014_v39 }
 0x3f4   :  { %854 = vrot.lane.b32.xlu1 %v5762_v40, %s6051_s8  ;;  %5765 = vpow2.f32 %v4611_v45 }
 0x3f5   :  { %5767 = vpow2.f32 %v4614_v47 }
 0x3f6   :  { %v1180_v41 = vpop.f32.mrb[10].mxu1 }
 0x3f7   :  { %v5047_v15 = vpop.f32.mrb[11].mxu1 }
 0x3fd   :  { %v5764_v43 = vpop.eup %5763 }
 0x3fe   :  { %1024 = vrot.lane.b32.xlu0 %v5764_v43, %s6051_s8  ;;  %v5766_v48 = vpop.eup %5765 }
 0x3ff   :  { %v848_v49 = vadd.f32 1.0, %v5766_v48  ;;  %v5768_v51 = vpop.eup %5767 }
 0x400   :  { %v1018_v52 = vadd.f32 1.0, %v5768_v51 }
 0x401   :  { %5769 = vrcp.f32 %v848_v49 }
 0x402   :  { %550 = vrot.lane.b32.xlu0 %v285_v44, %s6051_s8  ;;  %5771 = vrcp.f32 %v1018_v52 }
 0x406   :  { %762 = vrot.lane.b32.xlu0 %v6348_v3, %s6052_s22 }
 0x40b   :  { %v5770_v53 = vpop.eup %5769 }
 0x40c   :  { %v5772_v57 = vpop.eup %5771  ;;  %v852_v60 = vmul.f32 %v5770_v53, %v6252_v33 }
 0x466   :  { %v855_v55 = vpop.permute.xlu1 %854 }
 0x467   :  { %v857_v56 = vmul.f32 %v5770_v53, %v855_v55 }
 0x469   :  { %859 = vrot.lane.b32.xlu1 %v857_v56, %s6051_s8 }
 0x470   :  { %v1025_v58 = vpop.permute.xlu0 %1024 }
 0x471   :  { %v1027_v59 = vmul.f32 %v5772_v57, %v1025_v58 }
 0x473   :  { %1029 = vrot.lane.b32.xlu1 %v1027_v59, %s6051_s8 }
 0x474   :  { %v551_v3 = vpop.permute.xlu0 %550 }
 0x475   :  { %v1022_v5 = vmul.f32 %v5772_v57, %v551_v3 }
 0x478   :  { %v763_v17 = vpop.permute.xlu0 %762 }
 0x4db   :  { %v860_v63 = vpop.permute.xlu1 %859 }
 0x4dc   :  { %v6435_v2 = vadd.f32 %v860_v63, %v852_v60 }
 0x4de   :  { %5773 = vtanh.f32 %v6435_v2 }
 0x4e5   :  { %v1030_v6 = vpop.permute.xlu1 %1029 }
 0x4e6   :  { %v6438_v7 = vadd.f32 %v1030_v6, %v1022_v5 }
 0x4e8   :  { %v5774_v16 = vpop.eup %5773  ;;  %5775 = vtanh.f32 %v6438_v7 }
 0x4e9   :  { %865 = vrot.lane.b32.xlu1 %v5774_v16, %s6051_s8 }
 0x4ed   :  { %1040 = vrot.lane.b32.xlu1 %v763_v17, %s6052_s22 }
 0x4f2   :  { %v5776_v20 = vpop.eup %5775 }
 0x4f3   :  { %1035 = vrot.lane.b32.xlu0 %v5776_v20, %s6051_s8 }
 0x55b   :  { %v866_v33 = vpop.permute.xlu1 %865 }
 0x55c   :  { %v868_v21 = vmul.f32 %v5770_v53, %v866_v33 }
 0x55e   :  { %1225 = vrot.lane.b32.xlu0 %v868_v21, %s6052_s22 }
 0x55f   :  { %v1041_v22 = vpop.permute.xlu1 %1040 }
 0x560   :  { %5035 = vmatmul.mubr.msk.f32.vlgmr.msra.gmra.mrb[14].mxu0 %vm98_vm1, %v1041_v22 }
 0x561   :  { %5521 = vmatpush3.bf16.msra.mxu0 %v6207_v8  ;;  %5056 = vmatprep.mubr.msk.f32.mxu0 %vm6049_vm0, %v6050_v1 }
 0x562   :  { %1495 = vrot.lane.b32.xlu0 %v763_v17, %s6052_s22  ;;  %5522 = vmatprep.subr.bf16.mxu0 %v6048_v0  ;;  %v287_v17 = vld [vmem:[#allocation8] sm:$0xff] }
 0x565   :  { %v1036_v23 = vpop.permute.xlu0 %1035  ;;  %5524 = vmatpush3.bf16.msra.mxu0 %v6220_v12 }
 0x566   :  { %v1038_v24 = vmul.f32 %v5772_v57, %v1036_v23  ;;  %5531 = vmatprep.subr.bf16.mxu0 %v6048_v0 }
 0x568   :  { %1325 = vrot.lane.b32.xlu1 %v1038_v24, %s6052_s22 }
 0x5d0   :  { %v1226_v25 = vpop.permute.xlu0 %1225 }
 0x5d1   :  { %5057 = vmatmul.mubr.msk.f32.vlgmr.msra.gmra.mrb[16].mxu0 %vm98_vm1, %v1226_v25 }
 0x5d2   :  { %5533 = vmatpush3.bf16.msra.mxu0 %v6276_v42  ;;  %5078 = vmatprep.mubr.msk.f32.mxu0 %vm6049_vm0, %v6050_v1 }
 0x5d3   :  { %5534 = vmatprep.subr.bf16.mxu0 %v6048_v0 }
 0x5d4   :  { %v1496_v27 = vpop.permute.xlu0 %1495 }
 0x5d6   :  { %5536 = vmatpush3.bf16.msra.mxu0 %v6303_v50 }
 0x5d7   :  { %5543 = vmatprep.subr.bf16.mxu0 %v6048_v0 }
 0x5d9   :  { %5079 = vmatmul.mubr.msk.f32.vlgmr.msra.gmra.mrb[18].mxu0 %vm98_vm1, %v1226_v25 }
 0x5da   :  { %v1326_v26 = vpop.permute.xlu1 %1325  ;;  %5545 = vmatpush3.bf16.msra.mxu0 %v6339_v62  ;;  %5100 = vmatprep.mubr.msk.f32.mxu0 %vm6049_vm0, %v6050_v1 }
 0x5db   :  { %5068 = vmatmul.mubr.msk.f32.vlgmr.msra.gmra.mrb[12].mxu1 %vm98_vm1, %v1326_v26  ;;  %5546 = vmatprep.subr.bf16.mxu0 %v6048_v0 }
 0x5dc   :  { %5539 = vmatpush3.bf16.msra.mxu1 %v6312_v54  ;;  %5089 = vmatprep.mubr.msk.f32.mxu1 %vm6049_vm0, %v6050_v1 }
 0x5dd   :  { %5540 = vmatprep.subr.bf16.mxu1 %v6048_v0 }
 0x5de   :  { %5548 = vmatpush3.bf16.msra.mxu0 %v6354_v4 }
 0x5df   :  { %5555 = vmatprep.subr.bf16.mxu0 %v6048_v0 }
 0x5e0   :  { %5542 = vmatpush3.bf16.msra.mxu1 %v6331_v61 }
 0x5e1   :  { %5101 = vmatmul.mubr.msk.f32.vlgmr.msra.gmra.mrb[20].mxu0 %vm98_vm1, %v1326_v26  ;;  %5549 = vmatprep.subr.bf16.mxu1 %v6048_v0 }
 0x5e2   :  { %5557 = vmatpush3.bf16.msra.mxu0 %v6265_v38  ;;  %5122 = vmatprep.mubr.msk.f32.mxu0 %vm6049_vm0, %v6050_v1 }
 0x5e3   :  { %5090 = vmatmul.mubr.msk.f32.vlgmr.msra.gmra.mrb[14].mxu1 %vm98_vm1, %v1496_v27  ;;  %5558 = vmatprep.subr.bf16.mxu0 %v6048_v0 }
 0x5e4   :  { %5551 = vmatpush3.bf16.msra.mxu1 %v6207_v8  ;;  %5111 = vmatprep.mubr.msk.f32.mxu1 %vm6049_vm0, %v6050_v1 }
 0x5e5   :  { %5552 = vmatprep.subr.bf16.mxu1 %v6048_v0 }
 0x5e6   :  { %5560 = vmatpush3.bf16.msra.mxu0 %v6290_v46 }
 0x5e7   :  { %5567 = vmatprep.subr.bf16.mxu0 %v6048_v0 }
 0x5e8   :  { %5554 = vmatpush3.bf16.msra.mxu1 %v6220_v12 }
 0x5e9   :  { %5561 = vmatprep.subr.bf16.mxu1 %v6048_v0 }
 0x633   :  { %v1110_v28 = vpop.f32.mrb[14].mxu0 }
 0x634   :  { %v5036_v29 = vpop.f32.mrb[15].mxu0 }
 0x6a4   :  { %v1295_v31 = vpop.f32.mrb[16].mxu0 }
 0x6a5   :  { %v1299_v32 = vadd.f32 %v1295_v31, %v246_v30  ;;  %v5058_v35 = vpop.f32.mrb[17].mxu0 }
 0x6a7   :  { %5777 = vtanh.f32 %v1299_v32  ;;  %v4619_v55 = vmul.f32 -1.442695, %v1299_v32 }
 0x6ac   :  { %v1465_v36 = vpop.f32.mrb[18].mxu0 }
 0x6ad   :  { %v5080_v37 = vpop.f32.mrb[19].mxu0 }
 0x6ae   :  { %v1395_v39 = vpop.f32.mrb[12].mxu1 }
 0x6af   :  { %v1466_v40 = vadd.f32 %v1465_v36, %v1395_v39  ;;  %v5069_v41 = vpop.f32.mrb[13].mxu1 }
 0x6b1   :  { %v5778_v15 = vpop.eup %5777  ;;  %v1469_v43 = vadd.f32 %v6424_v34, %v1466_v40 }
 0x6b2   :  { %1309 = vrot.lane.b32.xlu1 %v5778_v15, %s6051_s8 }
 0x6b3   :  { %5779 = vtanh.f32 %v1469_v43  ;;  %v4622_v56 = vmul.f32 -1.442695, %v1469_v43 }
 0x6b4   :  { %v1635_v44 = vpop.f32.mrb[20].mxu0 }
 0x6b5   :  { %v5102_v45 = vpop.f32.mrb[21].mxu0 }
 0x6b6   :  { %v1565_v47 = vpop.f32.mrb[14].mxu1 }
 0x6b7   :  { %v1636_v48 = vadd.f32 %v1635_v44, %v1565_v47  ;;  %v5091_v49 = vpop.f32.mrb[15].mxu1 }
 0x6b9   :  { %v1639_v51 = vadd.f32 %v6496_v10, %v1636_v48 }
 0x6bb   :  { %5781 = vtanh.f32 %v1639_v51  ;;  %v4625_v59 = vmul.f32 -1.442695, %v1639_v51  ;;  %v251_v51 = vadd.f32 %v6386_v9, %v6236_v14 }
 0x6bc   :  { %5783 = vpow2.f32 %v4619_v55 }
 0x6bd   :  { %v5780_v52 = vpop.eup %5779  ;;  %5785 = vpow2.f32 %v4622_v56 }
 0x6be   :  { %1479 = vrot.lane.b32.xlu0 %v5780_v52, %s6051_s8 }
 0x6c5   :  { %v5782_v53 = vpop.eup %5781 }
 0x6c6   :  { %1649 = vrot.lane.b32.xlu1 %v5782_v53, %s6051_s8  ;;  %v5784_v57 = vpop.eup %5783 }
 0x6c7   :  { %v1303_v58 = vadd.f32 1.0, %v5784_v57  ;;  %v5786_v60 = vpop.eup %5785 }
 0x6c8   :  { %v1473_v63 = vadd.f32 1.0, %v5786_v60 }
 0x6c9   :  { %5787 = vrcp.f32 %v1303_v58 }
 0x6ca   :  { %5789 = vpow2.f32 %v4625_v59 }
 0x6cb   :  { %5791 = vrcp.f32 %v1473_v63 }
 0x6d3   :  { %v5788_v3 = vpop.eup %5787 }
 0x6d4   :  { %v5790_v16 = vpop.eup %5789  ;;  %v1307_v26 = vmul.f32 %v5788_v3, %v6435_v2 }
 0x6d5   :  { %v1643_v20 = vadd.f32 1.0, %v5790_v16  ;;  %v5792_v33 = vpop.eup %5791 }
 0x6d6   :  { %v1477_v29 = vmul.f32 %v5792_v33, %v6438_v7 }
 0x6d7   :  { %5793 = vrcp.f32 %v1643_v20 }
 0x6e1   :  { %v5794_v23 = vpop.eup %5793 }
 0x724   :  { %v1310_v5 = vpop.permute.xlu1 %1309 }
 0x725   :  { %v1312_v6 = vmul.f32 %v5788_v3, %v1310_v5 }
 0x727   :  { %1314 = vrot.lane.b32.xlu0 %v1312_v6, %s6051_s8 }
 0x72b   :  { %728 = vrot.lane.b32.xlu0 %v287_v17, %s6051_s8 }
 0x730   :  { %v1480_v21 = vpop.permute.xlu0 %1479 }
 0x731   :  { %v1482_v22 = vmul.f32 %v5792_v33, %v1480_v21 }
 0x733   :  { %1484 = vrot.lane.b32.xlu1 %v1482_v22, %s6051_s8 }
 0x738   :  { %v1650_v24 = vpop.permute.xlu1 %1649 }
 0x739   :  { %v1652_v25 = vmul.f32 %v5794_v23, %v1650_v24 }
 0x73b   :  { %1654 = vrot.lane.b32.xlu1 %v1652_v25, %s6051_s8 }
 0x799   :  { %v1315_v27 = vpop.permute.xlu0 %1314 }
 0x79a   :  { %v6506_v28 = vadd.f32 %v1315_v27, %v1307_v26 }
 0x79c   :  { %5795 = vtanh.f32 %v6506_v28 }
 0x79d   :  { %v729_v35 = vpop.permute.xlu0 %728 }
 0x79e   :  { %v1647_v36 = vmul.f32 %v5794_v23, %v729_v35 }
 0x7a5   :  { %v1485_v30 = vpop.permute.xlu1 %1484 }
 0x7a6   :  { %v5796_v31 = vpop.eup %5795  ;;  %v6510_v32 = vadd.f32 %v1485_v30, %v1477_v29 }
 0x7a7   :  { %1320 = vrot.lane.b32.xlu0 %v5796_v31, %s6051_s8 }
 0x7a8   :  { %5797 = vtanh.f32 %v6510_v32 }
 0x7ad   :  { %v1655_v37 = vpop.permute.xlu1 %1654 }
 0x7ae   :  { %v6514_v39 = vadd.f32 %v1655_v37, %v1647_v36 }
 0x7b0   :  { %5799 = vtanh.f32 %v6514_v39 }
 0x7b2   :  { %v5798_v2 = vpop.eup %5797 }
 0x7b3   :  { %1490 = vrot.lane.b32.xlu1 %v5798_v2, %s6051_s8 }
 0x7ba   :  { %v5800_v40 = vpop.eup %5799 }
 0x7bb   :  { %1660 = vrot.lane.b32.xlu0 %v5800_v40, %s6051_s8 }
 0x819   :  { %v1321_v7 = vpop.permute.xlu0 %1320 }
 0x81a   :  { %v1323_v41 = vmul.f32 %v5788_v3, %v1321_v7 }
 0x81c   :  { %1680 = vrot.lane.b32.xlu1 %v1323_v41, %s6052_s22 }
 0x825   :  { %v1491_v15 = vpop.permute.xlu1 %1490 }
 0x826   :  { %v1493_v43 = vmul.f32 %v5792_v33, %v1491_v15 }
 0x828   :  { %1780 = vrot.lane.b32.xlu0 %v1493_v43, %s6052_s22 }
 0x82d   :  { %v1661_v44 = vpop.permute.xlu0 %1660 }
 0x82e   :  { %v1663_v45 = vmul.f32 %v5794_v23, %v1661_v44 }
 0x830   :  { %1950 = vrot.lane.b32.xlu1 %v1663_v45, %s6052_s22 }
 0x88e   :  { %v1681_v47 = vpop.permute.xlu1 %1680 }
 0x88f   :  { %5112 = vmatmul.mubr.msk.f32.vlgmr.msra.gmra.mrb[16].mxu1 %vm98_vm1, %v1681_v47 }
 0x890   :  { %5563 = vmatpush3.bf16.msra.mxu1 %v6276_v42  ;;  %5133 = vmatprep.mubr.msk.f32.mxu1 %vm6049_vm0, %v6050_v1 }
 0x891   :  { %5564 = vmatprep.subr.bf16.mxu1 %v6048_v0 }
 0x894   :  { %5566 = vmatpush3.bf16.msra.mxu1 %v6303_v50 }
 0x895   :  { %5573 = vmatprep.subr.bf16.mxu1 %v6048_v0 }
 0x897   :  { %5134 = vmatmul.mubr.msk.f32.vlgmr.msra.gmra.mrb[18].mxu1 %vm98_vm1, %v1681_v47 }
 0x898   :  { %5575 = vmatpush3.bf16.msra.mxu1 %v6339_v62  ;;  %5155 = vmatprep.mubr.msk.f32.mxu1 %vm6049_vm0, %v6050_v1 }
 0x899   :  { %5576 = vmatprep.subr.bf16.mxu1 %v6048_v0 }
 0x89a   :  { %v1781_v48 = vpop.permute.xlu0 %1780 }
 0x89b   :  { %5123 = vmatmul.mubr.msk.f32.vlgmr.msra.gmra.mrb[22].mxu0 %vm98_vm1, %v1781_v48 }
 0x89c   :  { %5569 = vmatpush3.bf16.msra.mxu0 %v6312_v54  ;;  %5578 = vmatpush3.bf16.msra.mxu1 %v6354_v4 }
 0x89d   :  { %5570 = vmatprep.subr.bf16.mxu0 %v6048_v0  ;;  %5144 = vmatprep.mubr.msk.f32.mxu0 %vm6049_vm0, %v6050_v1 }
 0x89e   :  { %5585 = vmatprep.subr.bf16.mxu1 %v6048_v0 }
 0x89f   :  { %5156 = vmatmul.mubr.msk.f32.vlgmr.msra.gmra.mrb[20].mxu1 %vm98_vm1, %v1781_v48 }
 0x8a0   :  { %5572 = vmatpush3.bf16.msra.mxu0 %v6331_v61  ;;  %5587 = vmatpush3.bf16.msra.mxu1 %v6265_v38 }
 0x8a1   :  { %5579 = vmatprep.subr.bf16.mxu0 %v6048_v0  ;;  %5588 = vmatprep.subr.bf16.mxu1 %v6048_v0 }
 0x8a2   :  { %v1951_v49 = vpop.permute.xlu1 %1950  ;;  %5177 = vmatprep.mubr.msk.f32.mxu1 %vm6049_vm0, %v6050_v1 }
 0x8a3   :  { %5145 = vmatmul.mubr.msk.f32.vlgmr.msra.gmra.mrb[24].mxu0 %vm98_vm1, %v1951_v49 }
 0x8a4   :  { %5581 = vmatpush3.bf16.msra.mxu0 %v6207_v8  ;;  %5166 = vmatprep.mubr.msk.f32.mxu0 %vm6049_vm0, %v6050_v1 }
 0x8a5   :  { %5582 = vmatprep.subr.bf16.mxu0 %v6048_v0  ;;  %5590 = vmatpush3.bf16.msra.mxu1 %v6290_v46 }
 0x8a6   :  { %5597 = vmatprep.subr.bf16.mxu1 %v6048_v0 }
 0x8a8   :  { %5584 = vmatpush3.bf16.msra.mxu0 %v6220_v12 }
 0x8a9   :  { %5591 = vmatprep.subr.bf16.mxu0 %v6048_v0 }
 0x962   :  { %v1750_v52 = vpop.f32.mrb[16].mxu1 }
 0x963   :  { %v1754_v53 = vadd.f32 %v1750_v52, %v251_v51  ;;  %v5113_v55 = vpop.f32.mrb[17].mxu1 }
 0x965   :  { %5801 = vtanh.f32 %v1754_v53  ;;  %v4627_v22 = vmul.f32 -1.442695, %v1754_v53 }
 0x96a   :  { %v1920_v56 = vpop.f32.mrb[18].mxu1 }
 0x96b   :  { %v5135_v57 = vpop.f32.mrb[19].mxu1 }
 0x96e   :  { %v1850_v58 = vpop.f32.mrb[22].mxu0 }
 0x96f   :  { %v5802_v59 = vpop.eup %5801  ;;  %v1921_v60 = vadd.f32 %v1920_v56, %v1850_v58  ;;  %v5124_v63 = vpop.f32.mrb[23].mxu0 }
 0x970   :  { %1764 = vrot.lane.b32.xlu0 %v5802_v59, %s6051_s8 }
 0x971   :  { %v1924_v3 = vadd.f32 %v6424_v34, %v1921_v60 }
 0x972   :  { %v2090_v5 = vpop.f32.mrb[20].mxu1 }
 0x973   :  { %5803 = vtanh.f32 %v1924_v3  ;;  %v5157_v6 = vpop.f32.mrb[21].mxu1  ;;  %v4630_v24 = vmul.f32 -1.442695, %v1924_v3 }
 0x976   :  { %v2020_v16 = vpop.f32.mrb[24].mxu0 }
 0x977   :  { %v2091_v17 = vadd.f32 %v2090_v5, %v2020_v16  ;;  %v5146_v9 = vpop.f32.mrb[25].mxu0  ;;  %v256_v16 = vadd.f32 %v6236_v14, %v6392_v13 }
 0x979   :  { %v2094_v20 = vadd.f32 %v6496_v10, %v2091_v17 }
 0x97b   :  { %5805 = vtanh.f32 %v2094_v20  ;;  %v4633_v26 = vmul.f32 -1.442695, %v2094_v20 }
 0x97c   :  { %5807 = vpow2.f32 %v4627_v22 }
 0x97d   :  { %v5804_v33 = vpop.eup %5803  ;;  %5809 = vpow2.f32 %v4630_v24 }
 0x97e   :  { %1934 = vrot.lane.b32.xlu1 %v5804_v33, %s6051_s8 }
 0x985   :  { %v5806_v21 = vpop.eup %5805 }
 0x986   :  { %2104 = vrot.lane.b32.xlu0 %v5806_v21, %s6051_s8  ;;  %v5808_v23 = vpop.eup %5807 }
 0x987   :  { %v1758_v25 = vadd.f32 1.0, %v5808_v23  ;;  %v5810_v27 = vpop.eup %5809 }
 0x988   :  { %v1928_v30 = vadd.f32 1.0, %v5810_v27 }
 0x989   :  { %5811 = vrcp.f32 %v1758_v25 }
 0x98a   :  { %5813 = vpow2.f32 %v4633_v26 }
 0x98b   :  { %5815 = vrcp.f32 %v1928_v30 }
 0x993   :  { %v5812_v29 = vpop.eup %5811 }
 0x994   :  { %v5814_v36 = vpop.eup %5813  ;;  %v1762_v44 = vmul.f32 %v5812_v29, %v6506_v28 }
 0x995   :  { %v2098_v37 = vadd.f32 1.0, %v5814_v36  ;;  %v5816_v2 = vpop.eup %5815 }
 0x996   :  { %v1932_v49 = vmul.f32 %v5816_v2, %v6510_v32 }
 0x997   :  { %5817 = vrcp.f32 %v2098_v37 }
 0x9a1   :  { %v5818_v41 = vpop.eup %5817 }
 0x9a2   :  { %v2102_v53 = vmul.f32 %v5818_v41, %v6514_v39 }
 0x9e2   :  { %v1765_v31 = vpop.permute.xlu0 %1764 }
 0x9e3   :  { %v1767_v35 = vmul.f32 %v5812_v29, %v1765_v31 }
 0x9e5   :  { %1769 = vrot.lane.b32.xlu1 %v1767_v35, %s6051_s8 }
 0x9f0   :  { %v1935_v40 = vpop.permute.xlu1 %1934 }
 0x9f1   :  { %v1937_v7 = vmul.f32 %v5816_v2, %v1935_v40 }
 0x9f3   :  { %1939 = vrot.lane.b32.xlu0 %v1937_v7, %s6051_s8 }
 0x9f8   :  { %v2105_v15 = vpop.permute.xlu0 %2104 }
 0x9f9   :  { %v2107_v43 = vmul.f32 %v5818_v41, %v2105_v15 }
 0x9fb   :  { %2109 = vrot.lane.b32.xlu1 %v2107_v43, %s6051_s8 }
 0xa57   :  { %v1770_v45 = vpop.permute.xlu1 %1769 }
 0xa58   :  { %v6568_v47 = vadd.f32 %v1770_v45, %v1762_v44 }
 0xa5a   :  { %5819 = vtanh.f32 %v6568_v47 }
 0xa64   :  { %v5820_v48 = vpop.eup %5819 }
 0xa65   :  { %v1940_v51 = vpop.permute.xlu0 %1939  ;;  %1775 = vrot.lane.b32.xlu0 %v5820_v48, %s6051_s8 }
 0xa66   :  { %v6573_v52 = vadd.f32 %v1940_v51, %v1932_v49 }
 0xa68   :  { %5821 = vtanh.f32 %v6573_v52 }
 0xa6d   :  { %v2110_v55 = vpop.permute.xlu1 %2109 }
 0xa6e   :  { %v6577_v56 = vadd.f32 %v2110_v55, %v2102_v53 }
 0xa70   :  { %5823 = vtanh.f32 %v6577_v56 }
 0xa72   :  { %v5822_v28 = vpop.eup %5821 }
 0xa73   :  { %1945 = vrot.lane.b32.xlu1 %v5822_v28, %s6051_s8 }
 0xa7a   :  { %v5824_v57 = vpop.eup %5823 }
 0xa7b   :  { %2115 = vrot.lane.b32.xlu0 %v5824_v57, %s6051_s8 }
 0xad7   :  { %v1776_v32 = vpop.permute.xlu0 %1775 }
 0xad8   :  { %v1778_v58 = vmul.f32 %v5812_v29, %v1776_v32 }
 0xada   :  { %2135 = vrot.lane.b32.xlu1 %v1778_v58, %s6052_s22 }
 0xae5   :  { %v1946_v59 = vpop.permute.xlu1 %1945 }
 0xae6   :  { %v1948_v60 = vmul.f32 %v5816_v2, %v1946_v59 }
 0xae8   :  { %2235 = vrot.lane.b32.xlu0 %v1948_v60, %s6052_s22 }
 0xaed   :  { %v2116_v39 = vpop.permute.xlu0 %2115 }
 0xaee   :  { %v2118_v63 = vmul.f32 %v5818_v41, %v2116_v39 }
 0xaf0   :  { %2405 = vrot.lane.b32.xlu1 %v2118_v63, %s6052_s22 }
 0xb4c   :  { %v2136_v3 = vpop.permute.xlu1 %2135 }
 0xb4d   :  { %5167 = vmatmul.mubr.msk.f32.vlgmr.msra.gmra.mrb[26].mxu0 %vm98_vm1, %v2136_v3 }
 0xb4e   :  { %5593 = vmatpush3.bf16.msra.mxu0 %v6276_v42  ;;  %5188 = vmatprep.mubr.msk.f32.mxu0 %vm6049_vm0, %v6050_v1 }
 0xb4f   :  { %5594 = vmatprep.subr.bf16.mxu0 %v6048_v0 }
 0xb52   :  { %5596 = vmatpush3.bf16.msra.mxu0 %v6303_v50 }
 0xb53   :  { %5603 = vmatprep.subr.bf16.mxu0 %v6048_v0 }
 0xb55   :  { %5189 = vmatmul.mubr.msk.f32.vlgmr.msra.gmra.mrb[28].mxu0 %vm98_vm1, %v2136_v3 }
 0xb56   :  { %5605 = vmatpush3.bf16.msra.mxu0 %v6339_v62  ;;  %5210 = vmatprep.mubr.msk.f32.mxu0 %vm6049_vm0, %v6050_v1 }
 0xb57   :  { %5606 = vmatprep.subr.bf16.mxu0 %v6048_v0 }
 0xb5a   :  { %5608 = vmatpush3.bf16.msra.mxu0 %v6354_v4  ;;  %v2236_v5 = vpop.permute.xlu0 %2235 }
 0xb5b   :  { %5178 = vmatmul.mubr.msk.f32.vlgmr.msra.gmra.mrb[22].mxu1 %vm98_vm1, %v2236_v5  ;;  %5615 = vmatprep.subr.bf16.mxu0 %v6048_v0 }
 0xb5c   :  { %5599 = vmatpush3.bf16.msra.mxu1 %v6312_v54  ;;  %5199 = vmatprep.mubr.msk.f32.mxu1 %vm6049_vm0, %v6050_v1 }
 0xb5d   :  { %5211 = vmatmul.mubr.msk.f32.vlgmr.msra.gmra.mrb[30].mxu0 %vm98_vm1, %v2236_v5  ;;  %5600 = vmatprep.subr.bf16.mxu1 %v6048_v0 }
 0xb5e   :  { %5617 = vmatpush3.bf16.msra.mxu0 %v6265_v38  ;;  %5232 = vmatprep.mubr.msk.f32.mxu0 %vm6049_vm0, %v6050_v1 }
 0xb5f   :  { %5618 = vmatprep.subr.bf16.mxu0 %v6048_v0 }
 0xb60   :  { %5602 = vmatpush3.bf16.msra.mxu1 %v6331_v61 }
 0xb61   :  { %5609 = vmatprep.subr.bf16.mxu1 %v6048_v0 }
 0xb62   :  { %v2406_v6 = vpop.permute.xlu1 %2405  ;;  %5620 = vmatpush3.bf16.msra.mxu0 %v6290_v46 }
 0xb63   :  { %5200 = vmatmul.mubr.msk.f32.vlgmr.msra.gmra.mrb[24].mxu1 %vm98_vm1, %v2406_v6  ;;  %5627 = vmatprep.subr.bf16.mxu0 %v6048_v0 }
 0xb64   :  { %5611 = vmatpush3.bf16.msra.mxu1 %v6207_v8  ;;  %5221 = vmatprep.mubr.msk.f32.mxu1 %vm6049_vm0, %v6050_v1 }
 0xb65   :  { %5612 = vmatprep.subr.bf16.mxu1 %v6048_v0 }
 0xb68   :  { %5614 = vmatpush3.bf16.msra.mxu1 %v6220_v12 }
 0xb69   :  { %5621 = vmatprep.subr.bf16.mxu1 %v6048_v0 }
 0xc20   :  { %v2205_v17 = vpop.f32.mrb[26].mxu0 }
 0xc21   :  { %v2209_v9 = vadd.f32 %v2205_v17, %v256_v16  ;;  %v5168_v20 = vpop.f32.mrb[27].mxu0 }
 0xc23   :  { %5825 = vtanh.f32 %v2209_v9  ;;  %v4635_v37 = vmul.f32 -1.442695, %v2209_v9 }
 0xc28   :  { %v2375_v33 = vpop.f32.mrb[28].mxu0 }
 0xc29   :  { %v5190_v21 = vpop.f32.mrb[29].mxu0 }
 0xc2d   :  { %v5826_v22 = vpop.eup %5825 }
 0xc2e   :  { %v2305_v23 = vpop.f32.mrb[22].mxu1  ;;  %2219 = vrot.lane.b32.xlu0 %v5826_v22, %s6051_s8 }
 0xc2f   :  { %v2376_v24 = vadd.f32 %v2375_v33, %v2305_v23  ;;  %v5179_v25 = vpop.f32.mrb[23].mxu1 }
 0xc30   :  { %v2545_v26 = vpop.f32.mrb[30].mxu0 }
 0xc31   :  { %v2379_v27 = vadd.f32 %v6424_v34, %v2376_v24  ;;  %v5212_v29 = vpop.f32.mrb[31].mxu0 }
 0xc33   :  { %5827 = vtanh.f32 %v2379_v27  ;;  %v4638_v40 = vmul.f32 -1.442695, %v2379_v27  ;;  %v6686_v27 = vld [vmem:[%s6917_s3] ss:$0 sm:$0xff] }
 0xc34   :  { %v261_v29 = vadd.f32 %v6686_v27, %v6390_v11 }
 0xc36   :  { %v2475_v30 = vpop.f32.mrb[24].mxu1 }
 0xc37   :  { %v2546_v31 = vadd.f32 %v2545_v26, %v2475_v30  ;;  %v5201_v14 = vpop.f32.mrb[25].mxu1 }
 0xc39   :  { %v2549_v13 = vadd.f32 %v6496_v10, %v2546_v31 }
 0xc3b   :  { %5829 = vtanh.f32 %v2549_v13  ;;  %v4641_v41 = vmul.f32 -1.442695, %v2549_v13 }
 0xc3c   :  { %5831 = vpow2.f32 %v4635_v37 }
 0xc3d   :  { %v5828_v35 = vpop.eup %5827  ;;  %5833 = vpow2.f32 %v4638_v40 }
 0xc3e   :  { %2389 = vrot.lane.b32.xlu1 %v5828_v35, %s6051_s8 }
 0xc45   :  { %v5830_v36 = vpop.eup %5829 }
 0xc46   :  { %2559 = vrot.lane.b32.xlu0 %v5830_v36, %s6051_s8  ;;  %v5832_v2 = vpop.eup %5831 }
 0xc47   :  { %v2213_v7 = vadd.f32 1.0, %v5832_v2  ;;  %v5834_v15 = vpop.eup %5833 }
 0xc48   :  { %v2383_v48 = vadd.f32 1.0, %v5834_v15 }
 0xc49   :  { %5835 = vrcp.f32 %v2213_v7 }
 0xc4a   :  { %5837 = vpow2.f32 %v4641_v41 }
 0xc4b   :  { %5839 = vrcp.f32 %v2383_v48 }
 0xc53   :  { %v5836_v43 = vpop.eup %5835 }
 0xc54   :  { %v5838_v49 = vpop.eup %5837  ;;  %v2217_v59 = vmul.f32 %v5836_v43, %v6568_v47 }
 0xc55   :  { %v2553_v51 = vadd.f32 1.0, %v5838_v49  ;;  %v5840_v53 = vpop.eup %5839 }
 0xc56   :  { %v2387_v3 = vmul.f32 %v5840_v53, %v6573_v52 }
 0xc57   :  { %5841 = vrcp.f32 %v2553_v51 }
 0xc61   :  { %v5842_v57 = vpop.eup %5841 }
 0xc62   :  { %v2557_v16 = vmul.f32 %v5842_v57, %v6577_v56 }
 0xca0   :  { %v2220_v44 = vpop.permute.xlu0 %2219 }
 0xca1   :  { %v2222_v45 = vmul.f32 %v5836_v43, %v2220_v44 }
 0xca3   :  { %2224 = vrot.lane.b32.xlu1 %v2222_v45, %s6051_s8 }
 0xcb0   :  { %v2390_v55 = vpop.permute.xlu1 %2389 }
 0xcb1   :  { %v2392_v28 = vmul.f32 %v5840_v53, %v2390_v55 }
 0xcb3   :  { %2394 = vrot.lane.b32.xlu0 %v2392_v28, %s6051_s8 }
 0xcb8   :  { %v2560_v32 = vpop.permute.xlu0 %2559 }
 0xcb9   :  { %v2562_v58 = vmul.f32 %v5842_v57, %v2560_v32 }
 0xcbb   :  { %2564 = vrot.lane.b32.xlu1 %v2562_v58, %s6051_s8 }
 0xd15   :  { %v2225_v60 = vpop.permute.xlu1 %2224 }
 0xd16   :  { %v6631_v39 = vadd.f32 %v2225_v60, %v2217_v59 }
 0xd18   :  { %5843 = vtanh.f32 %v6631_v39 }
 0xd22   :  { %v5844_v63 = vpop.eup %5843 }
 0xd23   :  { %2230 = vrot.lane.b32.xlu0 %v5844_v63, %s6051_s8 }
 0xd25   :  { %v2395_v5 = vpop.permute.xlu0 %2394 }
 0xd26   :  { %v6636_v6 = vadd.f32 %v2395_v5, %v2387_v3 }
 0xd28   :  { %5845 = vtanh.f32 %v6636_v6 }
 0xd2d   :  { %v2565_v17 = vpop.permute.xlu1 %2564 }
 0xd2e   :  { %v6640_v9 = vadd.f32 %v2565_v17, %v2557_v16 }
 0xd30   :  { %5847 = vtanh.f32 %v6640_v9 }
 0xd32   :  { %v5846_v47 = vpop.eup %5845 }
 0xd33   :  { %2400 = vrot.lane.b32.xlu1 %v5846_v47, %s6051_s8 }
 0xd3a   :  { %v5848_v20 = vpop.eup %5847 }
 0xd3b   :  { %2570 = vrot.lane.b32.xlu0 %v5848_v20, %s6051_s8 }
 0xd95   :  { %v2231_v33 = vpop.permute.xlu0 %2230 }
 0xd96   :  { %v2233_v52 = vmul.f32 %v5836_v43, %v2231_v33 }
 0xd98   :  { %2590 = vrot.lane.b32.xlu1 %v2233_v52, %s6052_s22 }
 0xda5   :  { %v2401_v21 = vpop.permute.xlu1 %2400 }
 0xda6   :  { %v2403_v22 = vmul.f32 %v5840_v53, %v2401_v21 }
 0xda8   :  { %2690 = vrot.lane.b32.xlu0 %v2403_v22, %s6052_s22 }
 0xdad   :  { %v2571_v56 = vpop.permute.xlu0 %2570 }
 0xdae   :  { %v2573_v23 = vmul.f32 %v5842_v57, %v2571_v56 }
 0xdb0   :  { %2860 = vrot.lane.b32.xlu1 %v2573_v23, %s6052_s22 }
 0xe0a   :  { %v2591_v24 = vpop.permute.xlu1 %2590 }
 0xe0b   :  { %5222 = vmatmul.mubr.msk.f32.vlgmr.msra.gmra.mrb[26].mxu1 %vm98_vm1, %v2591_v24 }
 0xe0c   :  { %5623 = vmatpush3.bf16.msra.mxu1 %v6276_v42  ;;  %5243 = vmatprep.mubr.msk.f32.mxu1 %vm6049_vm0, %v6050_v1 }
 0xe0d   :  { %5624 = vmatprep.subr.bf16.mxu1 %v6048_v0 }
 0xe10   :  { %5626 = vmatpush3.bf16.msra.mxu1 %v6303_v50 }
 0xe11   :  { %5633 = vmatprep.subr.bf16.mxu1 %v6048_v0 }
 0xe13   :  { %5244 = vmatmul.mubr.msk.f32.vlgmr.msra.gmra.mrb[28].mxu1 %vm98_vm1, %v2591_v24 }
 0xe14   :  { %5635 = vmatpush3.bf16.msra.mxu1 %v6339_v62  ;;  %5265 = vmatprep.mubr.msk.f32.mxu1 %vm6049_vm0, %v6050_v1 }
 0xe15   :  { %5636 = vmatprep.subr.bf16.mxu1 %v6048_v0 }
 0xe18   :  { %5638 = vmatpush3.bf16.msra.mxu1 %v6354_v4 }
 0xe19   :  { %5645 = vmatprep.subr.bf16.mxu1 %v6048_v0 }
 0xe1a   :  { %v2691_v25 = vpop.permute.xlu0 %2690 }
 0xe1b   :  { %5233 = vmatmul.mubr.msk.f32.vlgmr.msra.gmra.mrb[32].mxu0 %vm98_vm1, %v2691_v25  ;;  %5266 = vmatmul.mubr.msk.f32.vlgmr.msra.gmra.mrb[30].mxu1 %vm98_vm1, %v2691_v25 }
 0xe1c   :  { %5629 = vmatpush3.bf16.msra.mxu0 %v6312_v54  ;;  %5254 = vmatprep.mubr.msk.f32.mxu0 %vm6049_vm0, %v6050_v1 }
 0xe1d   :  { %5630 = vmatprep.subr.bf16.mxu0 %v6048_v0  ;;  %5647 = vmatpush3.bf16.msra.mxu1 %v6265_v38 }
 0xe1e   :  { %5648 = vmatprep.subr.bf16.mxu1 %v6048_v0  ;;  %5287 = vmatprep.mubr.msk.f32.mxu1 %vm6049_vm0, %v6050_v1 }
 0xe20   :  { %5632 = vmatpush3.bf16.msra.mxu0 %v6331_v61 }
 0xe21   :  { %5639 = vmatprep.subr.bf16.mxu0 %v6048_v0  ;;  %5650 = vmatpush3.bf16.msra.mxu1 %v6290_v46 }
 0xe22   :  { %v2861_v26 = vpop.permute.xlu1 %2860  ;;  %5657 = vmatprep.subr.bf16.mxu1 %v6048_v0 }
 0xe23   :  { %5255 = vmatmul.mubr.msk.f32.vlgmr.msra.gmra.mrb[34].mxu0 %vm98_vm1, %v2861_v26 }
 0xe24   :  { %5641 = vmatpush3.bf16.msra.mxu0 %v6207_v8  ;;  %5276 = vmatprep.mubr.msk.f32.mxu0 %vm6049_vm0, %v6050_v1 }
 0xe25   :  { %5642 = vmatprep.subr.bf16.mxu0 %v6048_v0 }
 0xe28   :  { %5644 = vmatpush3.bf16.msra.mxu0 %v6220_v12 }
 0xe29   :  { %5651 = vmatprep.subr.bf16.mxu0 %v6048_v0 }
 0xede   :  { %v2660_v30 = vpop.f32.mrb[26].mxu1 }
 0xedf   :  { %v2664_v31 = vadd.f32 %v2660_v30, %v261_v29  ;;  %v5223_v14 = vpop.f32.mrb[27].mxu1 }
 0xee1   :  { %5849 = vtanh.f32 %v2664_v31  ;;  %v4643_v51 = vmul.f32 -1.442695, %v2664_v31 }
 0xee6   :  { %v2830_v13 = vpop.f32.mrb[28].mxu1 }
 0xee7   :  { %v5245_v35 = vpop.f32.mrb[29].mxu1 }
 0xeeb   :  { %v5850_v36 = vpop.eup %5849 }
 0xeec   :  { %2674 = vrot.lane.b32.xlu0 %v5850_v36, %s6051_s8 }
 0xeee   :  { %v2760_v37 = vpop.f32.mrb[32].mxu0  ;;  %v3000_v2 = vpop.f32.mrb[30].mxu1 }
 0xeef   :  { %v2831_v40 = vadd.f32 %v2830_v13, %v2760_v37  ;;  %v5234_v7 = vpop.f32.mrb[33].mxu0  ;;  %v5267_v41 = vpop.f32.mrb[31].mxu1 }
 0xef0   :  { %v266_v7 = vadd.f32 %v6686_v27, %v6396_v19 }
 0xef1   :  { %v2834_v15 = vadd.f32 %v6424_v34, %v2831_v40 }
 0xef3   :  { %5851 = vtanh.f32 %v2834_v15  ;;  %v4646_v28 = vmul.f32 -1.442695, %v2834_v15 }
 0xef6   :  { %v2930_v43 = vpop.f32.mrb[34].mxu0 }
 0xef7   :  { %v3001_v44 = vadd.f32 %v3000_v2, %v2930_v43  ;;  %v5256_v11 = vpop.f32.mrb[35].mxu0 }
 0xef9   :  { %v3004_v45 = vadd.f32 %v6496_v10, %v3001_v44 }
 0xefb   :  { %5853 = vtanh.f32 %v3004_v45  ;;  %v4649_v34 = vmul.f32 -1.442695, %v3004_v45 }
 0xefc   :  { %5855 = vpow2.f32 %v4643_v51 }
 0xefd   :  { %v5852_v48 = vpop.eup %5851 }
 0xefe   :  { %2844 = vrot.lane.b32.xlu1 %v5852_v48, %s6051_s8 }
 0xf05   :  { %v5854_v49 = vpop.eup %5853 }
 0xf06   :  { %3014 = vrot.lane.b32.xlu0 %v5854_v49, %s6051_s8  ;;  %v5856_v53 = vpop.eup %5855 }
 0xf07   :  { %v2668_v55 = vadd.f32 1.0, %v5856_v53 }
 0xf09   :  { %5857 = vrcp.f32 %v2668_v55 }
 0xf0a   :  { %5859 = vpow2.f32 %v4646_v28 }
 0xf0b   :  { %5861 = vpow2.f32 %v4649_v34 }
 0xf13   :  { %v5858_v57 = vpop.eup %5857 }
 0xf14   :  { %v5860_v58 = vpop.eup %5859  ;;  %v2672_v52 = vmul.f32 %v5858_v57, %v6631_v39 }
 0xf15   :  { %v2838_v60 = vadd.f32 1.0, %v5860_v58  ;;  %v5862_v63 = vpop.eup %5861 }
 0xf16   :  { %v3008_v3 = vadd.f32 1.0, %v5862_v63 }
 0xf17   :  { %5863 = vrcp.f32 %v2838_v60 }
 0xf18   :  { %5865 = vrcp.f32 %v3008_v3 }
 0xf21   :  { %v5864_v5 = vpop.eup %5863 }
 0xf22   :  { %v5866_v47 = vpop.eup %5865  ;;  %v2842_v23 = vmul.f32 %v5864_v5, %v6636_v6 }
 0xf23   :  { %v3012_v26 = vmul.f32 %v5866_v47, %v6640_v9 }
 0xf5e   :  { %v2675_v32 = vpop.permute.xlu0 %2674 }
 0xf5f   :  { %v2677_v59 = vmul.f32 %v5858_v57, %v2675_v32 }
 0xf61   :  { %2679 = vrot.lane.b32.xlu1 %v2677_v59, %s6051_s8 }
 0xf70   :  { %v2845_v16 = vpop.permute.xlu1 %2844 }
 0xf71   :  { %v2847_v17 = vmul.f32 %v5864_v5, %v2845_v16 }
 0xf73   :  { %2849 = vrot.lane.b32.xlu0 %v2847_v17, %s6051_s8 }
 0xf78   :  { %v3015_v20 = vpop.permute.xlu0 %3014 }
 0xf79   :  { %v3017_v33 = vmul.f32 %v5866_v47, %v3015_v20 }
 0xf7b   :  { %3019 = vrot.lane.b32.xlu1 %v3017_v33, %s6051_s8 }
 0xfd3   :  { %v2680_v21 = vpop.permute.xlu1 %2679 }
 0xfd4   :  { %v6699_v22 = vadd.f32 %v2680_v21, %v2672_v52 }
 0xfd6   :  { %5867 = vtanh.f32 %v6699_v22 }
 0xfe0   :  { %v5868_v56 = vpop.eup %5867 }
 0xfe1   :  { %2685 = vrot.lane.b32.xlu0 %v5868_v56, %s6051_s8 }
 0xfe5   :  { %v2850_v24 = vpop.permute.xlu0 %2849 }
 0xfe6   :  { %v6704_v25 = vadd.f32 %v2850_v24, %v2842_v23 }
 0xfe8   :  { %5869 = vtanh.f32 %v6704_v25 }
 0xfed   :  { %v3020_v29 = vpop.permute.xlu1 %3019 }
 0xfee   :  { %v6708_v30 = vadd.f32 %v3020_v29, %v3012_v26 }
 0xff0   :  { %5871 = vtanh.f32 %v6708_v30 }
 0xff2   :  { %v5870_v39 = vpop.eup %5869 }
 0xff3   :  { %2855 = vrot.lane.b32.xlu1 %v5870_v39, %s6051_s8 }
 0xffa   :  { %v5872_v31 = vpop.eup %5871 }
 0xffb   :  { %3025 = vrot.lane.b32.xlu0 %v5872_v31, %s6051_s8 }
0x1053   :  { %v2686_v14 = vpop.permute.xlu0 %2685 }
0x1054   :  { %v2688_v6 = vmul.f32 %v5858_v57, %v2686_v14 }
0x1056   :  { %3045 = vrot.lane.b32.xlu1 %v2688_v6, %s6052_s22 }
0x1065   :  { %v2856_v13 = vpop.permute.xlu1 %2855 }
0x1066   :  { %v2858_v35 = vmul.f32 %v5864_v5, %v2856_v13 }
0x1068   :  { %3145 = vrot.lane.b32.xlu0 %v2858_v35, %s6052_s22 }
0x106d   :  { %v3026_v9 = vpop.permute.xlu0 %3025 }
0x106e   :  { %v3028_v36 = vmul.f32 %v5866_v47, %v3026_v9 }
0x1070   :  { %3315 = vrot.lane.b32.xlu1 %v3028_v36, %s6052_s22 }
0x10c8   :  { %v3046_v37 = vpop.permute.xlu1 %3045 }
0x10c9   :  { %5277 = vmatmul.mubr.msk.f32.vlgmr.msra.gmra.mrb[36].mxu0 %vm98_vm1, %v3046_v37 }
0x10ca   :  { %5653 = vmatpush3.bf16.msra.mxu0 %v6276_v42  ;;  %5298 = vmatprep.mubr.msk.f32.mxu0 %vm6049_vm0, %v6050_v1 }
0x10cb   :  { %5654 = vmatprep.subr.bf16.mxu0 %v6048_v0 }
0x10ce   :  { %5656 = vmatpush3.bf16.msra.mxu0 %v6303_v50 }
0x10cf   :  { %5663 = vmatprep.subr.bf16.mxu0 %v6048_v0 }
0x10d1   :  { %5299 = vmatmul.mubr.msk.f32.vlgmr.msra.gmra.mrb[38].mxu0 %vm98_vm1, %v3046_v37 }
0x10d2   :  { %5665 = vmatpush3.bf16.msra.mxu0 %v6339_v62  ;;  %5320 = vmatprep.mubr.msk.f32.mxu0 %vm6049_vm0, %v6050_v1 }
0x10d3   :  { %5666 = vmatprep.subr.bf16.mxu0 %v6048_v0 }
0x10d6   :  { %5668 = vmatpush3.bf16.msra.mxu0 %v6354_v4 }
0x10d7   :  { %5675 = vmatprep.subr.bf16.mxu0 %v6048_v0 }
0x10da   :  { %v3146_v2 = vpop.permute.xlu0 %3145 }
0x10db   :  { %5288 = vmatmul.mubr.msk.f32.vlgmr.msra.gmra.mrb[32].mxu1 %vm98_vm1, %v3146_v2  ;;  %5321 = vmatmul.mubr.msk.f32.vlgmr.msra.gmra.mrb[40].mxu0 %vm98_vm1, %v3146_v2 }
0x10dc   :  { %5659 = vmatpush3.bf16.msra.mxu1 %v6312_v54  ;;  %5309 = vmatprep.mubr.msk.f32.mxu1 %vm6049_vm0, %v6050_v1 }
0x10dd   :  { %5660 = vmatprep.subr.bf16.mxu1 %v6048_v0  ;;  %5677 = vmatpush3.bf16.msra.mxu0 %v6265_v38 }
0x10de   :  { %5678 = vmatprep.subr.bf16.mxu0 %v6048_v0  ;;  %5342 = vmatprep.mubr.msk.f32.mxu0 %vm6049_vm0, %v6050_v1 }
0x10e0   :  { %5662 = vmatpush3.bf16.msra.mxu1 %v6331_v61 }
0x10e1   :  { %5669 = vmatprep.subr.bf16.mxu1 %v6048_v0  ;;  %5680 = vmatpush3.bf16.msra.mxu0 %v6290_v46 }
0x10e2   :  { %v3316_v40 = vpop.permute.xlu1 %3315  ;;  %5687 = vmatprep.subr.bf16.mxu0 %v6048_v0 }
0x10e3   :  { %5310 = vmatmul.mubr.msk.f32.vlgmr.msra.gmra.mrb[34].mxu1 %vm98_vm1, %v3316_v40 }
0x10e4   :  { %5671 = vmatpush3.bf16.msra.mxu1 %v6207_v8  ;;  %5331 = vmatprep.mubr.msk.f32.mxu1 %vm6049_vm0, %v6050_v1 }
0x10e5   :  { %5672 = vmatprep.subr.bf16.mxu1 %v6048_v0 }
0x10e8   :  { %5674 = vmatpush3.bf16.msra.mxu1 %v6220_v12  ;;  %v6757_v12 = vld [vmem:[%s6920_s6] ss:$0 sm:$0xff] }
0x10e9   :  { %5681 = vmatprep.subr.bf16.mxu1 %v6048_v0 }
0x119c   :  { %v3115_v41 = vpop.f32.mrb[36].mxu0 }
0x119d   :  { %v3119_v15 = vadd.f32 %v3115_v41, %v266_v7  ;;  %v5278_v43 = vpop.f32.mrb[37].mxu0 }
0x119f   :  { %5873 = vtanh.f32 %v3119_v15  ;;  %v4651_v59 = vmul.f32 -1.442695, %v3119_v15 }
0x11a4   :  { %v3285_v44 = vpop.f32.mrb[38].mxu0 }
0x11a5   :  { %v5300_v11 = vpop.f32.mrb[39].mxu0 }
0x11a9   :  { %v5874_v45 = vpop.eup %5873 }
0x11aa   :  { %3129 = vrot.lane.b32.xlu0 %v5874_v45, %s6051_s8 }
0x11ae   :  { %v3215_v8 = vpop.f32.mrb[32].mxu1  ;;  %v3455_v48 = vpop.f32.mrb[40].mxu0 }
0x11af   :  { %v3286_v49 = vadd.f32 %v3285_v44, %v3215_v8  ;;  %v5289_v51 = vpop.f32.mrb[33].mxu1  ;;  %v5322_v53 = vpop.f32.mrb[41].mxu0 }
0x11b1   :  { %v3289_v19 = vadd.f32 %v6757_v12, %v3286_v49 }
0x11b3   :  { %5875 = vtanh.f32 %v3289_v19  ;;  %v4654_v3 = vmul.f32 -1.442695, %v3289_v19 }
0x11b6   :  { %v3385_v55 = vpop.f32.mrb[34].mxu1 }
0x11b7   :  { %v3456_v28 = vadd.f32 %v3455_v48, %v3385_v55  ;;  %v5311_v34 = vpop.f32.mrb[35].mxu1 }
0x11b9   :  { %v3459_v57 = vadd.f32 %v6496_v10, %v3456_v28 }
0x11bb   :  { %5877 = vtanh.f32 %v3459_v57  ;;  %v4657_v5 = vmul.f32 -1.442695, %v3459_v57 }
0x11bc   :  { %5879 = vpow2.f32 %v4651_v59 }
0x11bd   :  { %v5876_v32 = vpop.eup %5875 }
0x11be   :  { %3299 = vrot.lane.b32.xlu1 %v5876_v32, %s6051_s8 }
0x11c5   :  { %v5878_v58 = vpop.eup %5877 }
0x11c6   :  { %3469 = vrot.lane.b32.xlu0 %v5878_v58, %s6051_s8  ;;  %v5880_v60 = vpop.eup %5879 }
0x11c7   :  { %v3123_v63 = vadd.f32 1.0, %v5880_v60 }
0x11c9   :  { %5881 = vrcp.f32 %v3123_v63 }
0x11ca   :  { %5883 = vpow2.f32 %v4654_v3 }
0x11cb   :  { %5885 = vpow2.f32 %v4657_v5 }
0x11d3   :  { %v5882_v16 = vpop.eup %5881 }
0x11d4   :  { %v5884_v10 = vpop.eup %5883  ;;  %v3127_v39 = vmul.f32 %v5882_v16, %v6699_v22 }
0x11d5   :  { %v3293_v20 = vadd.f32 1.0, %v5884_v10  ;;  %v5886_v33 = vpop.eup %5885 }
0x11d6   :  { %v3463_v52 = vadd.f32 1.0, %v5886_v33 }
0x11d7   :  { %5887 = vrcp.f32 %v3293_v20 }
0x11d8   :  { %5889 = vrcp.f32 %v3463_v52 }
0x11e1   :  { %v5888_v21 = vpop.eup %5887 }
0x11e2   :  { %v5890_v24 = vpop.eup %5889  ;;  %v3297_v13 = vmul.f32 %v5888_v21, %v6704_v25 }
0x11e3   :  { %v3467_v36 = vmul.f32 %v5890_v24, %v6708_v30 }
0x121c   :  { %v3130_v17 = vpop.permute.xlu0 %3129 }
0x121d   :  { %v3132_v47 = vmul.f32 %v5882_v16, %v3130_v17 }
0x121f   :  { %3134 = vrot.lane.b32.xlu1 %v3132_v47, %s6051_s8 }
0x1230   :  { %v3300_v56 = vpop.permute.xlu1 %3299 }
0x1231   :  { %v3302_v23 = vmul.f32 %v5888_v21, %v3300_v56 }
0x1233   :  { %3304 = vrot.lane.b32.xlu0 %v3302_v23, %s6051_s8 }
0x1238   :  { %v3470_v26 = vpop.permute.xlu0 %3469 }
0x1239   :  { %v3472_v29 = vmul.f32 %v5890_v24, %v3470_v26 }
0x123b   :  { %3474 = vrot.lane.b32.xlu1 %v3472_v29, %s6051_s8 }
0x1291   :  { %v3135_v31 = vpop.permute.xlu1 %3134 }
0x1292   :  { %v6767_v14 = vadd.f32 %v3135_v31, %v3127_v39 }
0x1294   :  { %5891 = vtanh.f32 %v6767_v14 }
0x129e   :  { %v5892_v6 = vpop.eup %5891 }
0x129f   :  { %3140 = vrot.lane.b32.xlu0 %v5892_v6, %s6051_s8 }
0x12a5   :  { %v3305_v35 = vpop.permute.xlu0 %3304 }
0x12a6   :  { %v6772_v9 = vadd.f32 %v3305_v35, %v3297_v13 }
0x12a8   :  { %5893 = vtanh.f32 %v6772_v9 }
0x12ad   :  { %v3475_v37 = vpop.permute.xlu1 %3474 }
0x12ae   :  { %v6776_v2 = vadd.f32 %v3475_v37, %v3467_v36 }
0x12b0   :  { %5895 = vtanh.f32 %v6776_v2 }
0x12b2   :  { %v5894_v22 = vpop.eup %5893 }
0x12b3   :  { %3310 = vrot.lane.b32.xlu1 %v5894_v22, %s6051_s8 }
0x12ba   :  { %v5896_v40 = vpop.eup %5895 }
0x12bb   :  { %3480 = vrot.lane.b32.xlu0 %v5896_v40, %s6051_s8 }
0x1311   :  { %v3141_v7 = vpop.permute.xlu0 %3140 }
0x1312   :  { %v3143_v25 = vmul.f32 %v5882_v16, %v3141_v7 }
0x1314   :  { %3500 = vrot.lane.b32.xlu1 %v3143_v25, %s6052_s22 }
0x1325   :  { %v3311_v41 = vpop.permute.xlu1 %3310 }
0x1326   :  { %v3313_v15 = vmul.f32 %v5888_v21, %v3311_v41 }
0x1328   :  { %3600 = vrot.lane.b32.xlu0 %v3313_v15, %s6052_s22 }
0x132d   :  { %v3481_v30 = vpop.permute.xlu0 %3480 }
0x132e   :  { %v3483_v43 = vmul.f32 %v5890_v24, %v3481_v30 }
0x1330   :  { %3770 = vrot.lane.b32.xlu1 %v3483_v43, %s6052_s22 }
0x1386   :  { %v3501_v44 = vpop.permute.xlu1 %3500 }
0x1387   :  { %5332 = vmatmul.mubr.msk.f32.vlgmr.msra.gmra.mrb[36].mxu1 %vm98_vm1, %v3501_v44 }
0x1388   :  { %5683 = vmatpush3.bf16.msra.mxu1 %v6276_v42  ;;  %5353 = vmatprep.mubr.msk.f32.mxu1 %vm6049_vm0, %v6050_v1 }
0x1389   :  { %5684 = vmatprep.subr.bf16.mxu1 %v6048_v0 }
0x138c   :  { %5686 = vmatpush3.bf16.msra.mxu1 %v6303_v50 }
0x138d   :  { %5693 = vmatprep.subr.bf16.mxu1 %v6048_v0 }
0x138f   :  { %5354 = vmatmul.mubr.msk.f32.vlgmr.msra.gmra.mrb[38].mxu1 %vm98_vm1, %v3501_v44 }
0x1390   :  { %5695 = vmatpush3.bf16.msra.mxu1 %v6339_v62  ;;  %5375 = vmatprep.mubr.msk.f32.mxu1 %vm6049_vm0, %v6050_v1 }
0x1391   :  { %5696 = vmatprep.subr.bf16.mxu1 %v6048_v0 }
0x1394   :  { %5698 = vmatpush3.bf16.msra.mxu1 %v6354_v4 }
0x1395   :  { %5705 = vmatprep.subr.bf16.mxu1 %v6048_v0 }
0x139a   :  { %v3601_v11 = vpop.permute.xlu0 %3600 }
0x139b   :  { %5343 = vmatmul.mubr.msk.f32.vlgmr.msra.gmra.mrb[42].mxu0 %vm98_vm1, %v3601_v11  ;;  %5376 = vmatmul.mubr.msk.f32.vlgmr.msra.gmra.mrb[40].mxu1 %vm98_vm1, %v3601_v11 }
0x139c   :  { %5689 = vmatpush3.bf16.msra.mxu0 %v6312_v54  ;;  %5364 = vmatprep.mubr.msk.f32.mxu0 %vm6049_vm0, %v6050_v1 }
0x139d   :  { %5690 = vmatprep.subr.bf16.mxu0 %v6048_v0  ;;  %5707 = vmatpush3.bf16.msra.mxu1 %v6276_v42  ;;  %v271_v42 = vadd.f32 %v6686_v27, %v6394_v18  ;;  %v6826_v27 = vld [vmem:[%s6923_s9] ss:$0 sm:$0xff]  ;;  %s6053_s9 = smov 96  }
0x139e   :  { %5708 = vmatprep.subr.bf16.mxu1 %v6048_v0  ;;  %5397 = vmatprep.mubr.msk.f32.mxu1 %vm6049_vm0, %v6050_v1 }
0x13a0   :  { %5692 = vmatpush3.bf16.msra.mxu0 %v6331_v61 }
0x13a1   :  { %5710 = vmatpush3.bf16.msra.mxu1 %v6303_v50  ;;  %5699 = vmatprep.subr.bf16.mxu0 %v6048_v0 }
0x13a2   :  { %v3771_v45 = vpop.permute.xlu1 %3770  ;;  %5717 = vmatprep.subr.bf16.mxu1 %v6048_v0 }
0x13a3   :  { %5365 = vmatmul.mubr.msk.f32.vlgmr.msra.gmra.mrb[44].mxu0 %vm98_vm1, %v3771_v45 }
0x13a4   :  { %5701 = vmatpush3.bf16.msra.mxu0 %v6265_v38  ;;  %5386 = vmatprep.mubr.msk.f32.mxu0 %vm6049_vm0, %v6050_v1 }
0x13a5   :  { %5702 = vmatprep.subr.bf16.mxu0 %v6048_v0 }
0x13a8   :  { %5704 = vmatpush3.bf16.msra.mxu0 %v6290_v46 }
0x13a9   :  { %5711 = vmatprep.subr.bf16.mxu0 %v6048_v0 }
0x145a   :  { %v3570_v50 = vpop.f32.mrb[36].mxu1 }
0x145b   :  { %v3574_v8 = vadd.f32 %v3570_v50, %v271_v42  ;;  %v5333_v48 = vpop.f32.mrb[37].mxu1 }
0x145d   :  { %5897 = vtanh.f32 %v3574_v8  ;;  %v4659_v63 = vmul.f32 -1.442695, %v3574_v8 }
0x1462   :  { %v3740_v49 = vpop.f32.mrb[38].mxu1 }
0x1463   :  { %v5355_v51 = vpop.f32.mrb[39].mxu1 }
0x1467   :  { %v5898_v53 = vpop.eup %5897 }
0x1468   :  { %3584 = vrot.lane.b32.xlu0 %v5898_v53, %s6051_s8 }
0x146e   :  { %v3670_v38 = vpop.f32.mrb[42].mxu0  ;;  %v3910_v19 = vpop.f32.mrb[40].mxu1 }
0x146f   :  { %v3741_v55 = vadd.f32 %v3740_v49, %v3670_v38  ;;  %v5344_v28 = vpop.f32.mrb[43].mxu0  ;;  %v5377_v34 = vpop.f32.mrb[41].mxu1 }
0x1471   :  { %v3744_v46 = vadd.f32 %v6757_v12, %v3741_v55 }
0x1473   :  { %5899 = vtanh.f32 %v3744_v46  ;;  %v4662_v16 = vmul.f32 -1.442695, %v3744_v46 }
0x1476   :  { %v3840_v57 = vpop.f32.mrb[44].mxu0 }
0x1477   :  { %v3911_v32 = vadd.f32 %v3910_v19, %v3840_v57  ;;  %v5366_v18 = vpop.f32.mrb[45].mxu0 }
0x1479   :  { %v3914_v58 = vadd.f32 %v6826_v27, %v3911_v32 }
0x147b   :  { %5901 = vtanh.f32 %v3914_v58  ;;  %v4665_v17 = vmul.f32 -1.442695, %v3914_v58 }
0x147c   :  { %5903 = vpow2.f32 %v4659_v63 }
0x147d   :  { %v5900_v59 = vpop.eup %5899 }
0x147e   :  { %3754 = vrot.lane.b32.xlu1 %v5900_v59, %s6051_s8 }
0x1485   :  { %v5902_v60 = vpop.eup %5901 }
0x1486   :  { %3924 = vrot.lane.b32.xlu0 %v5902_v60, %s6051_s8  ;;  %v5904_v3 = vpop.eup %5903 }
0x1487   :  { %v3578_v5 = vadd.f32 1.0, %v5904_v3 }
0x1489   :  { %5905 = vrcp.f32 %v3578_v5 }
0x148a   :  { %5907 = vpow2.f32 %v4662_v16 }
0x148b   :  { %5909 = vpow2.f32 %v4665_v17 }
0x1493   :  { %v5906_v47 = vpop.eup %5905 }
0x1494   :  { %v5908_v33 = vpop.eup %5907  ;;  %v3582_v6 = vmul.f32 %v5906_v47, %v6767_v14 }
0x1495   :  { %v3748_v52 = vadd.f32 1.0, %v5908_v33  ;;  %v5910_v21 = vpop.eup %5909 }
0x1496   :  { %v3918_v56 = vadd.f32 1.0, %v5910_v21 }
0x1497   :  { %5911 = vrcp.f32 %v3748_v52 }
0x1498   :  { %5913 = vrcp.f32 %v3918_v56 }
0x14a1   :  { %v5912_v23 = vpop.eup %5911 }
0x14a2   :  { %v5914_v29 = vpop.eup %5913  ;;  %v3752_v37 = vmul.f32 %v5912_v23, %v6772_v9 }
0x14a3   :  { %v3922_v7 = vmul.f32 %v5914_v29, %v6776_v2 }
0x14da   :  { %v3585_v10 = vpop.permute.xlu0 %3584 }
0x14db   :  { %v3587_v20 = vmul.f32 %v5906_v47, %v3585_v10 }
0x14dd   :  { %3589 = vrot.lane.b32.xlu1 %v3587_v20, %s6051_s8 }
0x14f0   :  { %v3755_v24 = vpop.permute.xlu1 %3754 }
0x14f1   :  { %v3757_v26 = vmul.f32 %v5912_v23, %v3755_v24 }
0x14f3   :  { %3759 = vrot.lane.b32.xlu0 %v3757_v26, %s6051_s8 }
0x14f8   :  { %v3925_v39 = vpop.permute.xlu0 %3924 }
0x14f9   :  { %v3927_v31 = vmul.f32 %v5914_v29, %v3925_v39 }
0x14fb   :  { %3929 = vrot.lane.b32.xlu1 %v3927_v31, %s6051_s8 }
0x154f   :  { %v3590_v13 = vpop.permute.xlu1 %3589 }
0x1550   :  { %v6835_v35 = vadd.f32 %v3590_v13, %v3582_v6 }
0x1552   :  { %5915 = vtanh.f32 %v6835_v35 }
0x155c   :  { %v5916_v36 = vpop.eup %5915 }
0x155d   :  { %3595 = vrot.lane.b32.xlu0 %v5916_v36, %s6051_s8 }
0x1565   :  { %v3760_v22 = vpop.permute.xlu0 %3759 }
0x1566   :  { %v6840_v40 = vadd.f32 %v3760_v22, %v3752_v37 }
0x1568   :  { %5917 = vtanh.f32 %v6840_v40 }
0x156d   :  { %v3930_v25 = vpop.permute.xlu1 %3929 }
0x156e   :  { %v6844_v41 = vadd.f32 %v3930_v25, %v3922_v7 }
0x1570   :  { %5919 = vtanh.f32 %v6844_v41 }
0x1572   :  { %v5918_v14 = vpop.eup %5917 }
0x1573   :  { %3765 = vrot.lane.b32.xlu1 %v5918_v14, %s6051_s8 }
0x157a   :  { %v5920_v15 = vpop.eup %5919 }
0x157b   :  { %3935 = vrot.lane.b32.xlu0 %v5920_v15, %s6051_s8 }
0x15cf   :  { %v3596_v30 = vpop.permute.xlu0 %3595 }
0x15d0   :  { %v3598_v9 = vmul.f32 %v5906_v47, %v3596_v30 }
0x15d2   :  { %3953 = vrot.lane.b32.xlu1 %v3598_v9, %s6052_s22 }
0x15e5   :  { %v3766_v43 = vpop.permute.xlu1 %3765 }
0x15e6   :  { %v3768_v44 = vmul.f32 %v5912_v23, %v3766_v43 }
0x15e8   :  { %3963 = vrot.lane.b32.xlu0 %v3768_v44, %s6052_s22 }
0x15ed   :  { %v3936_v2 = vpop.permute.xlu0 %3935 }
0x15ee   :  { %v3938_v11 = vmul.f32 %v5914_v29, %v3936_v2 }
0x15f0   :  { %3973 = vrot.lane.b32.xlu1 %v3938_v11, %s6052_s22 }
0x1644   :  { %v3954_v45 = vpop.permute.xlu1 %3953 }
0x1645   :  { %3956 = vst.msk [vmem:[#allocation3] sm:$0xff] %vm98_vm1, %v3954_v45  ;;  %5398 = vmatmul.mubr.msk.f32.vlgmr.msra.gmra.mrb[42].mxu1 %vm98_vm1, %v3954_v45  ;;  %v4496_v45 = vld [vmem:[#allocation13] sm:$0xff] }
0x1646   :  { %5719 = vmatpush3.bf16.msra.mxu1 %v6339_v62  ;;  %5419 = vmatprep.mubr.msk.f32.mxu1 %vm6049_vm0, %v6050_v1 }
0x1647   :  { %5720 = vmatprep.subr.bf16.mxu1 %v6048_v0 }
0x164a   :  { %5722 = vmatpush3.bf16.msra.mxu1 %v6354_v4 }
0x164b   :  { %5729 = vmatprep.subr.bf16.mxu1 %v6048_v0 }
0x165a   :  { %v3964_v42 = vpop.permute.xlu0 %3963 }
0x165b   :  { %3966 = vst.msk [vmem:[#allocation5] sm:$0xff] %vm98_vm1, %v3964_v42  ;;  %5387 = vmatmul.mubr.msk.f32.vlgmr.msra.gmra.mrb[46].mxu0 %vm98_vm1, %v3964_v42  ;;  %5420 = vmatmul.mubr.msk.f32.vlgmr.msra.gmra.mrb[44].mxu1 %vm98_vm1, %v3964_v42  ;;  %v4498_v42 = vld [vmem:[#allocation13 + $0x10] sm:$0xff] }
0x165c   :  { %5713 = vmatpush3.bf16.msra.mxu0 %v6312_v54  ;;  %5408 = vmatprep.mubr.msk.f32.mxu0 %vm6049_vm0, %v6050_v1 }
0x165d   :  { %5714 = vmatprep.subr.bf16.mxu0 %v6048_v0  ;;  %5731 = vmatpush3.bf16.msra.mxu1 %v6339_v62 }
0x165e   :  { %5732 = vmatprep.subr.bf16.mxu1 %v6048_v0  ;;  %5441 = vmatprep.mubr.msk.f32.mxu1 %vm6049_vm0, %v6050_v1 }
0x1660   :  { %5716 = vmatpush3.bf16.msra.mxu0 %v6331_v61 }
0x1661   :  { %5734 = vmatpush3.bf16.msra.mxu1 %v6354_v4  ;;  %5723 = vmatprep.subr.bf16.mxu0 %v6048_v0 }
0x1662   :  { %v3974_v50 = vpop.permute.xlu1 %3973 }
0x1663   :  { %3976 = vst.msk [vmem:[#allocation7] sm:$0xff] %vm98_vm1, %v3974_v50  ;;  %5409 = vmatmul.mubr.msk.f32.vlgmr.msra.gmra.mrb[48].mxu0 %vm98_vm1, %v3974_v50 }
0x1664   :  { %5725 = vmatpush3.bf16.msra.mxu0 %v6312_v54  ;;  %5430 = vmatprep.mubr.msk.f32.mxu0 %vm6049_vm0, %v6050_v1 }
0x1665   :  { %5726 = vmatprep.subr.bf16.mxu0 %v6048_v0 }
0x1668   :  { %5728 = vmatpush3.bf16.msra.mxu0 %v6331_v61 }
0x1669   :  { %5735 = vmatprep.subr.bf16.mxu0 %v6048_v0 }
0x1718   :  { %v4125_v62 = vpop.f32.mrb[42].mxu1 }
0x1719   :  { %v5399_v4 = vpop.f32.mrb[43].mxu1 }
0x172e   :  { %v4053_v8 = vpop.f32.mrb[46].mxu0  ;;  %v4292_v48 = vpop.f32.mrb[44].mxu1 }
0x172f   :  { %v4126_v49 = vadd.f32 %v4125_v62, %v4053_v8  ;;  %v5388_v51 = vpop.f32.mrb[47].mxu0  ;;  %v5421_v53 = vpop.f32.mrb[45].mxu1  ;;  %v4499_v62 = vld [vmem:[#allocation13 + $0x18] sm:$0xff] }
0x1730   :  { %v5739_v4 = vpack.c.bf16 %v4499_v62, %v4498_v42 }
0x1731   :  { %v4129_v38 = vadd.f32 %v6757_v12, %v4126_v49 }
0x1733   :  { %5921 = vtanh.f32 %v4129_v38  ;;  %v4668_v46 = vmul.f32 -1.442695, %v4129_v38 }
0x1736   :  { %v4222_v54 = vpop.f32.mrb[48].mxu0 }
0x1737   :  { %v4293_v19 = vadd.f32 %v4292_v48, %v4222_v54  ;;  %v5410_v55 = vpop.f32.mrb[49].mxu0 }
0x1739   :  { %v4296_v28 = vadd.f32 %v6826_v27, %v4293_v19 }
0x173b   :  { %5923 = vtanh.f32 %v4296_v28  ;;  %v4671_v57 = vmul.f32 -1.442695, %v4296_v28 }
0x173c   :  { %5925 = vpow2.f32 %v4668_v46 }
0x173d   :  { %v5922_v34 = vpop.eup %5921  ;;  %5927 = vpow2.f32 %v4671_v57 }
0x173e   :  { %4139 = vrot.lane.b32.xlu0 %v5922_v34, %s6051_s8 }
0x1745   :  { %v5924_v61 = vpop.eup %5923 }
0x1746   :  { %4306 = vrot.lane.b32.xlu1 %v5924_v61, %s6051_s8  ;;  %v5926_v32 = vpop.eup %5925 }
0x1747   :  { %v4133_v18 = vadd.f32 1.0, %v5926_v32  ;;  %v5928_v12 = vpop.eup %5927 }
0x1748   :  { %v4300_v58 = vadd.f32 1.0, %v5928_v12 }
0x1749   :  { %5929 = vrcp.f32 %v4133_v18 }
0x174a   :  { %5931 = vrcp.f32 %v4300_v58 }
0x1753   :  { %v5930_v59 = vpop.eup %5929 }
0x1754   :  { %v5932_v3 = vpop.eup %5931  ;;  %v4137_v17 = vmul.f32 %v5930_v59, %v6840_v40 }
0x1755   :  { %v4304_v20 = vmul.f32 %v5932_v3, %v6844_v41 }
0x17b0   :  { %v4140_v60 = vpop.permute.xlu0 %4139 }
0x17b1   :  { %v4142_v63 = vmul.f32 %v5930_v59, %v4140_v60 }
0x17b3   :  { %4144 = vrot.lane.b32.xlu0 %v4142_v63, %s6051_s8 }
0x17b8   :  { %v4307_v5 = vpop.permute.xlu1 %4306 }
0x17b9   :  { %v4309_v16 = vmul.f32 %v5932_v3, %v4307_v5 }
0x17bb   :  { %4311 = vrot.lane.b32.xlu1 %v4309_v16, %s6051_s8 }
0x1825   :  { %v4145_v47 = vpop.permute.xlu0 %4144 }
0x1826   :  { %v4147_v10 = vadd.f32 %v4145_v47, %v4137_v17 }
0x1828   :  { %5933 = vtanh.f32 %v4147_v10 }
0x182d   :  { %v4312_v33 = vpop.permute.xlu1 %4311 }
0x182e   :  { %v4314_v52 = vadd.f32 %v4312_v33, %v4304_v20 }
0x1830   :  { %5935 = vtanh.f32 %v4314_v52 }
0x1832   :  { %v5934_v21 = vpop.eup %5933 }
0x1833   :  { %4150 = vrot.lane.b32.xlu0 %v5934_v21, %s6051_s8 }
0x183a   :  { %v5936_v56 = vpop.eup %5935 }
0x183b   :  { %4317 = vrot.lane.b32.xlu1 %v5936_v56, %s6051_s8 }
0x18a5   :  { %v4151_v23 = vpop.permute.xlu0 %4150 }
0x18a6   :  { %v4153_v24 = vmul.f32 %v5930_v59, %v4151_v23 }
0x18a8   :  { %4397 = vrot.lane.b32.xlu1 %v4153_v24, %s6052_s22 }
0x18ad   :  { %v4318_v26 = vpop.permute.xlu1 %4317 }
0x18ae   :  { %v4320_v29 = vmul.f32 %v5932_v3, %v4318_v26 }
0x18b0   :  { %4322 = vrot.lane.b32.xlu0 %v4320_v29, %s6052_s22 }
0x191a   :  { %v4398_v39 = vpop.permute.xlu1 %4397 }
0x191b   :  { %5442 = vmatmul.mubr.msk.f32.vlgmr.msra.gmra.mrb[46].mxu1 %vm98_vm1, %v4398_v39 }
0x1922   :  { %v4323_v31 = vpop.permute.xlu0 %4322 }
0x1923   :  { %5431 = vmatmul.mubr.msk.f32.vlgmr.msra.gmra.mrb[50].mxu0 %vm98_vm1, %v4323_v31 }
0x1924   :  { %5452 = vmatprep.mubr.msk.f32.mxu0 %vm6049_vm0, %v6050_v1 }
0x19ee   :  { %v4467_v6 = vpop.f32.mrb[46].mxu1 }
0x19ef   :  { %v5443_v13 = vpop.f32.mrb[47].mxu1 }
0x19f6   :  { %v4392_v36 = vpop.f32.mrb[50].mxu0 }
0x19f7   :  { %v4468_v37 = vadd.f32 %v4467_v6, %v4392_v36  ;;  %v5432_v22 = vpop.f32.mrb[51].mxu0 }
0x19f9   :  { %v4471_v7 = vadd.f32 %v6826_v27, %v4468_v37  ;;  %v4497_v27 = vld [vmem:[#allocation13 + $0x8] sm:$0xff] }
0x19fa   :  { %v5736_v50 = vpack.c.bf16 %v4497_v27, %v4496_v45 }
0x19fb   :  { %5937 = vtanh.f32 %v4471_v7  ;;  %v4674_v14 = vmul.f32 -1.442695, %v4471_v7 }
0x19fc   :  { %5737 = vmatpush3.bf16.msra.mxu0 %v5736_v50 }
0x19fd   :  { %5939 = vpow2.f32 %v4674_v14  ;;  %5738 = vmatprep.subr.bf16.mxu0 %v6048_v0 }
0x1a00   :  { %5740 = vmatpush3.bf16.msra.mxu0 %v5739_v4 }
0x1a05   :  { %v5938_v25 = vpop.eup %5937 }
0x1a06   :  { %4481 = vrot.lane.b32.xlu0 %v5938_v25, %s6051_s8 }
0x1a07   :  { %v5940_v15 = vpop.eup %5939 }
0x1a08   :  { %v4475_v30 = vadd.f32 1.0, %v5940_v15 }
0x1a0a   :  { %5941 = vrcp.f32 %v4475_v30 }
0x1a14   :  { %v5942_v9 = vpop.eup %5941 }
0x1a15   :  { %v4479_v1 = vmul.f32 %v5942_v9, %v4314_v52 }
0x1a78   :  { %v4482_v43 = vpop.permute.xlu0 %4481 }
0x1a79   :  { %v4484_v44 = vmul.f32 %v5942_v9, %v4482_v43 }
0x1a7b   :  { %4486 = vrot.lane.b32.xlu1 %v4484_v44, %s6051_s8 }
0x1aed   :  { %v4487_v2 = vpop.permute.xlu1 %4486 }
0x1aee   :  { %v4489_v11 = vadd.f32 %v4487_v2, %v4479_v1 }
0x1af0   :  { %5943 = vtanh.f32 %v4489_v11 }
0x1afa   :  { %v5944_v8 = vpop.eup %5943 }
0x1afb   :  { %4492 = vrot.lane.b32.xlu0 %v5944_v8, %s6051_s8 }
0x1aff   :  { %3958 = vrot.lane.b32.xlu0 %v6835_v35, %s6053_s9  ;;  %v4675_v35 = vld [vmem:[#allocation14] ss:$0 sm:$0xff] }
0x1b03   :  { %3978 = vrot.lane.b32.xlu0 %v6844_v41, %s6053_s9 }
0x1b6d   :  { %v4493_v48 = vpop.permute.xlu0 %4492 }
0x1b6e   :  { %v4495_v49 = vmul.f32 %v5942_v9, %v4493_v48 }
0x1b70   :  { %4508 = vrot.lane.b32.xlu1 %v4495_v49, %s6052_s22 }
0x1b71   :  { %v3959_v51 = vpop.permute.xlu0 %3958 }
0x1b72   :  { %3961 = vst.msk [vmem:[#allocation4] sm:$0xff] %vm98_vm1, %v3959_v51 }
0x1b74   :  { %3968 = vrot.lane.b32.xlu1 %v6840_v40, %s6053_s9 }
0x1b75   :  { %v3979_v53 = vpop.permute.xlu0 %3978 }
0x1b76   :  { %3981 = vst.msk [vmem:[#allocation8] sm:$0xff] %vm98_vm1, %v3979_v53 }
0x1be2   :  { %v4509_v0 = vpop.permute.xlu1 %4508 }
0x1be3   :  { %5453 = vmatmul.mubr.msk.f32.vlgmr.msra.gmra.mrb[52].mxu0 %vm98_vm1, %v4509_v0 }
0x1be6   :  { %v3969_v38 = vpop.permute.xlu1 %3968 }
0x1be7   :  { %3971 = vst.msk [vmem:[#allocation6] sm:$0xff] %vm98_vm1, %v3969_v38 }
0x1cb6   :  { %v4578_v41 = vpop.f32.mrb[52].mxu0 }
0x1cb7   :  { %v4579_v54 = vadd.f32 %v4675_v35, %v4578_v41  ;;  %v5454_v19 = vpop.f32.mrb[53].mxu0 }
0x1cb9   :  { %v4582_v55 = vmax.f32 %v4579_v54, 0.0 }
0x1cbb   :  { %4583 = vst [vmem:[%s6926_s12] sm:$0xff] %v4582_v55 }
0x1cbc   :  { %4588 = vsyncpa [#allocation10], 1 }
0x1cbd   :  { %4589 = vsyncpa [#allocation12], 1 }
0x1cbe   :  { %4590 = vsyncpa [#allocation15], 1 }

</bundles_post_ra>
